<compile_context>
chip_gen: v5e
topology: v5e:2x2
jax: 0.10.0
libtpu: 0.0.40
codegen_flags: <defaults>
</compile_context>

<pallas_src>
import functools

import jax
import jax.numpy as jnp
from jax.experimental import pallas as pl
from jax.experimental.pallas import tpu as pltpu

EPS = 1e-5


def _round_up(v, m):
    return (v + m - 1) // m * m


def _write_pad_slab(pad_ref, xb, *, H, W, Wp, Cp):
    """Write the reflect-padded, kx-folded image into the flat slab.

    pad_ref: ((H+2)*Wp, 3*Cp) bf16.  Flat row y'*Wp + x', lane block kx holds
    padded[y', x'+kx] (ReflectionPad2d(1) of the body), zeros for the junk
    columns x' >= W+2-kx.  xb: (H, W, Cp) bf16 body.
    """
    left = xb[:, 1:2, :]            # reflect: padded col 0   = body col 1
    right = xb[:, W - 2:W - 1, :]   # reflect: padded col W+1 = body col W-2

    def z(w):
        return jnp.zeros((H, w, Cp), jnp.bfloat16)

    pieces = (
        [left, xb, right] + ([z(Wp - W - 2)] if Wp > W + 2 else []),  # kx = 0
        [xb, right, z(Wp - W - 1)],                                   # kx = 1
        [xb[:, 1:, :], right, z(Wp - W)],                             # kx = 2
    )
    for kx, p in enumerate(pieces):
        # Build the kx-shifted padded rows in-register; the (H, Wp) collapse is
        # a free view because Wp % 16 == 0 (bf16 sublane tile).
        shifted = jnp.concatenate(p, axis=1).reshape(H * Wp, Cp)
        lo, hi = kx * Cp, (kx + 1) * Cp
        # Aligned, unmasked stores: sublane offsets are multiples of Wp (%16==0),
        # lane offsets are multiples of Cp (%128==0), full lane tiles.
        pad_ref[Wp:(H + 1) * Wp, lo:hi] = shifted                       # body rows
        pad_ref[0:Wp, lo:hi] = shifted[Wp:2 * Wp, :]                    # top = row 1
        pad_ref[(H + 1) * Wp:(H + 2) * Wp, lo:hi] = (                   # bottom = row H-2
            shifted[(H - 2) * Wp:(H - 1) * Wp, :])


def _conv3x3(pad_ref, w_ref, acc_ref, *, H, Wp):
    """3x3 conv as 3 MXU matmuls (K = 3*Cp, one per ky), aligned LHS slices.

    Valid output pixels live at flat rows y*Wp + x with x < W; the remaining
    rows contract against finite junk and are sliced off by the caller.
    """
    nrows = H * Wp
    acc_ref[...] = jnp.dot(pad_ref[0:nrows, :], w_ref[0],
                           preferred_element_type=jnp.float32)
    acc_ref[...] += jnp.dot(pad_ref[Wp:Wp + nrows, :], w_ref[1],
                            preferred_element_type=jnp.float32)
    acc_ref[...] += jnp.dot(pad_ref[2 * Wp:2 * Wp + nrows, :], w_ref[2],
                            preferred_element_type=jnp.float32)


def _instance_norm(a, inv_hw):
    """InstanceNorm (affine=False, biased var), two-pass centered variance."""
    mean = jnp.sum(a, axis=(0, 1), keepdims=True) * inv_hw
    d = a - mean
    var = jnp.sum(d * d, axis=(0, 1), keepdims=True) * inv_hw
    return d * jax.lax.rsqrt(var + EPS)


def resnet_block_kernel(x_ref, w1_ref, w2_ref, o_ref, pad_ref, acc_ref,
                        *, H, W, Wp, Cp):
    inv_hw = jnp.float32(1.0 / (H * W))

    # --- conv1 -> InstanceNorm -> ReLU -------------------------------------
    _write_pad_slab(pad_ref, x_ref[0].astype(jnp.bfloat16), H=H, W=W, Wp=Wp, Cp=Cp)
    _conv3x3(pad_ref, w1_ref, acc_ref, H=H, Wp=Wp)
    a1 = acc_ref[...].reshape(H, Wp, Cp)[:, :W, :]      # valid pixels only
    h = jnp.maximum(_instance_norm(a1, inv_hw), 0.0)
    # TODO(synk): use_dropout=True would insert Dropout(0.5) here; the common
    # CycleGAN instantiation uses use_dropout=False, so it is not emitted.

    # --- conv2 -> InstanceNorm -> skip connection ---------------------------
    _write_pad_slab(pad_ref, h.astype(jnp.bfloat16), H=H, W=W, Wp=Wp, Cp=Cp)
    _conv3x3(pad_ref, w2_ref, acc_ref, H=H, Wp=Wp)
    a2 = acc_ref[...].reshape(H, Wp, Cp)[:, :W, :]

    o_ref[0] = (x_ref[0].astype(jnp.float32)
                + _instance_norm(a2, inv_hw)).astype(o_ref.dtype)


def resnet_block_nhwc(x, w1, b1, w2, b2):
    """x: (N, H, W, C) NHWC.  w: (3, 3, C, C) HWIO.  b: (C,).

    The conv biases are mathematically an exact no-op under affine-free
    InstanceNorm (the per-channel mean subtraction removes them), so they are
    not plumbed into the kernel.  Do NOT reuse this kernel with affine norms
    or BatchNorm variants without re-plumbing the bias.
    """
    del b1, b2
    N, H, W, C = x.shape
    assert H >= 2 and W >= 2, "ReflectionPad2d(1) requires H, W >= 2"
    # NOTE: padding tiny C (e.g. the C=4 test config) to 128 wastes (128/C)^2 of
    # the MXU FLOPs; real small-C workloads should use a VPU path or pack batch
    # along channels.  For CycleGAN production C=256 this is moot.
    Cp = _round_up(max(C, 128), 128)      # lane-dense channel axis
    Wp = _round_up(W + 2, 16)             # bf16-sublane-aligned padded width

    if Cp != C:
        x = jnp.pad(x, ((0, 0), (0, 0), (0, 0), (0, Cp - C)))

    def prep_w(w):
        w = w.astype(jnp.bfloat16)
        if Cp != C:
            w = jnp.pad(w, ((0, 0), (0, 0), (0, Cp - C), (0, Cp - C)))
        # (3, 3, Cp, Cp) HWIO -> (3, 3*Cp, Cp): row-block kx of w_big[ky] is
        # w[ky, kx], matching lane block kx of the kx-folded LHS slab.
        return w.reshape(3, 3 * Cp, Cp)

    w1r, w2r = prep_w(w1), prep_w(w2)

    # VMEM budget: io blocks (double buffered), both weight sets, the flat pad
    # slab, the f32 accumulator, plus the in-register padded-row / f32
    # normalization temporaries that Mosaic materializes in VMEM.
    itemsize = jnp.dtype(x.dtype).itemsize
    io_blk = H * W * Cp * itemsize
    w_blk = 3 * 3 * Cp * Cp * 2
    pad_blk = (H + 2) * Wp * 3 * Cp * 2
    acc_blk = H * Wp * Cp * 4
    shift_tmp = H * Wp * Cp * 2            # one kx-shifted value at a time
    f32_tmps = 3 * H * W * Cp * 4          # h, centered diff, misc
    est = 4 * io_blk + 2 * 2 * w_blk + pad_blk + acc_blk + shift_tmp + f32_tmps + (4 << 20)

    try:  # cap below the physical VMEM of this generation (v5e/v6e: 128 MiB, v7x: 64 MiB)
        phys = int(getattr(pltpu.get_tpu_info(), "vmem_capacity_bytes"))
    except Exception:
        phys = 64 << 20
    cap = max(32 << 20, (phys * 7) // 8)
    vmem_limit = int(min(max(est, 32 << 20), cap))

    kernel = functools.partial(resnet_block_kernel, H=H, W=W, Wp=Wp, Cp=Cp)

    # TODO(synk): v7x (2 TensorCores, 64 MiB VMEM) production sizes (C=256,
    # large H*W) want a spatial row-tile grid axis with halo rows and a
    # two-pass InstanceNorm (per-channel sum/sumsq scratch over an "arbitrary"
    # axis) so both cores are used at N=1 and the working set shrinks.
    # TODO(synk): single-buffer the grid-invariant weight blocks
    # (pipeline_mode=pl.Buffered(1)) once that path is validated on the target
    # toolchain; saves one (3, 3*Cp, Cp) bf16 copy per weight set.
    out = pl.pallas_call(
        kernel,
        out_shape=jax.ShapeDtypeStruct((N, H, W, Cp), x.dtype),
        grid_spec=pltpu.PrefetchScalarGridSpec(
            num_scalar_prefetch=0,
            grid=(N,),
            in_specs=[
                pl.BlockSpec((1, H, W, Cp), lambda n: (n, 0, 0, 0)),
                pl.BlockSpec((3, 3 * Cp, Cp), lambda n: (0, 0, 0)),
                pl.BlockSpec((3, 3 * Cp, Cp), lambda n: (0, 0, 0)),
            ],
            out_specs=pl.BlockSpec((1, H, W, Cp), lambda n: (n, 0, 0, 0)),
            scratch_shapes=[
                pltpu.VMEM(((H + 2) * Wp, 3 * Cp), jnp.bfloat16),  # kx-folded pad slab
                pltpu.VMEM((H * Wp, Cp), jnp.float32),             # conv accumulator
            ],
        ),
        compiler_params=pltpu.CompilerParams(
            dimension_semantics=("parallel",),
            vmem_limit_bytes=vmem_limit,
        ),
    )(x, w1r, w2r)

    if Cp != C:
        out = out[..., :C]
    return out


def resnet_block(x_nchw, w1, b1, w2, b2):
    """PyTorch-convention entry: x (N, C, H, W), weights HWIO (3, 3, C, C).

    Prefer resnet_block_nhwc and keep activations NHWC across a stack of
    blocks — these two transposes are full HBM round trips per block.
    """
    out = resnet_block_nhwc(jnp.transpose(x_nchw, (0, 2, 3, 1)), w1, b1, w2, b2)
    return jnp.transpose(out, (0, 3, 1, 2))


def _reference_f32(x_nchw, w1, b1, w2, b2):
    """Pure-JAX f32 reference matching the PyTorch module."""
    x = jnp.transpose(x_nchw, (0, 2, 3, 1)).astype(jnp.float32)

    def pad(t):
        return jnp.pad(t, ((0, 0), (1, 1), (1, 1), (0, 0)), mode="reflect")

    def conv(t, w, b):
        y = jax.lax.conv_general_dilated(
            t, w.astype(jnp.float32), (1, 1), "VALID",
            dimension_numbers=("NHWC", "HWIO", "NHWC"),
            precision=jax.lax.Precision.HIGHEST)
        return y + b

    def inorm(t):
        m = jnp.mean(t, axis=(1, 2), keepdims=True)
        v = jnp.mean((t - m) ** 2, axis=(1, 2), keepdims=True)
        return (t - m) * jax.lax.rsqrt(v + EPS)

    h = jnp.maximum(inorm(conv(pad(x), w1, b1)), 0.0)
    h = inorm(conv(pad(h), w2, b2))
    return jnp.transpose(x + h, (0, 3, 1, 2))


if __name__ == "__main__":
    # Small shapes consistent with the module: batch=2, dim=4, spatial=16.
    N, C, H, W = 2, 4, 16, 16
    key = jax.random.PRNGKey(0)
    kx_, kw1, kb1, kw2, kb2 = jax.random.split(key, 5)

    x = jax.random.normal(kx_, (N, C, H, W), dtype=jnp.float32)
    # Conv2d(dim, dim, kernel_size=3, bias=True) x2, stored HWIO for the kernel.
    w1 = 0.1 * jax.random.normal(kw1, (3, 3, C, C), dtype=jnp.float32)
    b1 = 0.1 * jax.random.normal(kb1, (C,), dtype=jnp.float32)
    w2 = 0.1 * jax.random.normal(kw2, (3, 3, C, C), dtype=jnp.float32)
    b2 = 0.1 * jax.random.normal(kb2, (C,), dtype=jnp.float32)

    out = resnet_block(x, w1, b1, w2, b2)
    jax.block_until_ready(out)
    assert out.shape == (N, C, H, W)

    # Loose tolerance: the conv path feeds the MXU in bf16 (f32 accumulation);
    # the residual path stays f32.
    ref = _reference_f32(x, w1, b1, w2, b2)
    err = float(jnp.max(jnp.abs(out - ref)))
    assert err < 2e-1, f"max abs err {err}"

    print("KERNEL_OK")
</pallas_src>

<mosaic_0001>
module attributes {stable_mosaic.version = 11 : i64} {
  func.func @resnet_block_kernel(%arg0: i32, %arg1: memref<1x16x16x128xf32, #tpu.memory_space<vmem>>, %arg2: memref<3x384x128xbf16, #tpu.memory_space<vmem>>, %arg3: memref<3x384x128xbf16, #tpu.memory_space<vmem>>, %arg4: memref<1x16x16x128xf32, #tpu.memory_space<vmem>>, %arg5: memref<576x384xbf16, #tpu.memory_space<vmem>>, %arg6: memref<512x128xf32, #tpu.memory_space<vmem>>) attributes {dimension_semantics = [#tpu.dimension_semantics<parallel>], iteration_bounds = array<i64: 2>, scalar_prefetch = 0 : i64, scratch_operands = 2 : i64, tpu.core_type = #tpu.core_type<tc>, window_params = [{transform_indices = @transform_0, window_bounds = array<i64: 1, 16, 16, 128>}, {pipeline_mode = #tpu.pipeline_mode<synchronous>, transform_indices = @transform_1, window_bounds = array<i64: 3, 384, 128>}, {pipeline_mode = #tpu.pipeline_mode<synchronous>, transform_indices = @transform_2, window_bounds = array<i64: 3, 384, 128>}, {transform_indices = @transform_3, window_bounds = array<i64: 1, 16, 16, 128>}]} {
    %c0 = arith.constant 0 : index
    %c0_0 = arith.constant 0 : index
    %c0_1 = arith.constant 0 : index
    %c0_2 = arith.constant 0 : index
    %0 = vector.load %arg1[%c0, %c0_0, %c0_1, %c0_2] : memref<1x16x16x128xf32, #tpu.memory_space<vmem>>, vector<1x16x16x128xf32>
    %1 = vector.shape_cast %0 : vector<1x16x16x128xf32> to vector<16x16x128xf32>
    %2 = arith.truncf %1 : vector<16x16x128xf32> to vector<16x16x128xbf16>
    %3 = vector.extract_strided_slice %2 {offsets = [0, 1, 0], sizes = [16, 1, 128], strides = [1, 1, 1]} : vector<16x16x128xbf16> to vector<16x1x128xbf16>
    %4 = vector.extract_strided_slice %2 {offsets = [0, 14, 0], sizes = [16, 1, 128], strides = [1, 1, 1]} : vector<16x16x128xbf16> to vector<16x1x128xbf16>
    %cst = arith.constant 0.000000e+00 : bf16
    %5 = vector.broadcast %cst : bf16 to vector<16x14x128xbf16>
    %cst_3 = arith.constant 0.000000e+00 : bf16
    %6 = vector.broadcast %cst_3 : bf16 to vector<16x15x128xbf16>
    %7 = vector.extract_strided_slice %2 {offsets = [0, 1, 0], sizes = [16, 15, 128], strides = [1, 1, 1]} : vector<16x16x128xbf16> to vector<16x15x128xbf16>
    %cst_4 = arith.constant 0.000000e+00 : bf16
    %8 = vector.broadcast %cst_4 : bf16 to vector<16x16x128xbf16>
    %9 = tpu.concatenate %3, %2, %4, %5 in 1 : vector<16x1x128xbf16>, vector<16x16x128xbf16>, vector<16x1x128xbf16>, vector<16x14x128xbf16> -> vector<16x32x128xbf16>
    %10 = vector.shape_cast %9 : vector<16x32x128xbf16> to vector<512x128xbf16>
    %c32 = arith.constant 32 : index
    %c0_5 = arith.constant 0 : index
    %11 = vector.load %arg5[%c32, %c0_5] : memref<576x384xbf16, #tpu.memory_space<vmem>>, vector<512x128xbf16>
    tpu.vector_store %arg5[%c32, %c0_5], %10 {strides = array<i32>} : memref<576x384xbf16, #tpu.memory_space<vmem>>, vector<512x128xbf16>,
    %12 = vector.extract_strided_slice %10 {offsets = [32, 0], sizes = [32, 128], strides = [1, 1]} : vector<512x128xbf16> to vector<32x128xbf16>
    %c0_6 = arith.constant 0 : index
    %c0_7 = arith.constant 0 : index
    %13 = vector.load %arg5[%c0_6, %c0_7] : memref<576x384xbf16, #tpu.memory_space<vmem>>, vector<32x128xbf16>
    tpu.vector_store %arg5[%c0_6, %c0_7], %12 {strides = array<i32>} : memref<576x384xbf16, #tpu.memory_space<vmem>>, vector<32x128xbf16>,
    %14 = vector.extract_strided_slice %10 {offsets = [448, 0], sizes = [32, 128], strides = [1, 1]} : vector<512x128xbf16> to vector<32x128xbf16>
    %c544 = arith.constant 544 : index
    %c0_8 = arith.constant 0 : index
    %15 = vector.load %arg5[%c544, %c0_8] : memref<576x384xbf16, #tpu.memory_space<vmem>>, vector<32x128xbf16>
    tpu.vector_store %arg5[%c544, %c0_8], %14 {strides = array<i32>} : memref<576x384xbf16, #tpu.memory_space<vmem>>, vector<32x128xbf16>,
    %16 = tpu.concatenate %2, %4, %6 in 1 : vector<16x16x128xbf16>, vector<16x1x128xbf16>, vector<16x15x128xbf16> -> vector<16x32x128xbf16>
    %17 = vector.shape_cast %16 : vector<16x32x128xbf16> to vector<512x128xbf16>
    %c32_9 = arith.constant 32 : index
    %c128 = arith.constant 128 : index
    %18 = vector.load %arg5[%c32_9, %c128] : memref<576x384xbf16, #tpu.memory_space<vmem>>, vector<512x128xbf16>
    tpu.vector_store %arg5[%c32_9, %c128], %17 {strides = array<i32>} : memref<576x384xbf16, #tpu.memory_space<vmem>>, vector<512x128xbf16>,
    %19 = vector.extract_strided_slice %17 {offsets = [32, 0], sizes = [32, 128], strides = [1, 1]} : vector<512x128xbf16> to vector<32x128xbf16>
    %c0_10 = arith.constant 0 : index
    %c128_11 = arith.constant 128 : index
    %20 = vector.load %arg5[%c0_10, %c128_11] : memref<576x384xbf16, #tpu.memory_space<vmem>>, vector<32x128xbf16>
    tpu.vector_store %arg5[%c0_10, %c128_11], %19 {strides = array<i32>} : memref<576x384xbf16, #tpu.memory_space<vmem>>, vector<32x128xbf16>,
    %21 = vector.extract_strided_slice %17 {offsets = [448, 0], sizes = [32, 128], strides = [1, 1]} : vector<512x128xbf16> to vector<32x128xbf16>
    %c544_12 = arith.constant 544 : index
    %c128_13 = arith.constant 128 : index
    %22 = vector.load %arg5[%c544_12, %c128_13] : memref<576x384xbf16, #tpu.memory_space<vmem>>, vector<32x128xbf16>
    tpu.vector_store %arg5[%c544_12, %c128_13], %21 {strides = array<i32>} : memref<576x384xbf16, #tpu.memory_space<vmem>>, vector<32x128xbf16>,
    %23 = tpu.concatenate %7, %4, %8 in 1 : vector<16x15x128xbf16>, vector<16x1x128xbf16>, vector<16x16x128xbf16> -> vector<16x32x128xbf16>
    %24 = vector.shape_cast %23 : vector<16x32x128xbf16> to vector<512x128xbf16>
    %c32_14 = arith.constant 32 : index
    %c256 = arith.constant 256 : index
    %25 = vector.load %arg5[%c32_14, %c256] : memref<576x384xbf16, #tpu.memory_space<vmem>>, vector<512x128xbf16>
    tpu.vector_store %arg5[%c32_14, %c256], %24 {strides = array<i32>} : memref<576x384xbf16, #tpu.memory_space<vmem>>, vector<512x128xbf16>,
    %26 = vector.extract_strided_slice %24 {offsets = [32, 0], sizes = [32, 128], strides = [1, 1]} : vector<512x128xbf16> to vector<32x128xbf16>
    %c0_15 = arith.constant 0 : index
    %c256_16 = arith.constant 256 : index
    %27 = vector.load %arg5[%c0_15, %c256_16] : memref<576x384xbf16, #tpu.memory_space<vmem>>, vector<32x128xbf16>
    tpu.vector_store %arg5[%c0_15, %c256_16], %26 {strides = array<i32>} : memref<576x384xbf16, #tpu.memory_space<vmem>>, vector<32x128xbf16>,
    %28 = vector.extract_strided_slice %24 {offsets = [448, 0], sizes = [32, 128], strides = [1, 1]} : vector<512x128xbf16> to vector<32x128xbf16>
    %c544_17 = arith.constant 544 : index
    %c256_18 = arith.constant 256 : index
    %29 = vector.load %arg5[%c544_17, %c256_18] : memref<576x384xbf16, #tpu.memory_space<vmem>>, vector<32x128xbf16>
    tpu.vector_store %arg5[%c544_17, %c256_18], %28 {strides = array<i32>} : memref<576x384xbf16, #tpu.memory_space<vmem>>, vector<32x128xbf16>,
    %c0_19 = arith.constant 0 : index
    %c0_20 = arith.constant 0 : index
    %30 = vector.load %arg5[%c0_19, %c0_20] : memref<576x384xbf16, #tpu.memory_space<vmem>>, vector<512x384xbf16>
    %c0_21 = arith.constant 0 : index
    %c0_22 = arith.constant 0 : index
    %c0_23 = arith.constant 0 : index
    %31 = vector.load %arg2[%c0_21, %c0_22, %c0_23] : memref<3x384x128xbf16, #tpu.memory_space<vmem>>, vector<1x384x128xbf16>
    %32 = vector.shape_cast %31 : vector<1x384x128xbf16> to vector<384x128xbf16>
    %cst_24 = arith.constant dense<0.000000e+00> : vector<512x128xf32>
    %33 = tpu.matmul %30, %32, %cst_24 {dimension_numbers = #tpu.dot_dimension_numbers<[1], [0], [0], [1], [0, 0, 1, 1], [], []>} : vector<512x384xbf16>, vector<384x128xbf16>, vector<512x128xf32> -> vector<512x128xf32>
    %c0_25 = arith.constant 0 : index
    %c0_26 = arith.constant 0 : index
    %34 = vector.load %arg6[%c0_25, %c0_26] : memref<512x128xf32, #tpu.memory_space<vmem>>, vector<512x128xf32>
    tpu.vector_store %arg6[%c0_25, %c0_26], %33 {strides = array<i32>} : memref<512x128xf32, #tpu.memory_space<vmem>>, vector<512x128xf32>,
    %c0_27 = arith.constant 0 : index
    %c0_28 = arith.constant 0 : index
    %35 = vector.load %arg6[%c0_27, %c0_28] : memref<512x128xf32, #tpu.memory_space<vmem>>, vector<512x128xf32>
    %c32_29 = arith.constant 32 : index
    %c0_30 = arith.constant 0 : index
    %36 = vector.load %arg5[%c32_29, %c0_30] : memref<576x384xbf16, #tpu.memory_space<vmem>>, vector<512x384xbf16>
    %c1 = arith.constant 1 : index
    %c0_31 = arith.constant 0 : index
    %c0_32 = arith.constant 0 : index
    %37 = vector.load %arg2[%c1, %c0_31, %c0_32] : memref<3x384x128xbf16, #tpu.memory_space<vmem>>, vector<1x384x128xbf16>
    %38 = vector.shape_cast %37 : vector<1x384x128xbf16> to vector<384x128xbf16>
    %cst_33 = arith.constant dense<0.000000e+00> : vector<512x128xf32>
    %39 = tpu.matmul %36, %38, %cst_33 {dimension_numbers = #tpu.dot_dimension_numbers<[1], [0], [0], [1], [0, 0, 1, 1], [], []>} : vector<512x384xbf16>, vector<384x128xbf16>, vector<512x128xf32> -> vector<512x128xf32>
    %40 = arith.addf %35, %39 : vector<512x128xf32>
    %c0_34 = arith.constant 0 : index
    %c0_35 = arith.constant 0 : index
    %41 = vector.load %arg6[%c0_34, %c0_35] : memref<512x128xf32, #tpu.memory_space<vmem>>, vector<512x128xf32>
    tpu.vector_store %arg6[%c0_34, %c0_35], %40 {strides = array<i32>} : memref<512x128xf32, #tpu.memory_space<vmem>>, vector<512x128xf32>,
    %c0_36 = arith.constant 0 : index
    %c0_37 = arith.constant 0 : index
    %42 = vector.load %arg6[%c0_36, %c0_37] : memref<512x128xf32, #tpu.memory_space<vmem>>, vector<512x128xf32>
    %c64 = arith.constant 64 : index
    %c0_38 = arith.constant 0 : index
    %43 = vector.load %arg5[%c64, %c0_38] : memref<576x384xbf16, #tpu.memory_space<vmem>>, vector<512x384xbf16>
    %c2 = arith.constant 2 : index
    %c0_39 = arith.constant 0 : index
    %c0_40 = arith.constant 0 : index
    %44 = vector.load %arg2[%c2, %c0_39, %c0_40] : memref<3x384x128xbf16, #tpu.memory_space<vmem>>, vector<1x384x128xbf16>
    %45 = vector.shape_cast %44 : vector<1x384x128xbf16> to vector<384x128xbf16>
    %cst_41 = arith.constant dense<0.000000e+00> : vector<512x128xf32>
    %46 = tpu.matmul %43, %45, %cst_41 {dimension_numbers = #tpu.dot_dimension_numbers<[1], [0], [0], [1], [0, 0, 1, 1], [], []>} : vector<512x384xbf16>, vector<384x128xbf16>, vector<512x128xf32> -> vector<512x128xf32>
    %47 = arith.addf %42, %46 : vector<512x128xf32>
    %c0_42 = arith.constant 0 : index
    %c0_43 = arith.constant 0 : index
    %48 = vector.load %arg6[%c0_42, %c0_43] : memref<512x128xf32, #tpu.memory_space<vmem>>, vector<512x128xf32>
    tpu.vector_store %arg6[%c0_42, %c0_43], %47 {strides = array<i32>} : memref<512x128xf32, #tpu.memory_space<vmem>>, vector<512x128xf32>,
    %c0_44 = arith.constant 0 : index
    %c0_45 = arith.constant 0 : index
    %49 = vector.load %arg6[%c0_44, %c0_45] : memref<512x128xf32, #tpu.memory_space<vmem>>, vector<512x128xf32>
    %50 = vector.shape_cast %49 : vector<512x128xf32> to vector<16x32x128xf32>
    %51 = vector.extract_strided_slice %50 {offsets = [0, 0, 0], sizes = [16, 16, 128], strides = [1, 1, 1]} : vector<16x32x128xf32> to vector<16x16x128xf32>
    %cst_46 = arith.constant dense<0.000000e+00> : vector<128xf32>
    %52 = vector.multi_reduction <add>, %51, %cst_46 [0, 1] : vector<16x16x128xf32> to vector<128xf32>
    %53 = vector.shape_cast %52 : vector<128xf32> to vector<1x1x128xf32>
    %cst_47 = arith.constant 3.906250e-03 : f32
    %54 = vector.broadcast %cst_47 : f32 to vector<1x1x128xf32>
    %55 = arith.mulf %53, %54 : vector<1x1x128xf32>
    %56 = vector.broadcast %55 : vector<1x1x128xf32> to vector<16x16x128xf32>
    %57 = arith.subf %51, %56 : vector<16x16x128xf32>
    %58 = arith.mulf %57, %57 : vector<16x16x128xf32>
    %cst_48 = arith.constant dense<0.000000e+00> : vector<128xf32>
    %59 = vector.multi_reduction <add>, %58, %cst_48 [0, 1] : vector<16x16x128xf32> to vector<128xf32>
    %60 = vector.shape_cast %59 : vector<128xf32> to vector<1x1x128xf32>
    %cst_49 = arith.constant 3.906250e-03 : f32
    %61 = vector.broadcast %cst_49 : f32 to vector<1x1x128xf32>
    %62 = arith.mulf %60, %61 : vector<1x1x128xf32>
    %cst_50 = arith.constant 9.99999974E-6 : f32
    %63 = vector.broadcast %cst_50 : f32 to vector<1x1x128xf32>
    %64 = arith.addf %62, %63 : vector<1x1x128xf32>
    %65 = math.rsqrt %64 : vector<1x1x128xf32>
    %66 = vector.broadcast %65 : vector<1x1x128xf32> to vector<16x16x128xf32>
    %67 = arith.mulf %57, %66 : vector<16x16x128xf32>
    %cst_51 = arith.constant 0.000000e+00 : f32
    %68 = vector.broadcast %cst_51 : f32 to vector<16x16x128xf32>
    %69 = arith.maximumf %67, %68 : vector<16x16x128xf32>
    %70 = arith.truncf %69 : vector<16x16x128xf32> to vector<16x16x128xbf16>
    %71 = vector.extract_strided_slice %70 {offsets = [0, 1, 0], sizes = [16, 1, 128], strides = [1, 1, 1]} : vector<16x16x128xbf16> to vector<16x1x128xbf16>
    %72 = vector.extract_strided_slice %70 {offsets = [0, 14, 0], sizes = [16, 1, 128], strides = [1, 1, 1]} : vector<16x16x128xbf16> to vector<16x1x128xbf16>
    %cst_52 = arith.constant 0.000000e+00 : bf16
    %73 = vector.broadcast %cst_52 : bf16 to vector<16x14x128xbf16>
    %cst_53 = arith.constant 0.000000e+00 : bf16
    %74 = vector.broadcast %cst_53 : bf16 to vector<16x15x128xbf16>
    %75 = vector.extract_strided_slice %70 {offsets = [0, 1, 0], sizes = [16, 15, 128], strides = [1, 1, 1]} : vector<16x16x128xbf16> to vector<16x15x128xbf16>
    %cst_54 = arith.constant 0.000000e+00 : bf16
    %76 = vector.broadcast %cst_54 : bf16 to vector<16x16x128xbf16>
    %77 = tpu.concatenate %71, %70, %72, %73 in 1 : vector<16x1x128xbf16>, vector<16x16x128xbf16>, vector<16x1x128xbf16>, vector<16x14x128xbf16> -> vector<16x32x128xbf16>
    %78 = vector.shape_cast %77 : vector<16x32x128xbf16> to vector<512x128xbf16>
    %c32_55 = arith.constant 32 : index
    %c0_56 = arith.constant 0 : index
    %79 = vector.load %arg5[%c32_55, %c0_56] : memref<576x384xbf16, #tpu.memory_space<vmem>>, vector<512x128xbf16>
    tpu.vector_store %arg5[%c32_55, %c0_56], %78 {strides = array<i32>} : memref<576x384xbf16, #tpu.memory_space<vmem>>, vector<512x128xbf16>,
    %80 = vector.extract_strided_slice %78 {offsets = [32, 0], sizes = [32, 128], strides = [1, 1]} : vector<512x128xbf16> to vector<32x128xbf16>
    %c0_57 = arith.constant 0 : index
    %c0_58 = arith.constant 0 : index
    %81 = vector.load %arg5[%c0_57, %c0_58] : memref<576x384xbf16, #tpu.memory_space<vmem>>, vector<32x128xbf16>
    tpu.vector_store %arg5[%c0_57, %c0_58], %80 {strides = array<i32>} : memref<576x384xbf16, #tpu.memory_space<vmem>>, vector<32x128xbf16>,
    %82 = vector.extract_strided_slice %78 {offsets = [448, 0], sizes = [32, 128], strides = [1, 1]} : vector<512x128xbf16> to vector<32x128xbf16>
    %c544_59 = arith.constant 544 : index
    %c0_60 = arith.constant 0 : index
    %83 = vector.load %arg5[%c544_59, %c0_60] : memref<576x384xbf16, #tpu.memory_space<vmem>>, vector<32x128xbf16>
    tpu.vector_store %arg5[%c544_59, %c0_60], %82 {strides = array<i32>} : memref<576x384xbf16, #tpu.memory_space<vmem>>, vector<32x128xbf16>,
    %84 = tpu.concatenate %70, %72, %74 in 1 : vector<16x16x128xbf16>, vector<16x1x128xbf16>, vector<16x15x128xbf16> -> vector<16x32x128xbf16>
    %85 = vector.shape_cast %84 : vector<16x32x128xbf16> to vector<512x128xbf16>
    %c32_61 = arith.constant 32 : index
    %c128_62 = arith.constant 128 : index
    %86 = vector.load %arg5[%c32_61, %c128_62] : memref<576x384xbf16, #tpu.memory_space<vmem>>, vector<512x128xbf16>
    tpu.vector_store %arg5[%c32_61, %c128_62], %85 {strides = array<i32>} : memref<576x384xbf16, #tpu.memory_space<vmem>>, vector<512x128xbf16>,
    %87 = vector.extract_strided_slice %85 {offsets = [32, 0], sizes = [32, 128], strides = [1, 1]} : vector<512x128xbf16> to vector<32x128xbf16>
    %c0_63 = arith.constant 0 : index
    %c128_64 = arith.constant 128 : index
    %88 = vector.load %arg5[%c0_63, %c128_64] : memref<576x384xbf16, #tpu.memory_space<vmem>>, vector<32x128xbf16>
    tpu.vector_store %arg5[%c0_63, %c128_64], %87 {strides = array<i32>} : memref<576x384xbf16, #tpu.memory_space<vmem>>, vector<32x128xbf16>,
    %89 = vector.extract_strided_slice %85 {offsets = [448, 0], sizes = [32, 128], strides = [1, 1]} : vector<512x128xbf16> to vector<32x128xbf16>
    %c544_65 = arith.constant 544 : index
    %c128_66 = arith.constant 128 : index
    %90 = vector.load %arg5[%c544_65, %c128_66] : memref<576x384xbf16, #tpu.memory_space<vmem>>, vector<32x128xbf16>
    tpu.vector_store %arg5[%c544_65, %c128_66], %89 {strides = array<i32>} : memref<576x384xbf16, #tpu.memory_space<vmem>>, vector<32x128xbf16>,
    %91 = tpu.concatenate %75, %72, %76 in 1 : vector<16x15x128xbf16>, vector<16x1x128xbf16>, vector<16x16x128xbf16> -> vector<16x32x128xbf16>
    %92 = vector.shape_cast %91 : vector<16x32x128xbf16> to vector<512x128xbf16>
    %c32_67 = arith.constant 32 : index
    %c256_68 = arith.constant 256 : index
    %93 = vector.load %arg5[%c32_67, %c256_68] : memref<576x384xbf16, #tpu.memory_space<vmem>>, vector<512x128xbf16>
    tpu.vector_store %arg5[%c32_67, %c256_68], %92 {strides = array<i32>} : memref<576x384xbf16, #tpu.memory_space<vmem>>, vector<512x128xbf16>,
    %94 = vector.extract_strided_slice %92 {offsets = [32, 0], sizes = [32, 128], strides = [1, 1]} : vector<512x128xbf16> to vector<32x128xbf16>
    %c0_69 = arith.constant 0 : index
    %c256_70 = arith.constant 256 : index
    %95 = vector.load %arg5[%c0_69, %c256_70] : memref<576x384xbf16, #tpu.memory_space<vmem>>, vector<32x128xbf16>
    tpu.vector_store %arg5[%c0_69, %c256_70], %94 {strides = array<i32>} : memref<576x384xbf16, #tpu.memory_space<vmem>>, vector<32x128xbf16>,
    %96 = vector.extract_strided_slice %92 {offsets = [448, 0], sizes = [32, 128], strides = [1, 1]} : vector<512x128xbf16> to vector<32x128xbf16>
    %c544_71 = arith.constant 544 : index
    %c256_72 = arith.constant 256 : index
    %97 = vector.load %arg5[%c544_71, %c256_72] : memref<576x384xbf16, #tpu.memory_space<vmem>>, vector<32x128xbf16>
    tpu.vector_store %arg5[%c544_71, %c256_72], %96 {strides = array<i32>} : memref<576x384xbf16, #tpu.memory_space<vmem>>, vector<32x128xbf16>,
    %c0_73 = arith.constant 0 : index
    %c0_74 = arith.constant 0 : index
    %98 = vector.load %arg5[%c0_73, %c0_74] : memref<576x384xbf16, #tpu.memory_space<vmem>>, vector<512x384xbf16>
    %c0_75 = arith.constant 0 : index
    %c0_76 = arith.constant 0 : index
    %c0_77 = arith.constant 0 : index
    %99 = vector.load %arg3[%c0_75, %c0_76, %c0_77] : memref<3x384x128xbf16, #tpu.memory_space<vmem>>, vector<1x384x128xbf16>
    %100 = vector.shape_cast %99 : vector<1x384x128xbf16> to vector<384x128xbf16>
    %cst_78 = arith.constant dense<0.000000e+00> : vector<512x128xf32>
    %101 = tpu.matmul %98, %100, %cst_78 {dimension_numbers = #tpu.dot_dimension_numbers<[1], [0], [0], [1], [0, 0, 1, 1], [], []>} : vector<512x384xbf16>, vector<384x128xbf16>, vector<512x128xf32> -> vector<512x128xf32>
    %c0_79 = arith.constant 0 : index
    %c0_80 = arith.constant 0 : index
    %102 = vector.load %arg6[%c0_79, %c0_80] : memref<512x128xf32, #tpu.memory_space<vmem>>, vector<512x128xf32>
    tpu.vector_store %arg6[%c0_79, %c0_80], %101 {strides = array<i32>} : memref<512x128xf32, #tpu.memory_space<vmem>>, vector<512x128xf32>,
    %c0_81 = arith.constant 0 : index
    %c0_82 = arith.constant 0 : index
    %103 = vector.load %arg6[%c0_81, %c0_82] : memref<512x128xf32, #tpu.memory_space<vmem>>, vector<512x128xf32>
    %c32_83 = arith.constant 32 : index
    %c0_84 = arith.constant 0 : index
    %104 = vector.load %arg5[%c32_83, %c0_84] : memref<576x384xbf16, #tpu.memory_space<vmem>>, vector<512x384xbf16>
    %c1_85 = arith.constant 1 : index
    %c0_86 = arith.constant 0 : index
    %c0_87 = arith.constant 0 : index
    %105 = vector.load %arg3[%c1_85, %c0_86, %c0_87] : memref<3x384x128xbf16, #tpu.memory_space<vmem>>, vector<1x384x128xbf16>
    %106 = vector.shape_cast %105 : vector<1x384x128xbf16> to vector<384x128xbf16>
    %cst_88 = arith.constant dense<0.000000e+00> : vector<512x128xf32>
    %107 = tpu.matmul %104, %106, %cst_88 {dimension_numbers = #tpu.dot_dimension_numbers<[1], [0], [0], [1], [0, 0, 1, 1], [], []>} : vector<512x384xbf16>, vector<384x128xbf16>, vector<512x128xf32> -> vector<512x128xf32>
    %108 = arith.addf %103, %107 : vector<512x128xf32>
    %c0_89 = arith.constant 0 : index
    %c0_90 = arith.constant 0 : index
    %109 = vector.load %arg6[%c0_89, %c0_90] : memref<512x128xf32, #tpu.memory_space<vmem>>, vector<512x128xf32>
    tpu.vector_store %arg6[%c0_89, %c0_90], %108 {strides = array<i32>} : memref<512x128xf32, #tpu.memory_space<vmem>>, vector<512x128xf32>,
    %c0_91 = arith.constant 0 : index
    %c0_92 = arith.constant 0 : index
    %110 = vector.load %arg6[%c0_91, %c0_92] : memref<512x128xf32, #tpu.memory_space<vmem>>, vector<512x128xf32>
    %c64_93 = arith.constant 64 : index
    %c0_94 = arith.constant 0 : index
    %111 = vector.load %arg5[%c64_93, %c0_94] : memref<576x384xbf16, #tpu.memory_space<vmem>>, vector<512x384xbf16>
    %c2_95 = arith.constant 2 : index
    %c0_96 = arith.constant 0 : index
    %c0_97 = arith.constant 0 : index
    %112 = vector.load %arg3[%c2_95, %c0_96, %c0_97] : memref<3x384x128xbf16, #tpu.memory_space<vmem>>, vector<1x384x128xbf16>
    %113 = vector.shape_cast %112 : vector<1x384x128xbf16> to vector<384x128xbf16>
    %cst_98 = arith.constant dense<0.000000e+00> : vector<512x128xf32>
    %114 = tpu.matmul %111, %113, %cst_98 {dimension_numbers = #tpu.dot_dimension_numbers<[1], [0], [0], [1], [0, 0, 1, 1], [], []>} : vector<512x384xbf16>, vector<384x128xbf16>, vector<512x128xf32> -> vector<512x128xf32>
    %115 = arith.addf %110, %114 : vector<512x128xf32>
    %c0_99 = arith.constant 0 : index
    %c0_100 = arith.constant 0 : index
    %116 = vector.load %arg6[%c0_99, %c0_100] : memref<512x128xf32, #tpu.memory_space<vmem>>, vector<512x128xf32>
    tpu.vector_store %arg6[%c0_99, %c0_100], %115 {strides = array<i32>} : memref<512x128xf32, #tpu.memory_space<vmem>>, vector<512x128xf32>,
    %c0_101 = arith.constant 0 : index
    %c0_102 = arith.constant 0 : index
    %117 = vector.load %arg6[%c0_101, %c0_102] : memref<512x128xf32, #tpu.memory_space<vmem>>, vector<512x128xf32>
    %118 = vector.shape_cast %117 : vector<512x128xf32> to vector<16x32x128xf32>
    %119 = vector.extract_strided_slice %118 {offsets = [0, 0, 0], sizes = [16, 16, 128], strides = [1, 1, 1]} : vector<16x32x128xf32> to vector<16x16x128xf32>
    %c0_103 = arith.constant 0 : index
    %c0_104 = arith.constant 0 : index
    %c0_105 = arith.constant 0 : index
    %c0_106 = arith.constant 0 : index
    %120 = vector.load %arg1[%c0_103, %c0_104, %c0_105, %c0_106] : memref<1x16x16x128xf32, #tpu.memory_space<vmem>>, vector<1x16x16x128xf32>
    %121 = vector.shape_cast %120 : vector<1x16x16x128xf32> to vector<16x16x128xf32>
    %cst_107 = arith.constant dense<0.000000e+00> : vector<128xf32>
    %122 = vector.multi_reduction <add>, %119, %cst_107 [0, 1] : vector<16x16x128xf32> to vector<128xf32>
    %123 = vector.shape_cast %122 : vector<128xf32> to vector<1x1x128xf32>
    %cst_108 = arith.constant 3.906250e-03 : f32
    %124 = vector.broadcast %cst_108 : f32 to vector<1x1x128xf32>
    %125 = arith.mulf %123, %124 : vector<1x1x128xf32>
    %126 = vector.broadcast %125 : vector<1x1x128xf32> to vector<16x16x128xf32>
    %127 = arith.subf %119, %126 : vector<16x16x128xf32>
    %128 = arith.mulf %127, %127 : vector<16x16x128xf32>
    %cst_109 = arith.constant dense<0.000000e+00> : vector<128xf32>
    %129 = vector.multi_reduction <add>, %128, %cst_109 [0, 1] : vector<16x16x128xf32> to vector<128xf32>
    %130 = vector.shape_cast %129 : vector<128xf32> to vector<1x1x128xf32>
    %cst_110 = arith.constant 3.906250e-03 : f32
    %131 = vector.broadcast %cst_110 : f32 to vector<1x1x128xf32>
    %132 = arith.mulf %130, %131 : vector<1x1x128xf32>
    %cst_111 = arith.constant 9.99999974E-6 : f32
    %133 = vector.broadcast %cst_111 : f32 to vector<1x1x128xf32>
    %134 = arith.addf %132, %133 : vector<1x1x128xf32>
    %135 = math.rsqrt %134 : vector<1x1x128xf32>
    %136 = vector.broadcast %135 : vector<1x1x128xf32> to vector<16x16x128xf32>
    %137 = arith.mulf %127, %136 : vector<16x16x128xf32>
    %138 = arith.addf %121, %137 : vector<16x16x128xf32>
    %c0_112 = arith.constant 0 : index
    %c0_113 = arith.constant 0 : index
    %c0_114 = arith.constant 0 : index
    %c0_115 = arith.constant 0 : index
    %139 = vector.load %arg4[%c0_112, %c0_113, %c0_114, %c0_115] : memref<1x16x16x128xf32, #tpu.memory_space<vmem>>, vector<1x16x16x128xf32>
    %140 = vector.shape_cast %139 : vector<1x16x16x128xf32> to vector<16x16x128xf32>
    %141 = vector.shape_cast %138 : vector<16x16x128xf32> to vector<1x16x16x128xf32>
    tpu.vector_store %arg4[%c0_112, %c0_113, %c0_114, %c0_115], %141 {strides = array<i32>} : memref<1x16x16x128xf32, #tpu.memory_space<vmem>>, vector<1x16x16x128xf32>,
    return
  }
  func.func @transform_0(%arg0: i32) -> (i32, i32, i32, i32) {
    %c0_i32 = arith.constant 0 : i32
    %c0_i32_0 = arith.constant 0 : i32
    %c0_i32_1 = arith.constant 0 : i32
    %c0_i32_2 = arith.constant 0 : i32
    return %arg0, %c0_i32, %c0_i32_0, %c0_i32_1 : i32, i32, i32, i32
  }
  func.func @transform_1(%arg0: i32) -> (i32, i32, i32) {
    %c0_i32 = arith.constant 0 : i32
    %c0_i32_0 = arith.constant 0 : i32
    %c0_i32_1 = arith.constant 0 : i32
    %c0_i32_2 = arith.constant 0 : i32
    return %c0_i32, %c0_i32_0, %c0_i32_1 : i32, i32, i32
  }
  func.func @transform_2(%arg0: i32) -> (i32, i32, i32) {
    %c0_i32 = arith.constant 0 : i32
    %c0_i32_0 = arith.constant 0 : i32
    %c0_i32_1 = arith.constant 0 : i32
    %c0_i32_2 = arith.constant 0 : i32
    return %c0_i32, %c0_i32_0, %c0_i32_1 : i32, i32, i32
  }
  func.func @transform_3(%arg0: i32) -> (i32, i32, i32, i32) {
    %c0_i32 = arith.constant 0 : i32
    %c0_i32_0 = arith.constant 0 : i32
    %c0_i32_1 = arith.constant 0 : i32
    %c0_i32_2 = arith.constant 0 : i32
    return %arg0, %c0_i32, %c0_i32_0, %c0_i32_1 : i32, i32, i32, i32
  }
}

</mosaic_0001>

<bundles_post_ra>
// kernel: tpu_custom_call.1
= control target key start
LH: loop header
LB: loop body
LE: loop exit
PB: predicated region body
PF: predicated region fallthrough
CT: control target
= control target key end

     0   :  { %8 = vsyncpa [#allocation5], 0  ;;  %s19391_s0 = inlined_call_operand.hbm [shape: f32[2,16,16,128], index: 0, kind: input, shape index: {}]   ;;  %s19392_s1 = inlined_call_operand.hbm [shape: bf16[3,384,128], index: 1, kind: input, shape index: {}]   ;;  %s19393_s2 = inlined_call_operand.hbm [shape: bf16[3,384,128], index: 2, kind: input, shape index: {}]   ;;  %s19394_s3 = inlined_call_operand.hbm [shape: f32[2,16,16,128], index: 3, kind: output, shape index: {}]  }
   0x1   :  { %10 = vsyncpa [#allocation5 + $0x1], 0 }
   0x2   :  { %11 = vsyncpa [#allocation8], 0 }
   0x3   :  { %12 = vsyncpa [#allocation6], 0 }
   0x4   :  { %14 = vsyncpa [#allocation6 + $0x1], 0  ;;  %s16449_s12 = smov 0   ;;  %s16451_s13 = smov 0  }
   0x5   :  { %s16453_s14 = smov 0   ;;  %s16455_s15 = smov 0  }
   0x6 LB: > { %s16470_s16 = sadd.s32 4294967295, %s16418_s15   ;;  %s12544_s17 = sadd.s32 4294967294, %s16418_s15   ;;  %s16418_s15 = sphi %s16455_s15, %s19757_s15   ;;  %s16414_s14 = sphi %s16453_s14, %s19756_s14   ;;  %s16410_s13 = sphi %s16451_s13, %s19755_s13   ;;  %s16406_s12 = sphi %s16449_s12, %s19754_s12  }
   0x7   : > { %p40_p0 = scmp.ne.s32.totalorder %s16410_s13, %s16406_s12  ;;  %p41_p1 = scmp.eq.s32.totalorder %s16470_s16, 0 }
   0x8   : > { %p106_p2 = scmp.eq.s32.totalorder %s16470_s16, 1  ;;  %p112_p3 = scmp.eq.s32.totalorder %s12544_s17, 1 }
   0x9   : > { %p16479_p4 = por %p41_p1, %p40_p0  ;;  %p12545_p5 = scmp.ge.s32.totalorder %s16418_s15, 1 }
   0xa   : > { %p16484_p6 = por %p112_p3, %p40_p0  ;;  %p119_p7 = scmp.lt.s32.totalorder %s16418_s15, 3 }
   0xb   : > { %s130_s22 = sshll.u32 %s19392_s1, 4  ;;  %s16420_s24 = smov [#allocation7]   ;;  %s131_s22 = int_to_ptr.hbm [resolvable:$true] %s130_s22 }
   0xc   : > { %p16492_p8 = pnand %p12545_p5, %p119_p7  ;;  %s132_s25 = sshll.u32 %s16420_s24, 4  ;;  %s133_s25 = int_to_ptr.vmem [resolvable:$true] %s132_s25 }
   0xd   : > { %s144_s28 = sshll.u32 %s19393_s2, 4  ;;  %s16421_s29 = smov 64   ;;  %s145_s28 = int_to_ptr.hbm [resolvable:$true] %s144_s28 }
   0xe   : > { %p16192_p9 = pneg %p16492_p8  ;;  %s16422_s30 = smov 4  }
   0xf   : > { %s16423_s4 = smov [#allocation9]   ;;  %s16505_s6 = sadd.s32 1, %s16418_s15  }
  0x10   : > { %p16193_p10 = pnand %p16192_p9, %p41_p1  ;;  %s146_s5 = sshll.u32 %s16423_s4, 4  ;;  %s147_s5 = int_to_ptr.vmem [resolvable:$true] %s146_s5 }
  0x11   : > { %s27_s7 = sadd.s32 1, %s16414_s14  ;;  %s24_s8 = ssub.s32 %s16418_s15, %s16505_s6 }
  0x12   : > { %16195 = dma.hbm_to_vmem [thread:$0]  (!%p16193_p10), %s131_s22, 9216, %s133_s25, [#allocation8], %s16421_s29, %s16421_s29, %s16422_s30  }
  0x13   : > { %16198 = dma.hbm_to_vmem [thread:$0]  (!%p16193_p10), %s145_s28, 9216, %s147_s5, [#allocation8], %s16421_s29, %s16421_s29, %s16422_s30  }
  0x14   : > { %p34_p12 = scmp.ne.s32.totalorder %s16414_s14, %s16410_s13  ;;  %p25_p13 = scmp.eq.s32.totalorder %s24_s8, 0 }
  0x15   : > { %p35_p0 = scmp.eq.s32.totalorder %s16418_s15, 0  ;;  %p16209_p5 = scmp.lt.s32.totalorder %s16418_s15, 2 }
  0x16   : > { %p16515_p3 = por %p106_p2, %p34_p12  ;;  %s160_s11 = sand.u32 1, %s16414_s14  }
  0x17   : > { %s16521_s10 = scalar_select %p25_p13, %s16414_s14, %s27_s7  }
  0x18   : > { %p36_p7 = por %p35_p0, %p34_p12  ;;  %s12549_s17 = sshll.u32 %s160_s11, 8 }
  0x19   : > { %s15442_s20 = sshll.u32 %s16418_s15, 8  ;;  %s164_s25 = scalar_lea.vmem [#allocation4], %s12549_s17 }
  0x1a   : > { %s169_s24 = scalar_lea.hbm %s19391_s0, %s15442_s20  ;;  %s172_s26 = sshll.u32 %s164_s25, 4  ;;  %s173_s26 = int_to_ptr.vmem [resolvable:$true] %s172_s26 }
  0x1b   : > { %s170_s27 = sshll.u32 %s169_s24, 4  ;;  %p16528_p2 = pnand %p16209_p5, %p36_p7  ;;  %s171_s27 = int_to_ptr.hbm [resolvable:$true] %s170_s27 }
  0x1c   : > { %s161_s29 = scalar_lea.sflag [#allocation5], %s160_s11  ;;  %s16318_s30 = sshra.s32 %s171_s27, 4  ;;  %s16319_s30 = int_to_ptr.hbm [resolvable:$true] %s16318_s30 }
  0x1d   : > { %s16320_s4 = scalar_lea.hbm %s16319_s30, 256  ;;  %p16322_p10 = pneg %p16528_p2 }
  0x1e   : > { %p16321_p9 = scmp.ne.s32.totalorder %s16319_s30, %s16320_s4  ;;  %s16325_s8 = scalar_lea.hbm %s19391_s0, 512 }
  0x1f   : > { %p16326_p0 = scmp.lt.s32.totalorder %s16319_s30, %s19391_s0  ;;  %p16327_p5 = scmp.lt.s32.totalorder %s16325_s8, %s16320_s4 }
  0x20   : > { %p16323_p12 = pnand %p16322_p10, %p16321_p9 }
  0x21   : > { %p16328_p7 = por %p16327_p5, %p16326_p0 }
  0x22   : > { %p16324_p13 = pneg %p16323_p12 }
  0x24   : > { %p16329_p11 = pnand %p16328_p7, %p16324_p13 }
  0x26   : > { %16332 = shalt.err (!%p16329_p11)
}
  0x27   : > { %s16424_s11 = smov 128   ;;  %s16425_s21 = smov 8  }
  0x28   : > { %16202 = dma.hbm_to_vmem [thread:$0]  (!%p16528_p2), %s171_s27, 4096, %s173_s26, %s161_s29, %s16424_s11, %s16424_s11, %s16425_s21  }
  0x29   : > { %184 = sbr.rel (%p16492_p8) target bundleno = 3583 (0xdff), region = 32 }
  0x2e   : > { %s16545_s22 = sand.u32 1, %s16410_s13  }
  0x2f   : > { %s12553_s24 = sshll.u32 %s16545_s22, 8  ;;  %s187_s25 = scalar_lea.sflag [#allocation5], %s16545_s22 }
  0x30   : > { %s16551_s30 = scalar_lea.vmem [#allocation4], %s12553_s24 }
  0x31   : > { %16393 = dma.done.wait (%p16479_p4), %s187_s25, 4096  }
  0x32   : > { %16395 = vsyncadd (%p16479_p4), %s187_s25, 4294963200 }
  0x33   : > { %16397 = dma.done.wait (%p41_p1), [#allocation8], 18432  }
  0x34   : > { %16399 = vsyncadd (%p41_p1), [#allocation8], 4294948864  ;;  %v15546_v0 = vld [vmem:[#allocation7 + $0x38] sm:$0xff]  ;;  %v15545_v2 = vld [vmem:[#allocation7 + $0x30] sm:$0xff]  ;;  %vm690_vm0 = vsmask.f32 256 }
  0x35   : > { %v15554_v1 = vld [vmem:[#allocation7 + $0x78] sm:$0xff]  ;;  %2440 = vmatpush.bf16.msra.mxu0 %v15546_v0  ;;  %16164 = vmatpush.bf16.msra.mxu2 %v15546_v0  ;;  %v15553_v3 = vld [vmem:[#allocation7 + $0x70] sm:$0xff]  ;;  %v15544_v6 = vld [vmem:[#allocation7 + $0x28] sm:$0xff]  ;;  %vm689_vm1 = vcmask 1040384   ;;  %vm1398_vm3 = vcmask 1047552   ;;  %s19230_s18 = scalar_lea.vmem [#allocation10], %s12553_s24 }
  0x36   : > { %2609 = vmatpush.bf16.msra.mxu1 %v15554_v1  ;;  %16172 = vmatpush.bf16.msra.mxu3 %v15554_v1  ;;  %v227_v4 = vld [vmem:[%s16551_s30 + $0x10] sm:$0xff]  ;;  %v228_v5 = vld [vmem:[%s16551_s30 + $0x18] sm:$0xff]  ;;  %v15552_v11 = vld [vmem:[#allocation7 + $0x68] sm:$0xff]  ;;  %vm1399_vm4 = vsmask.f32 7424  ;;  %s16163_s23 = sshll.u32 %s16470_s16, 8 }
  0x37   : > { %v259_v7 = vpack.c.bf16 %v227_v4, %v227_v4  ;;  %v260_v8 = vpack.c.bf16 %v228_v5, %v228_v5  ;;  %v239_v9 = vld [vmem:[%s16551_s30 + $0x70] sm:$0xff]  ;;  %v240_v10 = vld [vmem:[%s16551_s30 + $0x78] sm:$0xff]  ;;  %v15543_v18 = vld [vmem:[#allocation7 + $0x20] sm:$0xff]  ;;  %s12448_s27 = scalar_lea.hbm %s19394_s3, %s16163_s23  ;;  %s12449_s28 = sshll.u32 %s19230_s18, 4  ;;  %s12450_s28 = int_to_ptr.vmem [resolvable:$true] %s12449_s28 }
  0x38   : > { %v271_v12 = vpack.c.bf16 %v239_v9, %v239_v9  ;;  %v272_v13 = vpack.c.bf16 %v240_v10, %v240_v10  ;;  %v15551_v22 = vld [vmem:[#allocation7 + $0x60] sm:$0xff]  ;;  %v15542_v32 = vld [vmem:[#allocation7 + $0x18] sm:$0xff]  ;;  %vm16585_vm2 = vmand %vm689_vm1, %vm690_vm0  ;;  %s12451_s29 = sshll.u32 %s12448_s27, 4  ;;  %s12437_s4 = scalar_lea.sflag [#allocation6], %s16545_s22  ;;  %s12452_s29 = int_to_ptr.hbm [resolvable:$true] %s12451_s29 }
  0x39   : > { %2441 = vmatpush.bf16.msra.mxu0 %v15545_v2  ;;  %16165 = vmatpush.bf16.msra.mxu2 %v15545_v2  ;;  %v306_v14 = vunpack.c.l.b16 %v259_v7  ;;  %v418_v15 = vunpack.c.l.b16 %v260_v8  ;;  %v15550_v36 = vld [vmem:[#allocation7 + $0x58] sm:$0xff]  ;;  %v15541_v47 = vld [vmem:[#allocation7 + $0x10] sm:$0xff]  ;;  %v225_v50 = vld [vmem:[%s16551_s30] sm:$0xff]  ;;  %s16362_s5 = sshra.s32 %s12452_s29, 4  ;;  %s16368_s20 = scalar_lea.hbm %s19394_s3, 512  ;;  %s16363_s5 = int_to_ptr.hbm [resolvable:$true] %s16362_s5 }
  0x3a   : > { %2610 = vmatpush.bf16.msra.mxu1 %v15553_v3  ;;  %16173 = vmatpush.bf16.msra.mxu3 %v15553_v3  ;;  %v312_v16 = vunpack.c.l.b16 %v271_v12  ;;  %v424_v17 = vunpack.c.l.b16 %v272_v13  ;;  %v15549_v51 = vld [vmem:[#allocation7 + $0x50] sm:$0xff]  ;;  %v257_v63 = vpack.c.bf16 %v225_v50, %v225_v50  ;;  %v15540_v0 = vld [vmem:[#allocation7 + $0x8] sm:$0xff]  ;;  %v241_v2 = vld [vmem:[%s16551_s30 + $0x80] sm:$0xff]  ;;  %s16364_s7 = scalar_lea.hbm %s16363_s5, 256  ;;  %p16369_p11 = scmp.lt.s32.totalorder %s16363_s5, %s19394_s3 }
  0x3b   : > { %v322_v19 = vpack.c.b16 %v306_v14, %v306_v14  ;;  %v16565_v20 = vpack.c.b16 %v418_v15, %v306_v14  ;;  %v16567_v21 = vpack.c.b16 %v418_v15, %v418_v15  ;;  %v226_v1 = vld [vmem:[%s16551_s30 + $0x8] sm:$0xff]  ;;  %vm16979_vm5 = vmand %vm1398_vm3, %vm1399_vm4  ;;  %p16365_p1 = scmp.ne.s32.totalorder %s16363_s5, %s16364_s7  ;;  %p16370_p2 = scmp.lt.s32.totalorder %s16368_s20, %s16364_s7 }
  0x3c   : > { %v328_v23 = vpack.c.b16 %v312_v16, %v312_v16  ;;  %v16569_v24 = vpack.c.b16 %v424_v17, %v312_v16  ;;  %v16571_v25 = vpack.c.b16 %v424_v17, %v424_v17  ;;  %v15548_v3 = vld [vmem:[#allocation7 + $0x48] sm:$0xff]  ;;  %v258_v15 = vpack.c.bf16 %v226_v1, %v226_v1 }
  0x3d   : > { %2442 = vmatpush.bf16.msra.mxu0 %v15544_v6  ;;  %16166 = vmatpush.bf16.msra.mxu2 %v15544_v6  ;;  %v19431_v26 = vshrl.u32 %v16565_v20, 16  ;;  %v19433_v27 = vshll.u32 %v16565_v20, 16  ;;  %1250 = vst [vmem:[#allocation2 + $0x64] sm:$0xf] %v322_v19  ;;  %v19432_v28 = vshll.u32 %v16567_v21, 16  ;;  %v341_v33 = vshrl.u32 %v322_v19, 16  ;;  %p16366_p4 = pnand %p16365_p1, %p16515_p3  ;;  %p16371_p9 = por %p16370_p2, %p16369_p11 }
  0x3e   : > { %2611 = vmatpush.bf16.msra.mxu1 %v15552_v11  ;;  %16174 = vmatpush.bf16.msra.mxu3 %v15552_v11  ;;  %1310 = vst [vmem:[#allocation2 + $0x4] sm:$0xf] %v322_v19  ;;  %v19408_v29 = vshrl.u32 %v16569_v24, 16  ;;  %v19409_v30 = vshll.u32 %v16569_v24, 16  ;;  %v19407_v31 = vshll.u32 %v16571_v25, 16  ;;  %v359_v38 = vshrl.u32 %v328_v23, 16 }
  0x3f   : > { %v459_v34 = vrot.slane %v19431_v26, 7  ;;  %1274 = vst [vmem:[#allocation2 + $0x184] sm:$0xf] %v328_v23  ;;  %v616_v35 = vrot.slane %v19432_v28, 3  ;;  %v1055_v46 = vrot.slane %v16567_v21, 3  ;;  %v1061_v6 = vrot.slane %v16571_v25, 3  ;;  %p16367_p8 = pneg %p16366_p4 }
  0x40   : > { %v501_v39 = vrot.slane %v19408_v29, 7  ;;  %1311 = vst [vmem:[#allocation2 + $0x10] sm:$0xf] %v16567_v21  ;;  %v640_v40 = vrot.slane %v19407_v31, 3  ;;  %v242_v7 = vld [vmem:[%s16551_s30 + $0x88] sm:$0xff]  ;;  %v305_v16 = vunpack.c.l.b16 %v257_v63  ;;  %v273_v17 = vpack.c.bf16 %v241_v2, %v241_v2  ;;  %v15562_v23 = vld [vmem:[#allocation7 + $0xb8] sm:$0xff] }
  0x41   : > { %2443 = vmatpush.bf16.msra.mxu0 %v15543_v18  ;;  %16167 = vmatpush.bf16.msra.mxu2 %v15543_v18  ;;  %v462_v41 = vor.u32 %v19433_v27, %v459_v34  ;;  %1251 = vst [vmem:[#allocation2 + $0x70] sm:$0xf] %v16567_v21  ;;  %v709_v42 = vsel %vm16585_vm2, %v459_v34, %v616_v35  ;;  %v1087_v62 = vsel %vm16585_vm2, %v1055_v46, 0  ;;  %v15539_v18 = vld [vmem:[#allocation7] sm:$0xff]  ;;  %v417_v34 = vunpack.c.l.b16 %v258_v15  ;;  %p16372_p10 = pnand %p16371_p9, %p16367_p8 }
  0x42   : > { %2612 = vmatpush.bf16.msra.mxu1 %v15551_v22  ;;  %16175 = vmatpush.bf16.msra.mxu3 %v15551_v22  ;;  %v504_v43 = vor.u32 %v19409_v30, %v501_v39  ;;  %1275 = vst [vmem:[#allocation2 + $0x190] sm:$0xf] %v16571_v25  ;;  %v729_v44 = vsel %vm689_vm1, %v709_v42, 0  ;;  %v715_v45 = vsel %vm16585_vm2, %v501_v39, %v640_v40  ;;  %v1120_v11 = vunpack.c.l.b16 %v1087_v62  ;;  %v15547_v22 = vld [vmem:[#allocation7 + $0x40] sm:$0xff] }
  0x43   : > { %v693_v48 = vsel %vm16585_vm2, %v341_v33, %v462_v41  ;;  %v796_v49 = vunpack.c.l.b16 %v729_v44  ;;  %v797_v55 = vunpack.c.h.b16 %v729_v44  ;;  %v741_v59 = vsel %vm689_vm1, %v715_v45, 0 }
  0x44   : > { %v794_v52 = vunpack.c.l.b16 %v693_v48  ;;  %v795_v53 = vunpack.c.h.b16 %v693_v48  ;;  %v699_v54 = vsel %vm16585_vm2, %v359_v38, %v504_v43  ;;  %v820_v5 = vunpack.c.l.b16 %v741_v59  ;;  %v15674_v43 = vld [vmem:[#allocation7 + $0x138] sm:$0xff] }
  0x45   : > { %2444 = vmatpush.bf16.msra.mxu0 %v15542_v32  ;;  %16168 = vmatpush.bf16.msra.mxu2 %v15542_v32  ;;  %v818_v56 = vunpack.c.l.b16 %v699_v54  ;;  %v819_v57 = vunpack.c.h.b16 %v699_v54  ;;  %v860_v58 = vpack.c.b16 %v796_v49, %v796_v49  ;;  %v861_v9 = vpack.c.b16 %v797_v55, %v797_v55  ;;  %v15443_v12 = vld [vmem:[#allocation2 + $0x4] sm:$0xf]  ;;  %v15666_v32 = vld [vmem:[#allocation7 + $0xf8] sm:$0xff] }
  0x46   : > { %2613 = vmatpush.bf16.msra.mxu1 %v15550_v36  ;;  %16176 = vmatpush.bf16.msra.mxu3 %v15550_v36  ;;  %v858_v60 = vpack.c.b16 %v794_v52, %v794_v52  ;;  %v859_v61 = vpack.c.b16 %v795_v53, %v795_v53  ;;  %v821_v10 = vunpack.c.h.b16 %v741_v59  ;;  %v1121_v14 = vunpack.c.h.b16 %v1087_v62  ;;  %v15491_v38 = vld [vmem:[#allocation2 + $0x184] sm:$0xf] }
  0x47   : > { %1048 = vst [vmem:[#allocation2 + $0x18] sm:$0xf] %v860_v58  ;;  %v882_v4 = vpack.c.b16 %v818_v56, %v818_v56  ;;  %v883_v8 = vpack.c.b16 %v819_v57, %v819_v57  ;;  %v12561_v13 = vld [vmem:[#allocation2 + $0xc] sm:$0xf0]  ;;  %v274_v19 = vpack.c.bf16 %v242_v7, %v242_v7  ;;  %v1093_v33 = vsel %vm16585_vm2, %v1061_v6, 0 }
  0x48   : > { %1046 = vst [vmem:[#allocation2] sm:$0xf] %v858_v60  ;;  %v313_v35 = vunpack.c.l.b16 %v273_v17  ;;  %v12564_v36 = vor.u32 %v15443_v12, %v12561_v13  ;;  %v884_v40 = vpack.c.b16 %v820_v5, %v820_v5  ;;  %v885_v41 = vpack.c.b16 %v821_v10, %v821_v10  ;;  %v15561_v17 = vld [vmem:[#allocation7 + $0xb0] sm:$0xff] }
  0x49   : > { %2445 = vmatpush.bf16.msra.mxu0 %v15541_v47  ;;  %16169 = vmatpush.bf16.msra.mxu2 %v15541_v47  ;;  %1047 = vst [vmem:[#allocation2 + $0xc] sm:$0xf] %v859_v61  ;;  %v12753_v39 = vld [vmem:[#allocation2 + $0x18c] sm:$0xf0]  ;;  %v425_v42 = vunpack.c.l.b16 %v274_v19  ;;  %v1152_v44 = vpack.c.b16 %v1120_v11, %v1120_v11  ;;  %v1153_v45 = vpack.c.b16 %v1121_v14, %v1121_v14  ;;  %v1132_v49 = vunpack.c.l.b16 %v1093_v33 }
  0x4a   : > { %2614 = vmatpush.bf16.msra.mxu1 %v15549_v51  ;;  %16177 = vmatpush.bf16.msra.mxu3 %v15549_v51  ;;  %986 = vst [vmem:[#allocation2 + $0x60] sm:$0xf] %v858_v60  ;;  %v16620_v46 = vpack.c.b16 %v305_v16, %v305_v16  ;;  %v16622_v47 = vpack.c.b16 %v417_v34, %v305_v16  ;;  %v1133_v54 = vunpack.c.h.b16 %v1093_v33  ;;  %v15673_v19 = vld [vmem:[#allocation7 + $0x130] sm:$0xff] }
  0x4b   : > { %987 = vst [vmem:[#allocation2 + $0x6c] sm:$0xf] %v859_v61  ;;  %v16624_v50 = vpack.c.b16 %v313_v35, %v313_v35  ;;  %v16626_v51 = vpack.c.b16 %v425_v42, %v313_v35  ;;  %v12756_v53 = vor.u32 %v15491_v38, %v12753_v39  ;;  %v16635_v62 = vpack.c.b16 %v417_v34, %v417_v34 }
  0x4c   : > { %1010 = vst [vmem:[#allocation2 + $0x180] sm:$0xf] %v882_v4  ;;  %v19422_v55 = vshrl.u32 %v16622_v47, 16  ;;  %v19424_v56 = vshll.u32 %v16622_v47, 16  ;;  %v338_v60 = vshrl.u32 %v16620_v46, 16  ;;  %v16637_v63 = vpack.c.b16 %v425_v42, %v425_v42 }
  0x4d   : > { %2446 = vmatpush.bf16.msra.mxu0 %v15540_v0  ;;  %16170 = vmatpush.bf16.msra.mxu2 %v15540_v0  ;;  %1011 = vst [vmem:[#allocation2 + $0x18c] sm:$0xf] %v883_v8  ;;  %v19406_v59 = vshll.u32 %v16626_v51, 16  ;;  %v1164_v1 = vpack.c.b16 %v1132_v49, %v1132_v49  ;;  %v362_v2 = vshrl.u32 %v16624_v50, 16  ;;  %v1165_v5 = vpack.c.b16 %v1133_v54, %v1133_v54  ;;  %v243_v49 = vld [vmem:[%s16551_s30 + $0x90] sm:$0xff] }
  0x4e   : > { %2615 = vmatpush.bf16.msra.mxu1 %v15548_v3  ;;  %16178 = vmatpush.bf16.msra.mxu3 %v15548_v3  ;;  %1049 = vst [vmem:[#allocation2 + $0x24] sm:$0xf] %v861_v9  ;;  %v452_v61 = vrot.slane %v19422_v55, 7  ;;  %v19423_v7 = vshll.u32 %v16635_v62, 16  ;;  %v19404_v8 = vshll.u32 %v16637_v63, 16  ;;  %v1062_v54 = vrot.slane %v16637_v63, 3 }
  0x4f   : > { %v12559_v48 = vld [vmem:[#allocation2] sm:$0xf]  ;;  %988 = vst [vmem:[#allocation2 + $0x78] sm:$0xf] %v860_v58  ;;  %v19405_v58 = vshrl.u32 %v16626_v51, 16 }
  0x50   : > { %v15444_v52 = vld [vmem:[#allocation2 + $0x8] sm:$0xf0]  ;;  %989 = vst [vmem:[#allocation2 + $0x84] sm:$0xf] %v861_v9  ;;  %v455_v6 = vor.u32 %v19424_v56, %v452_v61  ;;  %v612_v12 = vrot.slane %v19423_v7, 3  ;;  %v644_v13 = vrot.slane %v19404_v8, 3 }
  0x51   : > { %2447 = vmatpush.bf16.msra.mxu0 %v15539_v18  ;;  %16171 = vmatpush.bf16.msra.mxu2 %v15539_v18  ;;  %v12560_v57 = vor.u32 %v15444_v52, %v12559_v48  ;;  %1012 = vst [vmem:[#allocation2 + $0x198] sm:$0xf] %v884_v40  ;;  %v508_v3 = vrot.slane %v19405_v58, 7  ;;  %v15665_v18 = vld [vmem:[#allocation7 + $0xf0] sm:$0xff]  ;;  %v12571_v39 = vld [vmem:[#allocation2 + $0x18] sm:$0xf] }
  0x52   : > { %2616 = vmatpush.bf16.msra.mxu1 %v15547_v22  ;;  %16179 = vmatpush.bf16.msra.mxu3 %v15547_v22  ;;  %1013 = vst [vmem:[#allocation2 + $0x1a4] sm:$0xf] %v885_v41  ;;  %v692_v11 = vsel %vm16585_vm2, %v338_v60, %v455_v6  ;;  %v1054_v48 = vrot.slane %v16635_v62, 3  ;;  %v275_v60 = vpack.c.bf16 %v243_v49, %v243_v49 }
  0x53   : > { %v12751_v0 = vld [vmem:[#allocation2 + $0x180] sm:$0xf]  ;;  %1312 = vst [vmem:[#allocation2 + $0x1c] sm:$0xf] %v1152_v44  ;;  %v511_v10 = vor.u32 %v19406_v59, %v508_v3  ;;  %v790_v14 = vunpack.c.l.b16 %v692_v11  ;;  %v791_v15 = vunpack.c.h.b16 %v692_v11  ;;  %v716_v33 = vsel %vm16585_vm2, %v508_v3, %v644_v13 }
  0x54   : > { %2448 = vmatmul.bf16.vlgmr.msra.gmra.mxu0 %v12560_v57  ;;  %v15492_v4 = vld [vmem:[#allocation2 + $0x188] sm:$0xf0]  ;;  %1313 = vst [vmem:[#allocation2 + $0x28] sm:$0xf] %v1153_v45  ;;  %v743_v38 = vsel %vm689_vm1, %v716_v33, 0  ;;  %v244_v57 = vld [vmem:[%s16551_s30 + $0x98] sm:$0xff]  ;;  %v314_v13 = vunpack.c.l.b16 %v275_v60 }
  0x55   : > { %2778 = vmatpush.bf16.msrb.mxu2 %v15562_v23  ;;  %4077 = vmatpush.bf16.msrb.mxu0 %v15674_v43  ;;  %v12752_v9 = vor.u32 %v15492_v4, %v12751_v0  ;;  %1252 = vst [vmem:[#allocation2 + $0x7c] sm:$0xf] %v1152_v44  ;;  %v700_v16 = vsel %vm16585_vm2, %v362_v2, %v511_v10  ;;  %v15447_v40 = vld [vmem:[#allocation2 + $0x20] sm:$0xf0] }
  0x56   : > { %3908 = vmatpush.bf16.msrb.mxu3 %v15666_v32  ;;  %2617 = vmatmul.bf16.vlgmr.msra.gmra.mxu1 %v12564_v36  ;;  %1253 = vst [vmem:[#allocation2 + $0x88] sm:$0xf] %v1153_v45  ;;  %v822_v22 = vunpack.c.l.b16 %v700_v16  ;;  %v823_v23 = vunpack.c.h.b16 %v700_v16  ;;  %v708_v32 = vsel %vm16585_vm2, %v452_v61, %v612_v12  ;;  %v854_v34 = vpack.c.b16 %v790_v14, %v790_v14 }
  0x57   : > { %2697 = vmatmul.bf16.vlgmr.msra.gmra.mxu3 %v12756_v53  ;;  %2528 = vmatmul.bf16.vlgmr.msra.gmra.mxu2 %v12752_v9  ;;  %1276 = vst [vmem:[#allocation2 + $0x19c] sm:$0xf] %v1164_v1  ;;  %v855_v35 = vpack.c.b16 %v791_v15, %v791_v15  ;;  %v727_v36 = vsel %vm689_vm1, %v708_v32, 0  ;;  %v825_v53 = vunpack.c.h.b16 %v743_v38  ;;  %v12572_v61 = vor.u32 %v15447_v40, %v12571_v39 }
  0x58   : > { %1277 = vst [vmem:[#allocation2 + $0x1a8] sm:$0xf] %v1165_v5  ;;  %v886_v41 = vpack.c.b16 %v822_v22, %v822_v22  ;;  %v887_v42 = vpack.c.b16 %v823_v23, %v823_v23  ;;  %v792_v43 = vunpack.c.l.b16 %v727_v36  ;;  %v793_v45 = vunpack.c.h.b16 %v727_v36  ;;  %v12763_v14 = vld [vmem:[#allocation2 + $0x198] sm:$0xf] }
  0x59   : > { %1246 = vst [vmem:[#allocation2 + $0x34] sm:$0xf] %v16620_v46  ;;  %2779 = vmatpush.bf16.msrb.mxu2 %v15561_v17  ;;  %4078 = vmatpush.bf16.msrb.mxu0 %v15673_v19  ;;  %v824_v46 = vunpack.c.l.b16 %v743_v38  ;;  %v1086_v1 = vsel %vm16585_vm2, %v1054_v48, 0  ;;  %v1094_v5 = vsel %vm16585_vm2, %v1062_v54, 0  ;;  %v276_v6 = vpack.c.bf16 %v244_v57, %v244_v57  ;;  %v15495_v15 = vld [vmem:[#allocation2 + $0x1a0] sm:$0xf0] }
  0x5a   : > { %3909 = vmatpush.bf16.msrb.mxu3 %v15665_v18  ;;  %1278 = vst [vmem:[#allocation2 + $0x1b4] sm:$0xf] %v16624_v50  ;;  %v15446_v44 = vld [vmem:[#allocation2 + $0x1c] sm:$0xf]  ;;  %v856_v0 = vpack.c.b16 %v792_v43, %v792_v43  ;;  %v857_v50 = vpack.c.b16 %v793_v45, %v793_v45  ;;  %v1118_v3 = vunpack.c.l.b16 %v1086_v1  ;;  %v1119_v4 = vunpack.c.h.b16 %v1086_v1 }
  0x5b   : > { %982 = vst [vmem:[#allocation2 + $0x30] sm:$0xf] %v854_v34  ;;  %v12573_v52 = vld [vmem:[#allocation2 + $0x24] sm:$0xf0]  ;;  %v888_v11 = vpack.c.b16 %v824_v46, %v824_v46  ;;  %v1134_v12 = vunpack.c.l.b16 %v1094_v5  ;;  %v889_v17 = vpack.c.b16 %v825_v53, %v825_v53  ;;  %v1135_v18 = vunpack.c.h.b16 %v1094_v5 }
  0x5c   : > { %983 = vst [vmem:[#allocation2 + $0x3c] sm:$0xf] %v855_v35  ;;  %v12576_v9 = vor.u32 %v15446_v44, %v12573_v52  ;;  %v426_v19 = vunpack.c.l.b16 %v276_v6  ;;  %v1150_v22 = vpack.c.b16 %v1118_v3, %v1118_v3  ;;  %v1151_v23 = vpack.c.b16 %v1119_v4, %v1119_v4 }
  0x5d   : > { %1014 = vst [vmem:[#allocation2 + $0x1b0] sm:$0xf] %v886_v41  ;;  %v12764_v33 = vor.u32 %v15495_v15, %v12763_v14  ;;  %v1166_v34 = vpack.c.b16 %v1134_v12, %v1134_v12  ;;  %v1167_v35 = vpack.c.b16 %v1135_v18, %v1135_v18  ;;  %v330_v36 = vpack.c.b16 %v314_v13, %v314_v13 }
  0x5e   : > { %v15494_v2 = vld [vmem:[#allocation2 + $0x19c] sm:$0xf]  ;;  %1015 = vst [vmem:[#allocation2 + $0x1bc] sm:$0xf] %v887_v42  ;;  %v16674_v32 = vpack.c.b16 %v426_v19, %v314_v13  ;;  %v16684_v48 = vpack.c.b16 %v426_v19, %v426_v19  ;;  %v15672_v13 = vld [vmem:[#allocation7 + $0x128] sm:$0xff] }
  0x5f   : > { %v12765_v10 = vld [vmem:[#allocation2 + $0x1a4] sm:$0xf0]  ;;  %1247 = vst [vmem:[#allocation2 + $0x40] sm:$0xf] %v16635_v62  ;;  %v365_v40 = vshrl.u32 %v330_v36, 16  ;;  %4079 = vmatpush.bf16.msrb.mxu0 %v15672_v13 }
  0x60   : > { %v12768_v16 = vor.u32 %v15494_v2, %v12765_v10  ;;  %1279 = vst [vmem:[#allocation2 + $0x1c0] sm:$0xf] %v16637_v63  ;;  %v19399_v38 = vshrl.u32 %v16674_v32, 16  ;;  %v19400_v39 = vshll.u32 %v16674_v32, 16  ;;  %v15449_v44 = vld [vmem:[#allocation2 + $0x34] sm:$0xf] }
  0x61   : > { %984 = vst [vmem:[#allocation2 + $0x48] sm:$0xf] %v856_v0  ;;  %v15497_v54 = vld [vmem:[#allocation2 + $0x1b4] sm:$0xf]  ;;  %v19398_v5 = vshll.u32 %v16684_v48, 16  ;;  %v15560_v10 = vld [vmem:[#allocation7 + $0xa8] sm:$0xff] }
  0x62   : > { %985 = vst [vmem:[#allocation2 + $0x54] sm:$0xf] %v857_v50  ;;  %v515_v41 = vrot.slane %v19399_v38, 7  ;;  %v12583_v49 = vld [vmem:[#allocation2 + $0x30] sm:$0xf]  ;;  %2780 = vmatpush.bf16.msrb.mxu2 %v15560_v10 }
  0x63   : > { %1016 = vst [vmem:[#allocation2 + $0x1c8] sm:$0xf] %v888_v11  ;;  %v15450_v52 = vld [vmem:[#allocation2 + $0x38] sm:$0xf0]  ;;  %v648_v6 = vrot.slane %v19398_v5, 3  ;;  %v15664_v11 = vld [vmem:[#allocation7 + $0xe8] sm:$0xff] }
  0x64   : > { %2453 = vmatmul.bf16.gmra.mxu0 %v12572_v61  ;;  %1017 = vst [vmem:[#allocation2 + $0x1d4] sm:$0xf] %v889_v17  ;;  %v518_v42 = vor.u32 %v19400_v39, %v515_v41  ;;  %v12584_v0 = vor.u32 %v15450_v52, %v12583_v49  ;;  %v12775_v1 = vld [vmem:[#allocation2 + $0x1b0] sm:$0xf]  ;;  %3910 = vmatpush.bf16.msrb.mxu3 %v15664_v11  ;;  %v246_v49 = vld [vmem:[%s16551_s30 + $0xa8] sm:$0xff] }
  0x65   : > { %1248 = vst [vmem:[#allocation2 + $0x4c] sm:$0xf] %v1150_v22  ;;  %v15498_v2 = vld [vmem:[#allocation2 + $0x1b8] sm:$0xf0]  ;;  %v717_v12 = vsel %vm16585_vm2, %v515_v41, %v648_v6 }
  0x66   : > { %2622 = vmatmul.bf16.gmra.mxu1 %v12576_v9  ;;  %1249 = vst [vmem:[#allocation2 + $0x58] sm:$0xf] %v1151_v23  ;;  %v701_v43 = vsel %vm16585_vm2, %v365_v40, %v518_v42  ;;  %v12585_v53 = vld [vmem:[#allocation2 + $0x3c] sm:$0xf0]  ;;  %v12776_v4 = vor.u32 %v15498_v2, %v12775_v1  ;;  %v1063_v9 = vrot.slane %v16684_v48, 3  ;;  %v745_v14 = vsel %vm689_vm1, %v717_v12, 0 }
  0x67   : > { %2702 = vmatmul.bf16.gmra.mxu3 %v12768_v16  ;;  %2533 = vmatmul.bf16.gmra.mxu2 %v12764_v33  ;;  %1280 = vst [vmem:[#allocation2 + $0x1cc] sm:$0xf] %v1166_v34  ;;  %v826_v45 = vunpack.c.l.b16 %v701_v43  ;;  %v827_v46 = vunpack.c.h.b16 %v701_v43  ;;  %v12777_v57 = vld [vmem:[#allocation2 + $0x1bc] sm:$0xf0]  ;;  %v12588_v50 = vor.u32 %v15449_v44, %v12585_v53  ;;  %v828_v15 = vunpack.c.l.b16 %v745_v14 }
  0x68   : > { %1281 = vst [vmem:[#allocation2 + $0x1d8] sm:$0xf] %v1167_v35  ;;  %v12780_v3 = vor.u32 %v15497_v54, %v12777_v57  ;;  %v829_v16 = vunpack.c.h.b16 %v745_v14  ;;  %v1095_v17 = vsel %vm16585_vm2, %v1063_v9, 0  ;;  %v12595_v18 = vld [vmem:[#allocation2 + $0x48] sm:$0xf]  ;;  %v229_v35 = vld [vmem:[%s16551_s30 + $0x20] sm:$0xff]  ;;  %v278_v57 = vpack.c.bf16 %v246_v49, %v246_v49 }
  0x69   : > { %1282 = vst [vmem:[#allocation2 + $0x1e4] sm:$0xf] %v330_v36  ;;  %v890_v60 = vpack.c.b16 %v826_v45, %v826_v45  ;;  %v891_v61 = vpack.c.b16 %v827_v46, %v827_v46  ;;  %v15453_v19 = vld [vmem:[#allocation2 + $0x50] sm:$0xf0]  ;;  %v1136_v22 = vunpack.c.l.b16 %v1095_v17  ;;  %v1137_v23 = vunpack.c.h.b16 %v1095_v17  ;;  %v230_v36 = vld [vmem:[%s16551_s30 + $0x28] sm:$0xff]  ;;  %v245_v40 = vld [vmem:[%s16551_s30 + $0xa0] sm:$0xff] }
  0x6a   : > { %1283 = vst [vmem:[#allocation2 + $0x1f0] sm:$0xf] %v16684_v48  ;;  %v892_v33 = vpack.c.b16 %v828_v15, %v828_v15  ;;  %v893_v34 = vpack.c.b16 %v829_v16, %v829_v16  ;;  %v261_v45 = vpack.c.bf16 %v229_v35, %v229_v35  ;;  %v262_v46 = vpack.c.bf16 %v230_v36, %v230_v36 }
  0x6b   : > { %1018 = vst [vmem:[#allocation2 + $0x1e0] sm:$0xf] %v890_v60  ;;  %v1168_v43 = vpack.c.b16 %v1136_v22, %v1136_v22  ;;  %v1169_v44 = vpack.c.b16 %v1137_v23, %v1137_v23  ;;  %v277_v54 = vpack.c.bf16 %v245_v40, %v245_v40  ;;  %v427_v2 = vunpack.c.l.b16 %v278_v57 }
  0x6c   : > { %1019 = vst [vmem:[#allocation2 + $0x1ec] sm:$0xf] %v891_v61  ;;  %v15452_v41 = vld [vmem:[#allocation2 + $0x4c] sm:$0xf]  ;;  %v307_v60 = vunpack.c.l.b16 %v261_v45  ;;  %v419_v61 = vunpack.c.l.b16 %v262_v46  ;;  %v15455_v45 = vld [vmem:[#allocation2 + $0x64] sm:$0xf] }
  0x6d   : > { %v12597_v42 = vld [vmem:[#allocation2 + $0x54] sm:$0xf0]  ;;  %1020 = vst [vmem:[#allocation2 + $0x1f8] sm:$0xf] %v892_v33  ;;  %v315_v1 = vunpack.c.l.b16 %v277_v54  ;;  %v12609_v46 = vld [vmem:[#allocation2 + $0x6c] sm:$0xf0] }
  0x6e   : > { %v15500_v52 = vld [vmem:[#allocation2 + $0x1cc] sm:$0xf]  ;;  %1021 = vst [vmem:[#allocation2 + $0x204] sm:$0xf] %v893_v34  ;;  %v16700_v9 = vpack.c.b16 %v419_v61, %v307_v60  ;;  %v323_v14 = vpack.c.b16 %v307_v60, %v307_v60 }
  0x6f   : > { %v12789_v53 = vld [vmem:[#allocation2 + $0x1d4] sm:$0xf0]  ;;  %1284 = vst [vmem:[#allocation2 + $0x1fc] sm:$0xf] %v1168_v43  ;;  %v16702_v10 = vpack.c.b16 %v427_v2, %v315_v1  ;;  %v331_v15 = vpack.c.b16 %v315_v1, %v315_v1  ;;  %v16720_v43 = vpack.c.b16 %v419_v61, %v419_v61  ;;  %v16723_v1 = vpack.c.b16 %v427_v2, %v427_v2 }
  0x70   : > { %v12792_v6 = vor.u32 %v15500_v52, %v12789_v53  ;;  %1285 = vst [vmem:[#allocation2 + $0x208] sm:$0xf] %v1169_v44  ;;  %v19420_v11 = vshrl.u32 %v16700_v9, 16  ;;  %v19421_v17 = vshll.u32 %v16700_v9, 16  ;;  %v15456_v44 = vld [vmem:[#allocation2 + $0x68] sm:$0xf0] }
  0x71   : > { %v19396_v13 = vshrl.u32 %v16702_v10, 16  ;;  %1254 = vst [vmem:[#allocation2 + $0x94] sm:$0xf] %v323_v14  ;;  %v368_v23 = vshrl.u32 %v331_v15, 16  ;;  %v19397_v33 = vshll.u32 %v16702_v10, 16 }
  0x72   : > { %v466_v16 = vrot.slane %v19420_v11, 7  ;;  %1286 = vst [vmem:[#allocation2 + $0x214] sm:$0xf] %v331_v15  ;;  %v15503_v57 = vld [vmem:[#allocation2 + $0x1e4] sm:$0xf]  ;;  %v19419_v15 = vshll.u32 %v16720_v43, 16 }
  0x73   : > { %v12801_v60 = vld [vmem:[#allocation2 + $0x1ec] sm:$0xf0]  ;;  %1255 = vst [vmem:[#allocation2 + $0xa0] sm:$0xf] %v16720_v43  ;;  %v12799_v61 = vld [vmem:[#allocation2 + $0x1e0] sm:$0xf] }
  0x74   : > { %2458 = vmatmul.bf16.gmra.mxu0 %v12584_v0  ;;  %v12596_v0 = vor.u32 %v15453_v19, %v12595_v18  ;;  %v522_v18 = vrot.slane %v19396_v13, 7  ;;  %v344_v19 = vshrl.u32 %v323_v14, 16  ;;  %v469_v22 = vor.u32 %v19421_v17, %v466_v16  ;;  %1287 = vst [vmem:[#allocation2 + $0x220] sm:$0xf] %v16723_v1 }
  0x75   : > { %v620_v2 = vrot.slane %v19419_v15, 3  ;;  %v15507_v5 = vld [vmem:[#allocation2 + $0x200] sm:$0xf0] }
  0x76   : > { %2627 = vmatmul.bf16.gmra.mxu1 %v12588_v50  ;;  %v12600_v50 = vor.u32 %v15452_v41, %v12597_v42  ;;  %v694_v34 = vsel %vm16585_vm2, %v344_v19, %v469_v22  ;;  %v525_v35 = vor.u32 %v19397_v33, %v522_v18  ;;  %v12607_v41 = vld [vmem:[#allocation2 + $0x60] sm:$0xf]  ;;  %v19395_v19 = vshll.u32 %v16723_v1, 16 }
  0x77   : > { %2707 = vmatmul.bf16.gmra.mxu3 %v12780_v3  ;;  %2538 = vmatmul.bf16.gmra.mxu2 %v12776_v4  ;;  %v12787_v3 = vld [vmem:[#allocation2 + $0x1c8] sm:$0xf]  ;;  %v15501_v4 = vld [vmem:[#allocation2 + $0x1d0] sm:$0xf0]  ;;  %v798_v36 = vunpack.c.l.b16 %v694_v34  ;;  %v799_v40 = vunpack.c.h.b16 %v694_v34  ;;  %v15559_v34 = vld [vmem:[#allocation7 + $0xa0] sm:$0xff] }
  0x78   : > { %v12788_v12 = vor.u32 %v15501_v4, %v12787_v3  ;;  %v702_v42 = vsel %vm16585_vm2, %v368_v23, %v525_v35  ;;  %v12608_v3 = vor.u32 %v15456_v44, %v12607_v41  ;;  %v12612_v4 = vor.u32 %v15455_v45, %v12609_v46  ;;  %v15663_v35 = vld [vmem:[#allocation7 + $0xe0] sm:$0xff]  ;;  %2781 = vmatpush.bf16.msrb.mxu2 %v15559_v34 }
  0x79   : > { %v862_v49 = vpack.c.b16 %v798_v36, %v798_v36  ;;  %v863_v52 = vpack.c.b16 %v799_v40, %v799_v40  ;;  %v830_v53 = vunpack.c.l.b16 %v702_v42  ;;  %v831_v54 = vunpack.c.h.b16 %v702_v42  ;;  %v15671_v42 = vld [vmem:[#allocation7 + $0x120] sm:$0xff]  ;;  %3911 = vmatpush.bf16.msrb.mxu3 %v15663_v35  ;;  %v248_v35 = vld [vmem:[%s16551_s30 + $0xb8] sm:$0xff] }
  0x7a   : > { %v652_v22 = vrot.slane %v19395_v19, 3  ;;  %v1056_v23 = vrot.slane %v16720_v43, 3  ;;  %v710_v36 = vsel %vm16585_vm2, %v466_v16, %v620_v2  ;;  %v1064_v41 = vrot.slane %v16723_v1, 3  ;;  %4080 = vmatpush.bf16.msrb.mxu0 %v15671_v42  ;;  %v247_v2 = vld [vmem:[%s16551_s30 + $0xb0] sm:$0xff] }
  0x7b   : > { %990 = vst [vmem:[#allocation2 + $0x90] sm:$0xf] %v862_v49  ;;  %v731_v44 = vsel %vm689_vm1, %v710_v36, 0  ;;  %v12619_v49 = vld [vmem:[#allocation2 + $0x78] sm:$0xf]  ;;  %v280_v19 = vpack.c.bf16 %v248_v35, %v248_v35 }
  0x7c   : > { %991 = vst [vmem:[#allocation2 + $0x9c] sm:$0xf] %v863_v52  ;;  %v718_v40 = vsel %vm16585_vm2, %v522_v18, %v652_v22  ;;  %v1088_v46 = vsel %vm16585_vm2, %v1056_v23, 0  ;;  %v800_v52 = vunpack.c.l.b16 %v731_v44  ;;  %v801_v16 = vunpack.c.h.b16 %v731_v44  ;;  %v15459_v18 = vld [vmem:[#allocation2 + $0x80] sm:$0xf0] }
  0x7d   : > { %v747_v45 = vsel %vm689_vm1, %v718_v40, 0  ;;  %v15506_v36 = vld [vmem:[#allocation2 + $0x1fc] sm:$0xf]  ;;  %v12813_v40 = vld [vmem:[#allocation2 + $0x204] sm:$0xf0] }
  0x7e   : > { %v12816_v38 = vor.u32 %v15506_v36, %v12813_v40 }
  0x82   : > { %v12631_v40 = vld [vmem:[#allocation2 + $0x90] sm:$0xf] }
  0x84   : > { %2463 = vmatmul.bf16.gmra.mxu0 %v12596_v0  ;;  %v894_v0 = vpack.c.b16 %v830_v53, %v830_v53  ;;  %v832_v53 = vunpack.c.l.b16 %v747_v45 }
  0x86   : > { %2632 = vmatmul.bf16.gmra.mxu1 %v12600_v50  ;;  %v895_v50 = vpack.c.b16 %v831_v54, %v831_v54  ;;  %1022 = vst [vmem:[#allocation2 + $0x210] sm:$0xf] %v894_v0  ;;  %v15458_v54 = vld [vmem:[#allocation2 + $0x7c] sm:$0xf]  ;;  %v1122_v0 = vunpack.c.l.b16 %v1088_v46 }
  0x87   : > { %2712 = vmatmul.bf16.gmra.mxu3 %v12792_v6  ;;  %2543 = vmatmul.bf16.gmra.mxu2 %v12788_v12  ;;  %v15504_v6 = vld [vmem:[#allocation2 + $0x1e8] sm:$0xf0]  ;;  %v12804_v12 = vor.u32 %v15503_v57, %v12801_v60  ;;  %v12621_v57 = vld [vmem:[#allocation2 + $0x84] sm:$0xf0]  ;;  %v833_v60 = vunpack.c.h.b16 %v747_v45 }
  0x88   : > { %1023 = vst [vmem:[#allocation2 + $0x21c] sm:$0xf] %v895_v50  ;;  %v12800_v14 = vor.u32 %v15504_v6, %v12799_v61  ;;  %v1123_v50 = vunpack.c.h.b16 %v1088_v46  ;;  %v896_v61 = vpack.c.b16 %v832_v53, %v832_v53  ;;  %v1096_v6 = vsel %vm16585_vm2, %v1064_v41, 0 }
  0x89   : > { %v897_v22 = vpack.c.b16 %v833_v60, %v833_v60  ;;  %v1154_v23 = vpack.c.b16 %v1122_v0, %v1122_v0  ;;  %v1138_v34 = vunpack.c.l.b16 %v1096_v6  ;;  %v1139_v42 = vunpack.c.h.b16 %v1096_v6  ;;  %v12811_v0 = vld [vmem:[#allocation2 + $0x1f8] sm:$0xf] }
  0x8a   : > { %v279_v46 = vpack.c.bf16 %v247_v2, %v247_v2  ;;  %v1155_v53 = vpack.c.b16 %v1123_v50, %v1123_v50  ;;  %1024 = vst [vmem:[#allocation2 + $0x228] sm:$0xf] %v896_v61 }
  0x8b   : > { %v1170_v41 = vpack.c.b16 %v1138_v34, %v1138_v34  ;;  %1025 = vst [vmem:[#allocation2 + $0x234] sm:$0xf] %v897_v22  ;;  %v1171_v39 = vpack.c.b16 %v1139_v42, %v1139_v42  ;;  %v15461_v34 = vld [vmem:[#allocation2 + $0x94] sm:$0xf]  ;;  %v15462_v42 = vld [vmem:[#allocation2 + $0x98] sm:$0xf0] }
  0x8c   : > { %v316_v60 = vunpack.c.l.b16 %v279_v46  ;;  %1256 = vst [vmem:[#allocation2 + $0xac] sm:$0xf] %v1154_v23 }
  0x8d   : > { %1257 = vst [vmem:[#allocation2 + $0xb8] sm:$0xf] %v1155_v53  ;;  %v12825_v53 = vld [vmem:[#allocation2 + $0x21c] sm:$0xf0] }
  0x8e   : > { %1288 = vst [vmem:[#allocation2 + $0x22c] sm:$0xf] %v1170_v41 }
  0x8f   : > { %1289 = vst [vmem:[#allocation2 + $0x238] sm:$0xf] %v1171_v39 }
  0x92   : > { %v15513_v29 = vld [vmem:[#allocation2 + $0x230] sm:$0xf0] }
  0x94   : > { %2468 = vmatmul.bf16.gmra.mxu0 %v12608_v3  ;;  %v864_v3 = vpack.c.b16 %v800_v52, %v800_v52  ;;  %v12620_v52 = vor.u32 %v15459_v18, %v12619_v49  ;;  %v12812_v18 = vor.u32 %v15507_v5, %v12811_v0 }
  0x96   : > { %2637 = vmatmul.bf16.gmra.mxu1 %v12612_v4  ;;  %v865_v4 = vpack.c.b16 %v801_v16, %v801_v16  ;;  %992 = vst [vmem:[#allocation2 + $0xa8] sm:$0xf] %v864_v3  ;;  %v12624_v16 = vor.u32 %v15458_v54, %v12621_v57  ;;  %v428_v3 = vunpack.c.l.b16 %v280_v19 }
  0x97   : > { %2717 = vmatmul.bf16.gmra.mxu3 %v12804_v12  ;;  %2548 = vmatmul.bf16.gmra.mxu2 %v12800_v14  ;;  %v231_v12 = vld [vmem:[%s16551_s30 + $0x30] sm:$0xff]  ;;  %v232_v14 = vld [vmem:[%s16551_s30 + $0x38] sm:$0xff] }
  0x98   : > { %v263_v44 = vpack.c.bf16 %v231_v12, %v231_v12  ;;  %v264_v45 = vpack.c.bf16 %v232_v14, %v232_v14  ;;  %993 = vst [vmem:[#allocation2 + $0xb4] sm:$0xf] %v865_v4  ;;  %v16750_v49 = vpack.c.b16 %v428_v3, %v316_v60  ;;  %v332_v4 = vpack.c.b16 %v316_v60, %v316_v60 }
  0x99   : > { %v16771_v0 = vpack.c.b16 %v428_v3, %v428_v3 }
  0x9a   : > { %v308_v13 = vunpack.c.l.b16 %v263_v44  ;;  %v420_v33 = vunpack.c.l.b16 %v264_v45  ;;  %v19402_v19 = vshrl.u32 %v16750_v49, 16  ;;  %v19403_v12 = vshll.u32 %v16750_v49, 16  ;;  %1290 = vst [vmem:[#allocation2 + $0x244] sm:$0xf] %v332_v4  ;;  %v12633_v44 = vld [vmem:[#allocation2 + $0x9c] sm:$0xf0] }
  0x9b   : > { %v371_v2 = vshrl.u32 %v332_v4, 16  ;;  %v12823_v4 = vld [vmem:[#allocation2 + $0x210] sm:$0xf]  ;;  %1291 = vst [vmem:[#allocation2 + $0x250] sm:$0xf] %v16771_v0 }
  0x9c   : > { %v16748_v6 = vpack.c.b16 %v420_v33, %v308_v13  ;;  %v324_v57 = vpack.c.b16 %v308_v13, %v308_v13  ;;  %v16768_v36 = vpack.c.b16 %v420_v33, %v420_v33 }
  0x9e   : > { %v19417_v54 = vshrl.u32 %v16748_v6, 16  ;;  %v19418_v50 = vshll.u32 %v16748_v6, 16  ;;  %v347_v14 = vshrl.u32 %v324_v57, 16  ;;  %1258 = vst [vmem:[#allocation2 + $0xc4] sm:$0xf] %v324_v57  ;;  %v12636_v57 = vor.u32 %v15461_v34, %v12633_v44 }
  0x9f   : > { %1259 = vst [vmem:[#allocation2 + $0xd0] sm:$0xf] %v16768_v36  ;;  %v1065_v34 = vrot.slane %v16771_v0, 3 }
  0xa0   : > { %v473_v61 = vrot.slane %v19417_v54, 7 }
  0xa2   : > { %v476_v5 = vor.u32 %v19418_v50, %v473_v61 }
  0xa4   : > { %2473 = vmatmul.bf16.gmra.mxu0 %v12620_v52  ;;  %v695_v39 = vsel %vm16585_vm2, %v347_v14, %v476_v5  ;;  %v15510_v14 = vld [vmem:[#allocation2 + $0x218] sm:$0xf0] }
  0xa5   : > { %v802_v22 = vunpack.c.l.b16 %v695_v39  ;;  %v803_v23 = vunpack.c.h.b16 %v695_v39  ;;  %v19410_v39 = vshll.u32 %v16768_v36, 16 }
  0xa6   : > { %2642 = vmatmul.bf16.gmra.mxu1 %v12624_v16  ;;  %v15509_v16 = vld [vmem:[#allocation2 + $0x214] sm:$0xf] }
  0xa7   : > { %2722 = vmatmul.bf16.gmra.mxu3 %v12816_v38  ;;  %2553 = vmatmul.bf16.gmra.mxu2 %v12812_v18  ;;  %v529_v38 = vrot.slane %v19402_v19, 7  ;;  %v866_v45 = vpack.c.b16 %v802_v22, %v802_v22  ;;  %v867_v46 = vpack.c.b16 %v803_v23, %v803_v23  ;;  %v12632_v18 = vor.u32 %v15462_v42, %v12631_v40  ;;  %v15662_v40 = vld [vmem:[#allocation7 + $0xd8] sm:$0xff] }
  0xa8   : > { %v12828_v5 = vor.u32 %v15509_v16, %v12825_v53  ;;  %v624_v3 = vrot.slane %v19410_v39, 3  ;;  %v1057_v23 = vrot.slane %v16768_v36, 3  ;;  %v1097_v16 = vsel %vm16585_vm2, %v1065_v34, 0  ;;  %3912 = vmatpush.bf16.msrb.mxu3 %v15662_v40  ;;  %v234_v34 = vld [vmem:[%s16551_s30 + $0x48] sm:$0xff]  ;;  %v12837_v19 = vld [vmem:[#allocation2 + $0x234] sm:$0xf0] }
  0xa9   : > { %v532_v13 = vor.u32 %v19403_v12, %v529_v38  ;;  %994 = vst [vmem:[#allocation2 + $0xc0] sm:$0xf] %v866_v45  ;;  %v266_v8 = vpack.c.bf16 %v234_v34, %v234_v34 }
  0xaa   : > { %995 = vst [vmem:[#allocation2 + $0xcc] sm:$0xf] %v867_v46  ;;  %v711_v42 = vsel %vm16585_vm2, %v473_v61, %v624_v3 }
  0xab   : > { %v703_v35 = vsel %vm16585_vm2, %v371_v2, %v532_v13  ;;  %v12824_v2 = vor.u32 %v15510_v14, %v12823_v4  ;;  %v19401_v13 = vshll.u32 %v16771_v0, 16  ;;  %v733_v45 = vsel %vm689_vm1, %v711_v42, 0  ;;  %v15670_v14 = vld [vmem:[#allocation7 + $0x118] sm:$0xff] }
  0xac   : > { %v834_v52 = vunpack.c.l.b16 %v703_v35  ;;  %v835_v41 = vunpack.c.h.b16 %v703_v35  ;;  %v15558_v35 = vld [vmem:[#allocation7 + $0x98] sm:$0xff]  ;;  %v804_v53 = vunpack.c.l.b16 %v733_v45  ;;  %v1141_v42 = vunpack.c.h.b16 %v1097_v16  ;;  %4081 = vmatpush.bf16.msrb.mxu0 %v15670_v14 }
  0xad   : > { %v656_v22 = vrot.slane %v19401_v13, 3  ;;  %2782 = vmatpush.bf16.msrb.mxu2 %v15558_v35  ;;  %v12645_v35 = vld [vmem:[#allocation2 + $0xb4] sm:$0xf0]  ;;  %v15512_v13 = vld [vmem:[#allocation2 + $0x22c] sm:$0xf] }
  0xae   : > { %v898_v60 = vpack.c.b16 %v834_v52, %v834_v52  ;;  %v899_v33 = vpack.c.b16 %v835_v41, %v835_v41  ;;  %v1089_v52 = vsel %vm16585_vm2, %v1057_v23, 0  ;;  %v805_v41 = vunpack.c.h.b16 %v733_v45  ;;  %v233_v23 = vld [vmem:[%s16551_s30 + $0x40] sm:$0xff]  ;;  %v250_v45 = vld [vmem:[%s16551_s30 + $0xc8] sm:$0xff] }
  0xaf   : > { %v719_v44 = vsel %vm16585_vm2, %v529_v38, %v656_v22  ;;  %v15465_v38 = vld [vmem:[#allocation2 + $0xb0] sm:$0xf0]  ;;  %v1125_v4 = vunpack.c.h.b16 %v1089_v52  ;;  %v1140_v22 = vunpack.c.l.b16 %v1097_v16  ;;  %v12835_v16 = vld [vmem:[#allocation2 + $0x228] sm:$0xf]  ;;  %v12840_v30 = vor.u32 %v15512_v13, %v12837_v19 }
  0xb0   : > { %1026 = vst [vmem:[#allocation2 + $0x240] sm:$0xf] %v898_v60  ;;  %v749_v46 = vsel %vm689_vm1, %v719_v44, 0  ;;  %v12643_v60 = vld [vmem:[#allocation2 + $0xa8] sm:$0xf]  ;;  %v249_v44 = vld [vmem:[%s16551_s30 + $0xc0] sm:$0xff]  ;;  %v1173_v39 = vpack.c.b16 %v1141_v42, %v1141_v42 }
  0xb1   : > { %1027 = vst [vmem:[#allocation2 + $0x24c] sm:$0xf] %v899_v33  ;;  %v836_v61 = vunpack.c.l.b16 %v749_v46  ;;  %v1124_v33 = vunpack.c.l.b16 %v1089_v52  ;;  %v12644_v52 = vor.u32 %v15465_v38, %v12643_v60  ;;  %v1172_v59 = vpack.c.b16 %v1140_v22, %v1140_v22  ;;  %v15468_v42 = vld [vmem:[#allocation2 + $0xc8] sm:$0xf0] }
  0xb2   : > { %v12836_v38 = vor.u32 %v15513_v29, %v12835_v16  ;;  %1293 = vst [vmem:[#allocation2 + $0x268] sm:$0xf] %v1173_v39 }
  0xb3   : > { %v900_v3 = vpack.c.b16 %v836_v61, %v836_v61  ;;  %v1156_v12 = vpack.c.b16 %v1124_v33, %v1124_v33  ;;  %v282_v61 = vpack.c.bf16 %v250_v45, %v250_v45  ;;  %1292 = vst [vmem:[#allocation2 + $0x25c] sm:$0xf] %v1172_v59 }
  0xb4   : > { %2478 = vmatmul.bf16.gmra.mxu0 %v12632_v18  ;;  %v15464_v18 = vld [vmem:[#allocation2 + $0xac] sm:$0xf] }
  0xb5   : > { %v12648_v58 = vor.u32 %v15464_v18, %v12645_v35  ;;  %1028 = vst [vmem:[#allocation2 + $0x258] sm:$0xf] %v900_v3 }
  0xb6   : > { %2647 = vmatmul.bf16.gmra.mxu1 %v12636_v57  ;;  %v837_v57 = vunpack.c.h.b16 %v749_v46  ;;  %v265_v46 = vpack.c.bf16 %v233_v23, %v233_v23  ;;  %1260 = vst [vmem:[#allocation2 + $0xdc] sm:$0xf] %v1156_v12  ;;  %v15467_v23 = vld [vmem:[#allocation2 + $0xc4] sm:$0xf] }
  0xb7   : > { %2727 = vmatmul.bf16.gmra.mxu3 %v12828_v5  ;;  %2558 = vmatmul.bf16.gmra.mxu2 %v12824_v2  ;;  %v868_v5 = vpack.c.b16 %v804_v53, %v804_v53  ;;  %v869_v2 = vpack.c.b16 %v805_v41, %v805_v41  ;;  %v1157_v53 = vpack.c.b16 %v1125_v4, %v1125_v4 }
  0xb8   : > { %v901_v40 = vpack.c.b16 %v837_v57, %v837_v57  ;;  %v281_v41 = vpack.c.bf16 %v249_v44, %v249_v44  ;;  %v309_v31 = vunpack.c.l.b16 %v265_v46  ;;  %v421_v57 = vunpack.c.l.b16 %v266_v8  ;;  %v12657_v44 = vld [vmem:[#allocation2 + $0xcc] sm:$0xf0] }
  0xb9   : > { %996 = vst [vmem:[#allocation2 + $0xd8] sm:$0xf] %v868_v5  ;;  %v429_v5 = vunpack.c.l.b16 %v282_v61 }
  0xba   : > { %997 = vst [vmem:[#allocation2 + $0xe4] sm:$0xf] %v869_v2  ;;  %v317_v14 = vunpack.c.l.b16 %v281_v41  ;;  %v16796_v33 = vpack.c.b16 %v421_v57, %v309_v31  ;;  %v325_v8 = vpack.c.b16 %v309_v31, %v309_v31  ;;  %v16816_v35 = vpack.c.b16 %v421_v57, %v421_v57  ;;  %v12849_v41 = vld [vmem:[#allocation2 + $0x24c] sm:$0xf0] }
  0xbb   : > { %1029 = vst [vmem:[#allocation2 + $0x264] sm:$0xf] %v901_v40  ;;  %v12655_v40 = vld [vmem:[#allocation2 + $0xc0] sm:$0xf] }
  0xbc   : > { %1261 = vst [vmem:[#allocation2 + $0xe8] sm:$0xf] %v1157_v53  ;;  %v16798_v60 = vpack.c.b16 %v429_v5, %v317_v14  ;;  %v19415_v18 = vshrl.u32 %v16796_v33, 16  ;;  %v19416_v19 = vshll.u32 %v16796_v33, 16  ;;  %v333_v13 = vpack.c.b16 %v317_v14, %v317_v14  ;;  %v15515_v53 = vld [vmem:[#allocation2 + $0x244] sm:$0xf] }
  0xbd   : > { %v350_v3 = vshrl.u32 %v325_v8, 16  ;;  %1262 = vst [vmem:[#allocation2 + $0xf4] sm:$0xf] %v325_v8  ;;  %v16819_v14 = vpack.c.b16 %v429_v5, %v429_v5  ;;  %v12660_v8 = vor.u32 %v15467_v23, %v12657_v44  ;;  %v19414_v5 = vshll.u32 %v16816_v35, 16  ;;  %v12859_v56 = vld [vmem:[#allocation2 + $0x258] sm:$0xf] }
  0xbe   : > { %v19412_v4 = vshrl.u32 %v16798_v60, 16  ;;  %v480_v12 = vrot.slane %v19415_v18, 7  ;;  %v19413_v2 = vshll.u32 %v16798_v60, 16  ;;  %1294 = vst [vmem:[#allocation2 + $0x274] sm:$0xf] %v333_v13 }
  0xbf   : > { %1263 = vst [vmem:[#allocation2 + $0x100] sm:$0xf] %v16816_v35  ;;  %v628_v23 = vrot.slane %v19414_v5, 3  ;;  %v252_v5 = vld [vmem:[%s16551_s30 + $0xd8] sm:$0xff] }
  0xc0   : > { %v483_v29 = vor.u32 %v19416_v19, %v480_v12  ;;  %1295 = vst [vmem:[#allocation2 + $0x280] sm:$0xf] %v16819_v14  ;;  %v15518_v18 = vld [vmem:[#allocation2 + $0x25c] sm:$0xf]  ;;  %v12861_v19 = vld [vmem:[#allocation2 + $0x264] sm:$0xf0] }
  0xc2   : > { %v696_v31 = vsel %vm16585_vm2, %v350_v3, %v483_v29  ;;  %v12847_v29 = vld [vmem:[#allocation2 + $0x240] sm:$0xf] }
  0xc3   : > { %v806_v39 = vunpack.c.l.b16 %v696_v31  ;;  %v807_v22 = vunpack.c.h.b16 %v696_v31  ;;  %v12852_v31 = vor.u32 %v15515_v53, %v12849_v41 }
  0xc4   : > { %2483 = vmatmul.bf16.gmra.mxu0 %v12644_v52 }
  0xc5   : > { %v870_v45 = vpack.c.b16 %v806_v39, %v806_v39  ;;  %v871_v46 = vpack.c.b16 %v807_v22, %v807_v22  ;;  %v19411_v22 = vshll.u32 %v16819_v14, 16 }
  0xc6   : > { %2652 = vmatmul.bf16.gmra.mxu1 %v12648_v58  ;;  %v374_v58 = vshrl.u32 %v333_v13, 16 }
  0xc7   : > { %2732 = vmatmul.bf16.gmra.mxu3 %v12840_v30  ;;  %2563 = vmatmul.bf16.gmra.mxu2 %v12836_v38  ;;  %v536_v30 = vrot.slane %v19412_v4, 7  ;;  %998 = vst [vmem:[#allocation2 + $0xf0] sm:$0xf] %v870_v45  ;;  %v12656_v38 = vor.u32 %v15468_v42, %v12655_v40  ;;  %v1058_v40 = vrot.slane %v16816_v35, 3  ;;  %v1066_v42 = vrot.slane %v16819_v14, 3  ;;  %v15557_v45 = vld [vmem:[#allocation7 + $0x90] sm:$0xff] }
  0xc8   : > { %999 = vst [vmem:[#allocation2 + $0xfc] sm:$0xf] %v871_v46  ;;  %v15661_v46 = vld [vmem:[#allocation7 + $0xd0] sm:$0xff]  ;;  %2783 = vmatpush.bf16.msrb.mxu2 %v15557_v45 }
  0xc9   : > { %v539_v59 = vor.u32 %v19413_v2, %v536_v30  ;;  %3913 = vmatpush.bf16.msrb.mxu3 %v15661_v46  ;;  %v15669_v45 = vld [vmem:[#allocation7 + $0x110] sm:$0xff] }
  0xca   : > { %v251_v2 = vld [vmem:[%s16551_s30 + $0xd0] sm:$0xff]  ;;  %4082 = vmatpush.bf16.msrb.mxu0 %v15669_v45  ;;  %v15519_v45 = vld [vmem:[#allocation2 + $0x260] sm:$0xf0] }
  0xcb   : > { %v704_v34 = vsel %vm16585_vm2, %v374_v58, %v539_v59  ;;  %v15516_v58 = vld [vmem:[#allocation2 + $0x248] sm:$0xf0] }
  0xcc   : > { %v838_v52 = vunpack.c.l.b16 %v704_v34  ;;  %v839_v61 = vunpack.c.h.b16 %v704_v34  ;;  %v12848_v39 = vor.u32 %v15516_v58, %v12847_v29  ;;  %v660_v34 = vrot.slane %v19411_v22, 3  ;;  %v12667_v29 = vld [vmem:[#allocation2 + $0xd8] sm:$0xf]  ;;  %v15471_v58 = vld [vmem:[#allocation2 + $0xe0] sm:$0xf0] }
  0xcd   : > { %v12668_v50 = vor.u32 %v15471_v58, %v12667_v29 }
  0xce   : > { %v902_v16 = vpack.c.b16 %v838_v52, %v838_v52  ;;  %v903_v57 = vpack.c.b16 %v839_v61, %v839_v61  ;;  %v712_v52 = vsel %vm16585_vm2, %v480_v12, %v628_v23  ;;  %v720_v53 = vsel %vm16585_vm2, %v536_v30, %v660_v34 }
  0xcf   : > { %v1098_v30 = vsel %vm16585_vm2, %v1066_v42, 0 }
  0xd0   : > { %1030 = vst [vmem:[#allocation2 + $0x270] sm:$0xf] %v902_v16  ;;  %v735_v16 = vsel %vm689_vm1, %v712_v52, 0  ;;  %v1142_v4 = vunpack.c.l.b16 %v1098_v30  ;;  %v1143_v54 = vunpack.c.h.b16 %v1098_v30 }
  0xd1   : > { %v2449_v13 = vpop.f32.mrf.mxu0  ;;  %1031 = vst [vmem:[#allocation2 + $0x27c] sm:$0xf] %v903_v57  ;;  %v809_v12 = vunpack.c.h.b16 %v735_v16 }
  0xd2   : > { %v1175_v30 = vpack.c.b16 %v1143_v54, %v1143_v54 }
  0xd3   : > { %v2618_v3 = vpop.f32.mrf.mxu1  ;;  %v873_v52 = vpack.c.b16 %v809_v12, %v809_v12  ;;  %v284_v12 = vpack.c.bf16 %v252_v5, %v252_v5 }
  0xd4   : > { %v16821_v59 = vadd.f32 %v2618_v3, %v2449_v13  ;;  %2488 = vmatmul.bf16.gmra.mxu0 %v12656_v38  ;;  %v751_v38 = vsel %vm689_vm1, %v720_v53, 0  ;;  %v808_v13 = vunpack.c.l.b16 %v735_v16  ;;  %v12669_v16 = vld [vmem:[#allocation2 + $0xe4] sm:$0xf0]  ;;  %1297 = vst [vmem:[#allocation2 + $0x298] sm:$0xf] %v1175_v30 }
  0xd5   : > { %v841_v23 = vunpack.c.h.b16 %v751_v38  ;;  %1001 = vst [vmem:[#allocation2 + $0x114] sm:$0xf] %v873_v52 }
  0xd6   : > { %2657 = vmatmul.bf16.gmra.mxu1 %v12660_v8  ;;  %v1090_v8 = vsel %vm16585_vm2, %v1058_v40, 0  ;;  %v872_v46 = vpack.c.b16 %v808_v13, %v808_v13 }
  0xd7   : > { %2737 = vmatmul.bf16.gmra.mxu3 %v12852_v31  ;;  %2568 = vmatmul.bf16.gmra.mxu2 %v12848_v39  ;;  %v15470_v31 = vld [vmem:[#allocation2 + $0xdc] sm:$0xf]  ;;  %v840_v39 = vunpack.c.l.b16 %v751_v38  ;;  %v1126_v34 = vunpack.c.l.b16 %v1090_v8  ;;  %v1127_v53 = vunpack.c.h.b16 %v1090_v8  ;;  %v905_v42 = vpack.c.b16 %v841_v23, %v841_v23 }
  0xd8   : > { %1000 = vst [vmem:[#allocation2 + $0x108] sm:$0xf] %v872_v46  ;;  %v283_v8 = vpack.c.bf16 %v251_v2, %v251_v2  ;;  %v12672_v11 = vor.u32 %v15470_v31, %v12669_v16  ;;  %v12864_v46 = vor.u32 %v15518_v18, %v12861_v19 }
  0xd9   : > { %v2451_v41 = vpop.f32.mrf.mxu0  ;;  %v904_v22 = vpack.c.b16 %v840_v39, %v840_v39  ;;  %v1158_v38 = vpack.c.b16 %v1126_v34, %v1126_v34  ;;  %v1159_v13 = vpack.c.b16 %v1127_v53, %v1127_v53  ;;  %v1174_v39 = vpack.c.b16 %v1142_v4, %v1142_v4  ;;  %1033 = vst [vmem:[#allocation2 + $0x294] sm:$0xf] %v905_v42 }
  0xda   : > { %v2698_v44 = vpop.f32.mrf.mxu3  ;;  %v2529_v3 = vpop.f32.mrf.mxu2  ;;  %v318_v34 = vunpack.c.l.b16 %v283_v8  ;;  %v12860_v4 = vor.u32 %v15519_v45, %v12859_v56  ;;  %v12681_v45 = vld [vmem:[#allocation2 + $0xfc] sm:$0xf0] }
  0xdb   : > { %v2620_v61 = vpop.f32.mrf.mxu1  ;;  %v16844_v40 = vadd.f32 %v2698_v44, %v2529_v3  ;;  %1032 = vst [vmem:[#allocation2 + $0x288] sm:$0xf] %v904_v22 }
  0xdc   : > { %v16840_v57 = vadd.f32 %v2620_v61, %v2451_v41  ;;  %v235_v41 = vld [vmem:[%s16551_s30 + $0x50] sm:$0xff]  ;;  %v236_v61 = vld [vmem:[%s16551_s30 + $0x58] sm:$0xff]  ;;  %1264 = vst [vmem:[#allocation2 + $0x10c] sm:$0xf] %v1158_v38  ;;  %v334_v18 = vpack.c.b16 %v318_v34, %v318_v34 }
  0xdd   : > { %19510 = vst [vmem:[#allocation14_spill] sm:$0xff] %v16844_v40  ;;  %v267_v44 = vpack.c.bf16 %v235_v41, %v235_v41  ;;  %v268_v3 = vpack.c.bf16 %v236_v61, %v236_v61  ;;  %v430_v41 = vunpack.c.l.b16 %v284_v12 }
  0xde   : > { %1265 = vst [vmem:[#allocation2 + $0x118] sm:$0xf] %v1159_v13  ;;  %v377_v31 = vshrl.u32 %v334_v18, 16  ;;  %v15473_v13 = vld [vmem:[#allocation2 + $0xf4] sm:$0xf] }
  0xdf   : > { %v310_v23 = vunpack.c.l.b16 %v267_v44  ;;  %v422_v17 = vunpack.c.l.b16 %v268_v3  ;;  %v16852_v5 = vpack.c.b16 %v430_v41, %v318_v34  ;;  %1296 = vst [vmem:[#allocation2 + $0x28c] sm:$0xf] %v1174_v39  ;;  %v12679_v39 = vld [vmem:[#allocation2 + $0xf0] sm:$0xf] }
  0xe0   : > { %1298 = vst [vmem:[#allocation2 + $0x2a4] sm:$0xf] %v334_v18 }
  0xe1   : > { %v2454_v55 = vpop.f32.mrf.mxu0  ;;  %v16850_v29 = vpack.c.b16 %v422_v17, %v310_v23  ;;  %19511 = vst [vmem:[#allocation15_spill] sm:$0xff] %v16852_v5  ;;  %v19426_v19 = vshrl.u32 %v16852_v5, 16  ;;  %v16875_v12 = vpack.c.b16 %v422_v17, %v422_v17 }
  0xe2   : > { %v2700_v15 = vpop.f32.mrf.mxu3  ;;  %v2531_v2 = vpop.f32.mrf.mxu2 }
  0xe3   : > { %v2623_v7 = vpop.f32.mrf.mxu1  ;;  %v16854_v22 = vadd.f32 %v2700_v15, %v2531_v2  ;;  %v19429_v55 = vshrl.u32 %v16850_v29, 16  ;;  %v19430_v54 = vshll.u32 %v16850_v29, 16  ;;  %v19427_v15 = vshll.u32 %v16852_v5, 16  ;;  %v15521_v2 = vld [vmem:[#allocation2 + $0x274] sm:$0xf] }
  0xe4   : > { %2493 = vmatmul.bf16.gmra.mxu0 %v12668_v50  ;;  %v326_v7 = vpack.c.b16 %v310_v23, %v310_v23  ;;  %v543_v52 = vrot.slane %v19426_v19, 7  ;;  %v15474_v23 = vld [vmem:[#allocation2 + $0xf8] sm:$0xf0]  ;;  %1267 = vst [vmem:[#allocation2 + $0x130] sm:$0xf] %v16875_v12 }
  0xe5   : > { %19512 = vst [vmem:[#allocation16_spill] sm:$0xff] %v16854_v22  ;;  %v16861_v58 = vrot.slane %v19429_v55, 7  ;;  %v12883_v5 = vld [vmem:[#allocation2 + $0x288] sm:$0xf] }
  0xe6   : > { %2662 = vmatmul.bf16.gmra.mxu1 %v12672_v11  ;;  %v353_v50 = vshrl.u32 %v326_v7, 16  ;;  %1266 = vst [vmem:[#allocation2 + $0x124] sm:$0xf] %v326_v7  ;;  %v546_v42 = vor.u32 %v19427_v15, %v543_v52  ;;  %v253_v15 = vld [vmem:[%s16551_s30 + $0xe0] sm:$0xff]  ;;  %v15524_v55 = vld [vmem:[#allocation2 + $0x28c] sm:$0xf] }
  0xe7   : > { %2742 = vmatmul.bf16.gmra.mxu3 %v12864_v46  ;;  %2573 = vmatmul.bf16.gmra.mxu2 %v12860_v4  ;;  %v490_v11 = vor.u32 %v19430_v54, %v16861_v58  ;;  %v12873_v4 = vld [vmem:[#allocation2 + $0x27c] sm:$0xf0]  ;;  %v12885_v54 = vld [vmem:[#allocation2 + $0x294] sm:$0xf0] }
  0xe8   : > { %v705_v8 = vsel %vm16585_vm2, %v377_v31, %v546_v42  ;;  %v12684_v31 = vor.u32 %v15473_v13, %v12681_v45  ;;  %v15522_v42 = vld [vmem:[#allocation2 + $0x278] sm:$0xf0]  ;;  %v1059_v45 = vrot.slane %v16875_v12, 3 }
  0xe9   : > { %v2456_v53 = vpop.f32.mrf.mxu0  ;;  %v697_v16 = vsel %vm16585_vm2, %v353_v50, %v490_v11  ;;  %v842_v34 = vunpack.c.l.b16 %v705_v8  ;;  %v843_v7 = vunpack.c.h.b16 %v705_v8  ;;  %v16878_v50 = vpack.c.b16 %v430_v41, %v430_v41 }
  0xea   : > { %v2703_v56 = vpop.f32.mrf.mxu3  ;;  %v2534_v38 = vpop.f32.mrf.mxu2  ;;  %v810_v44 = vunpack.c.l.b16 %v697_v16  ;;  %v811_v3 = vunpack.c.h.b16 %v697_v16  ;;  %v12680_v11 = vor.u32 %v15474_v23, %v12679_v39  ;;  %v12871_v16 = vld [vmem:[#allocation2 + $0x270] sm:$0xf]  ;;  %v19428_v8 = vshll.u32 %v16875_v12, 16 }
  0xeb   : > { %v2625_v61 = vpop.f32.mrf.mxu1  ;;  %v906_v18 = vpack.c.b16 %v842_v34, %v842_v34  ;;  %19513 = vst [vmem:[#allocation17_spill] sm:$0xff] %v16878_v50  ;;  %v907_v17 = vpack.c.b16 %v843_v7, %v843_v7  ;;  %v12876_v38 = vor.u32 %v15521_v2, %v12873_v4  ;;  %v12872_v41 = vor.u32 %v15522_v42, %v12871_v16  ;;  %v15556_v34 = vld [vmem:[#allocation7 + $0x88] sm:$0xff] }
  0xec   : > { %v874_v46 = vpack.c.b16 %v810_v44, %v810_v44  ;;  %v875_v30 = vpack.c.b16 %v811_v3, %v811_v3  ;;  %1299 = vst [vmem:[#allocation2 + $0x2b0] sm:$0xf] %v16878_v50  ;;  %v19425_v13 = vshll.u32 %v16878_v50, 16  ;;  %v632_v39 = vrot.slane %v19428_v8, 3  ;;  %v15660_v2 = vld [vmem:[#allocation7 + $0xc8] sm:$0xff]  ;;  %2784 = vmatpush.bf16.msrb.mxu2 %v15556_v34 }
  0xed   : > { %1034 = vst [vmem:[#allocation2 + $0x2a0] sm:$0xf] %v906_v18  ;;  %3914 = vmatpush.bf16.msrb.mxu3 %v15660_v2  ;;  %v12691_v42 = vld [vmem:[#allocation2 + $0x108] sm:$0xf] }
  0xee   : > { %1002 = vst [vmem:[#allocation2 + $0x120] sm:$0xf] %v874_v46  ;;  %v664_v23 = vrot.slane %v19425_v13, 3  ;;  %v1067_v46 = vrot.slane %v16878_v50, 3  ;;  %v713_v4 = vsel %vm16585_vm2, %v16861_v58, %v632_v39  ;;  %v15668_v34 = vld [vmem:[#allocation7 + $0x108] sm:$0xff] }
  0xef   : > { %1003 = vst [vmem:[#allocation2 + $0x12c] sm:$0xf] %v875_v30  ;;  %v254_v8 = vld [vmem:[%s16551_s30 + $0xe8] sm:$0xff]  ;;  %4083 = vmatpush.bf16.msrb.mxu0 %v15668_v34  ;;  %v15525_v34 = vld [vmem:[#allocation2 + $0x290] sm:$0xf0] }
  0xf0   : > { %1035 = vst [vmem:[#allocation2 + $0x2ac] sm:$0xf] %v907_v17  ;;  %v721_v7 = vsel %vm16585_vm2, %v543_v52, %v664_v23  ;;  %v1091_v17 = vsel %vm16585_vm2, %v1059_v45, 0  ;;  %v1099_v52 = vsel %vm16585_vm2, %v1067_v46, 0 }
  0xf1   : > { %v2459_v53 = vpop.f32.mrf.mxu0  ;;  %v1128_v23 = vunpack.c.l.b16 %v1091_v17  ;;  %v1144_v19 = vunpack.c.l.b16 %v1099_v52  ;;  %v1145_v26 = vunpack.c.h.b16 %v1099_v52 }
  0xf2   : > { %v2705_v56 = vpop.f32.mrf.mxu3  ;;  %v2536_v3 = vpop.f32.mrf.mxu2 }
  0xf3   : > { %v2628_v61 = vpop.f32.mrf.mxu1  ;;  %v15476_v3 = vld [vmem:[#allocation2 + $0x10c] sm:$0xf]  ;;  %v1177_v52 = vpack.c.b16 %v1145_v26, %v1145_v26 }
  0xf4   : > { %v16880_v44 = vadd.f32 %v2628_v61, %v2459_v53  ;;  %2498 = vmatmul.bf16.gmra.mxu0 %v12680_v11  ;;  %v737_v11 = vsel %vm689_vm1, %v713_v4, 0 }
  0xf5   : > { %v812_v61 = vunpack.c.l.b16 %v737_v11  ;;  %v813_v58 = vunpack.c.h.b16 %v737_v11  ;;  %v12693_v11 = vld [vmem:[#allocation2 + $0x114] sm:$0xf0]  ;;  %1301 = vst [vmem:[#allocation2 + $0x2c8] sm:$0xf] %v1177_v52 }
  0xf6   : > { %2667 = vmatmul.bf16.gmra.mxu1 %v12684_v31  ;;  %v753_v31 = vsel %vm689_vm1, %v721_v7, 0  ;;  %v1129_v7 = vunpack.c.h.b16 %v1091_v17  ;;  %v285_v17 = vpack.c.bf16 %v253_v15, %v253_v15 }
  0xf7   : > { %2747 = vmatmul.bf16.gmra.mxu3 %v12876_v38  ;;  %2578 = vmatmul.bf16.gmra.mxu2 %v12872_v41  ;;  %v15477_v38 = vld [vmem:[#allocation2 + $0x110] sm:$0xf0]  ;;  %v844_v41 = vunpack.c.l.b16 %v753_v31  ;;  %v845_v39 = vunpack.c.h.b16 %v753_v31  ;;  %v876_v2 = vpack.c.b16 %v812_v61, %v812_v61  ;;  %v877_v4 = vpack.c.b16 %v813_v58, %v813_v58 }
  0xf8   : > { %v1160_v31 = vpack.c.b16 %v1128_v23, %v1128_v23  ;;  %v12692_v28 = vor.u32 %v15477_v38, %v12691_v42  ;;  %v1161_v61 = vpack.c.b16 %v1129_v7, %v1129_v7  ;;  %v286_v58 = vpack.c.bf16 %v254_v8, %v254_v8 }
  0xf9   : > { %v2461_v18 = vpop.f32.mrf.mxu0  ;;  %v908_v13 = vpack.c.b16 %v844_v41, %v844_v41  ;;  %v909_v46 = vpack.c.b16 %v845_v39, %v845_v39  ;;  %1004 = vst [vmem:[#allocation2 + $0x138] sm:$0xf] %v876_v2  ;;  %v1176_v41 = vpack.c.b16 %v1144_v19, %v1144_v19  ;;  %v12888_v2 = vor.u32 %v15524_v55, %v12885_v54 }
  0xfa   : > { %v2708_v30 = vpop.f32.mrf.mxu3  ;;  %v2539_v16 = vpop.f32.mrf.mxu2  ;;  %1005 = vst [vmem:[#allocation2 + $0x144] sm:$0xf] %v877_v4  ;;  %v319_v23 = vunpack.c.l.b16 %v285_v17  ;;  %v12884_v19 = vor.u32 %v15525_v34, %v12883_v5  ;;  %v12705_v34 = vld [vmem:[#allocation2 + $0x12c] sm:$0xf0] }
  0xfb   : > { %v2630_v56 = vpop.f32.mrf.mxu1  ;;  %v16904_v45 = vadd.f32 %v2708_v30, %v2539_v16  ;;  %1036 = vst [vmem:[#allocation2 + $0x2b8] sm:$0xf] %v908_v13 }
  0xfc   : > { %v16900_v53 = vadd.f32 %v2630_v56, %v2461_v18  ;;  %v237_v18 = vld [vmem:[%s16551_s30 + $0x60] sm:$0xff]  ;;  %v238_v56 = vld [vmem:[%s16551_s30 + $0x68] sm:$0xff]  ;;  %1037 = vst [vmem:[#allocation2 + $0x2c4] sm:$0xf] %v909_v46  ;;  %v335_v54 = vpack.c.b16 %v319_v23, %v319_v23 }
  0xfd   : > { %19514 = vst [vmem:[#allocation18_spill] sm:$0xff] %v16904_v45  ;;  %v269_v30 = vpack.c.bf16 %v237_v18, %v237_v18  ;;  %v270_v16 = vpack.c.bf16 %v238_v56, %v238_v56  ;;  %v12696_v45 = vor.u32 %v15476_v3, %v12693_v11  ;;  %v431_v18 = vunpack.c.l.b16 %v286_v58 }
  0xfe   : > { %1268 = vst [vmem:[#allocation2 + $0x13c] sm:$0xf] %v1160_v31 }
  0xff   : > { %v311_v39 = vunpack.c.l.b16 %v269_v30  ;;  %v423_v22 = vunpack.c.l.b16 %v270_v16  ;;  %1269 = vst [vmem:[#allocation2 + $0x148] sm:$0xf] %v1161_v61  ;;  %v16912_v8 = vpack.c.b16 %v431_v18, %v319_v23  ;;  %v15479_v61 = vld [vmem:[#allocation2 + $0x124] sm:$0xf] }
 0x100   : > { %1300 = vst [vmem:[#allocation2 + $0x2bc] sm:$0xf] %v1176_v41  ;;  %v12703_v41 = vld [vmem:[#allocation2 + $0x120] sm:$0xf] }
 0x101   : > { %v2464_v40 = vpop.f32.mrf.mxu0  ;;  %v16910_v42 = vpack.c.b16 %v423_v22, %v311_v39  ;;  %v327_v26 = vpack.c.b16 %v311_v39, %v311_v39  ;;  %1302 = vst [vmem:[#allocation2 + $0x2d4] sm:$0xf] %v335_v54  ;;  %v16938_v58 = vpack.c.b16 %v423_v22, %v423_v22  ;;  %v15480_v39 = vld [vmem:[#allocation2 + $0x128] sm:$0xf0] }
 0x102   : > { %v2710_v27 = vpop.f32.mrf.mxu3  ;;  %v2541_v15 = vpop.f32.mrf.mxu2  ;;  %1314 = vst [vmem:[#allocation2 + $0x334] sm:$0xf] %v335_v54 }
 0x103   : > { %v2633_v50 = vpop.f32.mrf.mxu1  ;;  %v16914_v13 = vadd.f32 %v2710_v27, %v2541_v15  ;;  %v19441_v40 = vshrl.u32 %v16910_v42, 16  ;;  %v19442_v55 = vshll.u32 %v16910_v42, 16  ;;  %v19439_v27 = vshll.u32 %v16912_v8, 16  ;;  %1270 = vst [vmem:[#allocation2 + $0x154] sm:$0xf] %v327_v26 }
 0x104   : > { %2503 = vmatmul.bf16.gmra.mxu0 %v12692_v28  ;;  %v19438_v50 = vshrl.u32 %v16912_v8, 16  ;;  %v356_v28 = vshrl.u32 %v327_v26, 16  ;;  %v15527_v15 = vld [vmem:[#allocation2 + $0x2a4] sm:$0xf]  ;;  %1271 = vst [vmem:[#allocation2 + $0x160] sm:$0xf] %v16938_v58 }
 0x105   : > { %v16921_v38 = vrot.slane %v19441_v40, 7 }
 0x106   : > { %2672 = vmatmul.bf16.gmra.mxu1 %v12696_v45  ;;  %v380_v45 = vshrl.u32 %v335_v54, 16  ;;  %v16929_v4 = vrot.slane %v19438_v50, 7  ;;  %v12907_v50 = vld [vmem:[#allocation2 + $0x2b8] sm:$0xf] }
 0x107   : > { %2752 = vmatmul.bf16.gmra.mxu3 %v12888_v2  ;;  %2583 = vmatmul.bf16.gmra.mxu2 %v12884_v19  ;;  %v497_v3 = vor.u32 %v19442_v55, %v16921_v38  ;;  %v12897_v19 = vld [vmem:[#allocation2 + $0x2ac] sm:$0xf0] }
 0x108   : > { %v553_v46 = vor.u32 %v19439_v27, %v16929_v4 }
 0x109   : > { %v2466_v7 = vpop.f32.mrf.mxu0  ;;  %v698_v11 = vsel %vm16585_vm2, %v356_v28, %v497_v3  ;;  %v12708_v3 = vor.u32 %v15479_v61, %v12705_v34  ;;  %v19440_v61 = vshll.u32 %v16938_v58, 16 }
 0x10a   : > { %v2713_v5 = vpop.f32.mrf.mxu3  ;;  %v2544_v31 = vpop.f32.mrf.mxu2  ;;  %v814_v30 = vunpack.c.l.b16 %v698_v11  ;;  %v815_v16 = vunpack.c.h.b16 %v698_v11  ;;  %v706_v17 = vsel %vm16585_vm2, %v380_v45, %v553_v46  ;;  %v15528_v11 = vld [vmem:[#allocation2 + $0x2a8] sm:$0xf0]  ;;  %v12900_v46 = vor.u32 %v15527_v15, %v12897_v19 }
 0x10b   : > { %v2635_v56 = vpop.f32.mrf.mxu1  ;;  %v846_v23 = vunpack.c.l.b16 %v706_v17  ;;  %v847_v26 = vunpack.c.h.b16 %v706_v17  ;;  %v12704_v5 = vor.u32 %v15480_v39, %v12703_v41  ;;  %v16941_v31 = vpack.c.b16 %v431_v18, %v431_v18 }
 0x10c   : > { %v878_v2 = vpack.c.b16 %v814_v30, %v814_v30  ;;  %v879_v52 = vpack.c.b16 %v815_v16, %v815_v16  ;;  %v12895_v56 = vld [vmem:[#allocation2 + $0x2a0] sm:$0xf]  ;;  %v636_v18 = vrot.slane %v19440_v61, 3 }
 0x10d   : > { %v910_v54 = vpack.c.b16 %v846_v23, %v846_v23  ;;  %v911_v45 = vpack.c.b16 %v847_v26, %v847_v26  ;;  %v12896_v17 = vor.u32 %v15528_v11, %v12895_v56  ;;  %v19437_v41 = vshll.u32 %v16941_v31, 16  ;;  %1303 = vst [vmem:[#allocation2 + $0x2e0] sm:$0xf] %v16941_v31  ;;  %v15659_v23 = vld [vmem:[#allocation7 + $0xc0] sm:$0xff] }
 0x10e   : > { %1006 = vst [vmem:[#allocation2 + $0x150] sm:$0xf] %v878_v2  ;;  %v1068_v34 = vrot.slane %v16941_v31, 3  ;;  %v714_v26 = vsel %vm16585_vm2, %v16921_v38, %v636_v18  ;;  %3915 = vmatpush.bf16.msrb.mxu3 %v15659_v23  ;;  %v15483_v18 = vld [vmem:[#allocation2 + $0x140] sm:$0xf0] }
 0x10f   : > { %1007 = vst [vmem:[#allocation2 + $0x15c] sm:$0xf] %v879_v52  ;;  %v668_v39 = vrot.slane %v19437_v41, 3  ;;  %v15555_v52 = vld [vmem:[#allocation7 + $0x80] sm:$0xff]  ;;  %v12909_v41 = vld [vmem:[#allocation2 + $0x2c4] sm:$0xf0] }
 0x110   : > { %1038 = vst [vmem:[#allocation2 + $0x2d0] sm:$0xf] %v910_v54  ;;  %2785 = vmatpush.bf16.msrb.mxu2 %v15555_v52  ;;  %v12717_v52 = vld [vmem:[#allocation2 + $0x144] sm:$0xf0] }
 0x111   : > { %v2469_v22 = vpop.f32.mrf.mxu0  ;;  %1039 = vst [vmem:[#allocation2 + $0x2dc] sm:$0xf] %v911_v45 }
 0x112   : > { %v2715_v28 = vpop.f32.mrf.mxu3  ;;  %v2546_v16 = vpop.f32.mrf.mxu2  ;;  %1050 = vst [vmem:[#allocation2 + $0x330] sm:$0xf] %v910_v54  ;;  %v722_v54 = vsel %vm16585_vm2, %v16929_v4, %v668_v39  ;;  %v15667_v4 = vld [vmem:[#allocation7 + $0x100] sm:$0xff]  ;;  %v15482_v39 = vld [vmem:[#allocation2 + $0x13c] sm:$0xf] }
 0x113   : > { %v2638_v7 = vpop.f32.mrf.mxu1  ;;  %1051 = vst [vmem:[#allocation2 + $0x33c] sm:$0xf] %v911_v45  ;;  %v1100_v45 = vsel %vm16585_vm2, %v1068_v34, 0  ;;  %v12715_v16 = vld [vmem:[#allocation2 + $0x138] sm:$0xf]  ;;  %4084 = vmatpush.bf16.msrb.mxu0 %v15667_v4  ;;  %v12720_v27 = vor.u32 %v15482_v39, %v12717_v52 }
 0x114   : > { %v16943_v30 = vadd.f32 %v2638_v7, %v2469_v22  ;;  %2508 = vmatmul.bf16.gmra.mxu0 %v12704_v5  ;;  %1315 = vst [vmem:[#allocation2 + $0x340] sm:$0xf] %v16941_v31  ;;  %v739_v5 = vsel %vm689_vm1, %v714_v26, 0  ;;  %v1146_v26 = vunpack.c.l.b16 %v1100_v45 }
 0x115   : > { %v816_v7 = vunpack.c.l.b16 %v739_v5  ;;  %v817_v56 = vunpack.c.h.b16 %v739_v5  ;;  %v1147_v5 = vunpack.c.h.b16 %v1100_v45 }
 0x116   : > { %2677 = vmatmul.bf16.gmra.mxu1 %v12708_v3  ;;  %v755_v3 = vsel %vm689_vm1, %v722_v54, 0  ;;  %v15530_v54 = vld [vmem:[#allocation2 + $0x2bc] sm:$0xf] }
 0x117   : > { %2757 = vmatmul.bf16.gmra.mxu3 %v12900_v46  ;;  %2588 = vmatmul.bf16.gmra.mxu2 %v12896_v17  ;;  %v848_v11 = vunpack.c.l.b16 %v755_v3  ;;  %v849_v38 = vunpack.c.h.b16 %v755_v3  ;;  %v15682_v17 = vld [vmem:[#allocation7 + $0x178] sm:$0xff]  ;;  %v880_v23 = vpack.c.b16 %v816_v7, %v816_v7  ;;  %v15531_v7 = vld [vmem:[#allocation2 + $0x2c0] sm:$0xf0] }
 0x118   : > { %4246 = vmatpush.bf16.msrb.mxu1 %v15682_v17 }
 0x119   : > { %v2471_v15 = vpop.f32.mrf.mxu0  ;;  %v913_v34 = vpack.c.b16 %v849_v38, %v849_v38  ;;  %1008 = vst [vmem:[#allocation2 + $0x168] sm:$0xf] %v880_v23  ;;  %v1179_v38 = vpack.c.b16 %v1147_v5, %v1147_v5  ;;  %v19515_v23 = vshll.u32 %v16565_v20, 16 }
 0x11a   : > { %v2718_v2 = vpop.f32.mrf.mxu3  ;;  %v2549_v22 = vpop.f32.mrf.mxu2 }
 0x11b   : > { %v2640_v19 = vpop.f32.mrf.mxu1  ;;  %v16966_v46 = vadd.f32 %v2718_v2, %v2549_v22  ;;  %v1060_v2 = vrot.slane %v16938_v58, 3  ;;  %v12716_v22 = vor.u32 %v15483_v18, %v12715_v16  ;;  %1041 = vst [vmem:[#allocation2 + $0x2f4] sm:$0xf] %v913_v34  ;;  %v1320_v55 = vrot.slane %v19515_v23, 1  ;;  %v15681_v18 = vld [vmem:[#allocation7 + $0x170] sm:$0xff]  ;;  %v15678_v23 = vld [vmem:[#allocation7 + $0x158] sm:$0xff] }
 0x11c   : > { %v16960_v28 = vadd.f32 %v2640_v19, %v2471_v15  ;;  %v881_v15 = vpack.c.b16 %v817_v56, %v817_v56  ;;  %v912_v19 = vpack.c.b16 %v848_v11, %v848_v11  ;;  %v12912_v56 = vor.u32 %v15530_v54, %v12909_v41  ;;  %1053 = vst [vmem:[#allocation2 + $0x354] sm:$0xf] %v913_v34 }
 0x11d   : > { %v1178_v11 = vpack.c.b16 %v1146_v26, %v1146_v26  ;;  %v1092_v4 = vsel %vm16585_vm2, %v1060_v2, 0  ;;  %4247 = vmatpush.bf16.msrb.mxu1 %v15681_v18  ;;  %v19516_v41 = vshll.u32 %v16567_v21, 16  ;;  %1305 = vst [vmem:[#allocation2 + $0x2f8] sm:$0xf] %v1179_v38  ;;  %v15680_v26 = vld [vmem:[#allocation7 + $0x168] sm:$0xff]  ;;  %v19517_v54 = vshrl.u32 %v16565_v20, 16 }
 0x11e   : > { %1009 = vst [vmem:[#allocation2 + $0x174] sm:$0xf] %v881_v15  ;;  %v1130_v45 = vunpack.c.l.b16 %v1092_v4  ;;  %v1131_v17 = vunpack.c.h.b16 %v1092_v4  ;;  %v19518_v34 = vmov 0  ;;  %v19521_v20 = vshll.u32 %v16622_v47, 16 }
 0x11f   : > { %1040 = vst [vmem:[#allocation2 + $0x2e8] sm:$0xf] %v912_v19  ;;  %v1367_v52 = vrot.slane %v19516_v41, 4  ;;  %v19519_v34 = vsel %vm16979_vm5, 4294967295, %v19518_v34  ;;  %v19522_v4 = vshll.u32 %v16635_v62, 16  ;;  %v19523_v41 = vshrl.u32 %v16622_v47, 16 }
 0x120   : > { %1052 = vst [vmem:[#allocation2 + $0x348] sm:$0xf] %v912_v19  ;;  %v1163_v15 = vpack.c.b16 %v1131_v17, %v1131_v17  ;;  %v1321_v19 = vor.u32 %v1320_v55, %v19517_v54  ;;  %v1318_v55 = vrot.slane %v19521_v20, 1  ;;  %v15486_v17 = vld [vmem:[#allocation2 + $0x158] sm:$0xf0] }
 0x121   : > { %v2474_v61 = vpop.f32.mrf.mxu0  ;;  %1304 = vst [vmem:[#allocation2 + $0x2ec] sm:$0xf] %v1178_v11  ;;  %4248 = vmatpush.bf16.msrb.mxu1 %v15680_v26  ;;  %v12919_v62 = vld [vmem:[#allocation2 + $0x2d0] sm:$0xf] }
 0x122   : > { %v2720_v3 = vpop.f32.mrf.mxu3  ;;  %v2551_v16 = vpop.f32.mrf.mxu2  ;;  %v1162_v61 = vpack.c.b16 %v1130_v45, %v1130_v45  ;;  %1316 = vst [vmem:[#allocation2 + $0x34c] sm:$0xf] %v1178_v11  ;;  %v1402_v21 = vsel %vm16979_vm5, %v1321_v19, %v1367_v52  ;;  %v12729_v11 = vld [vmem:[#allocation2 + $0x15c] sm:$0xf0]  ;;  %v12727_v45 = vld [vmem:[#allocation2 + $0x150] sm:$0xf]  ;;  %v1319_v52 = vor.u32 %v1318_v55, %v19523_v41 }
 0x123   : > { %v2643_v40 = vpop.f32.mrf.mxu1  ;;  %v16973_v39 = vadd.f32 %v2720_v3, %v2551_v16  ;;  %1317 = vst [vmem:[#allocation2 + $0x358] sm:$0xf] %v1179_v38  ;;  %v15679_v3 = vld [vmem:[#allocation7 + $0x160] sm:$0xff]  ;;  %v1366_v38 = vrot.slane %v19522_v4, 4  ;;  %v12728_v26 = vor.u32 %v15486_v17, %v12727_v45  ;;  %v15794_v45 = vld [vmem:[#allocation7 + $0x1f8] sm:$0xff] }
 0x124   : > { %2513 = vmatmul.bf16.gmra.mxu0 %v12716_v22  ;;  %v12908_v40 = vor.u32 %v15531_v7, %v12907_v50  ;;  %1272 = vst [vmem:[#allocation2 + $0x16c] sm:$0xf] %v1162_v61  ;;  %v1438_v22 = vunpack.c.l.b16 %v1402_v21  ;;  %v1439_v7 = vunpack.c.h.b16 %v1402_v21  ;;  %v12921_v61 = vld [vmem:[#allocation2 + $0x2dc] sm:$0xf0]  ;;  %5609 = vmatpush.bf16.msra.mxu3 %v15794_v45 }
 0x125   : > { %19520 = vst [vmem:[#allocation19_spill] sm:$0xff] %v19519_v34  ;;  %4249 = vmatpush.bf16.msrb.mxu1 %v15679_v3  ;;  %v1401_v21 = vsel %vm16979_vm5, %v1319_v52, %v1366_v38  ;;  %v15677_v3 = vld [vmem:[#allocation7 + $0x150] sm:$0xff]  ;;  %v15786_v38 = vld [vmem:[#allocation7 + $0x1b8] sm:$0xff]  ;;  %v15675_v52 = vld [vmem:[#allocation7 + $0x140] sm:$0xff] }
 0x126   : > { %2682 = vmatmul.bf16.gmra.mxu1 %v12720_v27  ;;  %1273 = vst [vmem:[#allocation2 + $0x178] sm:$0xf] %v1163_v15  ;;  %v1472_v16 = vpack.c.b16 %v1438_v22, %v1438_v22  ;;  %v1473_v18 = vpack.c.b16 %v1439_v7, %v1439_v7  ;;  %v1435_v47 = vunpack.c.h.b16 %v1401_v21  ;;  %5440 = vmatpush.bf16.msra.mxu2 %v15786_v38 }
 0x127   : > { %2762 = vmatmul.bf16.gmra.mxu3 %v12912_v56  ;;  %2593 = vmatmul.bf16.gmra.mxu2 %v12908_v40  ;;  %v15485_v56 = vld [vmem:[#allocation2 + $0x154] sm:$0xf] }
 0x128   : > { %v15533_v40 = vld [vmem:[#allocation2 + $0x2d4] sm:$0xf]  ;;  %1600 = vst [vmem:[#allocation2 + $0x8] sm:$0xf] %v1472_v16  ;;  %v12732_v54 = vor.u32 %v15485_v56, %v12729_v11  ;;  %v1469_v56 = vpack.c.b16 %v1435_v47, %v1435_v47  ;;  %v15676_v11 = vld [vmem:[#allocation7 + $0x148] sm:$0xff] }
 0x129   : > { %v2476_v50 = vpop.f32.mrf.mxu0  ;;  %1601 = vst [vmem:[#allocation2 + $0x14] sm:$0xf] %v1473_v18  ;;  %4250 = vmatpush.bf16.msrb.mxu1 %v15678_v23 }
 0x12a   : > { %v2723_v5 = vpop.f32.mrf.mxu3  ;;  %v2554_v2 = vpop.f32.mrf.mxu2  ;;  %v15534_v50 = vld [vmem:[#allocation2 + $0x2d8] sm:$0xf0]  ;;  %1540 = vst [vmem:[#allocation2 + $0x68] sm:$0xf] %v1472_v16 }
 0x12b   : > { %v2645_v27 = vpop.f32.mrf.mxu1  ;;  %1541 = vst [vmem:[#allocation2 + $0x74] sm:$0xf] %v1473_v18  ;;  %v1434_v2 = vunpack.c.l.b16 %v1401_v21  ;;  %v12920_v22 = vor.u32 %v15534_v50, %v12919_v62  ;;  %v16426_v18 = vmov 0   ;;  %v15489_v62 = vld [vmem:[#allocation2 + $0x170] sm:$0xf0] }
 0x12c   : > { %v12924_v27 = vor.u32 %v15533_v40, %v12921_v61  ;;  %1537 = vst [vmem:[#allocation2 + $0x44] sm:$0xf] %v1469_v56  ;;  %v1436_v40 = vunpack.c.l.b16 %v16426_v18  ;;  %v1437_v61 = vunpack.c.h.b16 %v16426_v18  ;;  %v15488_v50 = vld [vmem:[#allocation2 + $0x16c] sm:$0xf]  ;;  %v12931_v56 = vld [vmem:[#allocation2 + $0x2e8] sm:$0xf] }
 0x12d   : > { %v1468_v7 = vpack.c.b16 %v1434_v2, %v1434_v2  ;;  %4251 = vmatpush.bf16.msrb.mxu1 %v15677_v3  ;;  %v15536_v21 = vld [vmem:[#allocation2 + $0x2ec] sm:$0xf]  ;;  %v12933_v2 = vld [vmem:[#allocation2 + $0x2f4] sm:$0xf0] }
 0x12f   : > { %1536 = vst [vmem:[#allocation2 + $0x38] sm:$0xf] %v1468_v7 }
 0x131   : > { %v2479_v19 = vpop.f32.mrf.mxu0  ;;  %4252 = vmatpush.bf16.msrb.mxu1 %v15676_v11  ;;  %v15537_v11 = vld [vmem:[#allocation2 + $0x2f0] sm:$0xf0] }
 0x132   : > { %v2725_v15 = vpop.f32.mrf.mxu3  ;;  %v2556_v55 = vpop.f32.mrf.mxu2 }
 0x133   : > { %v2648_v5 = vpop.f32.mrf.mxu1 }
 0x134   : > { %v16993_v20 = vadd.f32 %v2648_v5, %v2479_v19  ;;  %2518 = vmatmul.bf16.gmra.mxu0 %v12728_v26  ;;  %v12739_v26 = vld [vmem:[#allocation2 + $0x168] sm:$0xf]  ;;  %v16999_v19 = vpack.c.b16 %v1436_v40, %v1436_v40  ;;  %v17001_v5 = vpack.c.b16 %v1437_v61, %v1437_v61 }
 0x135   : > { %4253 = vmatpush.bf16.msrb.mxu1 %v15675_v52  ;;  %v12740_v55 = vor.u32 %v15489_v62, %v12739_v26  ;;  %v15563_v26 = vld [vmem:[#allocation2 + $0x34] sm:$0xf] }
 0x136   : > { %2687 = vmatmul.bf16.gmra.mxu1 %v12732_v54  ;;  %v15802_v54 = vld [vmem:[#allocation7 + $0x238] sm:$0xff]  ;;  %19525 = vst [vmem:[#allocation21_spill] sm:$0xff] %v16999_v19 }
 0x137   : > { %2767 = vmatmul.bf16.gmra.mxu3 %v12924_v27  ;;  %2598 = vmatmul.bf16.gmra.mxu2 %v12920_v22  ;;  %19526 = vst [vmem:[#allocation22_spill] sm:$0xff] %v17001_v5  ;;  %v12741_v27 = vld [vmem:[#allocation2 + $0x174] sm:$0xf0] }
 0x138   : > { %5778 = vmatpush.bf16.msra.mxu0 %v15802_v54  ;;  %1602 = vst [vmem:[#allocation2 + $0x20] sm:$0xf] %v16999_v19  ;;  %v12744_v3 = vor.u32 %v15488_v50, %v12741_v27  ;;  %v13041_v54 = vld [vmem:[#allocation2 + $0x3c] sm:$0xf0]  ;;  %v13047_v62 = vld [vmem:[#allocation2 + $0x38] sm:$0xf] }
 0x139   : > { %v2481_v17 = vpop.f32.mrf.mxu0  ;;  %1603 = vst [vmem:[#allocation2 + $0x2c] sm:$0xf] %v17001_v5  ;;  %v15565_v50 = vld [vmem:[#allocation2 + $0x40] sm:$0xf0]  ;;  %v13039_v27 = vld [vmem:[#allocation2 + $0x30] sm:$0xf] }
 0x13a   : > { %v2728_v4 = vpop.f32.mrf.mxu3  ;;  %v2559_v41 = vpop.f32.mrf.mxu2  ;;  %1538 = vst [vmem:[#allocation2 + $0x50] sm:$0xf] %v16999_v19 }
 0x13b   : > { %v2650_v23 = vpop.f32.mrf.mxu1  ;;  %v16997_v15 = vadd.f32 %v2728_v4, %v2559_v41  ;;  %v12936_v4 = vor.u32 %v15536_v21, %v12933_v2  ;;  %1539 = vst [vmem:[#allocation2 + $0x5c] sm:$0xf] %v17001_v5  ;;  %v15564_v21 = vld [vmem:[#allocation2 + $0x38] sm:$0xf0] }
 0x13c   : > { %v16995_v16 = vadd.f32 %v2650_v23, %v2481_v17  ;;  %1542 = vst [vmem:[#allocation2 + $0x80] sm:$0xf] %v16999_v19  ;;  %v12932_v17 = vor.u32 %v15537_v11, %v12931_v56  ;;  %v15445_v56 = vld [vmem:[#allocation2 + $0x10] sm:$0xf0]  ;;  %v13040_v11 = vor.u32 %v15564_v21, %v13039_v27 }
 0x13d   : > { %19524 = vst [vmem:[#allocation20_spill] sm:$0xff] %v16997_v15 }
 0x13e   : > { %1543 = vst [vmem:[#allocation2 + $0x8c] sm:$0xf] %v17001_v5 }
 0x13f   : > { %1546 = vst [vmem:[#allocation2 + $0xb0] sm:$0xf] %v16999_v19  ;;  %v17012_v23 = vld [vmem:[#allocation2 + $0x20] sm:$0xf] }
 0x140   : > { %1547 = vst [vmem:[#allocation2 + $0xbc] sm:$0xf] %v17001_v5  ;;  %v17015_v18 = vld [vmem:[#allocation2 + $0x28] sm:$0xf0] }
 0x141   : > { %v2484_v22 = vpop.f32.mrf.mxu0  ;;  %7652 = vst [vmem:[#allocation2 + $0x20] sm:$0xf] %v16999_v19  ;;  %v13059_v27 = vld [vmem:[#allocation2 + $0x50] sm:$0xf] }
 0x142   : > { %v2730_v47 = vpop.f32.mrf.mxu3  ;;  %v2561_v38 = vpop.f32.mrf.mxu2  ;;  %7653 = vst [vmem:[#allocation2 + $0x2c] sm:$0xf] %v17001_v5  ;;  %v15568_v21 = vld [vmem:[#allocation2 + $0x58] sm:$0xf0] }
 0x143   : > { %v2653_v7 = vpop.f32.mrf.mxu1  ;;  %v17009_v45 = vadd.f32 %v2730_v47, %v2561_v38  ;;  %1550 = vst [vmem:[#allocation2 + $0xe0] sm:$0xf] %v16999_v19  ;;  %v13044_v47 = vor.u32 %v15563_v26, %v13041_v54 }
 0x144   : > { %2523 = vmatmul.bf16.gmra.mxu0 %v12740_v55  ;;  %1551 = vst [vmem:[#allocation2 + $0xec] sm:$0xf] %v17001_v5  ;;  %v13048_v55 = vor.u32 %v15565_v50, %v13047_v62  ;;  %v12567_v7 = vld [vmem:[#allocation2 + $0x8] sm:$0xf]  ;;  %v15566_v62 = vld [vmem:[#allocation2 + $0x4c] sm:$0xf] }
 0x145   : > { %19527 = vst [vmem:[#allocation23_spill] sm:$0xff] %v17009_v45  ;;  %v13053_v50 = vld [vmem:[#allocation2 + $0x54] sm:$0xf0] }
 0x146   : > { %2692 = vmatmul.bf16.gmra.mxu1 %v12744_v3  ;;  %1554 = vst [vmem:[#allocation2 + $0x110] sm:$0xf] %v16999_v19 }
 0x147   : > { %2772 = vmatmul.bf16.gmra.mxu3 %v12936_v4  ;;  %2603 = vmatmul.bf16.gmra.mxu2 %v12932_v17  ;;  %1555 = vst [vmem:[#allocation2 + $0x11c] sm:$0xf] %v17001_v5  ;;  %v12568_v17 = vor.u32 %v15445_v56, %v12567_v7 }
 0x148   : > { %1558 = vst [vmem:[#allocation2 + $0x140] sm:$0xf] %v16999_v19  ;;  %v14019_v37 = vld [vmem:[#allocation2 + $0x20] sm:$0xf] }
 0x149   : > { %v2486_v61 = vpop.f32.mrf.mxu0  ;;  %1559 = vst [vmem:[#allocation2 + $0x14c] sm:$0xf] %v17001_v5 }
 0x14a   : > { %v2733_v40 = vpop.f32.mrf.mxu3  ;;  %v2564_v52 = vpop.f32.mrf.mxu2  ;;  %1562 = vst [vmem:[#allocation2 + $0x170] sm:$0xf] %v16999_v19 }
 0x14b   : > { %v2655_v41 = vpop.f32.mrf.mxu1  ;;  %1563 = vst [vmem:[#allocation2 + $0x17c] sm:$0xf] %v17001_v5 }
 0x14c   : > { %1566 = vst [vmem:[#allocation2 + $0x1a0] sm:$0xf] %v16999_v19 }
 0x14d   : > { %1567 = vst [vmem:[#allocation2 + $0x1ac] sm:$0xf] %v17001_v5 }
 0x14e   : > { %1570 = vst [vmem:[#allocation2 + $0x1d0] sm:$0xf] %v16999_v19 }
 0x14f   : > { %1571 = vst [vmem:[#allocation2 + $0x1dc] sm:$0xf] %v17001_v5 }
 0x150   : > { %1574 = vst [vmem:[#allocation2 + $0x200] sm:$0xf] %v16999_v19 }
 0x151   : > { %v2489_v3 = vpop.f32.mrf.mxu0  ;;  %1575 = vst [vmem:[#allocation2 + $0x20c] sm:$0xf] %v17001_v5 }
 0x152   : > { %v2735_v2 = vpop.f32.mrf.mxu3  ;;  %v2566_v38 = vpop.f32.mrf.mxu2  ;;  %1578 = vst [vmem:[#allocation2 + $0x230] sm:$0xf] %v16999_v19 }
 0x153   : > { %v2658_v22 = vpop.f32.mrf.mxu1  ;;  %1579 = vst [vmem:[#allocation2 + $0x23c] sm:$0xf] %v17001_v5  ;;  %v13051_v2 = vld [vmem:[#allocation2 + $0x48] sm:$0xf] }
 0x154   : > { %v17029_v4 = vadd.f32 %v2658_v22, %v2489_v3  ;;  %4085 = vmatmul.bf16.vlgmr.msrb.gmra.mxu0 %v13044_v47  ;;  %1582 = vst [vmem:[#allocation2 + $0x260] sm:$0xf] %v16999_v19  ;;  %v15567_v47 = vld [vmem:[#allocation2 + $0x50] sm:$0xf0]  ;;  %v13056_v3 = vor.u32 %v15566_v62, %v13053_v50  ;;  %v13060_v22 = vor.u32 %v15568_v21, %v13059_v27  ;;  %v19530_v27 = vshll.u32 %v16700_v9, 16 }
 0x155   : > { %1583 = vst [vmem:[#allocation2 + $0x26c] sm:$0xf] %v17001_v5 }
 0x156   : > { %4254 = vmatmul.bf16.vlgmr.msrb.gmra.mxu1 %v13048_v55  ;;  %1586 = vst [vmem:[#allocation2 + $0x290] sm:$0xf] %v16999_v19  ;;  %v1322_v21 = vrot.slane %v19530_v27, 1  ;;  %v15451_v27 = vld [vmem:[#allocation2 + $0x40] sm:$0xf0] }
 0x157   : > { %3916 = vmatmul.bf16.vlgmr.msrb.gmra.mxu3 %v13040_v11  ;;  %2786 = vmatmul.bf16.vlgmr.msrb.gmra.mxu2 %v12568_v17  ;;  %1587 = vst [vmem:[#allocation2 + $0x29c] sm:$0xf] %v17001_v5  ;;  %v13052_v11 = vor.u32 %v15567_v47, %v13051_v2  ;;  %v13071_v47 = vld [vmem:[#allocation2 + $0x68] sm:$0xf] }
 0x158   : > { %1590 = vst [vmem:[#allocation2 + $0x2c0] sm:$0xf] %v16999_v19 }
 0x159   : > { %v2491_v61 = vpop.f32.mrf.mxu0  ;;  %1591 = vst [vmem:[#allocation2 + $0x2cc] sm:$0xf] %v17001_v5 }
 0x15a   : > { %v2738_v40 = vpop.f32.mrf.mxu3  ;;  %v2569_v26 = vpop.f32.mrf.mxu2  ;;  %1594 = vst [vmem:[#allocation2 + $0x2f0] sm:$0xf] %v16999_v19 }
 0x15b   : > { %v2660_v41 = vpop.f32.mrf.mxu1  ;;  %v17043_v54 = vadd.f32 %v2738_v40, %v2569_v26  ;;  %1595 = vst [vmem:[#allocation2 + $0x2fc] sm:$0xf] %v17001_v5  ;;  %v12580_v40 = vor.u32 %v17015_v18, %v17012_v23  ;;  %v15569_v23 = vld [vmem:[#allocation2 + $0x64] sm:$0xf]  ;;  %v13065_v18 = vld [vmem:[#allocation2 + $0x6c] sm:$0xf0] }
 0x15c   : > { %v17039_v52 = vadd.f32 %v2660_v41, %v2491_v61  ;;  %1598 = vst [vmem:[#allocation2 + $0x320] sm:$0xf] %v16999_v19  ;;  %v17057_v61 = vld [vmem:[#allocation2 + $0x50] sm:$0xf]  ;;  %v17059_v41 = vld [vmem:[#allocation2 + $0x58] sm:$0xf0] }
 0x15d   : > { %19528 = vst [vmem:[#allocation24_spill] sm:$0xff] %v17043_v54  ;;  %v12591_v54 = vld [vmem:[#allocation2 + $0x38] sm:$0xf] }
 0x15e   : > { %1599 = vst [vmem:[#allocation2 + $0x32c] sm:$0xf] %v17001_v5 }
 0x15f   : > { %1606 = vst [vmem:[#allocation2 + $0x350] sm:$0xf] %v16999_v19 }
 0x160   : > { %1607 = vst [vmem:[#allocation2 + $0x35c] sm:$0xf] %v17001_v5 }
 0x161   : > { %v2494_v7 = vpop.f32.mrf.mxu0  ;;  %7588 = vst [vmem:[#allocation2 + $0x50] sm:$0xf] %v16999_v19 }
 0x162   : > { %v2740_v55 = vpop.f32.mrf.mxu3  ;;  %v2571_v38 = vpop.f32.mrf.mxu2  ;;  %7589 = vst [vmem:[#allocation2 + $0x5c] sm:$0xf] %v17001_v5  ;;  %v19531_v7 = vshrl.u32 %v16700_v9, 16 }
 0x163   : > { %v2663_v56 = vpop.f32.mrf.mxu1  ;;  %v17053_v17 = vadd.f32 %v2740_v55, %v2571_v38  ;;  %v15571_v55 = vld [vmem:[#allocation2 + $0x70] sm:$0xf0] }
 0x164   : > { %4090 = vmatmul.bf16.gmra.mxu0 %v13056_v3  ;;  %v13063_v3 = vld [vmem:[#allocation2 + $0x60] sm:$0xf]  ;;  %v1323_v56 = vor.u32 %v1322_v21, %v19531_v7  ;;  %v12592_v21 = vor.u32 %v15451_v27, %v12591_v54  ;;  %v15572_v54 = vld [vmem:[#allocation2 + $0x7c] sm:$0xf] }
 0x165   : > { %19529 = vst [vmem:[#allocation25_spill] sm:$0xff] %v17053_v17 }
 0x166   : > { %4259 = vmatmul.bf16.gmra.mxu1 %v13060_v22  ;;  %v15570_v22 = vld [vmem:[#allocation2 + $0x68] sm:$0xf0] }
 0x167   : > { %3921 = vmatmul.bf16.gmra.mxu3 %v13052_v11  ;;  %2791 = vmatmul.bf16.gmra.mxu2 %v12580_v40  ;;  %v19532_v11 = vshll.u32 %v16720_v43, 16 }
 0x169   : > { %v2496_v62 = vpop.f32.mrf.mxu0  ;;  %v1368_v38 = vrot.slane %v19532_v11, 4  ;;  %v15574_v11 = vld [vmem:[#allocation2 + $0x88] sm:$0xf0] }
 0x16a   : > { %v2743_v26 = vpop.f32.mrf.mxu3  ;;  %v2574_v2 = vpop.f32.mrf.mxu2  ;;  %v13072_v62 = vor.u32 %v15571_v55, %v13071_v47  ;;  %v15793_v47 = vld [vmem:[#allocation7 + $0x1f0] sm:$0xff] }
 0x16b   : > { %v2665_v50 = vpop.f32.mrf.mxu1  ;;  %v13068_v26 = vor.u32 %v15569_v23, %v13065_v18  ;;  %v13064_v2 = vor.u32 %v15570_v22, %v13063_v3  ;;  %v1403_v5 = vsel %vm16979_vm5, %v1323_v56, %v1368_v38  ;;  %v15785_v18 = vld [vmem:[#allocation7 + $0x1b0] sm:$0xff]  ;;  %5610 = vmatpush.bf16.msra.mxu3 %v15793_v47  ;;  %v13075_v38 = vld [vmem:[#allocation2 + $0x78] sm:$0xf] }
 0x16c   : > { %v1440_v45 = vunpack.c.l.b16 %v1403_v5  ;;  %v1441_v15 = vunpack.c.h.b16 %v1403_v5  ;;  %5441 = vmatpush.bf16.msra.mxu2 %v15785_v18  ;;  %v15801_v56 = vld [vmem:[#allocation7 + $0x230] sm:$0xff] }
 0x16d   : > { %5779 = vmatpush.bf16.msra.mxu0 %v15801_v56  ;;  %v13089_v56 = vld [vmem:[#allocation2 + $0x9c] sm:$0xf0] }
 0x16e   : > { %v1474_v43 = vpack.c.b16 %v1440_v45, %v1440_v45  ;;  %v1475_v7 = vpack.c.b16 %v1441_v15, %v1441_v15  ;;  %v13077_v45 = vld [vmem:[#allocation2 + $0x84] sm:$0xf0]  ;;  %v13083_v15 = vld [vmem:[#allocation2 + $0x80] sm:$0xf] }
 0x170   : > { %1544 = vst [vmem:[#allocation2 + $0x98] sm:$0xf] %v1474_v43 }
 0x171   : > { %v2499_v50 = vpop.f32.mrf.mxu0  ;;  %1545 = vst [vmem:[#allocation2 + $0xa4] sm:$0xf] %v1475_v7  ;;  %v12604_v7 = vor.u32 %v17059_v41, %v17057_v61  ;;  %v19536_v41 = vshll.u32 %v16768_v36, 16 }
 0x172   : > { %v2745_v40 = vpop.f32.mrf.mxu3  ;;  %v2576_v9 = vpop.f32.mrf.mxu2 }
 0x173   : > { %v2668_v17 = vpop.f32.mrf.mxu1  ;;  %v15573_v40 = vld [vmem:[#allocation2 + $0x80] sm:$0xf0] }
 0x174   : > { %v17071_v19 = vadd.f32 %v2668_v17, %v2499_v50  ;;  %4095 = vmatmul.bf16.gmra.mxu0 %v13068_v26  ;;  %v13084_v50 = vor.u32 %v15574_v11, %v13083_v15  ;;  %v13076_v9 = vor.u32 %v15573_v40, %v13075_v38  ;;  %v13087_v11 = vld [vmem:[#allocation2 + $0x90] sm:$0xf]  ;;  %v15576_v38 = vld [vmem:[#allocation2 + $0x98] sm:$0xf0]  ;;  %v19535_v40 = vshrl.u32 %v16748_v6, 16 }
 0x176   : > { %4264 = vmatmul.bf16.gmra.mxu1 %v13072_v62  ;;  %v13080_v62 = vor.u32 %v15572_v54, %v13077_v45  ;;  %v15575_v54 = vld [vmem:[#allocation2 + $0x94] sm:$0xf] }
 0x177   : > { %3926 = vmatmul.bf16.gmra.mxu3 %v13064_v2  ;;  %2796 = vmatmul.bf16.gmra.mxu2 %v12592_v21  ;;  %v13095_v45 = vld [vmem:[#allocation2 + $0x98] sm:$0xf] }
 0x178   : > { %v15577_v15 = vld [vmem:[#allocation2 + $0xa0] sm:$0xf0] }
 0x179   : > { %v2501_v55 = vpop.f32.mrf.mxu0 }
 0x17a   : > { %v2748_v23 = vpop.f32.mrf.mxu3  ;;  %v2579_v5 = vpop.f32.mrf.mxu2 }
 0x17b   : > { %v2670_v3 = vpop.f32.mrf.mxu1  ;;  %v17075_v17 = vadd.f32 %v2748_v23, %v2579_v5 }
 0x17c   : > { %v17073_v22 = vadd.f32 %v2670_v3, %v2501_v55  ;;  %v19534_v55 = vshll.u32 %v16748_v6, 16 }
 0x17e   : > { %v1324_v3 = vrot.slane %v19534_v55, 1 }
 0x180   : > { %v1325_v61 = vor.u32 %v1324_v3, %v19535_v40 }
 0x181   : > { %v2504_v27 = vpop.f32.mrf.mxu0 }
 0x182   : > { %v2750_v26 = vpop.f32.mrf.mxu3  ;;  %v2581_v21 = vpop.f32.mrf.mxu2  ;;  %v13096_v27 = vor.u32 %v15577_v15, %v13095_v45 }
 0x183   : > { %v2673_v2 = vpop.f32.mrf.mxu1  ;;  %v17077_v43 = vadd.f32 %v2750_v26, %v2581_v21  ;;  %v1369_v26 = vrot.slane %v19536_v41, 4  ;;  %v12615_v21 = vld [vmem:[#allocation2 + $0x68] sm:$0xf]  ;;  %v13101_v41 = vld [vmem:[#allocation2 + $0xb4] sm:$0xf0] }
 0x184   : > { %4100 = vmatmul.bf16.gmra.mxu0 %v13080_v62 }
 0x185   : > { %19533 = vst [vmem:[#allocation26_spill] sm:$0xff] %v17077_v43 }
 0x186   : > { %4269 = vmatmul.bf16.gmra.mxu1 %v13084_v50  ;;  %v13092_v50 = vor.u32 %v15575_v54, %v13089_v56 }
 0x187   : > { %3931 = vmatmul.bf16.gmra.mxu3 %v13076_v9  ;;  %2801 = vmatmul.bf16.gmra.mxu2 %v12604_v7  ;;  %v15457_v7 = vld [vmem:[#allocation2 + $0x70] sm:$0xf0] }
 0x188   : > { %v12616_v3 = vor.u32 %v15457_v7, %v12615_v21 }
 0x189   : > { %v2506_v18 = vpop.f32.mrf.mxu0 }
 0x18a   : > { %v2753_v23 = vpop.f32.mrf.mxu3  ;;  %v2584_v5 = vpop.f32.mrf.mxu2  ;;  %v1404_v18 = vsel %vm16979_vm5, %v1325_v61, %v1369_v26  ;;  %v15578_v61 = vld [vmem:[#allocation2 + $0xac] sm:$0xf]  ;;  %v13107_v26 = vld [vmem:[#allocation2 + $0xb0] sm:$0xf] }
 0x18b   : > { %v2675_v47 = vpop.f32.mrf.mxu1  ;;  %v13088_v23 = vor.u32 %v15576_v38, %v13087_v11  ;;  %v1442_v55 = vunpack.c.l.b16 %v1404_v18  ;;  %v1443_v5 = vunpack.c.h.b16 %v1404_v18  ;;  %v12627_v18 = vld [vmem:[#allocation2 + $0x80] sm:$0xf] }
 0x18d   : > { %v1476_v36 = vpack.c.b16 %v1442_v55, %v1442_v55  ;;  %v1477_v40 = vpack.c.b16 %v1443_v5, %v1443_v5  ;;  %v15460_v55 = vld [vmem:[#allocation2 + $0x88] sm:$0xf0] }
 0x18f   : > { %1548 = vst [vmem:[#allocation2 + $0xc8] sm:$0xf] %v1476_v36  ;;  %v12628_v36 = vor.u32 %v15460_v55, %v12627_v18 }
 0x190   : > { %1549 = vst [vmem:[#allocation2 + $0xd4] sm:$0xf] %v1477_v40 }
 0x191   : > { %v2509_v2 = vpop.f32.mrf.mxu0 }
 0x192   : > { %v2755_v62 = vpop.f32.mrf.mxu3  ;;  %v2586_v6 = vpop.f32.mrf.mxu2 }
 0x193   : > { %v2678_v9 = vpop.f32.mrf.mxu1  ;;  %v15580_v62 = vld [vmem:[#allocation2 + $0xb8] sm:$0xf0] }
 0x194   : > { %v17089_v47 = vadd.f32 %v2678_v9, %v2509_v2  ;;  %4105 = vmatmul.bf16.gmra.mxu0 %v13092_v50  ;;  %v13099_v50 = vld [vmem:[#allocation2 + $0xa8] sm:$0xf]  ;;  %v13104_v9 = vor.u32 %v15578_v61, %v13101_v41  ;;  %v13108_v21 = vor.u32 %v15580_v62, %v13107_v26  ;;  %v15581_v41 = vld [vmem:[#allocation2 + $0xc4] sm:$0xf]  ;;  %v13113_v26 = vld [vmem:[#allocation2 + $0xcc] sm:$0xf0] }
 0x195   : > { %v13116_v55 = vor.u32 %v15581_v41, %v13113_v26  ;;  %v15784_v26 = vld [vmem:[#allocation7 + $0x1a8] sm:$0xff] }
 0x196   : > { %4274 = vmatmul.bf16.gmra.mxu1 %v13096_v27  ;;  %v15579_v27 = vld [vmem:[#allocation2 + $0xb0] sm:$0xf0]  ;;  %v13119_v62 = vld [vmem:[#allocation2 + $0xc8] sm:$0xf]  ;;  %5442 = vmatpush.bf16.msra.mxu2 %v15784_v26 }
 0x197   : > { %3936 = vmatmul.bf16.gmra.mxu3 %v13088_v23  ;;  %2806 = vmatmul.bf16.gmra.mxu2 %v12616_v3  ;;  %v13100_v5 = vor.u32 %v15579_v27, %v13099_v50  ;;  %v13111_v50 = vld [vmem:[#allocation2 + $0xc0] sm:$0xf]  ;;  %v15582_v27 = vld [vmem:[#allocation2 + $0xc8] sm:$0xf0] }
 0x199   : > { %v2511_v56 = vpop.f32.mrf.mxu0 }
 0x19a   : > { %v2758_v54 = vpop.f32.mrf.mxu3  ;;  %v2589_v11 = vpop.f32.mrf.mxu2 }
 0x19b   : > { %v2680_v45 = vpop.f32.mrf.mxu1  ;;  %v17093_v38 = vadd.f32 %v2758_v54, %v2589_v11 }
 0x19c   : > { %v17091_v15 = vadd.f32 %v2680_v45, %v2511_v56  ;;  %v19539_v45 = vshll.u32 %v16796_v33, 16 }
 0x19d   : > { %19537 = vst [vmem:[#allocation27_spill] sm:$0xff] %v17093_v38 }
 0x19e   : > { %v1326_v11 = vrot.slane %v19539_v45, 1 }
 0x1a1   : > { %v2514_v7 = vpop.f32.mrf.mxu0 }
 0x1a2   : > { %v2760_v2 = vpop.f32.mrf.mxu3  ;;  %v2591_v6 = vpop.f32.mrf.mxu2  ;;  %v15583_v7 = vld [vmem:[#allocation2 + $0xd0] sm:$0xf0] }
 0x1a3   : > { %v2683_v23 = vpop.f32.mrf.mxu1  ;;  %v17095_v3 = vadd.f32 %v2760_v2, %v2591_v6  ;;  %v19540_v2 = vshrl.u32 %v16796_v33, 16 }
 0x1a4   : > { %4110 = vmatmul.bf16.gmra.mxu0 %v13104_v9  ;;  %v19541_v9 = vshll.u32 %v16816_v35, 16 }
 0x1a5   : > { %19538 = vst [vmem:[#allocation28_spill] sm:$0xff] %v17095_v3  ;;  %v1327_v23 = vor.u32 %v1326_v11, %v19540_v2 }
 0x1a6   : > { %4279 = vmatmul.bf16.gmra.mxu1 %v13108_v21  ;;  %v1370_v21 = vrot.slane %v19541_v9, 4 }
 0x1a7   : > { %3941 = vmatmul.bf16.gmra.mxu3 %v13100_v5  ;;  %2811 = vmatmul.bf16.gmra.mxu2 %v12628_v36  ;;  %v13120_v5 = vor.u32 %v15583_v7, %v13119_v62  ;;  %v15792_v62 = vld [vmem:[#allocation7 + $0x1e8] sm:$0xff] }
 0x1a8   : > { %v1405_v45 = vsel %vm16979_vm5, %v1327_v23, %v1370_v21  ;;  %5611 = vmatpush.bf16.msra.mxu3 %v15792_v62  ;;  %v15584_v21 = vld [vmem:[#allocation2 + $0xdc] sm:$0xf] }
 0x1a9   : > { %v2516_v54 = vpop.f32.mrf.mxu0  ;;  %v1444_v3 = vunpack.c.l.b16 %v1405_v45  ;;  %v1445_v38 = vunpack.c.h.b16 %v1405_v45  ;;  %v12651_v45 = vld [vmem:[#allocation2 + $0xb0] sm:$0xf] }
 0x1aa   : > { %v2763_v40 = vpop.f32.mrf.mxu3  ;;  %v2594_v61 = vpop.f32.mrf.mxu2  ;;  %v15463_v54 = vld [vmem:[#allocation2 + $0xa0] sm:$0xf0] }
 0x1ab   : > { %v2685_v56 = vpop.f32.mrf.mxu1  ;;  %v12639_v40 = vld [vmem:[#allocation2 + $0x98] sm:$0xf]  ;;  %v1478_v35 = vpack.c.b16 %v1444_v3, %v1444_v3  ;;  %v1479_v2 = vpack.c.b16 %v1445_v38, %v1445_v38  ;;  %v13131_v3 = vld [vmem:[#allocation2 + $0xe0] sm:$0xf]  ;;  %v15586_v38 = vld [vmem:[#allocation2 + $0xe8] sm:$0xf0] }
 0x1ac   : > { %v13112_v56 = vor.u32 %v15582_v27, %v13111_v50  ;;  %v12640_v11 = vor.u32 %v15463_v54, %v12639_v40  ;;  %v13132_v54 = vor.u32 %v15586_v38, %v13131_v3 }
 0x1ad   : > { %1552 = vst [vmem:[#allocation2 + $0xf8] sm:$0xf] %v1478_v35 }
 0x1ae   : > { %1553 = vst [vmem:[#allocation2 + $0x104] sm:$0xf] %v1479_v2 }
 0x1b1   : > { %v2519_v6 = vpop.f32.mrf.mxu0 }
 0x1b2   : > { %v2765_v18 = vpop.f32.mrf.mxu3  ;;  %v2596_v33 = vpop.f32.mrf.mxu2 }
 0x1b3   : > { %v2688_v36 = vpop.f32.mrf.mxu1  ;;  %v13125_v18 = vld [vmem:[#allocation2 + $0xe4] sm:$0xf0]  ;;  %v15466_v33 = vld [vmem:[#allocation2 + $0xb8] sm:$0xf0] }
 0x1b4   : > { %v17105_v61 = vadd.f32 %v2688_v36, %v2519_v6  ;;  %4115 = vmatmul.bf16.gmra.mxu0 %v13116_v55  ;;  %v13123_v55 = vld [vmem:[#allocation2 + $0xd8] sm:$0xf]  ;;  %v15800_v6 = vld [vmem:[#allocation7 + $0x228] sm:$0xff]  ;;  %v13128_v40 = vor.u32 %v15584_v21, %v13125_v18  ;;  %v15587_v21 = vld [vmem:[#allocation2 + $0xf4] sm:$0xf] }
 0x1b5   : > { %5780 = vmatpush.bf16.msra.mxu0 %v15800_v6  ;;  %v13137_v18 = vld [vmem:[#allocation2 + $0xfc] sm:$0xf0]  ;;  %v13143_v3 = vld [vmem:[#allocation2 + $0xf8] sm:$0xf]  ;;  %v15589_v38 = vld [vmem:[#allocation2 + $0x100] sm:$0xf0] }
 0x1b6   : > { %4284 = vmatmul.bf16.gmra.mxu1 %v13120_v5  ;;  %v15585_v5 = vld [vmem:[#allocation2 + $0xe0] sm:$0xf0]  ;;  %v19544_v6 = vshll.u32 %v16850_v29, 16 }
 0x1b7   : > { %3946 = vmatmul.bf16.gmra.mxu3 %v13112_v56  ;;  %2816 = vmatmul.bf16.gmra.mxu2 %v12640_v11  ;;  %v13124_v11 = vor.u32 %v15585_v5, %v13123_v55  ;;  %v13135_v5 = vld [vmem:[#allocation2 + $0xf0] sm:$0xf] }
 0x1b8   : > { %v1328_v55 = vrot.slane %v19544_v6, 1 }
 0x1b9   : > { %v2521_v7 = vpop.f32.mrf.mxu0 }
 0x1ba   : > { %v2768_v41 = vpop.f32.mrf.mxu3  ;;  %v2599_v23 = vpop.f32.mrf.mxu2 }
 0x1bb   : > { %v2690_v50 = vpop.f32.mrf.mxu1  ;;  %v17109_v9 = vadd.f32 %v2768_v41, %v2599_v23  ;;  %v12652_v41 = vor.u32 %v15466_v33, %v12651_v45 }
 0x1bc   : > { %v17107_v27 = vadd.f32 %v2690_v50, %v2521_v7 }
 0x1bd   : > { %19542 = vst [vmem:[#allocation29_spill] sm:$0xff] %v17109_v9 }
 0x1c1   : > { %v2524_v56 = vpop.f32.mrf.mxu0 }
 0x1c2   : > { %v2770_v36 = vpop.f32.mrf.mxu3  ;;  %v2601_v2 = vpop.f32.mrf.mxu2  ;;  %v15588_v56 = vld [vmem:[#allocation2 + $0xf8] sm:$0xf0] }
 0x1c3   : > { %v2693_v35 = vpop.f32.mrf.mxu1  ;;  %v17111_v26 = vadd.f32 %v2770_v36, %v2601_v2  ;;  %v19545_v36 = vshrl.u32 %v16850_v29, 16 }
 0x1c4   : > { %4120 = vmatmul.bf16.gmra.mxu0 %v13128_v40  ;;  %v19546_v40 = vshll.u32 %v16875_v12, 16  ;;  %v13144_v35 = vor.u32 %v15589_v38, %v13143_v3 }
 0x1c5   : > { %19543 = vst [vmem:[#allocation30_spill] sm:$0xff] %v17111_v26  ;;  %v1329_v45 = vor.u32 %v1328_v55, %v19545_v36  ;;  %v15590_v36 = vld [vmem:[#allocation2 + $0x10c] sm:$0xf] }
 0x1c6   : > { %4289 = vmatmul.bf16.gmra.mxu1 %v13132_v54  ;;  %v1371_v54 = vrot.slane %v19546_v40, 4  ;;  %v15592_v40 = vld [vmem:[#allocation2 + $0x118] sm:$0xf0] }
 0x1c7   : > { %3951 = vmatmul.bf16.gmra.mxu3 %v13124_v11  ;;  %2821 = vmatmul.bf16.gmra.mxu2 %v12652_v41  ;;  %v13140_v11 = vor.u32 %v15587_v21, %v13137_v18  ;;  %v12663_v41 = vld [vmem:[#allocation2 + $0xc8] sm:$0xf] }
 0x1c9   : > { %v2526_v7 = vpop.f32.mrf.mxu0 }
 0x1ca   : > { %v2773_v62 = vpop.f32.mrf.mxu3  ;;  %v2604_v23 = vpop.f32.mrf.mxu2  ;;  %v13136_v7 = vor.u32 %v15588_v56, %v13135_v5 }
 0x1cb   : > { %v2695_v50 = vpop.f32.mrf.mxu1  ;;  %v15469_v62 = vld [vmem:[#allocation2 + $0xd0] sm:$0xf0]  ;;  %v1406_v23 = vsel %vm16979_vm5, %v1329_v45, %v1371_v54  ;;  %v13149_v45 = vld [vmem:[#allocation2 + $0x114] sm:$0xf0] }
 0x1cc   : > { %v1446_v6 = vunpack.c.l.b16 %v1406_v23  ;;  %v1447_v26 = vunpack.c.h.b16 %v1406_v23  ;;  %v12664_v43 = vor.u32 %v15469_v62, %v12663_v41 }
 0x1ce   : > { %v1480_v29 = vpack.c.b16 %v1446_v6, %v1446_v6  ;;  %v1481_v12 = vpack.c.b16 %v1447_v26, %v1447_v26  ;;  %v15591_v26 = vld [vmem:[#allocation2 + $0x110] sm:$0xf0] }
 0x1d0   : > { %1556 = vst [vmem:[#allocation2 + $0x128] sm:$0xf] %v1480_v29 }
 0x1d1   : > { %v4086_v2 = vpop.f32.mrf.mxu0  ;;  %1557 = vst [vmem:[#allocation2 + $0x134] sm:$0xf] %v1481_v12 }
 0x1d2   : > { %v2775_v33 = vpop.f32.mrf.mxu3  ;;  %v2606_v9 = vpop.f32.mrf.mxu2 }
 0x1d3   : > { %v4255_v50 = vpop.f32.mrf.mxu1  ;;  %v13155_v9 = vld [vmem:[#allocation2 + $0x110] sm:$0xf]  ;;  %v13147_v33 = vld [vmem:[#allocation2 + $0x108] sm:$0xf] }
 0x1d4   : > { %4125 = vmatmul.bf16.gmra.mxu0 %v13140_v11  ;;  %v13156_v41 = vor.u32 %v15592_v40, %v13155_v9  ;;  %v13148_v23 = vor.u32 %v15591_v26, %v13147_v33  ;;  %v19547_v40 = vshll.u32 %v16910_v42, 16  ;;  %v13159_v33 = vld [vmem:[#allocation2 + $0x120] sm:$0xf]  ;;  %v19548_v26 = vshrl.u32 %v16910_v42, 16 }
 0x1d6   : > { %4294 = vmatmul.bf16.gmra.mxu1 %v13144_v35  ;;  %v13152_v35 = vor.u32 %v15590_v36, %v13149_v45  ;;  %v13161_v36 = vld [vmem:[#allocation2 + $0x12c] sm:$0xf0] }
 0x1d7   : > { %3956 = vmatmul.bf16.gmra.mxu3 %v13136_v7  ;;  %2826 = vmatmul.bf16.gmra.mxu2 %v12664_v43  ;;  %v15472_v7 = vld [vmem:[#allocation2 + $0xe8] sm:$0xf0]  ;;  %v13167_v45 = vld [vmem:[#allocation2 + $0x128] sm:$0xf] }
 0x1d8   : > { %v15595_v9 = vld [vmem:[#allocation2 + $0x130] sm:$0xf0] }
 0x1d9   : > { %v4088_v3 = vpop.f32.mrf.mxu0 }
 0x1da   : > { %v3917_v21 = vpop.f32.mrf.mxu3  ;;  %v2787_v55 = vpop.f32.mrf.mxu2 }
 0x1db   : > { %v4087_v18 = vadd.f32 %v4086_v2, %v3917_v21  ;;  %v4257_v38 = vpop.f32.mrf.mxu1  ;;  %v2788_v56 = vadd.f32 %v2787_v55, %v16821_v59  ;;  %v12675_v2 = vld [vmem:[#allocation2 + $0xe0] sm:$0xf] }
 0x1dc   : > { %v12676_v12 = vor.u32 %v15472_v7, %v12675_v2  ;;  %v13168_v2 = vor.u32 %v15595_v9, %v13167_v45 }
 0x1dd   : > { %v4256_v5 = vadd.f32 %v4255_v50, %v4087_v18 }
 0x1df   : > { %v17122_v54 = vadd.f32 %v4256_v5, %v2788_v56  ;;  %v15593_v56 = vld [vmem:[#allocation2 + $0x124] sm:$0xf] }
 0x1e1   : > { %v4091_v62 = vpop.f32.mrf.mxu0 }
 0x1e2   : > { %v3919_v11 = vpop.f32.mrf.mxu3  ;;  %v2789_v50 = vpop.f32.mrf.mxu2  ;;  %v13164_v62 = vor.u32 %v15593_v56, %v13161_v36  ;;  %v15783_v56 = vld [vmem:[#allocation7 + $0x1a0] sm:$0xff] }
 0x1e3   : > { %v4089_v43 = vadd.f32 %v4088_v3, %v3919_v11  ;;  %v4260_v6 = vpop.f32.mrf.mxu1  ;;  %v2790_v59 = vadd.f32 %v2789_v50, %v16840_v57  ;;  %v15594_v57 = vld [vmem:[#allocation2 + $0x128] sm:$0xf0]  ;;  %v15791_v36 = vld [vmem:[#allocation7 + $0x1e0] sm:$0xff]  ;;  %5443 = vmatpush.bf16.msra.mxu2 %v15783_v56 }
 0x1e4   : > { %4130 = vmatmul.bf16.gmra.mxu0 %v13152_v35  ;;  %v19549_v35 = vshll.u32 %v16938_v58, 16  ;;  %v15475_v6 = vld [vmem:[#allocation2 + $0x100] sm:$0xf0]  ;;  %v13160_v50 = vor.u32 %v15594_v57, %v13159_v33  ;;  %5612 = vmatpush.bf16.msra.mxu3 %v15791_v36 }
 0x1e5   : > { %v4258_v29 = vadd.f32 %v4257_v38, %v4089_v43  ;;  %v1330_v38 = vrot.slane %v19547_v40, 1 }
 0x1e6   : > { %4299 = vmatmul.bf16.gmra.mxu1 %v13156_v41  ;;  %v1372_v41 = vrot.slane %v19549_v35, 4  ;;  %v13179_v35 = vld [vmem:[#allocation2 + $0x140] sm:$0xf] }
 0x1e7   : > { %3961 = vmatmul.bf16.gmra.mxu3 %v13148_v23  ;;  %v17125_v21 = vadd.f32 %v4258_v29, %v2790_v59  ;;  %2831 = vmatmul.bf16.gmra.mxu2 %v12676_v12  ;;  %v1331_v11 = vor.u32 %v1330_v38, %v19548_v26  ;;  %v12687_v23 = vld [vmem:[#allocation2 + $0xf8] sm:$0xf]  ;;  %v15596_v26 = vld [vmem:[#allocation2 + $0x13c] sm:$0xf] }
 0x1e9   : > { %v4093_v55 = vpop.f32.mrf.mxu0  ;;  %v1407_v59 = vsel %vm16979_vm5, %v1331_v11, %v1372_v41  ;;  %v13173_v11 = vld [vmem:[#allocation2 + $0x144] sm:$0xf0]  ;;  %v15598_v41 = vld [vmem:[#allocation2 + $0x148] sm:$0xf0] }
 0x1ea   : > { %v3922_v18 = vpop.f32.mrf.mxu3  ;;  %v2792_v3 = vpop.f32.mrf.mxu2  ;;  %v1448_v12 = vunpack.c.l.b16 %v1407_v59 }
 0x1eb   : > { %v4262_v5 = vpop.f32.mrf.mxu1  ;;  %v1449_v18 = vunpack.c.h.b16 %v1407_v59 }
 0x1ec   : > { %v12688_v5 = vor.u32 %v15475_v6, %v12687_v23  ;;  %v1482_v42 = vpack.c.b16 %v1448_v12, %v1448_v12  ;;  %v15799_v23 = vld [vmem:[#allocation7 + $0x220] sm:$0xff] }
 0x1ed   : > { %v1483_v58 = vpack.c.b16 %v1449_v18, %v1449_v18  ;;  %5781 = vmatpush.bf16.msra.mxu0 %v15799_v23  ;;  %v12699_v18 = vld [vmem:[#allocation2 + $0x110] sm:$0xf]  ;;  %v19552_v23 = vshll.u32 %v16571_v25, 16 }
 0x1ee   : > { %1560 = vst [vmem:[#allocation2 + $0x158] sm:$0xf] %v1482_v42 }
 0x1ef   : > { %1561 = vst [vmem:[#allocation2 + $0x164] sm:$0xf] %v1483_v58 }
 0x1f1   : > { %v4096_v7 = vpop.f32.mrf.mxu0 }
 0x1f2   : > { %v3924_v43 = vpop.f32.mrf.mxu3  ;;  %v2794_v55 = vpop.f32.mrf.mxu2 }
 0x1f3   : > { %v4265_v29 = vpop.f32.mrf.mxu1  ;;  %v15478_v55 = vld [vmem:[#allocation2 + $0x118] sm:$0xf0] }
 0x1f4   : > { %4135 = vmatmul.bf16.gmra.mxu0 %v13164_v62  ;;  %v13171_v62 = vld [vmem:[#allocation2 + $0x138] sm:$0xf] }
 0x1f6   : > { %4304 = vmatmul.bf16.gmra.mxu1 %v13168_v2  ;;  %v15597_v2 = vld [vmem:[#allocation2 + $0x140] sm:$0xf0] }
 0x1f7   : > { %3966 = vmatmul.bf16.gmra.mxu3 %v13160_v50  ;;  %2836 = vmatmul.bf16.gmra.mxu2 %v12688_v5  ;;  %v13176_v50 = vor.u32 %v15596_v26, %v13173_v11  ;;  %v15599_v26 = vld [vmem:[#allocation2 + $0x154] sm:$0xf]  ;;  %v13185_v11 = vld [vmem:[#allocation2 + $0x15c] sm:$0xf0] }
 0x1f9   : > { %v4098_v9 = vpop.f32.mrf.mxu0 }
 0x1fa   : > { %v3927_v3 = vpop.f32.mrf.mxu3  ;;  %v2797_v38 = vpop.f32.mrf.mxu2 }
 0x1fb   : > { %v4097_v45 = vadd.f32 %v4096_v7, %v3927_v3  ;;  %v4267_v40 = vpop.f32.mrf.mxu1  ;;  %v2798_v57 = vadd.f32 %v2797_v38, %v16880_v44  ;;  %v13180_v7 = vor.u32 %v15598_v41, %v13179_v35  ;;  %v12700_v3 = vor.u32 %v15478_v55, %v12699_v18  ;;  %v13191_v35 = vld [vmem:[#allocation2 + $0x158] sm:$0xf]  ;;  %v13183_v41 = vld [vmem:[#allocation2 + $0x150] sm:$0xf]  ;;  %v12711_v18 = vld [vmem:[#allocation2 + $0x128] sm:$0xf] }
 0x1fc   : > { %v15481_v55 = vld [vmem:[#allocation2 + $0x130] sm:$0xf0] }
 0x1fd   : > { %v4266_v33 = vadd.f32 %v4265_v29, %v4097_v45  ;;  %v13172_v29 = vor.u32 %v15597_v2, %v13171_v62  ;;  %v19551_v62 = vshrl.u32 %v16569_v24, 16 }
 0x1ff   : > { %v17136_v43 = vadd.f32 %v4266_v33, %v2798_v57 }
 0x201   : > { %v4101_v12 = vpop.f32.mrf.mxu0 }
 0x202   : > { %v3929_v6 = vpop.f32.mrf.mxu3  ;;  %v2799_v44 = vpop.f32.mrf.mxu2 }
 0x203   : > { %v4099_v59 = vadd.f32 %v4098_v9, %v3929_v6  ;;  %v4270_v5 = vpop.f32.mrf.mxu1  ;;  %v2800_v58 = vadd.f32 %v2799_v44, %v16900_v53  ;;  %v19550_v9 = vshll.u32 %v16569_v24, 16  ;;  %v15600_v53 = vld [vmem:[#allocation2 + $0x158] sm:$0xf0]  ;;  %v1373_v6 = vrot.slane %v19552_v23, 4  ;;  %v15603_v23 = vld [vmem:[#allocation2 + $0x170] sm:$0xf0] }
 0x204   : > { %4140 = vmatmul.bf16.gmra.mxu0 %v13176_v50 }
 0x205   : > { %v4268_v42 = vadd.f32 %v4267_v40, %v4099_v59  ;;  %v1332_v33 = vrot.slane %v19550_v9, 1  ;;  %v15601_v40 = vld [vmem:[#allocation2 + $0x160] sm:$0xf0] }
 0x206   : > { %4309 = vmatmul.bf16.gmra.mxu1 %v13180_v7  ;;  %v13188_v7 = vor.u32 %v15599_v26, %v13185_v11  ;;  %v13192_v59 = vor.u32 %v15601_v40, %v13191_v35  ;;  %v15602_v35 = vld [vmem:[#allocation2 + $0x16c] sm:$0xf]  ;;  %v13197_v40 = vld [vmem:[#allocation2 + $0x174] sm:$0xf0] }
 0x207   : > { %3971 = vmatmul.bf16.gmra.mxu3 %v13172_v29  ;;  %v17139_v56 = vadd.f32 %v4268_v42, %v2800_v58  ;;  %2841 = vmatmul.bf16.gmra.mxu2 %v12700_v3  ;;  %v1333_v2 = vor.u32 %v1332_v33, %v19551_v62  ;;  %v13184_v29 = vor.u32 %v15600_v53, %v13183_v41  ;;  %v13203_v41 = vld [vmem:[#allocation2 + $0x170] sm:$0xf]  ;;  %v15604_v53 = vld [vmem:[#allocation2 + $0x178] sm:$0xf0] }
 0x209   : > { %v4103_v45 = vpop.f32.mrf.mxu0  ;;  %v1408_v44 = vsel %vm16979_vm5, %v1333_v2, %v1373_v6  ;;  %v13195_v2 = vld [vmem:[#allocation2 + $0x168] sm:$0xf] }
 0x20a   : > { %v3932_v36 = vpop.f32.mrf.mxu3  ;;  %v2802_v57 = vpop.f32.mrf.mxu2  ;;  %v1450_v42 = vunpack.c.l.b16 %v1408_v44  ;;  %v1451_v58 = vunpack.c.h.b16 %v1408_v44 }
 0x20b   : > { %v4272_v38 = vpop.f32.mrf.mxu1  ;;  %v12712_v36 = vor.u32 %v15481_v55, %v12711_v18  ;;  %v15484_v55 = vld [vmem:[#allocation2 + $0x148] sm:$0xf0] }
 0x20c   : > { %v1484_v24 = vpack.c.b16 %v1450_v42, %v1450_v42  ;;  %v1485_v25 = vpack.c.b16 %v1451_v58, %v1451_v58 }
 0x20e   : > { %1564 = vst [vmem:[#allocation2 + $0x188] sm:$0xf] %v1484_v24 }
 0x20f   : > { %1565 = vst [vmem:[#allocation2 + $0x194] sm:$0xf] %v1485_v25 }
 0x211   : > { %v4106_v12 = vpop.f32.mrf.mxu0 }
 0x212   : > { %v3934_v50 = vpop.f32.mrf.mxu3  ;;  %v2804_v3 = vpop.f32.mrf.mxu2 }
 0x213   : > { %v4275_v5 = vpop.f32.mrf.mxu1  ;;  %v13200_v50 = vor.u32 %v15602_v35, %v13197_v40  ;;  %v13207_v35 = vld [vmem:[#allocation2 + $0x180] sm:$0xf]  ;;  %v19554_v40 = vshrl.u32 %v16626_v51, 16 }
 0x214   : > { %4145 = vmatmul.bf16.gmra.mxu0 %v13188_v7  ;;  %v13204_v7 = vor.u32 %v15604_v53, %v13203_v41  ;;  %v19555_v53 = vshll.u32 %v16637_v63, 16 }
 0x216   : > { %4314 = vmatmul.bf16.gmra.mxu1 %v13192_v59 }
 0x217   : > { %3976 = vmatmul.bf16.gmra.mxu3 %v13184_v29  ;;  %2846 = vmatmul.bf16.gmra.mxu2 %v12712_v36  ;;  %v13196_v29 = vor.u32 %v15603_v23, %v13195_v2  ;;  %v1374_v2 = vrot.slane %v19555_v53, 4  ;;  %v15609_v53 = vld [vmem:[#allocation2 + $0x1a0] sm:$0xf0] }
 0x219   : > { %v4108_v9 = vpop.f32.mrf.mxu0 }
 0x21a   : > { %v3937_v45 = vpop.f32.mrf.mxu3  ;;  %v2807_v57 = vpop.f32.mrf.mxu2 }
 0x21b   : > { %v4107_v38 = vadd.f32 %v4106_v12, %v3937_v45  ;;  %v4277_v33 = vpop.f32.mrf.mxu1  ;;  %v2808_v11 = vadd.f32 %v2807_v57, %v16943_v30  ;;  %v12723_v12 = vld [vmem:[#allocation2 + $0x140] sm:$0xf]  ;;  %v19553_v45 = vshll.u32 %v16626_v51, 16  ;;  %v15605_v57 = vld [vmem:[#allocation2 + $0x184] sm:$0xf] }
 0x21c   : > { %v12724_v58 = vor.u32 %v15484_v55, %v12723_v12 }
 0x21d   : > { %v4276_v26 = vadd.f32 %v4275_v5, %v4107_v38  ;;  %v1334_v38 = vrot.slane %v19553_v45, 1 }
 0x21f   : > { %v17150_v62 = vadd.f32 %v4276_v26, %v2808_v11  ;;  %v13209_v26 = vld [vmem:[#allocation2 + $0x18c] sm:$0xf0]  ;;  %v13215_v11 = vld [vmem:[#allocation2 + $0x188] sm:$0xf]  ;;  %v1335_v41 = vor.u32 %v1334_v38, %v19554_v40 }
 0x221   : > { %v4111_v18 = vpop.f32.mrf.mxu0 }
 0x222   : > { %v3939_v6 = vpop.f32.mrf.mxu3  ;;  %v2809_v5 = vpop.f32.mrf.mxu2  ;;  %v15487_v18 = vld [vmem:[#allocation2 + $0x160] sm:$0xf0] }
 0x223   : > { %v4109_v59 = vadd.f32 %v4108_v9, %v3939_v6  ;;  %v4280_v44 = vpop.f32.mrf.mxu1  ;;  %v2810_v30 = vadd.f32 %v2809_v5, %v16960_v28  ;;  %v15606_v28 = vld [vmem:[#allocation2 + $0x188] sm:$0xf0]  ;;  %v13212_v6 = vor.u32 %v15605_v57, %v13209_v26 }
 0x224   : > { %4150 = vmatmul.bf16.gmra.mxu0 %v13200_v50  ;;  %v13208_v12 = vor.u32 %v15606_v28, %v13207_v35  ;;  %v13227_v35 = vld [vmem:[#allocation2 + $0x1a0] sm:$0xf]  ;;  %v15610_v28 = vld [vmem:[#allocation2 + $0x1a8] sm:$0xf0] }
 0x225   : > { %v4278_v42 = vadd.f32 %v4277_v33, %v4109_v59  ;;  %v15607_v33 = vld [vmem:[#allocation2 + $0x190] sm:$0xf0]  ;;  %v12735_v59 = vld [vmem:[#allocation2 + $0x158] sm:$0xf] }
 0x226   : > { %4319 = vmatmul.bf16.gmra.mxu1 %v13204_v7  ;;  %v13216_v50 = vor.u32 %v15607_v33, %v13215_v11  ;;  %v15608_v11 = vld [vmem:[#allocation2 + $0x19c] sm:$0xf]  ;;  %v13221_v33 = vld [vmem:[#allocation2 + $0x1a4] sm:$0xf0] }
 0x227   : > { %3981 = vmatmul.bf16.gmra.mxu3 %v13196_v29  ;;  %v17153_v3 = vadd.f32 %v4278_v42, %v2810_v30  ;;  %2851 = vmatmul.bf16.gmra.mxu2 %v12724_v58  ;;  %v1409_v29 = vsel %vm16979_vm5, %v1335_v41, %v1374_v2  ;;  %v12736_v30 = vor.u32 %v15487_v18, %v12735_v59  ;;  %v13219_v41 = vld [vmem:[#allocation2 + $0x198] sm:$0xf]  ;;  %v12747_v18 = vld [vmem:[#allocation2 + $0x170] sm:$0xf] }
 0x228   : > { %v1452_v44 = vunpack.c.l.b16 %v1409_v29  ;;  %v1453_v5 = vunpack.c.h.b16 %v1409_v29  ;;  %v15798_v2 = vld [vmem:[#allocation7 + $0x218] sm:$0xff] }
 0x229   : > { %v4113_v24 = vpop.f32.mrf.mxu0  ;;  %5782 = vmatpush.bf16.msra.mxu0 %v15798_v2 }
 0x22a   : > { %v3942_v36 = vpop.f32.mrf.mxu3  ;;  %v2812_v9 = vpop.f32.mrf.mxu2  ;;  %v1486_v51 = vpack.c.b16 %v1452_v44, %v1452_v44  ;;  %v1487_v63 = vpack.c.b16 %v1453_v5, %v1453_v5  ;;  %v15790_v24 = vld [vmem:[#allocation7 + $0x1d8] sm:$0xff] }
 0x22b   : > { %v4282_v25 = vpop.f32.mrf.mxu1  ;;  %v15782_v36 = vld [vmem:[#allocation7 + $0x198] sm:$0xff]  ;;  %5613 = vmatpush.bf16.msra.mxu3 %v15790_v24 }
 0x22c   : > { %1568 = vst [vmem:[#allocation2 + $0x1b8] sm:$0xf] %v1486_v51  ;;  %5444 = vmatpush.bf16.msra.mxu2 %v15782_v36  ;;  %v19556_v36 = vshll.u32 %v16674_v32, 16 }
 0x22d   : > { %1569 = vst [vmem:[#allocation2 + $0x1c4] sm:$0xf] %v1487_v63 }
 0x22e   : > { %v1336_v24 = vrot.slane %v19556_v36, 1 }
 0x231   : > { %v4116_v7 = vpop.f32.mrf.mxu0 }
 0x232   : > { %v3944_v23 = vpop.f32.mrf.mxu3  ;;  %v2814_v42 = vpop.f32.mrf.mxu2 }
 0x233   : > { %v4285_v55 = vpop.f32.mrf.mxu1 }
 0x234   : > { %4155 = vmatmul.bf16.gmra.mxu0 %v13212_v6  ;;  %v13224_v6 = vor.u32 %v15608_v11, %v13221_v33  ;;  %v19557_v11 = vshrl.u32 %v16674_v32, 16 }
 0x236   : > { %4324 = vmatmul.bf16.gmra.mxu1 %v13216_v50  ;;  %v13228_v50 = vor.u32 %v15610_v28, %v13227_v35  ;;  %v1337_v33 = vor.u32 %v1336_v24, %v19557_v11  ;;  %v19558_v35 = vshll.u32 %v16684_v48, 16  ;;  %v15614_v24 = vld [vmem:[#allocation2 + $0x1cc] sm:$0xf] }
 0x237   : > { %3986 = vmatmul.bf16.gmra.mxu3 %v13208_v12  ;;  %2856 = vmatmul.bf16.gmra.mxu2 %v12736_v30  ;;  %v15490_v12 = vld [vmem:[#allocation2 + $0x178] sm:$0xf0] }
 0x238   : > { %v12748_v42 = vor.u32 %v15490_v12, %v12747_v18  ;;  %v1375_v28 = vrot.slane %v19558_v35, 4 }
 0x239   : > { %v4118_v45 = vpop.f32.mrf.mxu0 }
 0x23a   : > { %v3947_v58 = vpop.f32.mrf.mxu3  ;;  %v2817_v9 = vpop.f32.mrf.mxu2  ;;  %v1410_v18 = vsel %vm16979_vm5, %v1337_v33, %v1375_v28 }
 0x23b   : > { %v4117_v25 = vadd.f32 %v4116_v7, %v3947_v58  ;;  %v4287_v38 = vpop.f32.mrf.mxu1  ;;  %v2818_v26 = vadd.f32 %v2817_v9, %v16993_v20  ;;  %v13233_v9 = vld [vmem:[#allocation2 + $0x1bc] sm:$0xf0]  ;;  %v1454_v12 = vunpack.c.l.b16 %v1410_v18 }
 0x23d   : > { %v4286_v57 = vadd.f32 %v4285_v55, %v4117_v25  ;;  %v13220_v55 = vor.u32 %v15609_v53, %v13219_v41  ;;  %v1488_v32 = vpack.c.b16 %v1454_v12, %v1454_v12 }
 0x23f   : > { %v17164_v40 = vadd.f32 %v4286_v57, %v2818_v26  ;;  %v13239_v57 = vld [vmem:[#allocation2 + $0x1b8] sm:$0xf]  ;;  %v13231_v26 = vld [vmem:[#allocation2 + $0x1b0] sm:$0xf]  ;;  %1572 = vst [vmem:[#allocation2 + $0x1e8] sm:$0xf] %v1488_v32 }
 0x241   : > { %v4121_v59 = vpop.f32.mrf.mxu0 }
 0x242   : > { %v3949_v23 = vpop.f32.mrf.mxu3  ;;  %v2819_v20 = vpop.f32.mrf.mxu2 }
 0x243   : > { %v4119_v7 = vadd.f32 %v4118_v45, %v3949_v23  ;;  %v4290_v29 = vpop.f32.mrf.mxu1  ;;  %v2820_v5 = vadd.f32 %v2819_v20, %v16995_v16  ;;  %v15611_v45 = vld [vmem:[#allocation2 + $0x1b4] sm:$0xf]  ;;  %v15612_v16 = vld [vmem:[#allocation2 + $0x1b8] sm:$0xf0] }
 0x244   : > { %4160 = vmatmul.bf16.gmra.mxu0 %v13224_v6  ;;  %v13236_v53 = vor.u32 %v15611_v45, %v13233_v9  ;;  %v12759_v6 = vld [vmem:[#allocation2 + $0x188] sm:$0xf]  ;;  %v13251_v45 = vld [vmem:[#allocation2 + $0x1d0] sm:$0xf]  ;;  %v15616_v9 = vld [vmem:[#allocation2 + $0x1d8] sm:$0xf0] }
 0x245   : > { %v4288_v44 = vadd.f32 %v4287_v38, %v4119_v7  ;;  %v15613_v38 = vld [vmem:[#allocation2 + $0x1c0] sm:$0xf0]  ;;  %v13232_v7 = vor.u32 %v15612_v16, %v13231_v26  ;;  %v15615_v26 = vld [vmem:[#allocation2 + $0x1d0] sm:$0xf0]  ;;  %v13252_v33 = vor.u32 %v15616_v9, %v13251_v45 }
 0x246   : > { %4329 = vmatmul.bf16.gmra.mxu1 %v13228_v50  ;;  %v13240_v2 = vor.u32 %v15613_v38, %v13239_v57  ;;  %v15493_v50 = vld [vmem:[#allocation2 + $0x190] sm:$0xf0]  ;;  %v13243_v38 = vld [vmem:[#allocation2 + $0x1c8] sm:$0xf] }
 0x247   : > { %3991 = vmatmul.bf16.gmra.mxu3 %v13220_v55  ;;  %v17167_v30 = vadd.f32 %v4288_v44, %v2820_v5  ;;  %2861 = vmatmul.bf16.gmra.mxu2 %v12748_v42  ;;  %v1455_v55 = vunpack.c.h.b16 %v1410_v18  ;;  %v12760_v20 = vor.u32 %v15493_v50, %v12759_v6 }
 0x249   : > { %v4123_v63 = vpop.f32.mrf.mxu0  ;;  %v1489_v48 = vpack.c.b16 %v1455_v55, %v1455_v55 }
 0x24a   : > { %v3952_v51 = vpop.f32.mrf.mxu3  ;;  %v2822_v25 = vpop.f32.mrf.mxu2 }
 0x24b   : > { %v4292_v58 = vpop.f32.mrf.mxu1  ;;  %1573 = vst [vmem:[#allocation2 + $0x1f4] sm:$0xf] %v1489_v48  ;;  %v13245_v25 = vld [vmem:[#allocation2 + $0x1d4] sm:$0xf0]  ;;  %v15617_v48 = vld [vmem:[#allocation2 + $0x1e4] sm:$0xf] }
 0x24c   : > { %v13248_v11 = vor.u32 %v15614_v24, %v13245_v25 }
 0x251   : > { %v4126_v23 = vpop.f32.mrf.mxu0 }
 0x252   : > { %v3954_v41 = vpop.f32.mrf.mxu3  ;;  %v2824_v29 = vpop.f32.mrf.mxu2 }
 0x253   : > { %v4295_v59 = vpop.f32.mrf.mxu1  ;;  %v12771_v41 = vld [vmem:[#allocation2 + $0x1a0] sm:$0xf]  ;;  %v19559_v29 = vshll.u32 %v16702_v10, 16 }
 0x254   : > { %4165 = vmatmul.bf16.gmra.mxu0 %v13236_v53  ;;  %v15496_v53 = vld [vmem:[#allocation2 + $0x1a8] sm:$0xf0] }
 0x256   : > { %4334 = vmatmul.bf16.gmra.mxu1 %v13240_v2  ;;  %v13244_v2 = vor.u32 %v15615_v26, %v13243_v38  ;;  %v12783_v26 = vld [vmem:[#allocation2 + $0x1b8] sm:$0xf] }
 0x257   : > { %3996 = vmatmul.bf16.gmra.mxu3 %v13232_v7  ;;  %2866 = vmatmul.bf16.gmra.mxu2 %v12760_v20  ;;  %v12772_v7 = vor.u32 %v15496_v53, %v12771_v41  ;;  %v1338_v20 = vrot.slane %v19559_v29, 1 }
 0x259   : > { %v4128_v42 = vpop.f32.mrf.mxu0 }
 0x25a   : > { %v3957_v44 = vpop.f32.mrf.mxu3  ;;  %v2827_v63 = vpop.f32.mrf.mxu2 }
 0x25b   : > { %v4127_v5 = vadd.f32 %v4126_v23, %v3957_v44  ;;  %v4297_v51 = vpop.f32.mrf.mxu1  ;;  %v2828_v36 = vadd.f32 %v2827_v63, %v17029_v4  ;;  %v13257_v44 = vld [vmem:[#allocation2 + $0x1ec] sm:$0xf0]  ;;  %v19560_v63 = vshrl.u32 %v16702_v10, 16 }
 0x25c   : > { %v13260_v45 = vor.u32 %v15617_v48, %v13257_v44  ;;  %v13275_v48 = vld [vmem:[#allocation2 + $0x200] sm:$0xf]  ;;  %v15622_v44 = vld [vmem:[#allocation2 + $0x208] sm:$0xf0] }
 0x25d   : > { %v4296_v58 = vadd.f32 %v4295_v59, %v4127_v5  ;;  %v13263_v5 = vld [vmem:[#allocation2 + $0x1e8] sm:$0xf] }
 0x25f   : > { %v17178_v57 = vadd.f32 %v4296_v58, %v2828_v36  ;;  %v1339_v58 = vor.u32 %v1338_v20, %v19560_v63  ;;  %v19561_v36 = vshll.u32 %v16723_v1, 16  ;;  %v15620_v20 = vld [vmem:[#allocation2 + $0x1fc] sm:$0xf] }
 0x261   : > { %v4131_v28 = vpop.f32.mrf.mxu0  ;;  %v1376_v24 = vrot.slane %v19561_v36, 4  ;;  %v13276_v36 = vor.u32 %v15622_v44, %v13275_v48 }
 0x262   : > { %v3959_v16 = vpop.f32.mrf.mxu3  ;;  %v2829_v6 = vpop.f32.mrf.mxu2 }
 0x263   : > { %v4129_v35 = vadd.f32 %v4128_v42, %v3959_v16  ;;  %v4300_v23 = vpop.f32.mrf.mxu1  ;;  %v2830_v4 = vadd.f32 %v2829_v6, %v17039_v52  ;;  %v15619_v42 = vld [vmem:[#allocation2 + $0x1f0] sm:$0xf0]  ;;  %v15618_v52 = vld [vmem:[#allocation2 + $0x1e8] sm:$0xf0]  ;;  %v15499_v16 = vld [vmem:[#allocation2 + $0x1c0] sm:$0xf0] }
 0x264   : > { %4170 = vmatmul.bf16.gmra.mxu0 %v13248_v11  ;;  %v13264_v9 = vor.u32 %v15619_v42, %v13263_v5  ;;  %v15781_v6 = vld [vmem:[#allocation7 + $0x190] sm:$0xff]  ;;  %v13267_v42 = vld [vmem:[#allocation2 + $0x1f8] sm:$0xf] }
 0x265   : > { %v4298_v50 = vadd.f32 %v4297_v51, %v4129_v35  ;;  %v13255_v51 = vld [vmem:[#allocation2 + $0x1e0] sm:$0xf]  ;;  %v1411_v35 = vsel %vm16979_vm5, %v1339_v58, %v1376_v24  ;;  %5445 = vmatpush.bf16.msra.mxu2 %v15781_v6 }
 0x266   : > { %4339 = vmatmul.bf16.gmra.mxu1 %v13252_v33  ;;  %v13256_v11 = vor.u32 %v15618_v52, %v13255_v51  ;;  %v1456_v28 = vunpack.c.l.b16 %v1411_v35  ;;  %v1457_v41 = vunpack.c.h.b16 %v1411_v35  ;;  %v15621_v51 = vld [vmem:[#allocation2 + $0x200] sm:$0xf0]  ;;  %v15797_v52 = vld [vmem:[#allocation7 + $0x210] sm:$0xff]  ;;  %v13281_v6 = vld [vmem:[#allocation2 + $0x21c] sm:$0xf0] }
 0x267   : > { %4001 = vmatmul.bf16.gmra.mxu3 %v13244_v2  ;;  %v17181_v59 = vadd.f32 %v4298_v50, %v2830_v4  ;;  %2871 = vmatmul.bf16.gmra.mxu2 %v12772_v7  ;;  %v12784_v2 = vor.u32 %v15499_v16, %v12783_v26  ;;  %v15789_v50 = vld [vmem:[#allocation7 + $0x1d0] sm:$0xff] }
 0x268   : > { %v1490_v10 = vpack.c.b16 %v1456_v28, %v1456_v28  ;;  %v1491_v1 = vpack.c.b16 %v1457_v41, %v1457_v41  ;;  %5614 = vmatpush.bf16.msra.mxu3 %v15789_v50  ;;  %5783 = vmatpush.bf16.msra.mxu0 %v15797_v52 }
 0x269   : > { %v4133_v12 = vpop.f32.mrf.mxu0 }
 0x26a   : > { %v3962_v18 = vpop.f32.mrf.mxu3  ;;  %v2832_v32 = vpop.f32.mrf.mxu2  ;;  %1576 = vst [vmem:[#allocation2 + $0x218] sm:$0xf] %v1490_v10 }
 0x26b   : > { %v4302_v55 = vpop.f32.mrf.mxu1  ;;  %1577 = vst [vmem:[#allocation2 + $0x224] sm:$0xf] %v1491_v1  ;;  %v13269_v32 = vld [vmem:[#allocation2 + $0x204] sm:$0xf0] }
 0x26c   : > { %v13272_v58 = vor.u32 %v15620_v20, %v13269_v32 }
 0x271   : > { %v4136_v38 = vpop.f32.mrf.mxu0  ;;  %v13287_v50 = vld [vmem:[#allocation2 + $0x218] sm:$0xf] }
 0x272   : > { %v3964_v25 = vpop.f32.mrf.mxu3  ;;  %v2834_v53 = vpop.f32.mrf.mxu2 }
 0x273   : > { %v4305_v33 = vpop.f32.mrf.mxu1 }
 0x274   : > { %4175 = vmatmul.bf16.gmra.mxu0 %v13260_v45  ;;  %v12795_v45 = vld [vmem:[#allocation2 + $0x1d0] sm:$0xf] }
 0x276   : > { %4344 = vmatmul.bf16.gmra.mxu1 %v13264_v9  ;;  %v15502_v9 = vld [vmem:[#allocation2 + $0x1d8] sm:$0xf0] }
 0x277   : > { %4006 = vmatmul.bf16.gmra.mxu3 %v13256_v11  ;;  %2876 = vmatmul.bf16.gmra.mxu2 %v12784_v2  ;;  %v19562_v2 = vshll.u32 %v16750_v49, 16 }
 0x279   : > { %v4138_v7 = vpop.f32.mrf.mxu0  ;;  %v1340_v10 = vrot.slane %v19562_v2, 1  ;;  %v15628_v2 = vld [vmem:[#allocation2 + $0x238] sm:$0xf0] }
 0x27a   : > { %v3967_v23 = vpop.f32.mrf.mxu3  ;;  %v2837_v12 = vpop.f32.mrf.mxu2 }
 0x27b   : > { %v4137_v4 = vadd.f32 %v4136_v38, %v3967_v23  ;;  %v4307_v18 = vpop.f32.mrf.mxu1  ;;  %v2838_v29 = vadd.f32 %v2837_v12, %v17071_v19  ;;  %v13268_v38 = vor.u32 %v15621_v51, %v13267_v42  ;;  %v15623_v23 = vld [vmem:[#allocation2 + $0x214] sm:$0xf]  ;;  %v12807_v42 = vld [vmem:[#allocation2 + $0x1e8] sm:$0xf] }
 0x27c   : > { %v13284_v32 = vor.u32 %v15623_v23, %v13281_v6  ;;  %v15505_v51 = vld [vmem:[#allocation2 + $0x1f0] sm:$0xf0] }
 0x27d   : > { %v4306_v55 = vadd.f32 %v4305_v33, %v4137_v4  ;;  %v12796_v33 = vor.u32 %v15502_v9, %v12795_v45  ;;  %v15625_v4 = vld [vmem:[#allocation2 + $0x220] sm:$0xf0]  ;;  %v12808_v45 = vor.u32 %v15505_v51, %v12807_v42  ;;  %v15627_v23 = vld [vmem:[#allocation2 + $0x230] sm:$0xf0] }
 0x27e   : > { %v13288_v48 = vor.u32 %v15625_v4, %v13287_v50 }
 0x27f   : > { %v17192_v5 = vadd.f32 %v4306_v55, %v2838_v29  ;;  %v19564_v55 = vshll.u32 %v16771_v0, 16 }
 0x281   : > { %v4141_v25 = vpop.f32.mrf.mxu0  ;;  %v1377_v29 = vrot.slane %v19564_v55, 4 }
 0x282   : > { %v3969_v63 = vpop.f32.mrf.mxu3  ;;  %v2839_v19 = vpop.f32.mrf.mxu2 }
 0x283   : > { %v4139_v24 = vadd.f32 %v4138_v7, %v3969_v63  ;;  %v4310_v26 = vpop.f32.mrf.mxu1  ;;  %v2840_v11 = vadd.f32 %v2839_v19, %v17073_v22  ;;  %v13279_v7 = vld [vmem:[#allocation2 + $0x210] sm:$0xf]  ;;  %v15624_v22 = vld [vmem:[#allocation2 + $0x218] sm:$0xf0] }
 0x284   : > { %4180 = vmatmul.bf16.gmra.mxu0 %v13272_v58  ;;  %v13280_v52 = vor.u32 %v15624_v22, %v13279_v7 }
 0x285   : > { %v4308_v16 = vadd.f32 %v4307_v18, %v4139_v24  ;;  %v19563_v18 = vshrl.u32 %v16750_v49, 16 }
 0x286   : > { %4349 = vmatmul.bf16.gmra.mxu1 %v13276_v36 }
 0x287   : > { %4011 = vmatmul.bf16.gmra.mxu3 %v13268_v38  ;;  %v17195_v35 = vadd.f32 %v4308_v16, %v2840_v11  ;;  %2881 = vmatmul.bf16.gmra.mxu2 %v12796_v33  ;;  %v1341_v12 = vor.u32 %v1340_v10, %v19563_v18  ;;  %v12819_v18 = vld [vmem:[#allocation2 + $0x200] sm:$0xf] }
 0x289   : > { %v4143_v41 = vpop.f32.mrf.mxu0  ;;  %v1412_v58 = vsel %vm16979_vm5, %v1341_v12, %v1377_v29  ;;  %v15508_v12 = vld [vmem:[#allocation2 + $0x208] sm:$0xf0] }
 0x28a   : > { %v3972_v28 = vpop.f32.mrf.mxu3  ;;  %v2842_v1 = vpop.f32.mrf.mxu2  ;;  %v1458_v36 = vunpack.c.l.b16 %v1412_v58  ;;  %v1459_v24 = vunpack.c.h.b16 %v1412_v58  ;;  %v13293_v41 = vld [vmem:[#allocation2 + $0x234] sm:$0xf0] }
 0x28b   : > { %v4312_v53 = vpop.f32.mrf.mxu1  ;;  %v15626_v28 = vld [vmem:[#allocation2 + $0x22c] sm:$0xf]  ;;  %v13291_v1 = vld [vmem:[#allocation2 + $0x228] sm:$0xf] }
 0x28c   : > { %v1492_v49 = vpack.c.b16 %v1458_v36, %v1458_v36  ;;  %v1493_v0 = vpack.c.b16 %v1459_v24, %v1459_v24  ;;  %v13299_v53 = vld [vmem:[#allocation2 + $0x230] sm:$0xf]  ;;  %v13296_v50 = vor.u32 %v15626_v28, %v13293_v41  ;;  %v13292_v55 = vor.u32 %v15627_v23, %v13291_v1  ;;  %v15629_v24 = vld [vmem:[#allocation2 + $0x244] sm:$0xf]  ;;  %v12831_v41 = vld [vmem:[#allocation2 + $0x218] sm:$0xf] }
 0x28d   : > { %v13300_v4 = vor.u32 %v15628_v2, %v13299_v53  ;;  %v15511_v53 = vld [vmem:[#allocation2 + $0x220] sm:$0xf0] }
 0x28e   : > { %1580 = vst [vmem:[#allocation2 + $0x248] sm:$0xf] %v1492_v49 }
 0x28f   : > { %1581 = vst [vmem:[#allocation2 + $0x254] sm:$0xf] %v1493_v0  ;;  %v13303_v0 = vld [vmem:[#allocation2 + $0x240] sm:$0xf] }
 0x291   : > { %v4146_v44 = vpop.f32.mrf.mxu0 }
 0x292   : > { %v3974_v20 = vpop.f32.mrf.mxu3  ;;  %v2844_v25 = vpop.f32.mrf.mxu2 }
 0x293   : > { %v4315_v63 = vpop.f32.mrf.mxu1  ;;  %v13305_v25 = vld [vmem:[#allocation2 + $0x24c] sm:$0xf0] }
 0x294   : > { %4185 = vmatmul.bf16.gmra.mxu0 %v13284_v32 }
 0x296   : > { %4354 = vmatmul.bf16.gmra.mxu1 %v13288_v48  ;;  %v12820_v48 = vor.u32 %v15508_v12, %v12819_v18  ;;  %v15631_v49 = vld [vmem:[#allocation2 + $0x250] sm:$0xf0]  ;;  %v15780_v18 = vld [vmem:[#allocation7 + $0x188] sm:$0xff] }
 0x297   : > { %4016 = vmatmul.bf16.gmra.mxu3 %v13280_v52  ;;  %2886 = vmatmul.bf16.gmra.mxu2 %v12808_v45  ;;  %v13311_v45 = vld [vmem:[#allocation2 + $0x248] sm:$0xf] }
 0x298   : > { %v15788_v12 = vld [vmem:[#allocation7 + $0x1c8] sm:$0xff]  ;;  %5446 = vmatpush.bf16.msra.mxu2 %v15780_v18  ;;  %v13327_v18 = vld [vmem:[#allocation2 + $0x270] sm:$0xf] }
 0x299   : > { %v4148_v26 = vpop.f32.mrf.mxu0  ;;  %5615 = vmatpush.bf16.msra.mxu3 %v15788_v12 }
 0x29a   : > { %v3977_v9 = vpop.f32.mrf.mxu3  ;;  %v2847_v16 = vpop.f32.mrf.mxu2 }
 0x29b   : > { %v4147_v38 = vadd.f32 %v4146_v44, %v3977_v9  ;;  %v4317_v19 = vpop.f32.mrf.mxu1  ;;  %v2848_v33 = vadd.f32 %v2847_v16, %v17089_v47  ;;  %v19566_v9 = vshrl.u32 %v16798_v60, 16 }
 0x29d   : > { %v4316_v11 = vadd.f32 %v4315_v63, %v4147_v38  ;;  %v19565_v63 = vshll.u32 %v16798_v60, 16 }
 0x29f   : > { %v17206_v10 = vadd.f32 %v4316_v11, %v2848_v33  ;;  %v1342_v58 = vrot.slane %v19565_v63, 1  ;;  %v13308_v11 = vor.u32 %v15629_v24, %v13305_v25  ;;  %v13312_v33 = vor.u32 %v15631_v49, %v13311_v45  ;;  %v15634_v63 = vld [vmem:[#allocation2 + $0x268] sm:$0xf0]  ;;  %v15633_v24 = vld [vmem:[#allocation2 + $0x260] sm:$0xf0] }
 0x2a0   : > { %v15796_v25 = vld [vmem:[#allocation7 + $0x208] sm:$0xff] }
 0x2a1   : > { %v4151_v22 = vpop.f32.mrf.mxu0  ;;  %v1343_v38 = vor.u32 %v1342_v58, %v19566_v9  ;;  %5784 = vmatpush.bf16.msra.mxu0 %v15796_v25 }
 0x2a2   : > { %v3979_v6 = vpop.f32.mrf.mxu3  ;;  %v2849_v20 = vpop.f32.mrf.mxu2 }
 0x2a3   : > { %v4149_v7 = vadd.f32 %v4148_v26, %v3979_v6  ;;  %v4320_v29 = vpop.f32.mrf.mxu1  ;;  %v2850_v47 = vadd.f32 %v2849_v20, %v17091_v15  ;;  %v15630_v15 = vld [vmem:[#allocation2 + $0x248] sm:$0xf0]  ;;  %v19567_v26 = vshll.u32 %v16819_v14, 16 }
 0x2a4   : > { %4190 = vmatmul.bf16.gmra.mxu0 %v13296_v50  ;;  %v13304_v2 = vor.u32 %v15630_v15, %v13303_v0 }
 0x2a5   : > { %v4318_v32 = vadd.f32 %v4317_v19, %v4149_v7  ;;  %v1378_v19 = vrot.slane %v19567_v26, 4  ;;  %v12832_v7 = vor.u32 %v15511_v53, %v12831_v41  ;;  %v15514_v26 = vld [vmem:[#allocation2 + $0x238] sm:$0xf0] }
 0x2a6   : > { %4359 = vmatmul.bf16.gmra.mxu1 %v13300_v4 }
 0x2a7   : > { %4021 = vmatmul.bf16.gmra.mxu3 %v13292_v55  ;;  %v17209_v44 = vadd.f32 %v4318_v32, %v2850_v47  ;;  %2891 = vmatmul.bf16.gmra.mxu2 %v12820_v48  ;;  %v1413_v23 = vsel %vm16979_vm5, %v1343_v38, %v1378_v19  ;;  %v12843_v38 = vld [vmem:[#allocation2 + $0x230] sm:$0xf] }
 0x2a8   : > { %v1460_v6 = vunpack.c.l.b16 %v1413_v23  ;;  %v1461_v50 = vunpack.c.h.b16 %v1413_v23 }
 0x2a9   : > { %v4153_v51 = vpop.f32.mrf.mxu0 }
 0x2aa   : > { %v3982_v42 = vpop.f32.mrf.mxu3  ;;  %v2852_v36 = vpop.f32.mrf.mxu2  ;;  %v1494_v60 = vpack.c.b16 %v1460_v6, %v1460_v6  ;;  %v1495_v14 = vpack.c.b16 %v1461_v50, %v1461_v50  ;;  %v13317_v51 = vld [vmem:[#allocation2 + $0x264] sm:$0xf0]  ;;  %v15635_v6 = vld [vmem:[#allocation2 + $0x274] sm:$0xf]  ;;  %v13329_v50 = vld [vmem:[#allocation2 + $0x27c] sm:$0xf0] }
 0x2ab   : > { %v4322_v52 = vpop.f32.mrf.mxu1  ;;  %v15632_v42 = vld [vmem:[#allocation2 + $0x25c] sm:$0xf]  ;;  %v13315_v36 = vld [vmem:[#allocation2 + $0x258] sm:$0xf] }
 0x2ac   : > { %1584 = vst [vmem:[#allocation2 + $0x278] sm:$0xf] %v1494_v60  ;;  %v13323_v52 = vld [vmem:[#allocation2 + $0x260] sm:$0xf]  ;;  %v13320_v49 = vor.u32 %v15632_v42, %v13317_v51  ;;  %v13316_v19 = vor.u32 %v15633_v24, %v13315_v36  ;;  %v19568_v60 = vld [vmem:[#allocation15_spill] sm:$0xff] }
 0x2ad   : > { %1585 = vst [vmem:[#allocation2 + $0x284] sm:$0xf] %v1495_v14  ;;  %v13324_v0 = vor.u32 %v15634_v63, %v13323_v52  ;;  %v19569_v14 = vshll.u32 %v19568_v60, 16  ;;  %v19570_v12 = vshrl.u32 %v19568_v60, 16  ;;  %v12855_v52 = vld [vmem:[#allocation2 + $0x248] sm:$0xf] }
 0x2ae   : > { %v15517_v63 = vld [vmem:[#allocation2 + $0x250] sm:$0xf0] }
 0x2b1   : > { %v4156_v28 = vpop.f32.mrf.mxu0 }
 0x2b2   : > { %v3984_v16 = vpop.f32.mrf.mxu3  ;;  %v2854_v4 = vpop.f32.mrf.mxu2 }
 0x2b3   : > { %v4325_v1 = vpop.f32.mrf.mxu1  ;;  %v13335_v4 = vld [vmem:[#allocation2 + $0x278] sm:$0xf] }
 0x2b4   : > { %4195 = vmatmul.bf16.gmra.mxu0 %v13308_v11 }
 0x2b6   : > { %4364 = vmatmul.bf16.gmra.mxu1 %v13312_v33 }
 0x2b7   : > { %4026 = vmatmul.bf16.gmra.mxu3 %v13304_v2  ;;  %2896 = vmatmul.bf16.gmra.mxu2 %v12832_v7  ;;  %v15637_v7 = vld [vmem:[#allocation2 + $0x280] sm:$0xf0] }
 0x2b8   : > { %v13336_v42 = vor.u32 %v15637_v7, %v13335_v4  ;;  %v13339_v4 = vld [vmem:[#allocation2 + $0x288] sm:$0xf]  ;;  %v15639_v7 = vld [vmem:[#allocation2 + $0x290] sm:$0xf0] }
 0x2b9   : > { %v4158_v29 = vpop.f32.mrf.mxu0 }
 0x2ba   : > { %v3987_v22 = vpop.f32.mrf.mxu3  ;;  %v2857_v32 = vpop.f32.mrf.mxu2 }
 0x2bb   : > { %v4157_v55 = vadd.f32 %v4156_v28, %v3987_v22  ;;  %v4327_v20 = vpop.f32.mrf.mxu1  ;;  %v2858_v48 = vadd.f32 %v2857_v32, %v17105_v61  ;;  %v12844_v28 = vor.u32 %v15514_v26, %v12843_v38  ;;  %v1344_v22 = vrot.slane %v19569_v14, 1 }
 0x2bd   : > { %v4326_v47 = vadd.f32 %v4325_v1, %v4157_v55  ;;  %v1345_v55 = vor.u32 %v1344_v22, %v19570_v12  ;;  %v12867_v12 = vld [vmem:[#allocation2 + $0x260] sm:$0xf] }
 0x2bf   : > { %v17220_v58 = vadd.f32 %v4326_v47, %v2858_v48  ;;  %v13332_v48 = vor.u32 %v15635_v6, %v13329_v50  ;;  %v15640_v6 = vld [vmem:[#allocation2 + $0x298] sm:$0xf0] }
 0x2c1   : > { %v4161_v9 = vpop.f32.mrf.mxu0 }
 0x2c2   : > { %v3989_v45 = vpop.f32.mrf.mxu3  ;;  %v2859_v61 = vpop.f32.mrf.mxu2 }
 0x2c3   : > { %v4159_v15 = vadd.f32 %v4158_v29, %v3989_v45  ;;  %v4330_v16 = vpop.f32.mrf.mxu1  ;;  %v2860_v33 = vadd.f32 %v2859_v61, %v17107_v27  ;;  %v15636_v27 = vld [vmem:[#allocation2 + $0x278] sm:$0xf0] }
 0x2c4   : > { %4200 = vmatmul.bf16.gmra.mxu0 %v13320_v49  ;;  %v19571_v29 = vld [vmem:[#allocation17_spill] sm:$0xff]  ;;  %v13328_v36 = vor.u32 %v15636_v27, %v13327_v18 }
 0x2c5   : > { %v4328_v11 = vadd.f32 %v4327_v20, %v4159_v15  ;;  %v19572_v20 = vshll.u32 %v19571_v29, 16  ;;  %v12856_v15 = vor.u32 %v15517_v63, %v12855_v52  ;;  %v13340_v29 = vor.u32 %v15639_v7, %v13339_v4 }
 0x2c6   : > { %4369 = vmatmul.bf16.gmra.mxu1 %v13324_v0 }
 0x2c7   : > { %4031 = vmatmul.bf16.gmra.mxu3 %v13316_v19  ;;  %v17223_v41 = vadd.f32 %v4328_v11, %v2860_v33  ;;  %2901 = vmatmul.bf16.gmra.mxu2 %v12844_v28  ;;  %v1379_v32 = vrot.slane %v19572_v20, 4  ;;  %v19573_v28 = vld [vmem:[#allocation14_spill] sm:$0xff] }
 0x2c9   : > { %v4163_v2 = vpop.f32.mrf.mxu0  ;;  %v1414_v25 = vsel %vm16979_vm5, %v1345_v55, %v1379_v32  ;;  %v15520_v55 = vld [vmem:[#allocation2 + $0x268] sm:$0xf0] }
 0x2ca   : > { %v3992_v53 = vpop.f32.mrf.mxu3  ;;  %v2862_v23 = vpop.f32.mrf.mxu2  ;;  %v1462_v45 = vunpack.c.l.b16 %v1414_v25  ;;  %v1463_v49 = vunpack.c.h.b16 %v1414_v25  ;;  %v15638_v2 = vld [vmem:[#allocation2 + $0x28c] sm:$0xf] }
 0x2cb   : > { %v4332_v1 = vpop.f32.mrf.mxu1  ;;  %v13347_v23 = vld [vmem:[#allocation2 + $0x290] sm:$0xf] }
 0x2cc   : > { %v1496_v9 = vpack.c.b16 %v1462_v45, %v1462_v45  ;;  %v1497_v38 = vpack.c.b16 %v1463_v49, %v1463_v49  ;;  %v13341_v1 = vld [vmem:[#allocation2 + $0x294] sm:$0xf0]  ;;  %v13348_v22 = vor.u32 %v15640_v6, %v13347_v23  ;;  %v15641_v45 = vld [vmem:[#allocation2 + $0x2a4] sm:$0xf]  ;;  %v13353_v49 = vld [vmem:[#allocation2 + $0x2ac] sm:$0xf0] }
 0x2cd   : > { %v13344_v14 = vor.u32 %v15638_v2, %v13341_v1  ;;  %v12879_v23 = vld [vmem:[#allocation2 + $0x278] sm:$0xf]  ;;  %v15523_v6 = vld [vmem:[#allocation2 + $0x280] sm:$0xf0] }
 0x2ce   : > { %1588 = vst [vmem:[#allocation2 + $0x2a8] sm:$0xf] %v1496_v9  ;;  %v19575_v9 = vshll.u32 %v16912_v8, 16 }
 0x2cf   : > { %1589 = vst [vmem:[#allocation2 + $0x2b4] sm:$0xf] %v1497_v38 }
 0x2d0   : > { %v1346_v38 = vrot.slane %v19575_v9, 1 }
 0x2d1   : > { %v4166_v51 = vpop.f32.mrf.mxu0 }
 0x2d2   : > { %v3994_v47 = vpop.f32.mrf.mxu3  ;;  %v2864_v0 = vpop.f32.mrf.mxu2 }
 0x2d3   : > { %v4335_v24 = vpop.f32.mrf.mxu1 }
 0x2d4   : > { %4205 = vmatmul.bf16.gmra.mxu0 %v13332_v48  ;;  %v19574_v48 = vld [vmem:[#allocation16_spill] sm:$0xff] }
 0x2d5   : > { %v13359_v0 = vld [vmem:[#allocation2 + $0x2a8] sm:$0xf] }
 0x2d6   : > { %4374 = vmatmul.bf16.gmra.mxu1 %v13336_v42 }
 0x2d7   : > { %4036 = vmatmul.bf16.gmra.mxu3 %v13328_v36  ;;  %2906 = vmatmul.bf16.gmra.mxu2 %v12856_v15  ;;  %v15643_v15 = vld [vmem:[#allocation2 + $0x2b0] sm:$0xf0] }
 0x2d8   : > { %v13360_v2 = vor.u32 %v15643_v15, %v13359_v0  ;;  %v15646_v0 = vld [vmem:[#allocation2 + $0x2c8] sm:$0xf0] }
 0x2d9   : > { %v4168_v16 = vpop.f32.mrf.mxu0 }
 0x2da   : > { %v3997_v26 = vpop.f32.mrf.mxu3  ;;  %v2867_v11 = vpop.f32.mrf.mxu2 }
 0x2db   : > { %v4167_v19 = vadd.f32 %v4166_v51, %v3997_v26  ;;  %v4337_v61 = vpop.f32.mrf.mxu1  ;;  %v2868_v53 = vadd.f32 %v2867_v11, %v19573_v28  ;;  %v12868_v51 = vor.u32 %v15520_v55, %v12867_v12  ;;  %v13351_v26 = vld [vmem:[#allocation2 + $0x2a0] sm:$0xf]  ;;  %v19577_v11 = vshll.u32 %v16941_v31, 16 }
 0x2dc   : > { %v15779_v55 = vld [vmem:[#allocation7 + $0x180] sm:$0xff] }
 0x2dd   : > { %v4336_v33 = vadd.f32 %v4335_v24, %v4167_v19  ;;  %v15642_v19 = vld [vmem:[#allocation2 + $0x2a8] sm:$0xf0]  ;;  %5447 = vmatpush.bf16.msra.mxu2 %v15779_v55 }
 0x2de   : > { %v13352_v4 = vor.u32 %v15642_v19, %v13351_v26  ;;  %v13363_v26 = vld [vmem:[#allocation2 + $0x2b8] sm:$0xf]  ;;  %v15645_v19 = vld [vmem:[#allocation2 + $0x2c0] sm:$0xf0] }
 0x2df   : > { %v17234_v50 = vadd.f32 %v4336_v33, %v2868_v53  ;;  %v1380_v33 = vrot.slane %v19577_v11, 4  ;;  %v13356_v53 = vor.u32 %v15641_v45, %v13353_v49  ;;  %v13365_v45 = vld [vmem:[#allocation2 + $0x2c4] sm:$0xf0]  ;;  %v13371_v49 = vld [vmem:[#allocation2 + $0x2c0] sm:$0xf] }
 0x2e1   : > { %v4171_v27 = vpop.f32.mrf.mxu0 }
 0x2e2   : > { %v3999_v60 = vpop.f32.mrf.mxu3  ;;  %v2869_v32 = vpop.f32.mrf.mxu2  ;;  %v12880_v27 = vor.u32 %v15523_v6, %v12879_v23  ;;  %v12891_v23 = vld [vmem:[#allocation2 + $0x290] sm:$0xf]  ;;  %v15526_v6 = vld [vmem:[#allocation2 + $0x298] sm:$0xf0] }
 0x2e3   : > { %v4169_v18 = vadd.f32 %v4168_v16, %v3999_v60  ;;  %v4340_v20 = vpop.f32.mrf.mxu1  ;;  %v2870_v42 = vadd.f32 %v2869_v32, %v19574_v48  ;;  %v19576_v16 = vshrl.u32 %v16912_v8, 16 }
 0x2e4   : > { %4210 = vmatmul.bf16.gmra.mxu0 %v13344_v14 }
 0x2e5   : > { %v4338_v47 = vadd.f32 %v4337_v61, %v4169_v18  ;;  %v1347_v61 = vor.u32 %v1346_v38, %v19576_v16  ;;  %v15795_v16 = vld [vmem:[#allocation7 + $0x200] sm:$0xff] }
 0x2e6   : > { %4379 = vmatmul.bf16.gmra.mxu1 %v13348_v22  ;;  %5785 = vmatpush.bf16.msra.mxu0 %v15795_v16 }
 0x2e7   : > { %4041 = vmatmul.bf16.gmra.mxu3 %v13340_v29  ;;  %v17237_v52 = vadd.f32 %v4338_v47, %v2870_v42  ;;  %2911 = vmatmul.bf16.gmra.mxu2 %v12868_v51  ;;  %v1415_v60 = vsel %vm16979_vm5, %v1347_v61, %v1380_v33  ;;  %v15787_v29 = vld [vmem:[#allocation7 + $0x1c0] sm:$0xff] }
 0x2e8   : > { %v1464_v14 = vunpack.c.l.b16 %v1415_v60  ;;  %v1465_v22 = vunpack.c.h.b16 %v1415_v60  ;;  %5616 = vmatpush.bf16.msra.mxu3 %v15787_v29  ;;  %v19578_v51 = vld [vmem:[#allocation18_spill] sm:$0xff] }
 0x2e9   : > { %v4173_v36 = vpop.f32.mrf.mxu0 }
 0x2ea   : > { %v4002_v63 = vpop.f32.mrf.mxu3  ;;  %v2872_v25 = vpop.f32.mrf.mxu2  ;;  %v1498_v8 = vpack.c.b16 %v1464_v14, %v1464_v14  ;;  %v1499_v31 = vpack.c.b16 %v1465_v22, %v1465_v22  ;;  %v15644_v36 = vld [vmem:[#allocation2 + $0x2bc] sm:$0xf] }
 0x2eb   : > { %v4342_v24 = vpop.f32.mrf.mxu1  ;;  %v256_v25 = vld [vmem:[%s16551_s30 + $0xf8] sm:$0xff] }
 0x2ec   : > { %1592 = vst [vmem:[#allocation2 + $0x2d8] sm:$0xf] %v1498_v8  ;;  %v255_v24 = vld [vmem:[%s16551_s30 + $0xf0] sm:$0xff]  ;;  %v288_v9 = vpack.c.bf16 %v256_v25, %v256_v25 }
 0x2ed   : > { %1593 = vst [vmem:[#allocation2 + $0x2e4] sm:$0xf] %v1499_v31  ;;  %v287_v15 = vpack.c.bf16 %v255_v24, %v255_v24 }
 0x2ee   : > { %1604 = vst [vmem:[#allocation2 + $0x338] sm:$0xf] %v1498_v8  ;;  %v432_v11 = vunpack.c.l.b16 %v288_v9  ;;  %v12892_v8 = vor.u32 %v15526_v6, %v12891_v23  ;;  %v12903_v23 = vld [vmem:[#allocation2 + $0x2a8] sm:$0xf]  ;;  %v15529_v6 = vld [vmem:[#allocation2 + $0x2b0] sm:$0xf0] }
 0x2ef   : > { %1605 = vst [vmem:[#allocation2 + $0x344] sm:$0xf] %v1499_v31  ;;  %v320_v61 = vunpack.c.l.b16 %v287_v15 }
 0x2f1   : > { %v4176_v1 = vpop.f32.mrf.mxu0  ;;  %v448_v60 = vpack.c.b16 %v432_v11, %v320_v61  ;;  %v336_v31 = vpack.c.b16 %v320_v61, %v320_v61 }
 0x2f2   : > { %v4004_v28 = vpop.f32.mrf.mxu3  ;;  %v2874_v18 = vpop.f32.mrf.mxu2 }
 0x2f3   : > { %v4345_v7 = vpop.f32.mrf.mxu1  ;;  %v13368_v28 = vor.u32 %v15644_v36, %v13365_v45  ;;  %v555_v18 = vshrl.u32 %v448_v60, 16  ;;  %1306 = vst [vmem:[#allocation2 + $0x304] sm:$0xf] %v336_v31  ;;  %v15647_v36 = vld [vmem:[#allocation2 + $0x2d4] sm:$0xf] }
 0x2f4   : > { %4215 = vmatmul.bf16.gmra.mxu0 %v13356_v53  ;;  %v13372_v53 = vor.u32 %v15646_v0, %v13371_v49  ;;  %v13383_v24 = vld [vmem:[#allocation2 + $0x2d8] sm:$0xf]  ;;  %v15649_v45 = vld [vmem:[#allocation2 + $0x2e0] sm:$0xf0] }
 0x2f5   : > { %v557_v55 = vrot.slane %v555_v18, 7 }
 0x2f6   : > { %4384 = vmatmul.bf16.gmra.mxu1 %v13360_v2 }
 0x2f7   : > { %4046 = vmatmul.bf16.gmra.mxu3 %v13352_v4  ;;  %2916 = vmatmul.bf16.gmra.mxu2 %v12880_v27  ;;  %v13364_v4 = vor.u32 %v15645_v19, %v13363_v26  ;;  %v13375_v26 = vld [vmem:[#allocation2 + $0x2d0] sm:$0xf]  ;;  %v15648_v19 = vld [vmem:[#allocation2 + $0x2d8] sm:$0xf0] }
 0x2f9   : > { %v4178_v32 = vpop.f32.mrf.mxu0 }
 0x2fa   : > { %v4007_v12 = vpop.f32.mrf.mxu3  ;;  %v2877_v48 = vpop.f32.mrf.mxu2 }
 0x2fb   : > { %v4177_v20 = vadd.f32 %v4176_v1, %v4007_v12  ;;  %v4347_v47 = vpop.f32.mrf.mxu1  ;;  %v2878_v63 = vadd.f32 %v2877_v48, %v19578_v51 }
 0x2fd   : > { %v4346_v42 = vadd.f32 %v4345_v7, %v4177_v20  ;;  %v383_v20 = vshrl.u32 %v336_v31, 16 }
 0x2ff   : > { %v17250_v38 = vadd.f32 %v4346_v42, %v2878_v63  ;;  %v608_v63 = vpack.c.b16 %v432_v11, %v432_v11 }
 0x301   : > { %v4181_v1 = vpop.f32.mrf.mxu0  ;;  %v670_v15 = vshll.u32 %v608_v63, 16  ;;  %1307 = vst [vmem:[#allocation2 + $0x310] sm:$0xf] %v608_v63 }
 0x302   : > { %v4009_v33 = vpop.f32.mrf.mxu3  ;;  %v2879_v14 = vpop.f32.mrf.mxu2 }
 0x303   : > { %v4179_v2 = vadd.f32 %v4178_v32, %v4009_v33  ;;  %v4350_v7 = vpop.f32.mrf.mxu1  ;;  %v2880_v27 = vadd.f32 %v2879_v14, %v16914_v13  ;;  %v558_v32 = vshll.u32 %v448_v60, 16  ;;  %v13377_v13 = vld [vmem:[#allocation2 + $0x2dc] sm:$0xf0] }
 0x304   : > { %4220 = vmatmul.bf16.gmra.mxu0 %v13368_v28  ;;  %v1381_v28 = vrot.slane %v670_v15, 4  ;;  %v13380_v11 = vor.u32 %v15647_v36, %v13377_v13 }
 0x305   : > { %v4348_v22 = vadd.f32 %v4347_v47, %v4179_v2  ;;  %v560_v51 = vor.u32 %v558_v32, %v557_v55  ;;  %v1348_v9 = vrot.slane %v558_v32, 1  ;;  %v13384_v2 = vor.u32 %v15649_v45, %v13383_v24 }
 0x306   : > { %4389 = vmatmul.bf16.gmra.mxu1 %v13372_v53 }
 0x307   : > { %4051 = vmatmul.bf16.gmra.mxu3 %v13364_v4  ;;  %v17253_v12 = vadd.f32 %v4348_v22, %v2880_v27  ;;  %2921 = vmatmul.bf16.gmra.mxu2 %v12892_v8  ;;  %v707_v25 = vsel %vm16585_vm2, %v383_v20, %v560_v51  ;;  %v1349_v33 = vor.u32 %v1348_v9, %v555_v18  ;;  %v1069_v20 = vrot.slane %v608_v63, 3  ;;  %v15650_v9 = vld [vmem:[#allocation2 + $0x2ec] sm:$0xf] }
 0x308   : > { %v850_v49 = vunpack.c.l.b16 %v707_v25  ;;  %v851_v0 = vunpack.c.h.b16 %v707_v25  ;;  %v13376_v4 = vor.u32 %v15648_v19, %v13375_v26  ;;  %v12904_v8 = vor.u32 %v15529_v6, %v12903_v23 }
 0x309   : > { %v4183_v48 = vpop.f32.mrf.mxu0  ;;  %v1416_v60 = vsel %vm16979_vm5, %v1349_v33, %v1381_v28  ;;  %v1101_v13 = vsel %vm16585_vm2, %v1069_v20, 0  ;;  %v15652_v33 = vld [vmem:[#allocation2 + $0x2f8] sm:$0xf0] }
 0x30a   : > { %v4012_v29 = vpop.f32.mrf.mxu3  ;;  %v2882_v47 = vpop.f32.mrf.mxu2  ;;  %v914_v16 = vpack.c.b16 %v850_v49, %v850_v49  ;;  %v915_v61 = vpack.c.b16 %v851_v0, %v851_v0  ;;  %v1466_v14 = vunpack.c.l.b16 %v1416_v60  ;;  %v1467_v22 = vunpack.c.h.b16 %v1416_v60  ;;  %v15532_v60 = vld [vmem:[#allocation2 + $0x2c8] sm:$0xf0] }
 0x30b   : > { %v4352_v42 = vpop.f32.mrf.mxu1  ;;  %v672_v29 = vrot.slane %v670_v15, 3  ;;  %v1148_v45 = vunpack.c.l.b16 %v1101_v13  ;;  %v1149_v15 = vunpack.c.h.b16 %v1101_v13 }
 0x30c   : > { %1042 = vst [vmem:[#allocation2 + $0x300] sm:$0xf] %v914_v16  ;;  %v1500_v18 = vpack.c.b16 %v1466_v14, %v1466_v14  ;;  %v1501_v31 = vpack.c.b16 %v1467_v22, %v1467_v22  ;;  %v13389_v16 = vld [vmem:[#allocation2 + $0x2f4] sm:$0xf0] }
 0x30d   : > { %1043 = vst [vmem:[#allocation2 + $0x30c] sm:$0xf] %v915_v61  ;;  %v723_v48 = vsel %vm16585_vm2, %v557_v55, %v672_v29  ;;  %v1180_v55 = vpack.c.b16 %v1148_v45, %v1148_v45  ;;  %v13395_v61 = vld [vmem:[#allocation2 + $0x2f0] sm:$0xf]  ;;  %v1181_v28 = vpack.c.b16 %v1149_v15, %v1149_v15  ;;  %v13392_v23 = vor.u32 %v15650_v9, %v13389_v16  ;;  %v12927_v15 = vld [vmem:[#allocation2 + $0x2d8] sm:$0xf] }
 0x30e   : > { %1596 = vst [vmem:[#allocation2 + $0x308] sm:$0xf] %v1500_v18  ;;  %v757_v36 = vsel %vm689_vm1, %v723_v48, 0  ;;  %v13396_v6 = vor.u32 %v15652_v33, %v13395_v61 }
 0x30f   : > { %1597 = vst [vmem:[#allocation2 + $0x314] sm:$0xf] %v1501_v31  ;;  %v852_v24 = vunpack.c.l.b16 %v757_v36  ;;  %v853_v25 = vunpack.c.h.b16 %v757_v36  ;;  %v13401_v36 = vld [vmem:[#allocation2 + $0x30c] sm:$0xf0] }
 0x310   : > { %1308 = vst [vmem:[#allocation2 + $0x31c] sm:$0xf] %v1180_v55 }
 0x311   : > { %v4186_v1 = vpop.f32.mrf.mxu0  ;;  %v916_v26 = vpack.c.b16 %v852_v24, %v852_v24  ;;  %v917_v19 = vpack.c.b16 %v853_v25, %v853_v25  ;;  %1309 = vst [vmem:[#allocation2 + $0x328] sm:$0xf] %v1181_v28 }
 0x312   : > { %v4014_v53 = vpop.f32.mrf.mxu3  ;;  %v2884_v27 = vpop.f32.mrf.mxu2 }
 0x313   : > { %v4355_v7 = vpop.f32.mrf.mxu1  ;;  %1044 = vst [vmem:[#allocation2 + $0x318] sm:$0xf] %v916_v26  ;;  %v13399_v25 = vld [vmem:[#allocation2 + $0x300] sm:$0xf] }
 0x314   : > { %4225 = vmatmul.bf16.gmra.mxu0 %v13380_v11  ;;  %v13387_v11 = vld [vmem:[#allocation2 + $0x2e8] sm:$0xf]  ;;  %1045 = vst [vmem:[#allocation2 + $0x324] sm:$0xf] %v917_v19  ;;  %v15654_v45 = vld [vmem:[#allocation2 + $0x308] sm:$0xf0] }
 0x315   : > { %v13407_v13 = vld [vmem:[#allocation2 + $0x308] sm:$0xf]  ;;  %v13400_v9 = vor.u32 %v15654_v45, %v13399_v25  ;;  %v13539_v25 = vld [vmem:[#allocation2 + $0x80] sm:$0xf]  ;;  %v15688_v45 = vld [vmem:[#allocation2 + $0x88] sm:$0xf0] }
 0x316   : > { %4394 = vmatmul.bf16.gmra.mxu1 %v13384_v2  ;;  %v15651_v2 = vld [vmem:[#allocation2 + $0x2f0] sm:$0xf0] }
 0x317   : > { %4056 = vmatmul.bf16.gmra.mxu3 %v13376_v4  ;;  %2926 = vmatmul.bf16.gmra.mxu2 %v12904_v8  ;;  %v13388_v14 = vor.u32 %v15651_v2, %v13387_v11  ;;  %v15655_v24 = vld [vmem:[#allocation2 + $0x310] sm:$0xf0] }
 0x319   : > { %v4188_v51 = vpop.f32.mrf.mxu0 }
 0x31a   : > { %v4017_v32 = vpop.f32.mrf.mxu3  ;;  %v2887_v49 = vpop.f32.mrf.mxu2 }
 0x31b   : > { %v4187_v42 = vadd.f32 %v4186_v1, %v4017_v32  ;;  %v4357_v47 = vpop.f32.mrf.mxu1  ;;  %v2888_v63 = vadd.f32 %v2887_v49, %v16966_v46 }
 0x31d   : > { %v4356_v0 = vadd.f32 %v4355_v7, %v4187_v42  ;;  %v12915_v7 = vld [vmem:[#allocation2 + $0x2c0] sm:$0xf] }
 0x31e   : > { %v12916_v31 = vor.u32 %v15532_v60, %v12915_v7  ;;  %v13411_v7 = vld [vmem:[#allocation2 + $0x318] sm:$0xf]  ;;  %v15657_v60 = vld [vmem:[#allocation2 + $0x320] sm:$0xf0] }
 0x31f   : > { %v17265_v53 = vadd.f32 %v4356_v0, %v2888_v63  ;;  %v15535_v63 = vld [vmem:[#allocation2 + $0x2e0] sm:$0xf0] }
 0x320   : > { %v12928_v55 = vor.u32 %v15535_v63, %v12927_v15 }
 0x321   : > { %v4191_v46 = vpop.f32.mrf.mxu0 }
 0x322   : > { %v4019_v1 = vpop.f32.mrf.mxu3  ;;  %v2889_v27 = vpop.f32.mrf.mxu2 }
 0x323   : > { %v4189_v4 = vadd.f32 %v4188_v51, %v4019_v1  ;;  %v4360_v22 = vpop.f32.mrf.mxu1  ;;  %v2890_v18 = vadd.f32 %v2889_v27, %v16973_v39  ;;  %v15653_v51 = vld [vmem:[#allocation2 + $0x304] sm:$0xf]  ;;  %v13408_v39 = vor.u32 %v15655_v24, %v13407_v13  ;;  %v19579_v1 = vld [vmem:[#allocation20_spill] sm:$0xff] }
 0x324   : > { %4230 = vmatmul.bf16.gmra.mxu0 %v13392_v23  ;;  %v13404_v49 = vor.u32 %v15653_v51, %v13401_v36  ;;  %v19580_v51 = vld [vmem:[#allocation23_spill] sm:$0xff] }
 0x325   : > { %v4358_v8 = vadd.f32 %v4357_v47, %v4189_v4  ;;  %v13413_v4 = vld [vmem:[#allocation2 + $0x324] sm:$0xf0] }
 0x326   : > { %4399 = vmatmul.bf16.gmra.mxu1 %v13396_v6  ;;  %v15656_v6 = vld [vmem:[#allocation2 + $0x31c] sm:$0xf] }
 0x327   : > { %4061 = vmatmul.bf16.gmra.mxu3 %v13388_v14  ;;  %v17268_v29 = vadd.f32 %v4358_v8, %v2890_v18  ;;  %2931 = vmatmul.bf16.gmra.mxu2 %v12916_v31  ;;  %v13416_v22 = vor.u32 %v15656_v6, %v13413_v4  ;;  %v12939_v18 = vld [vmem:[#allocation2 + $0x2f0] sm:$0xf]  ;;  %v15538_v31 = vld [vmem:[#allocation2 + $0x2f8] sm:$0xf0] }
 0x328   : > { %v12940_v13 = vor.u32 %v15538_v31, %v12939_v18 }
 0x329   : > { %v4193_v32 = vpop.f32.mrf.mxu0 }
 0x32a   : > { %v4022_v20 = vpop.f32.mrf.mxu3  ;;  %v2892_v42 = vpop.f32.mrf.mxu2 }
 0x32b   : > { %v4362_v48 = vpop.f32.mrf.mxu1  ;;  %v13412_v20 = vor.u32 %v15657_v60, %v13411_v7 }
 0x331   : > { %v4196_v0 = vpop.f32.mrf.mxu0 }
 0x332   : > { %v4024_v47 = vpop.f32.mrf.mxu3  ;;  %v2894_v19 = vpop.f32.mrf.mxu2 }
 0x333   : > { %v4365_v26 = vpop.f32.mrf.mxu1  ;;  %v19581_v47 = vld [vmem:[#allocation21_spill] sm:$0xff]  ;;  %v15683_v19 = vld [vmem:[#allocation2 + $0x64] sm:$0xf] }
 0x334   : > { %4235 = vmatmul.bf16.gmra.mxu0 %v13404_v49  ;;  %7592 = vst [vmem:[#allocation2 + $0x80] sm:$0xf] %v19581_v47 }
 0x336   : > { %4404 = vmatmul.bf16.gmra.mxu1 %v13408_v39  ;;  %v19582_v39 = vld [vmem:[#allocation22_spill] sm:$0xff] }
 0x337   : > { %4066 = vmatmul.bf16.gmra.mxu3 %v13400_v9  ;;  %2936 = vmatmul.bf16.gmra.mxu2 %v12928_v55  ;;  %7593 = vst [vmem:[#allocation2 + $0x8c] sm:$0xf] %v19582_v39  ;;  %v13527_v9 = vld [vmem:[#allocation2 + $0x68] sm:$0xf]  ;;  %v13521_v55 = vld [vmem:[#allocation2 + $0x6c] sm:$0xf0] }
 0x339   : > { %v4198_v33 = vpop.f32.mrf.mxu0 }
 0x33a   : > { %v4027_v16 = vpop.f32.mrf.mxu3  ;;  %v2897_v11 = vpop.f32.mrf.mxu2 }
 0x33b   : > { %v4197_v61 = vadd.f32 %v4196_v0, %v4027_v16  ;;  %v4367_v28 = vpop.f32.mrf.mxu1  ;;  %v2898_v23 = vadd.f32 %v2897_v11, %v19579_v1  ;;  %v15684_v11 = vld [vmem:[#allocation2 + $0x68] sm:$0xf0] }
 0x33d   : > { %v4366_v2 = vadd.f32 %v4365_v26, %v4197_v61  ;;  %v15685_v26 = vld [vmem:[#allocation2 + $0x70] sm:$0xf0] }
 0x33e   : > { %v13528_v61 = vor.u32 %v15685_v26, %v13527_v9  ;;  %v19584_v26 = vld [vmem:[#allocation25_spill] sm:$0xff] }
 0x33f   : > { %v17271_v46 = vadd.f32 %v4366_v2, %v2898_v23  ;;  %v13524_v2 = vor.u32 %v15683_v19, %v13521_v55 }
 0x341   : > { %v4201_v8 = vpop.f32.mrf.mxu0 }
 0x342   : > { %v4029_v14 = vpop.f32.mrf.mxu3  ;;  %v2899_v48 = vpop.f32.mrf.mxu2  ;;  %v19583_v8 = vld [vmem:[#allocation24_spill] sm:$0xff] }
 0x343   : > { %v4199_v27 = vadd.f32 %v4198_v33, %v4029_v14  ;;  %v4370_v32 = vpop.f32.mrf.mxu1  ;;  %v2900_v36 = vadd.f32 %v2899_v48, %v19580_v51 }
 0x344   : > { %4240 = vmatmul.bf16.gmra.mxu0 %v13416_v22  ;;  %v13533_v32 = vld [vmem:[#allocation2 + $0x84] sm:$0xf0] }
 0x345   : > { %v4368_v42 = vadd.f32 %v4367_v28, %v4199_v27  ;;  %v13519_v28 = vld [vmem:[#allocation2 + $0x60] sm:$0xf] }
 0x346   : > { %v13520_v6 = vor.u32 %v15684_v11, %v13519_v28 }
 0x347   : > { %4071 = vmatmul.bf16.gmra.mxu3 %v13412_v20  ;;  %v17274_v24 = vadd.f32 %v4368_v42, %v2900_v36  ;;  %2941 = vmatmul.bf16.gmra.mxu2 %v12940_v13  ;;  %v15686_v20 = vld [vmem:[#allocation2 + $0x7c] sm:$0xf]  ;;  %v13540_v42 = vor.u32 %v15688_v45, %v13539_v25  ;;  %v13531_v13 = vld [vmem:[#allocation2 + $0x78] sm:$0xf] }
 0x349   : > { %v4203_v0 = vpop.f32.mrf.mxu0 }
 0x34a   : > { %v4032_v49 = vpop.f32.mrf.mxu3  ;;  %v2902_v63 = vpop.f32.mrf.mxu2  ;;  %v13536_v0 = vor.u32 %v15686_v20, %v13533_v32 }
 0x34b   : > { %v4372_v15 = vpop.f32.mrf.mxu1  ;;  %v15687_v49 = vld [vmem:[#allocation2 + $0x80] sm:$0xf0] }
 0x34c   : > { %v13532_v55 = vor.u32 %v15687_v49, %v13531_v13 }
 0x351   : > { %v4206_v33 = vpop.f32.mrf.mxu0 }
 0x352   : > { %v4034_v16 = vpop.f32.mrf.mxu3  ;;  %v2904_v23 = vpop.f32.mrf.mxu2 }
 0x353   : > { %v4375_v1 = vpop.f32.mrf.mxu1  ;;  %v15689_v23 = vld [vmem:[#allocation2 + $0x94] sm:$0xf] }
 0x354   : > { %5786 = vmatmul.bf16.vlgmr.msra.gmra.mxu0 %v13528_v61  ;;  %v13563_v61 = vld [vmem:[#allocation2 + $0xb0] sm:$0xf] }
 0x355   : > { %7596 = vst [vmem:[#allocation2 + $0xb0] sm:$0xf] %v19581_v47 }
 0x357   : > { %5617 = vmatmul.bf16.vlgmr.msra.gmra.mxu3 %v13524_v2  ;;  %5448 = vmatmul.bf16.vlgmr.msra.gmra.mxu2 %v13520_v6  ;;  %v13551_v2 = vld [vmem:[#allocation2 + $0x98] sm:$0xf]  ;;  %v13545_v6 = vld [vmem:[#allocation2 + $0x9c] sm:$0xf0] }
 0x359   : > { %v4208_v60 = vpop.f32.mrf.mxu0 }
 0x35a   : > { %v4037_v4 = vpop.f32.mrf.mxu3  ;;  %v2907_v22 = vpop.f32.mrf.mxu2 }
 0x35b   : > { %v4207_v7 = vadd.f32 %v4206_v33, %v4037_v4  ;;  %v4377_v14 = vpop.f32.mrf.mxu1  ;;  %v2908_v18 = vadd.f32 %v2907_v22, %v19583_v8  ;;  %v15694_v33 = vld [vmem:[#allocation2 + $0xb8] sm:$0xf0] }
 0x35c   : > { %7597 = vst [vmem:[#allocation2 + $0xbc] sm:$0xf] %v19582_v39  ;;  %v15690_v22 = vld [vmem:[#allocation2 + $0x98] sm:$0xf0] }
 0x35d   : > { %v4376_v27 = vadd.f32 %v4375_v1, %v4207_v7  ;;  %v15691_v1 = vld [vmem:[#allocation2 + $0xa0] sm:$0xf0] }
 0x35e   : > { %v13552_v7 = vor.u32 %v15691_v1, %v13551_v2 }
 0x35f   : > { %v17279_v31 = vadd.f32 %v4376_v27, %v2908_v18  ;;  %v13548_v27 = vor.u32 %v15689_v23, %v13545_v6  ;;  %v19585_v23 = vld [vmem:[#allocation26_spill] sm:$0xff] }
 0x361   : > { %v4211_v36 = vpop.f32.mrf.mxu0 }
 0x362   : > { %v4039_v48 = vpop.f32.mrf.mxu3  ;;  %v2909_v63 = vpop.f32.mrf.mxu2 }
 0x363   : > { %v4209_v51 = vadd.f32 %v4208_v60, %v4039_v48  ;;  %v4380_v15 = vpop.f32.mrf.mxu1  ;;  %v2910_v19 = vadd.f32 %v2909_v63, %v19584_v26  ;;  %v13557_v63 = vld [vmem:[#allocation2 + $0xb4] sm:$0xf0]  ;;  %v13564_v26 = vor.u32 %v15694_v33, %v13563_v61 }
 0x364   : > { %5791 = vmatmul.bf16.gmra.mxu0 %v13540_v42  ;;  %v15692_v15 = vld [vmem:[#allocation2 + $0xac] sm:$0xf] }
 0x365   : > { %v4378_v9 = vadd.f32 %v4377_v14, %v4209_v51  ;;  %v13543_v14 = vld [vmem:[#allocation2 + $0x90] sm:$0xf] }
 0x366   : > { %v13544_v20 = vor.u32 %v15690_v22, %v13543_v14 }
 0x367   : > { %5622 = vmatmul.bf16.gmra.mxu3 %v13536_v0  ;;  %v17282_v16 = vadd.f32 %v4378_v9, %v2910_v19  ;;  %5453 = vmatmul.bf16.gmra.mxu2 %v13532_v55 }
 0x369   : > { %v4213_v45 = vpop.f32.mrf.mxu0 }
 0x36a   : > { %v4042_v25 = vpop.f32.mrf.mxu3  ;;  %v2912_v11 = vpop.f32.mrf.mxu2  ;;  %v15693_v45 = vld [vmem:[#allocation2 + $0xb0] sm:$0xf0] }
 0x36b   : > { %v4382_v28 = vpop.f32.mrf.mxu1  ;;  %v13555_v25 = vld [vmem:[#allocation2 + $0xa8] sm:$0xf] }
 0x36c   : > { %v13560_v28 = vor.u32 %v15692_v15, %v13557_v63 }
 0x371   : > { %v4216_v60 = vpop.f32.mrf.mxu0 }
 0x372   : > { %v4044_v4 = vpop.f32.mrf.mxu3  ;;  %v2914_v18 = vpop.f32.mrf.mxu2 }
 0x373   : > { %v4385_v8 = vpop.f32.mrf.mxu1  ;;  %v13556_v4 = vor.u32 %v15693_v45, %v13555_v25  ;;  %v15695_v18 = vld [vmem:[#allocation2 + $0xc4] sm:$0xf] }
 0x374   : > { %5796 = vmatmul.bf16.gmra.mxu0 %v13552_v7  ;;  %v13587_v7 = vld [vmem:[#allocation2 + $0xe0] sm:$0xf] }
 0x375   : > { %7600 = vst [vmem:[#allocation2 + $0xe0] sm:$0xf] %v19581_v47 }
 0x377   : > { %5627 = vmatmul.bf16.gmra.mxu3 %v13548_v27  ;;  %5458 = vmatmul.bf16.gmra.mxu2 %v13544_v20  ;;  %v13575_v27 = vld [vmem:[#allocation2 + $0xc8] sm:$0xf]  ;;  %v13569_v20 = vld [vmem:[#allocation2 + $0xcc] sm:$0xf0] }
 0x379   : > { %v4218_v42 = vpop.f32.mrf.mxu0 }
 0x37a   : > { %v4047_v32 = vpop.f32.mrf.mxu3  ;;  %v2917_v36 = vpop.f32.mrf.mxu2 }
 0x37b   : > { %v4217_v48 = vadd.f32 %v4216_v60, %v4047_v32  ;;  %v4387_v51 = vpop.f32.mrf.mxu1  ;;  %v2918_v49 = vadd.f32 %v2917_v36, %v17075_v17  ;;  %v15700_v60 = vld [vmem:[#allocation2 + $0xe8] sm:$0xf0] }
 0x37c   : > { %7601 = vst [vmem:[#allocation2 + $0xec] sm:$0xf] %v19582_v39  ;;  %v15696_v36 = vld [vmem:[#allocation2 + $0xc8] sm:$0xf0] }
 0x37d   : > { %v4386_v13 = vadd.f32 %v4385_v8, %v4217_v48  ;;  %v15697_v8 = vld [vmem:[#allocation2 + $0xd0] sm:$0xf0] }
 0x37e   : > { %v13576_v48 = vor.u32 %v15697_v8, %v13575_v27 }
 0x37f   : > { %v17287_v0 = vadd.f32 %v4386_v13, %v2918_v49  ;;  %v13572_v13 = vor.u32 %v15695_v18, %v13569_v20 }
 0x381   : > { %v4221_v55 = vpop.f32.mrf.mxu0 }
 0x382   : > { %v4049_v9 = vpop.f32.mrf.mxu3  ;;  %v2919_v2 = vpop.f32.mrf.mxu2 }
 0x383   : > { %v4219_v19 = vadd.f32 %v4218_v42, %v4049_v9  ;;  %v4390_v11 = vpop.f32.mrf.mxu1  ;;  %v2920_v6 = vadd.f32 %v2919_v2, %v19585_v23  ;;  %v13581_v23 = vld [vmem:[#allocation2 + $0xe4] sm:$0xf0] }
 0x384   : > { %5801 = vmatmul.bf16.gmra.mxu0 %v13564_v26 }
 0x385   : > { %v4388_v1 = vadd.f32 %v4387_v51, %v4219_v19  ;;  %v13567_v51 = vld [vmem:[#allocation2 + $0xc0] sm:$0xf] }
 0x386   : > { %v13568_v63 = vor.u32 %v15696_v36, %v13567_v51  ;;  %v13611_v36 = vld [vmem:[#allocation2 + $0x110] sm:$0xf] }
 0x387   : > { %5632 = vmatmul.bf16.gmra.mxu3 %v13560_v28  ;;  %v17290_v17 = vadd.f32 %v4388_v1, %v2920_v6  ;;  %5463 = vmatmul.bf16.gmra.mxu2 %v13556_v4  ;;  %v19586_v28 = vld [vmem:[#allocation27_spill] sm:$0xff]  ;;  %v15698_v1 = vld [vmem:[#allocation2 + $0xdc] sm:$0xf]  ;;  %v13588_v4 = vor.u32 %v15700_v60, %v13587_v7  ;;  %7604 = vst [vmem:[#allocation2 + $0x110] sm:$0xf] %v19581_v47 }
 0x388   : > { %v13584_v27 = vor.u32 %v15698_v1, %v13581_v23 }
 0x389   : > { %v4223_v33 = vpop.f32.mrf.mxu0 }
 0x38a   : > { %v4052_v61 = vpop.f32.mrf.mxu3  ;;  %v2922_v22 = vpop.f32.mrf.mxu2 }
 0x38b   : > { %v4392_v14 = vpop.f32.mrf.mxu1  ;;  %v15699_v22 = vld [vmem:[#allocation2 + $0xe0] sm:$0xf0] }
 0x38c   : > { %v13579_v14 = vld [vmem:[#allocation2 + $0xd8] sm:$0xf] }
 0x391   : > { %v4226_v42 = vpop.f32.mrf.mxu0 }
 0x392   : > { %v4054_v32 = vpop.f32.mrf.mxu3  ;;  %v2924_v15 = vpop.f32.mrf.mxu2 }
 0x393   : > { %v4395_v49 = vpop.f32.mrf.mxu1  ;;  %v19587_v32 = vld [vmem:[#allocation28_spill] sm:$0xff] }
 0x394   : > { %5806 = vmatmul.bf16.gmra.mxu0 %v13576_v48 }
 0x397   : > { %5637 = vmatmul.bf16.gmra.mxu3 %v13572_v13  ;;  %5468 = vmatmul.bf16.gmra.mxu2 %v13568_v63  ;;  %v15706_v13 = vld [vmem:[#allocation2 + $0x118] sm:$0xf0]  ;;  %v13599_v63 = vld [vmem:[#allocation2 + $0xf8] sm:$0xf] }
 0x398   : > { %7605 = vst [vmem:[#allocation2 + $0x11c] sm:$0xf] %v19582_v39 }
 0x399   : > { %v4228_v19 = vpop.f32.mrf.mxu0 }
 0x39a   : > { %v4057_v9 = vpop.f32.mrf.mxu3  ;;  %v2927_v25 = vpop.f32.mrf.mxu2 }
 0x39b   : > { %v4227_v26 = vadd.f32 %v4226_v42, %v4057_v9  ;;  %v4397_v55 = vpop.f32.mrf.mxu1  ;;  %v2928_v11 = vadd.f32 %v2927_v25, %v19586_v28  ;;  %v13580_v42 = vor.u32 %v15699_v22, %v13579_v14  ;;  %v15703_v9 = vld [vmem:[#allocation2 + $0x100] sm:$0xf0]  ;;  %v13591_v28 = vld [vmem:[#allocation2 + $0xf0] sm:$0xf] }
 0x39c   : > { %v13600_v25 = vor.u32 %v15703_v9, %v13599_v63  ;;  %v13603_v63 = vld [vmem:[#allocation2 + $0x108] sm:$0xf]  ;;  %v15705_v9 = vld [vmem:[#allocation2 + $0x110] sm:$0xf0] }
 0x39d   : > { %v4396_v45 = vadd.f32 %v4395_v49, %v4227_v26  ;;  %v15701_v26 = vld [vmem:[#allocation2 + $0xf4] sm:$0xf] }
 0x39f   : > { %v17295_v2 = vadd.f32 %v4396_v45, %v2928_v11  ;;  %v15702_v11 = vld [vmem:[#allocation2 + $0xf8] sm:$0xf0] }
 0x3a1   : > { %v4231_v33 = vpop.f32.mrf.mxu0 }
 0x3a2   : > { %v4059_v6 = vpop.f32.mrf.mxu3  ;;  %v2929_v18 = vpop.f32.mrf.mxu2 }
 0x3a3   : > { %v4229_v61 = vadd.f32 %v4228_v19, %v4059_v6  ;;  %v4400_v8 = vpop.f32.mrf.mxu1  ;;  %v2930_v48 = vadd.f32 %v2929_v18, %v19587_v32  ;;  %v13593_v19 = vld [vmem:[#allocation2 + $0xfc] sm:$0xf0]  ;;  %v13592_v6 = vor.u32 %v15702_v11, %v13591_v28  ;;  %v15704_v32 = vld [vmem:[#allocation2 + $0x10c] sm:$0xf]  ;;  %v13604_v28 = vor.u32 %v15705_v9, %v13603_v63 }
 0x3a4   : > { %5811 = vmatmul.bf16.gmra.mxu0 %v13588_v4  ;;  %v13596_v1 = vor.u32 %v15701_v26, %v13593_v19  ;;  %v19588_v8 = vld [vmem:[#allocation29_spill] sm:$0xff] }
 0x3a5   : > { %v4398_v20 = vadd.f32 %v4397_v55, %v4229_v61 }
 0x3a7   : > { %5642 = vmatmul.bf16.gmra.mxu3 %v13584_v27  ;;  %v17298_v51 = vadd.f32 %v4398_v20, %v2930_v48  ;;  %5473 = vmatmul.bf16.gmra.mxu2 %v13580_v42  ;;  %v13605_v48 = vld [vmem:[#allocation2 + $0x114] sm:$0xf0] }
 0x3a8   : > { %v13608_v26 = vor.u32 %v15704_v32, %v13605_v48  ;;  %v15708_v32 = vld [vmem:[#allocation2 + $0x128] sm:$0xf0] }
 0x3a9   : > { %v4233_v60 = vpop.f32.mrf.mxu0 }
 0x3aa   : > { %v4062_v7 = vpop.f32.mrf.mxu3  ;;  %v2932_v15 = vpop.f32.mrf.mxu2  ;;  %v13612_v60 = vor.u32 %v15706_v13, %v13611_v36 }
 0x3ab   : > { %v4402_v49 = vpop.f32.mrf.mxu1 }
 0x3b1   : > { %v4236_v45 = vpop.f32.mrf.mxu0 }
 0x3b2   : > { %v4064_v55 = vpop.f32.mrf.mxu3  ;;  %v2934_v23 = vpop.f32.mrf.mxu2 }
 0x3b3   : > { %v4405_v4 = vpop.f32.mrf.mxu1  ;;  %v15712_v23 = vld [vmem:[#allocation2 + $0x148] sm:$0xf0] }
 0x3b4   : > { %5816 = vmatmul.bf16.gmra.mxu0 %v13600_v25  ;;  %v19589_v25 = vld [vmem:[#allocation30_spill] sm:$0xff]  ;;  %7609 = vst [vmem:[#allocation2 + $0x14c] sm:$0xf] %v19582_v39 }
 0x3b7   : > { %5647 = vmatmul.bf16.gmra.mxu3 %v13596_v1  ;;  %5478 = vmatmul.bf16.gmra.mxu2 %v13592_v6  ;;  %v13635_v1 = vld [vmem:[#allocation2 + $0x140] sm:$0xf] }
 0x3b8   : > { %7608 = vst [vmem:[#allocation2 + $0x140] sm:$0xf] %v19581_v47 }
 0x3b9   : > { %v4238_v14 = vpop.f32.mrf.mxu0 }
 0x3ba   : > { %v4067_v61 = vpop.f32.mrf.mxu3  ;;  %v2937_v22 = vpop.f32.mrf.mxu2 }
 0x3bb   : > { %v4237_v33 = vadd.f32 %v4236_v45, %v4067_v61  ;;  %v2938_v18 = vadd.f32 %v2937_v22, %v19588_v8  ;;  %v4407_v7 = vpop.f32.mrf.mxu1  ;;  %v15709_v61 = vld [vmem:[#allocation2 + $0x130] sm:$0xf0] }
 0x3bd   : > { %v4406_v27 = vadd.f32 %v4405_v4, %v4237_v33  ;;  %v13623_v4 = vld [vmem:[#allocation2 + $0x128] sm:$0xf]  ;;  %v15707_v33 = vld [vmem:[#allocation2 + $0x124] sm:$0xf] }
 0x3bf   : > { %v17303_v20 = vadd.f32 %v4406_v27, %v2938_v18  ;;  %v13624_v27 = vor.u32 %v15709_v61, %v13623_v4  ;;  %v13615_v18 = vld [vmem:[#allocation2 + $0x120] sm:$0xf] }
 0x3c1   : > { %v4241_v15 = vpop.f32.mrf.mxu0 }
 0x3c2   : > { %v4069_v42 = vpop.f32.mrf.mxu3  ;;  %v2939_v19 = vpop.f32.mrf.mxu2 }
 0x3c3   : > { %v4239_v49 = vadd.f32 %v4238_v14, %v4069_v42  ;;  %v2940_v45 = vadd.f32 %v2939_v19, %v19589_v25  ;;  %v13617_v14 = vld [vmem:[#allocation2 + $0x12c] sm:$0xf0]  ;;  %v13629_v19 = vld [vmem:[#allocation2 + $0x144] sm:$0xf0] }
 0x3c4   : > { %5821 = vmatmul.bf16.gmra.mxu0 %v13612_v60  ;;  %v13620_v48 = vor.u32 %v15707_v33, %v13617_v14 }
 0x3c5   : > { %v4408_v55 = vadd.f32 %v4407_v7, %v4239_v49  ;;  %v13616_v7 = vor.u32 %v15708_v32, %v13615_v18  ;;  %v13647_v18 = vld [vmem:[#allocation2 + $0x158] sm:$0xf]  ;;  %v15715_v32 = vld [vmem:[#allocation2 + $0x160] sm:$0xf0] }
 0x3c7   : > { %5652 = vmatmul.bf16.gmra.mxu3 %v13608_v26  ;;  %v17306_v11 = vadd.f32 %v4408_v55, %v2940_v45  ;;  %5483 = vmatmul.bf16.gmra.mxu2 %v13604_v28  ;;  %v15710_v26 = vld [vmem:[#allocation2 + $0x13c] sm:$0xf]  ;;  %v13636_v45 = vor.u32 %v15712_v23, %v13635_v1 }
 0x3c9   : > { %v4243_v13 = vpop.f32.mrf.mxu0 }
 0x3ca   : > { %v4072_v36 = vpop.f32.mrf.mxu3  ;;  %v2942_v6 = vpop.f32.mrf.mxu2  ;;  %v15711_v13 = vld [vmem:[#allocation2 + $0x140] sm:$0xf0] }
 0x3cb   : > { %v13627_v36 = vld [vmem:[#allocation2 + $0x138] sm:$0xf]  ;;  %v13632_v6 = vor.u32 %v15710_v26, %v13629_v19 }
 0x3cc   : > { %v13628_v33 = vor.u32 %v15711_v13, %v13627_v36  ;;  %v15716_v13 = vld [vmem:[#allocation2 + $0x16c] sm:$0xf] }
 0x3d1   : > { %v5787_v8 = vpop.f32.mrf.mxu0 }
 0x3d2   : > { %v4074_v22 = vpop.f32.mrf.mxu3  ;;  %v2944_v42 = vpop.f32.mrf.mxu2 }
 0x3d3   : > { %v13659_v22 = vld [vmem:[#allocation2 + $0x170] sm:$0xf]  ;;  %v13641_v42 = vld [vmem:[#allocation2 + $0x15c] sm:$0xf0] }
 0x3d4   : > { %5826 = vmatmul.bf16.gmra.mxu0 %v13624_v27  ;;  %v15718_v27 = vld [vmem:[#allocation2 + $0x178] sm:$0xf0]  ;;  %7612 = vst [vmem:[#allocation2 + $0x170] sm:$0xf] %v19581_v47 }
 0x3d5   : > { %7613 = vst [vmem:[#allocation2 + $0x17c] sm:$0xf] %v19582_v39 }
 0x3d7   : > { %5657 = vmatmul.bf16.gmra.mxu3 %v13620_v48  ;;  %5488 = vmatmul.bf16.gmra.mxu2 %v13616_v7  ;;  %v15713_v48 = vld [vmem:[#allocation2 + $0x154] sm:$0xf] }
 0x3d9   : > { %v5789_v49 = vpop.f32.mrf.mxu0 }
 0x3da   : > { %v5618_v60 = vpop.f32.mrf.mxu3  ;;  %v5449_v15 = vpop.f32.mrf.mxu2 }
 0x3db   : > { %v5619_v63 = vadd.f32 %v5618_v60, %v5449_v15  ;;  %v13648_v60 = vor.u32 %v15715_v32, %v13647_v18  ;;  %v13639_v15 = vld [vmem:[#allocation2 + $0x150] sm:$0xf] }
 0x3dd   : > { %v5788_v9 = vadd.f32 %v5787_v8, %v5619_v63  ;;  %v15714_v63 = vld [vmem:[#allocation2 + $0x158] sm:$0xf0] }
 0x3de   : > { %v13640_v19 = vor.u32 %v15714_v63, %v13639_v15  ;;  %v13671_v15 = vld [vmem:[#allocation2 + $0x188] sm:$0xf]  ;;  %v15721_v63 = vld [vmem:[#allocation2 + $0x190] sm:$0xf0] }
 0x3df   : > { %v17311_v55 = vadd.f32 %v5788_v9, %v17122_v54  ;;  %v13644_v9 = vor.u32 %v15713_v48, %v13641_v42 }
 0x3e1   : > { %v5792_v28 = vpop.f32.mrf.mxu0 }
 0x3e2   : > { %v5620_v25 = vpop.f32.mrf.mxu3  ;;  %v5451_v4 = vpop.f32.mrf.mxu2 }
 0x3e3   : > { %v5621_v61 = vadd.f32 %v5620_v25, %v5451_v4 }
 0x3e4   : > { %5831 = vmatmul.bf16.gmra.mxu0 %v13636_v45 }
 0x3e5   : > { %v5790_v14 = vadd.f32 %v5789_v49, %v5621_v61 }
 0x3e7   : > { %5662 = vmatmul.bf16.gmra.mxu3 %v13632_v6  ;;  %v17315_v8 = vadd.f32 %v5790_v14, %v17125_v21  ;;  %5493 = vmatmul.bf16.gmra.mxu2 %v13628_v33  ;;  %v13653_v6 = vld [vmem:[#allocation2 + $0x174] sm:$0xf0]  ;;  %v13660_v33 = vor.u32 %v15718_v27, %v13659_v22 }
 0x3e9   : > { %v5794_v1 = vpop.f32.mrf.mxu0 }
 0x3ea   : > { %v5623_v54 = vpop.f32.mrf.mxu3  ;;  %v5454_v23 = vpop.f32.mrf.mxu2  ;;  %v15717_v1 = vld [vmem:[#allocation2 + $0x170] sm:$0xf0] }
 0x3eb   : > { %v13651_v54 = vld [vmem:[#allocation2 + $0x168] sm:$0xf]  ;;  %v13656_v23 = vor.u32 %v15716_v13, %v13653_v6 }
 0x3ec   : > { %v13652_v48 = vor.u32 %v15717_v1, %v13651_v54  ;;  %v15722_v1 = vld [vmem:[#allocation2 + $0x19c] sm:$0xf] }
 0x3f1   : > { %v5797_v49 = vpop.f32.mrf.mxu0 }
 0x3f2   : > { %v5625_v7 = vpop.f32.mrf.mxu3  ;;  %v5456_v26 = vpop.f32.mrf.mxu2 }
 0x3f3   : > { %v13683_v7 = vld [vmem:[#allocation2 + $0x1a0] sm:$0xf]  ;;  %v13665_v26 = vld [vmem:[#allocation2 + $0x18c] sm:$0xf0] }
 0x3f4   : > { %5836 = vmatmul.bf16.gmra.mxu0 %v13648_v60  ;;  %v15724_v60 = vld [vmem:[#allocation2 + $0x1a8] sm:$0xf0]  ;;  %7616 = vst [vmem:[#allocation2 + $0x1a0] sm:$0xf] %v19581_v47 }
 0x3f5   : > { %7617 = vst [vmem:[#allocation2 + $0x1ac] sm:$0xf] %v19582_v39 }
 0x3f7   : > { %5667 = vmatmul.bf16.gmra.mxu3 %v13644_v9  ;;  %5498 = vmatmul.bf16.gmra.mxu2 %v13640_v19  ;;  %v15719_v9 = vld [vmem:[#allocation2 + $0x184] sm:$0xf] }
 0x3f9   : > { %v5799_v25 = vpop.f32.mrf.mxu0 }
 0x3fa   : > { %v5628_v21 = vpop.f32.mrf.mxu3  ;;  %v5459_v45 = vpop.f32.mrf.mxu2 }
 0x3fb   : > { %v5629_v28 = vadd.f32 %v5628_v21, %v5459_v45  ;;  %v13672_v21 = vor.u32 %v15721_v63, %v13671_v15  ;;  %v13663_v45 = vld [vmem:[#allocation2 + $0x180] sm:$0xf] }
 0x3fd   : > { %v5798_v36 = vadd.f32 %v5797_v49, %v5629_v28  ;;  %v15720_v28 = vld [vmem:[#allocation2 + $0x188] sm:$0xf0] }
 0x3fe   : > { %v13664_v6 = vor.u32 %v15720_v28, %v13663_v45  ;;  %v13695_v45 = vld [vmem:[#allocation2 + $0x1b8] sm:$0xf]  ;;  %v15727_v28 = vld [vmem:[#allocation2 + $0x1c0] sm:$0xf0] }
 0x3ff   : > { %v17319_v4 = vadd.f32 %v5798_v36, %v17136_v43  ;;  %v13668_v36 = vor.u32 %v15719_v9, %v13665_v26 }
 0x401   : > { %v5802_v14 = vpop.f32.mrf.mxu0 }
 0x402   : > { %v5630_v61 = vpop.f32.mrf.mxu3  ;;  %v5461_v18 = vpop.f32.mrf.mxu2 }
 0x403   : > { %v5631_v32 = vadd.f32 %v5630_v61, %v5461_v18 }
 0x404   : > { %5841 = vmatmul.bf16.gmra.mxu0 %v13660_v33 }
 0x405   : > { %v5800_v42 = vadd.f32 %v5799_v25, %v5631_v32 }
 0x407   : > { %5672 = vmatmul.bf16.gmra.mxu3 %v13656_v23  ;;  %v17323_v49 = vadd.f32 %v5800_v42, %v17139_v56  ;;  %5503 = vmatmul.bf16.gmra.mxu2 %v13652_v48  ;;  %v13677_v23 = vld [vmem:[#allocation2 + $0x1a4] sm:$0xf0]  ;;  %v13684_v48 = vor.u32 %v15724_v60, %v13683_v7 }
 0x409   : > { %v5804_v22 = vpop.f32.mrf.mxu0 }
 0x40a   : > { %v5633_v43 = vpop.f32.mrf.mxu3  ;;  %v5464_v27 = vpop.f32.mrf.mxu2  ;;  %v15723_v22 = vld [vmem:[#allocation2 + $0x1a0] sm:$0xf0] }
 0x40b   : > { %v13675_v43 = vld [vmem:[#allocation2 + $0x198] sm:$0xf]  ;;  %v13680_v27 = vor.u32 %v15722_v1, %v13677_v23 }
 0x40c   : > { %v13676_v9 = vor.u32 %v15723_v22, %v13675_v43  ;;  %v15728_v22 = vld [vmem:[#allocation2 + $0x1cc] sm:$0xf] }
 0x411   : > { %v5807_v25 = vpop.f32.mrf.mxu0 }
 0x412   : > { %v5635_v19 = vpop.f32.mrf.mxu3  ;;  %v5466_v13 = vpop.f32.mrf.mxu2 }
 0x413   : > { %v13707_v19 = vld [vmem:[#allocation2 + $0x1d0] sm:$0xf]  ;;  %v13689_v13 = vld [vmem:[#allocation2 + $0x1bc] sm:$0xf0] }
 0x414   : > { %5846 = vmatmul.bf16.gmra.mxu0 %v13672_v21  ;;  %v15730_v21 = vld [vmem:[#allocation2 + $0x1d8] sm:$0xf0]  ;;  %7620 = vst [vmem:[#allocation2 + $0x1d0] sm:$0xf] %v19581_v47 }
 0x415   : > { %7621 = vst [vmem:[#allocation2 + $0x1dc] sm:$0xf] %v19582_v39 }
 0x417   : > { %5677 = vmatmul.bf16.gmra.mxu3 %v13668_v36  ;;  %5508 = vmatmul.bf16.gmra.mxu2 %v13664_v6  ;;  %v15725_v36 = vld [vmem:[#allocation2 + $0x1b4] sm:$0xf] }
 0x419   : > { %v5809_v61 = vpop.f32.mrf.mxu0 }
 0x41a   : > { %v5638_v56 = vpop.f32.mrf.mxu3  ;;  %v5469_v33 = vpop.f32.mrf.mxu2 }
 0x41b   : > { %v5639_v14 = vadd.f32 %v5638_v56, %v5469_v33  ;;  %v13696_v56 = vor.u32 %v15727_v28, %v13695_v45  ;;  %v13687_v33 = vld [vmem:[#allocation2 + $0x1b0] sm:$0xf]  ;;  %v15906_v45 = vld [vmem:[#allocation9 + $0x38] sm:$0xff] }
 0x41c   : > { %8490 = vmatpush.bf16.msra.mxu1 %v15906_v45  ;;  %v13725_v45 = vld [vmem:[#allocation2 + $0x204] sm:$0xf0] }
 0x41d   : > { %v5808_v54 = vadd.f32 %v5807_v25, %v5639_v14  ;;  %v15726_v14 = vld [vmem:[#allocation2 + $0x1b8] sm:$0xf0] }
 0x41e   : > { %v13688_v23 = vor.u32 %v15726_v14, %v13687_v33  ;;  %v13719_v14 = vld [vmem:[#allocation2 + $0x1e8] sm:$0xf] }
 0x41f   : > { %v17327_v18 = vadd.f32 %v5808_v54, %v17150_v62  ;;  %v13692_v54 = vor.u32 %v15725_v36, %v13689_v13 }
 0x421   : > { %v5812_v42 = vpop.f32.mrf.mxu0 }
 0x422   : > { %v5640_v32 = vpop.f32.mrf.mxu3  ;;  %v5471_v15 = vpop.f32.mrf.mxu2 }
 0x423   : > { %v5641_v63 = vadd.f32 %v5640_v32, %v5471_v15 }
 0x424   : > { %5851 = vmatmul.bf16.gmra.mxu0 %v13684_v48 }
 0x425   : > { %v5810_v26 = vadd.f32 %v5809_v61, %v5641_v63 }
 0x427   : > { %5682 = vmatmul.bf16.gmra.mxu3 %v13680_v27  ;;  %v17331_v25 = vadd.f32 %v5810_v26, %v17153_v3  ;;  %5513 = vmatmul.bf16.gmra.mxu2 %v13676_v9  ;;  %v13701_v27 = vld [vmem:[#allocation2 + $0x1d4] sm:$0xf0]  ;;  %v13708_v9 = vor.u32 %v15730_v21, %v13707_v19 }
 0x429   : > { %v5814_v7 = vpop.f32.mrf.mxu0 }
 0x42a   : > { %v5643_v62 = vpop.f32.mrf.mxu3  ;;  %v5474_v60 = vpop.f32.mrf.mxu2  ;;  %v15729_v7 = vld [vmem:[#allocation2 + $0x1d0] sm:$0xf0] }
 0x42b   : > { %v13699_v62 = vld [vmem:[#allocation2 + $0x1c8] sm:$0xf]  ;;  %v13704_v60 = vor.u32 %v15728_v22, %v13701_v27 }
 0x42c   : > { %v13700_v13 = vor.u32 %v15729_v7, %v13699_v62 }
 0x431   : > { %v5817_v61 = vpop.f32.mrf.mxu0 }
 0x432   : > { %v5645_v6 = vpop.f32.mrf.mxu3  ;;  %v5476_v1 = vpop.f32.mrf.mxu2 }
 0x433   : > { %v15731_v1 = vld [vmem:[#allocation2 + $0x1e4] sm:$0xf] }
 0x434   : > { %5856 = vmatmul.bf16.gmra.mxu0 %v13696_v56  ;;  %v13731_v56 = vld [vmem:[#allocation2 + $0x200] sm:$0xf] }
 0x435   : > { %7624 = vst [vmem:[#allocation2 + $0x200] sm:$0xf] %v19581_v47 }
 0x437   : > { %5687 = vmatmul.bf16.gmra.mxu3 %v13692_v54  ;;  %5518 = vmatmul.bf16.gmra.mxu2 %v13688_v23  ;;  %v15733_v54 = vld [vmem:[#allocation2 + $0x1f0] sm:$0xf0]  ;;  %v13713_v23 = vld [vmem:[#allocation2 + $0x1ec] sm:$0xf0] }
 0x438   : > { %v13716_v22 = vor.u32 %v15731_v1, %v13713_v23 }
 0x439   : > { %v5819_v32 = vpop.f32.mrf.mxu0 }
 0x43a   : > { %v5648_v3 = vpop.f32.mrf.mxu3  ;;  %v5479_v48 = vpop.f32.mrf.mxu2 }
 0x43b   : > { %v5649_v42 = vadd.f32 %v5648_v3, %v5479_v48  ;;  %v13720_v48 = vor.u32 %v15733_v54, %v13719_v14 }
 0x43d   : > { %v5818_v43 = vadd.f32 %v5817_v61, %v5649_v42  ;;  %v15736_v61 = vld [vmem:[#allocation2 + $0x208] sm:$0xf0]  ;;  %v13711_v42 = vld [vmem:[#allocation2 + $0x1e0] sm:$0xf] }
 0x43e   : > { %7625 = vst [vmem:[#allocation2 + $0x20c] sm:$0xf] %v19582_v39 }
 0x43f   : > { %v17335_v15 = vadd.f32 %v5818_v43, %v17164_v40  ;;  %v15732_v43 = vld [vmem:[#allocation2 + $0x1e8] sm:$0xf0] }
 0x441   : > { %v5822_v26 = vpop.f32.mrf.mxu0 }
 0x442   : > { %v5650_v63 = vpop.f32.mrf.mxu3  ;;  %v5481_v28 = vpop.f32.mrf.mxu2 }
 0x443   : > { %v5651_v36 = vadd.f32 %v5650_v63, %v5481_v28  ;;  %v13712_v63 = vor.u32 %v15732_v43, %v13711_v42  ;;  %v13743_v42 = vld [vmem:[#allocation2 + $0x218] sm:$0xf]  ;;  %v15739_v43 = vld [vmem:[#allocation2 + $0x220] sm:$0xf0] }
 0x444   : > { %5861 = vmatmul.bf16.gmra.mxu0 %v13708_v9 }
 0x445   : > { %v5820_v6 = vadd.f32 %v5819_v32, %v5651_v36 }
 0x447   : > { %5692 = vmatmul.bf16.gmra.mxu3 %v13704_v60  ;;  %v17339_v40 = vadd.f32 %v5820_v6, %v17167_v30  ;;  %5523 = vmatmul.bf16.gmra.mxu2 %v13700_v13  ;;  %v15734_v60 = vld [vmem:[#allocation2 + $0x1fc] sm:$0xf]  ;;  %v13732_v13 = vor.u32 %v15736_v61, %v13731_v56 }
 0x449   : > { %v5824_v21 = vpop.f32.mrf.mxu0 }
 0x44a   : > { %v5653_v19 = vpop.f32.mrf.mxu3  ;;  %v5484_v33 = vpop.f32.mrf.mxu2  ;;  %v15735_v21 = vld [vmem:[#allocation2 + $0x200] sm:$0xf0] }
 0x44b   : > { %v13723_v19 = vld [vmem:[#allocation2 + $0x1f8] sm:$0xf]  ;;  %v13728_v33 = vor.u32 %v15734_v60, %v13725_v45 }
 0x44c   : > { %v13724_v1 = vor.u32 %v15735_v21, %v13723_v19  ;;  %v15740_v21 = vld [vmem:[#allocation2 + $0x22c] sm:$0xf] }
 0x451   : > { %v5827_v32 = vpop.f32.mrf.mxu0 }
 0x452   : > { %v5655_v3 = vpop.f32.mrf.mxu3  ;;  %v5486_v27 = vpop.f32.mrf.mxu2 }
 0x453   : > { %v13755_v3 = vld [vmem:[#allocation2 + $0x230] sm:$0xf]  ;;  %v13737_v27 = vld [vmem:[#allocation2 + $0x21c] sm:$0xf0] }
 0x454   : > { %5866 = vmatmul.bf16.gmra.mxu0 %v13720_v48  ;;  %v15742_v48 = vld [vmem:[#allocation2 + $0x238] sm:$0xf0]  ;;  %7628 = vst [vmem:[#allocation2 + $0x230] sm:$0xf] %v19581_v47 }
 0x455   : > { %7629 = vst [vmem:[#allocation2 + $0x23c] sm:$0xf] %v19582_v39 }
 0x457   : > { %5697 = vmatmul.bf16.gmra.mxu3 %v13716_v22  ;;  %5528 = vmatmul.bf16.gmra.mxu2 %v13712_v63  ;;  %v15737_v22 = vld [vmem:[#allocation2 + $0x214] sm:$0xf] }
 0x459   : > { %v5829_v9 = vpop.f32.mrf.mxu0 }
 0x45a   : > { %v5658_v30 = vpop.f32.mrf.mxu3  ;;  %v5489_v26 = vpop.f32.mrf.mxu2 }
 0x45b   : > { %v5659_v62 = vadd.f32 %v5658_v30, %v5489_v26  ;;  %v13744_v30 = vor.u32 %v15739_v43, %v13743_v42  ;;  %v13735_v26 = vld [vmem:[#allocation2 + $0x210] sm:$0xf] }
 0x45c   : > { %v15905_v42 = vld [vmem:[#allocation9 + $0x30] sm:$0xff] }
 0x45d   : > { %v5828_v7 = vadd.f32 %v5827_v32, %v5659_v62  ;;  %v15738_v62 = vld [vmem:[#allocation2 + $0x218] sm:$0xf0]  ;;  %8491 = vmatpush.bf16.msra.mxu1 %v15905_v42  ;;  %v13773_v42 = vld [vmem:[#allocation2 + $0x264] sm:$0xf0] }
 0x45e   : > { %v13736_v45 = vor.u32 %v15738_v62, %v13735_v26  ;;  %v13767_v62 = vld [vmem:[#allocation2 + $0x248] sm:$0xf] }
 0x45f   : > { %v17343_v28 = vadd.f32 %v5828_v7, %v17178_v57  ;;  %v13740_v7 = vor.u32 %v15737_v22, %v13737_v27 }
 0x461   : > { %v5832_v6 = vpop.f32.mrf.mxu0 }
 0x462   : > { %v5660_v36 = vpop.f32.mrf.mxu3  ;;  %v5491_v14 = vpop.f32.mrf.mxu2 }
 0x463   : > { %v5661_v54 = vadd.f32 %v5660_v36, %v5491_v14 }
 0x464   : > { %5871 = vmatmul.bf16.gmra.mxu0 %v13732_v13 }
 0x465   : > { %v5830_v23 = vadd.f32 %v5829_v9, %v5661_v54 }
 0x467   : > { %5702 = vmatmul.bf16.gmra.mxu3 %v13728_v33  ;;  %v17347_v32 = vadd.f32 %v5830_v23, %v17181_v59  ;;  %5533 = vmatmul.bf16.gmra.mxu2 %v13724_v1  ;;  %v13749_v33 = vld [vmem:[#allocation2 + $0x234] sm:$0xf0]  ;;  %v13756_v1 = vor.u32 %v15742_v48, %v13755_v3 }
 0x469   : > { %v5834_v56 = vpop.f32.mrf.mxu0 }
 0x46a   : > { %v5663_v57 = vpop.f32.mrf.mxu3  ;;  %v5494_v61 = vpop.f32.mrf.mxu2  ;;  %v15741_v56 = vld [vmem:[#allocation2 + $0x230] sm:$0xf0] }
 0x46b   : > { %v13747_v57 = vld [vmem:[#allocation2 + $0x228] sm:$0xf]  ;;  %v13752_v61 = vor.u32 %v15740_v21, %v13749_v33 }
 0x46c   : > { %v13748_v27 = vor.u32 %v15741_v56, %v13747_v57 }
 0x471   : > { %v5837_v9 = vpop.f32.mrf.mxu0 }
 0x472   : > { %v5665_v63 = vpop.f32.mrf.mxu3  ;;  %v5496_v60 = vpop.f32.mrf.mxu2 }
 0x473   : > { %v15743_v60 = vld [vmem:[#allocation2 + $0x244] sm:$0xf] }
 0x474   : > { %5876 = vmatmul.bf16.gmra.mxu0 %v13744_v30  ;;  %v13779_v30 = vld [vmem:[#allocation2 + $0x260] sm:$0xf] }
 0x475   : > { %7632 = vst [vmem:[#allocation2 + $0x260] sm:$0xf] %v19581_v47 }
 0x477   : > { %5707 = vmatmul.bf16.gmra.mxu3 %v13740_v7  ;;  %5538 = vmatmul.bf16.gmra.mxu2 %v13736_v45  ;;  %v15745_v7 = vld [vmem:[#allocation2 + $0x250] sm:$0xf0]  ;;  %v13761_v45 = vld [vmem:[#allocation2 + $0x24c] sm:$0xf0] }
 0x478   : > { %v13764_v21 = vor.u32 %v15743_v60, %v13761_v45 }
 0x479   : > { %v5839_v36 = vpop.f32.mrf.mxu0 }
 0x47a   : > { %v5668_v59 = vpop.f32.mrf.mxu3  ;;  %v5499_v13 = vpop.f32.mrf.mxu2 }
 0x47b   : > { %v5669_v6 = vadd.f32 %v5668_v59, %v5499_v13  ;;  %v13768_v13 = vor.u32 %v15745_v7, %v13767_v62 }
 0x47d   : > { %v5838_v19 = vadd.f32 %v5837_v9, %v5669_v6  ;;  %v15748_v9 = vld [vmem:[#allocation2 + $0x268] sm:$0xf0]  ;;  %v13759_v6 = vld [vmem:[#allocation2 + $0x240] sm:$0xf] }
 0x47e   : > { %7633 = vst [vmem:[#allocation2 + $0x26c] sm:$0xf] %v19582_v39 }
 0x47f   : > { %v17351_v14 = vadd.f32 %v5838_v19, %v17192_v5  ;;  %v15744_v19 = vld [vmem:[#allocation2 + $0x248] sm:$0xf0] }
 0x481   : > { %v5842_v23 = vpop.f32.mrf.mxu0 }
 0x482   : > { %v5670_v54 = vpop.f32.mrf.mxu3  ;;  %v5501_v43 = vpop.f32.mrf.mxu2 }
 0x483   : > { %v5671_v22 = vadd.f32 %v5670_v54, %v5501_v43  ;;  %v13760_v54 = vor.u32 %v15744_v19, %v13759_v6  ;;  %v13791_v6 = vld [vmem:[#allocation2 + $0x278] sm:$0xf]  ;;  %v15751_v19 = vld [vmem:[#allocation2 + $0x280] sm:$0xf0] }
 0x484   : > { %5881 = vmatmul.bf16.gmra.mxu0 %v13756_v1 }
 0x485   : > { %v5840_v63 = vadd.f32 %v5839_v36, %v5671_v22 }
 0x487   : > { %5712 = vmatmul.bf16.gmra.mxu3 %v13752_v61  ;;  %v17355_v5 = vadd.f32 %v5840_v63, %v17195_v35  ;;  %5543 = vmatmul.bf16.gmra.mxu2 %v13748_v27  ;;  %v15746_v61 = vld [vmem:[#allocation2 + $0x25c] sm:$0xf]  ;;  %v13780_v27 = vor.u32 %v15748_v9, %v13779_v30 }
 0x489   : > { %v5844_v48 = vpop.f32.mrf.mxu0 }
 0x48a   : > { %v5673_v3 = vpop.f32.mrf.mxu3  ;;  %v5504_v26 = vpop.f32.mrf.mxu2  ;;  %v15747_v48 = vld [vmem:[#allocation2 + $0x260] sm:$0xf0] }
 0x48b   : > { %v13771_v3 = vld [vmem:[#allocation2 + $0x258] sm:$0xf]  ;;  %v13776_v26 = vor.u32 %v15746_v61, %v13773_v42 }
 0x48c   : > { %v13772_v60 = vor.u32 %v15747_v48, %v13771_v3  ;;  %v15752_v48 = vld [vmem:[#allocation2 + $0x28c] sm:$0xf] }
 0x491   : > { %v5847_v36 = vpop.f32.mrf.mxu0 }
 0x492   : > { %v5675_v59 = vpop.f32.mrf.mxu3  ;;  %v5506_v33 = vpop.f32.mrf.mxu2 }
 0x493   : > { %v13803_v59 = vld [vmem:[#allocation2 + $0x290] sm:$0xf]  ;;  %v13785_v33 = vld [vmem:[#allocation2 + $0x27c] sm:$0xf0] }
 0x494   : > { %5886 = vmatmul.bf16.gmra.mxu0 %v13768_v13  ;;  %v15754_v13 = vld [vmem:[#allocation2 + $0x298] sm:$0xf0]  ;;  %7636 = vst [vmem:[#allocation2 + $0x290] sm:$0xf] %v19581_v47 }
 0x495   : > { %7637 = vst [vmem:[#allocation2 + $0x29c] sm:$0xf] %v19582_v39 }
 0x497   : > { %5717 = vmatmul.bf16.gmra.mxu3 %v13764_v21  ;;  %5548 = vmatmul.bf16.gmra.mxu2 %v13760_v54  ;;  %v15749_v21 = vld [vmem:[#allocation2 + $0x274] sm:$0xf] }
 0x499   : > { %v5849_v1 = vpop.f32.mrf.mxu0 }
 0x49a   : > { %v5678_v35 = vpop.f32.mrf.mxu3  ;;  %v5509_v23 = vpop.f32.mrf.mxu2 }
 0x49b   : > { %v5679_v57 = vadd.f32 %v5678_v35, %v5509_v23  ;;  %v13792_v35 = vor.u32 %v15751_v19, %v13791_v6  ;;  %v13783_v23 = vld [vmem:[#allocation2 + $0x270] sm:$0xf]  ;;  %v15904_v6 = vld [vmem:[#allocation9 + $0x28] sm:$0xff] }
 0x49c   : > { %8492 = vmatpush.bf16.msra.mxu1 %v15904_v6  ;;  %v13821_v6 = vld [vmem:[#allocation2 + $0x2c4] sm:$0xf0] }
 0x49d   : > { %v5848_v56 = vadd.f32 %v5847_v36, %v5679_v57  ;;  %v15750_v57 = vld [vmem:[#allocation2 + $0x278] sm:$0xf0] }
 0x49e   : > { %v13784_v42 = vor.u32 %v15750_v57, %v13783_v23  ;;  %v13815_v57 = vld [vmem:[#allocation2 + $0x2a8] sm:$0xf] }
 0x49f   : > { %v17359_v43 = vadd.f32 %v5848_v56, %v17206_v10  ;;  %v13788_v56 = vor.u32 %v15749_v21, %v13785_v33 }
 0x4a1   : > { %v5852_v63 = vpop.f32.mrf.mxu0 }
 0x4a2   : > { %v5680_v22 = vpop.f32.mrf.mxu3  ;;  %v5511_v62 = vpop.f32.mrf.mxu2 }
 0x4a3   : > { %v5681_v7 = vadd.f32 %v5680_v22, %v5511_v62 }
 0x4a4   : > { %5891 = vmatmul.bf16.gmra.mxu0 %v13780_v27 }
 0x4a5   : > { %v5850_v45 = vadd.f32 %v5849_v1, %v5681_v7 }
 0x4a7   : > { %5722 = vmatmul.bf16.gmra.mxu3 %v13776_v26  ;;  %v17363_v36 = vadd.f32 %v5850_v45, %v17209_v44  ;;  %5553 = vmatmul.bf16.gmra.mxu2 %v13772_v60  ;;  %v13797_v26 = vld [vmem:[#allocation2 + $0x294] sm:$0xf0]  ;;  %v13804_v60 = vor.u32 %v15754_v13, %v13803_v59 }
 0x4a9   : > { %v5854_v30 = vpop.f32.mrf.mxu0 }
 0x4aa   : > { %v5683_v10 = vpop.f32.mrf.mxu3  ;;  %v5514_v9 = vpop.f32.mrf.mxu2  ;;  %v15753_v30 = vld [vmem:[#allocation2 + $0x290] sm:$0xf0] }
 0x4ab   : > { %v13795_v10 = vld [vmem:[#allocation2 + $0x288] sm:$0xf]  ;;  %v13800_v9 = vor.u32 %v15752_v48, %v13797_v26 }
 0x4ac   : > { %v13796_v33 = vor.u32 %v15753_v30, %v13795_v10 }
 0x4b1   : > { %v5857_v1 = vpop.f32.mrf.mxu0 }
 0x4b2   : > { %v5685_v54 = vpop.f32.mrf.mxu3  ;;  %v5516_v61 = vpop.f32.mrf.mxu2 }
 0x4b3   : > { %v15755_v61 = vld [vmem:[#allocation2 + $0x2a4] sm:$0xf] }
 0x4b4   : > { %5896 = vmatmul.bf16.gmra.mxu0 %v13792_v35  ;;  %v13827_v35 = vld [vmem:[#allocation2 + $0x2c0] sm:$0xf] }
 0x4b5   : > { %7640 = vst [vmem:[#allocation2 + $0x2c0] sm:$0xf] %v19581_v47 }
 0x4b7   : > { %5727 = vmatmul.bf16.gmra.mxu3 %v13788_v56  ;;  %5558 = vmatmul.bf16.gmra.mxu2 %v13784_v42  ;;  %v15757_v56 = vld [vmem:[#allocation2 + $0x2b0] sm:$0xf0]  ;;  %v13809_v42 = vld [vmem:[#allocation2 + $0x2ac] sm:$0xf0] }
 0x4b8   : > { %v13812_v48 = vor.u32 %v15755_v61, %v13809_v42 }
 0x4b9   : > { %v5859_v22 = vpop.f32.mrf.mxu0 }
 0x4ba   : > { %v5688_v44 = vpop.f32.mrf.mxu3  ;;  %v5519_v27 = vpop.f32.mrf.mxu2 }
 0x4bb   : > { %v5689_v63 = vadd.f32 %v5688_v44, %v5519_v27  ;;  %v13816_v27 = vor.u32 %v15757_v56, %v13815_v57 }
 0x4bd   : > { %v5858_v3 = vadd.f32 %v5857_v1, %v5689_v63  ;;  %v15760_v1 = vld [vmem:[#allocation2 + $0x2c8] sm:$0xf0]  ;;  %v13807_v63 = vld [vmem:[#allocation2 + $0x2a0] sm:$0xf] }
 0x4be   : > { %7641 = vst [vmem:[#allocation2 + $0x2cc] sm:$0xf] %v19582_v39 }
 0x4bf   : > { %v17367_v62 = vadd.f32 %v5858_v3, %v17220_v58  ;;  %v15756_v3 = vld [vmem:[#allocation2 + $0x2a8] sm:$0xf0] }
 0x4c1   : > { %v5862_v45 = vpop.f32.mrf.mxu0 }
 0x4c2   : > { %v5690_v7 = vpop.f32.mrf.mxu3  ;;  %v5521_v19 = vpop.f32.mrf.mxu2 }
 0x4c3   : > { %v5691_v21 = vadd.f32 %v5690_v7, %v5521_v19  ;;  %v13808_v7 = vor.u32 %v15756_v3, %v13807_v63  ;;  %v13839_v63 = vld [vmem:[#allocation2 + $0x2d8] sm:$0xf]  ;;  %v15763_v3 = vld [vmem:[#allocation2 + $0x2e0] sm:$0xf0] }
 0x4c4   : > { %5901 = vmatmul.bf16.gmra.mxu0 %v13804_v60 }
 0x4c5   : > { %v5860_v54 = vadd.f32 %v5859_v22, %v5691_v21 }
 0x4c7   : > { %5732 = vmatmul.bf16.gmra.mxu3 %v13800_v9  ;;  %v17371_v58 = vadd.f32 %v5860_v54, %v17223_v41  ;;  %5563 = vmatmul.bf16.gmra.mxu2 %v13796_v33  ;;  %v15758_v9 = vld [vmem:[#allocation2 + $0x2bc] sm:$0xf]  ;;  %v13828_v33 = vor.u32 %v15760_v1, %v13827_v35 }
 0x4c9   : > { %v5864_v13 = vpop.f32.mrf.mxu0 }
 0x4ca   : > { %v5693_v59 = vpop.f32.mrf.mxu3  ;;  %v5524_v23 = vpop.f32.mrf.mxu2  ;;  %v15759_v13 = vld [vmem:[#allocation2 + $0x2c0] sm:$0xf0] }
 0x4cb   : > { %v13819_v59 = vld [vmem:[#allocation2 + $0x2b8] sm:$0xf]  ;;  %v13824_v23 = vor.u32 %v15758_v9, %v13821_v6 }
 0x4cc   : > { %v13820_v61 = vor.u32 %v15759_v13, %v13819_v59  ;;  %v15764_v13 = vld [vmem:[#allocation2 + $0x2ec] sm:$0xf] }
 0x4d1   : > { %v5867_v22 = vpop.f32.mrf.mxu0 }
 0x4d2   : > { %v5695_v44 = vpop.f32.mrf.mxu3  ;;  %v5526_v26 = vpop.f32.mrf.mxu2 }
 0x4d3   : > { %v13851_v44 = vld [vmem:[#allocation2 + $0x2f0] sm:$0xf]  ;;  %v13833_v26 = vld [vmem:[#allocation2 + $0x2dc] sm:$0xf0] }
 0x4d4   : > { %5906 = vmatmul.bf16.gmra.mxu0 %v13816_v27  ;;  %v15766_v27 = vld [vmem:[#allocation2 + $0x2f8] sm:$0xf0]  ;;  %7644 = vst [vmem:[#allocation2 + $0x2f0] sm:$0xf] %v19581_v47 }
 0x4d5   : > { %7645 = vst [vmem:[#allocation2 + $0x2fc] sm:$0xf] %v19582_v39 }
 0x4d7   : > { %5737 = vmatmul.bf16.gmra.mxu3 %v13812_v48  ;;  %5568 = vmatmul.bf16.gmra.mxu2 %v13808_v7  ;;  %v15761_v48 = vld [vmem:[#allocation2 + $0x2d4] sm:$0xf] }
 0x4d9   : > { %v5869_v60 = vpop.f32.mrf.mxu0 }
 0x4da   : > { %v5698_v41 = vpop.f32.mrf.mxu3  ;;  %v5529_v45 = vpop.f32.mrf.mxu2 }
 0x4db   : > { %v5699_v10 = vadd.f32 %v5698_v41, %v5529_v45  ;;  %v13840_v41 = vor.u32 %v15763_v3, %v13839_v63  ;;  %v13831_v45 = vld [vmem:[#allocation2 + $0x2d0] sm:$0xf]  ;;  %v15903_v63 = vld [vmem:[#allocation9 + $0x20] sm:$0xff] }
 0x4dc   : > { %8493 = vmatpush.bf16.msra.mxu1 %v15903_v63  ;;  %v13869_v63 = vld [vmem:[#allocation2 + $0x324] sm:$0xf0] }
 0x4dd   : > { %v5868_v30 = vadd.f32 %v5867_v22, %v5699_v10  ;;  %v15762_v10 = vld [vmem:[#allocation2 + $0x2d8] sm:$0xf0] }
 0x4de   : > { %v13832_v6 = vor.u32 %v15762_v10, %v13831_v45  ;;  %v15767_v10 = vld [vmem:[#allocation2 + $0x304] sm:$0xf] }
 0x4df   : > { %v17375_v19 = vadd.f32 %v5868_v30, %v17234_v50  ;;  %v13836_v30 = vor.u32 %v15761_v48, %v13833_v26 }
 0x4e1   : > { %v5872_v54 = vpop.f32.mrf.mxu0 }
 0x4e2   : > { %v5700_v21 = vpop.f32.mrf.mxu3  ;;  %v5531_v57 = vpop.f32.mrf.mxu2 }
 0x4e3   : > { %v5701_v56 = vadd.f32 %v5700_v21, %v5531_v57 }
 0x4e4   : > { %5911 = vmatmul.bf16.gmra.mxu0 %v13828_v33 }
 0x4e5   : > { %v5870_v42 = vadd.f32 %v5869_v60, %v5701_v56 }
 0x4e7   : > { %5742 = vmatmul.bf16.gmra.mxu3 %v13824_v23  ;;  %v17379_v22 = vadd.f32 %v5870_v42, %v17237_v52  ;;  %5573 = vmatmul.bf16.gmra.mxu2 %v13820_v61  ;;  %v13845_v23 = vld [vmem:[#allocation2 + $0x2f4] sm:$0xf0]  ;;  %v13852_v61 = vor.u32 %v15766_v27, %v13851_v44  ;;  %v13863_v44 = vld [vmem:[#allocation2 + $0x308] sm:$0xf]  ;;  %v15769_v27 = vld [vmem:[#allocation2 + $0x310] sm:$0xf0] }
 0x4e9   : > { %v5874_v35 = vpop.f32.mrf.mxu0 }
 0x4ea   : > { %v5703_v50 = vpop.f32.mrf.mxu3  ;;  %v5534_v1 = vpop.f32.mrf.mxu2  ;;  %v15765_v35 = vld [vmem:[#allocation2 + $0x2f0] sm:$0xf0] }
 0x4eb   : > { %v13843_v50 = vld [vmem:[#allocation2 + $0x2e8] sm:$0xf]  ;;  %v13848_v1 = vor.u32 %v15764_v13, %v13845_v23 }
 0x4ec   : > { %v13844_v26 = vor.u32 %v15765_v35, %v13843_v50  ;;  %v15772_v50 = vld [vmem:[#allocation2 + $0x328] sm:$0xf0] }
 0x4f1   : > { %v5877_v60 = vpop.f32.mrf.mxu0 }
 0x4f2   : > { %v5705_v7 = vpop.f32.mrf.mxu3  ;;  %v5536_v9 = vpop.f32.mrf.mxu2 }
 0x4f4   : > { %5916 = vmatmul.bf16.gmra.mxu0 %v13840_v41 }
 0x4f7   : > { %5747 = vmatmul.bf16.gmra.mxu3 %v13836_v30  ;;  %5578 = vmatmul.bf16.gmra.mxu2 %v13832_v6  ;;  %v13857_v30 = vld [vmem:[#allocation2 + $0x30c] sm:$0xf0]  ;;  %v13864_v6 = vor.u32 %v15769_v27, %v13863_v44 }
 0x4f9   : > { %v5879_v21 = vpop.f32.mrf.mxu0 }
 0x4fa   : > { %v5708_v52 = vpop.f32.mrf.mxu3  ;;  %v5539_v33 = vpop.f32.mrf.mxu2 }
 0x4fb   : > { %v5709_v54 = vadd.f32 %v5708_v52, %v5539_v33  ;;  %v13855_v33 = vld [vmem:[#allocation2 + $0x300] sm:$0xf] }
 0x4fd   : > { %v5878_v59 = vadd.f32 %v5877_v60, %v5709_v54  ;;  %v15768_v54 = vld [vmem:[#allocation2 + $0x308] sm:$0xf0] }
 0x4fe   : > { %v13856_v23 = vor.u32 %v15768_v54, %v13855_v33  ;;  %v13881_v33 = vld [vmem:[#allocation2 + $0x33c] sm:$0xf0] }
 0x4ff   : > { %v17383_v57 = vadd.f32 %v5878_v59, %v17250_v38  ;;  %v13860_v59 = vor.u32 %v15767_v10, %v13857_v30 }
 0x501   : > { %v5882_v42 = vpop.f32.mrf.mxu0 }
 0x502   : > { %v5710_v56 = vpop.f32.mrf.mxu3  ;;  %v5541_v3 = vpop.f32.mrf.mxu2  ;;  %v13875_v42 = vld [vmem:[#allocation2 + $0x320] sm:$0xf] }
 0x503   : > { %v5711_v48 = vadd.f32 %v5710_v56, %v5541_v3 }
 0x504   : > { %5921 = vmatmul.bf16.gmra.mxu0 %v13852_v61 }
 0x505   : > { %v5880_v7 = vadd.f32 %v5879_v21, %v5711_v48 }
 0x507   : > { %5752 = vmatmul.bf16.gmra.mxu3 %v13848_v1  ;;  %v17386_v41 = vadd.f32 %v5880_v7, %v17253_v12  ;;  %5583 = vmatmul.bf16.gmra.mxu2 %v13844_v26  ;;  %v15770_v1 = vld [vmem:[#allocation2 + $0x31c] sm:$0xf]  ;;  %v13876_v26 = vor.u32 %v15772_v50, %v13875_v42 }
 0x509   : > { %v5884_v60 = vpop.f32.mrf.mxu0 }
 0x50a   : > { %v5713_v38 = vpop.f32.mrf.mxu3  ;;  %v5544_v45 = vpop.f32.mrf.mxu2  ;;  %v15771_v60 = vld [vmem:[#allocation2 + $0x320] sm:$0xf0] }
 0x50b   : > { %v13867_v38 = vld [vmem:[#allocation2 + $0x318] sm:$0xf]  ;;  %v13872_v45 = vor.u32 %v15770_v1, %v13869_v63 }
 0x50c   : > { %v13868_v27 = vor.u32 %v15771_v60, %v13867_v38 }
 0x511   : > { %v5887_v52 = vpop.f32.mrf.mxu0 }
 0x512   : > { %v5715_v9 = vpop.f32.mrf.mxu3  ;;  %v5546_v13 = vpop.f32.mrf.mxu2 }
 0x514   : > { %5926 = vmatmul.bf16.gmra.mxu0 %v13864_v6  ;;  %v13887_v6 = vld [vmem:[#allocation2 + $0x338] sm:$0xf] }
 0x517   : > { %5757 = vmatmul.bf16.gmra.mxu3 %v13860_v59  ;;  %5588 = vmatmul.bf16.gmra.mxu2 %v13856_v23  ;;  %v13879_v23 = vld [vmem:[#allocation2 + $0x330] sm:$0xf] }
 0x519   : > { %v17388_v21 = vpop.f32.mrf.mxu0 }
 0x51a   : > { %v5718_v12 = vpop.f32.mrf.mxu3  ;;  %v5549_v56 = vpop.f32.mrf.mxu2 }
 0x51b   : > { %v5719_v61 = vadd.f32 %v5718_v12, %v5549_v56  ;;  %v15774_v12 = vld [vmem:[#allocation2 + $0x338] sm:$0xf0] }
 0x51c   : > { %v13880_v42 = vor.u32 %v15774_v12, %v13879_v23 }
 0x51d   : > { %v5888_v35 = vadd.f32 %v5887_v52, %v5719_v61  ;;  %v15775_v52 = vld [vmem:[#allocation2 + $0x340] sm:$0xf0] }
 0x51e   : > { %v13888_v59 = vor.u32 %v15775_v52, %v13887_v6 }
 0x51f   : > { %v17391_v3 = vadd.f32 %v5888_v35, %v17265_v53  ;;  %v15773_v53 = vld [vmem:[#allocation2 + $0x334] sm:$0xf] }
 0x520   : > { %v13884_v56 = vor.u32 %v15773_v53, %v13881_v33 }
 0x521   : > { %v5892_v7 = vpop.f32.mrf.mxu0 }
 0x522   : > { %v17393_v48 = vpop.f32.mrf.mxu3  ;;  %v17395_v44 = vpop.f32.mrf.mxu2 }
 0x524   : > { %5931 = vmatmul.bf16.gmra.mxu0 %v13876_v26 }
 0x527   : > { %5762 = vmatmul.bf16.gmra.mxu3 %v13872_v45  ;;  %5593 = vmatmul.bf16.gmra.mxu2 %v13868_v27  ;;  %v15902_v45 = vld [vmem:[#allocation9 + $0x18] sm:$0xff] }
 0x528   : > { %8494 = vmatpush.bf16.msra.mxu1 %v15902_v45 }
 0x529   : > { %v5894_v30 = vpop.f32.mrf.mxu0 }
 0x52a   : > { %v5723_v10 = vpop.f32.mrf.mxu3  ;;  %v5554_v9 = vpop.f32.mrf.mxu2 }
 0x531   : > { %v5897_v13 = vpop.f32.mrf.mxu0 }
 0x532   : > { %v5725_v54 = vpop.f32.mrf.mxu3  ;;  %v5556_v61 = vpop.f32.mrf.mxu2 }
 0x534   : > { %5936 = vmatmul.bf16.gmra.mxu0 %v13888_v59 }
 0x537   : > { %5767 = vmatmul.bf16.gmra.mxu3 %v13884_v56  ;;  %5598 = vmatmul.bf16.gmra.mxu2 %v13880_v42 }
 0x539   : > { %v17397_v35 = vpop.f32.mrf.mxu0 }
 0x53a   : > { %v5728_v50 = vpop.f32.mrf.mxu3  ;;  %v5559_v1 = vpop.f32.mrf.mxu2 }
 0x53b   : > { %v5729_v63 = vadd.f32 %v5728_v50, %v5559_v1 }
 0x53d   : > { %v5898_v26 = vadd.f32 %v5897_v13, %v5729_v63 }
 0x53f   : > { %v17400_v7 = vadd.f32 %v5898_v26, %v17271_v46 }
 0x541   : > { %v5902_v60 = vpop.f32.mrf.mxu0 }
 0x542   : > { %v5730_v38 = vpop.f32.mrf.mxu3  ;;  %v5561_v27 = vpop.f32.mrf.mxu2  ;;  %v6107_v60 = vadd.f32 %v17315_v8, %v17311_v55 }
 0x549   : > { %v5904_v30 = vpop.f32.mrf.mxu0 }
 0x54a   : > { %v5733_v10 = vpop.f32.mrf.mxu3  ;;  %v5564_v9 = vpop.f32.mrf.mxu2 }
 0x54b   : > { %v6108_v10 = vadd.f32 %v6107_v60, %v17319_v4  ;;  %v15901_v60 = vld [vmem:[#allocation9 + $0x10] sm:$0xff] }
 0x54c   : > { %8495 = vmatpush.bf16.msra.mxu1 %v15901_v60  ;;  %v5731_v60 = vadd.f32 %v5730_v38, %v5561_v27 }
 0x54d   : > { %v6109_v30 = vadd.f32 %v6108_v10, %v17323_v49 }
 0x54f   : > { %v6110_v9 = vadd.f32 %v6109_v30, %v17327_v18 }
 0x551   : > { %v5907_v52 = vpop.f32.mrf.mxu0 }
 0x552   : > { %v5735_v6 = vpop.f32.mrf.mxu3  ;;  %v5566_v53 = vpop.f32.mrf.mxu2 }
 0x559   : > { %v5909_v54 = vpop.f32.mrf.mxu0 }
 0x55a   : > { %v5738_v33 = vpop.f32.mrf.mxu3  ;;  %v5569_v59 = vpop.f32.mrf.mxu2 }
 0x55b   : > { %v5739_v23 = vadd.f32 %v5738_v33, %v5569_v59 }
 0x55d   : > { %v5908_v12 = vadd.f32 %v5907_v52, %v5739_v23  ;;  %v6111_v52 = vadd.f32 %v6110_v9, %v17331_v25 }
 0x55f   : > { %v17403_v13 = vadd.f32 %v5908_v12, %v17279_v31  ;;  %v6112_v33 = vadd.f32 %v6111_v52, %v17335_v15 }
 0x561   : > { %v5912_v56 = vpop.f32.mrf.mxu0  ;;  %v6113_v23 = vadd.f32 %v6112_v33, %v17339_v40 }
 0x562   : > { %v5740_v46 = vpop.f32.mrf.mxu3  ;;  %v5571_v61 = vpop.f32.mrf.mxu2 }
 0x563   : > { %v6114_v56 = vadd.f32 %v6113_v23, %v17343_v28 }
 0x569   : > { %v5914_v50 = vpop.f32.mrf.mxu0 }
 0x56a   : > { %v5743_v42 = vpop.f32.mrf.mxu3  ;;  %v5574_v1 = vpop.f32.mrf.mxu2 }
 0x571   : > { %v5917_v26 = vpop.f32.mrf.mxu0 }
 0x572   : > { %v5745_v63 = vpop.f32.mrf.mxu3  ;;  %v5576_v45 = vpop.f32.mrf.mxu2 }
 0x573   : > { %v6115_v63 = vadd.f32 %v6114_v56, %v17347_v32 }
 0x575   : > { %v6116_v10 = vadd.f32 %v6115_v63, %v17351_v14 }
 0x577   : > { %v6117_v30 = vadd.f32 %v6116_v10, %v17355_v5 }
 0x579   : > { %v5919_v6 = vpop.f32.mrf.mxu0  ;;  %v6118_v9 = vadd.f32 %v6117_v30, %v17359_v43 }
 0x57a   : > { %v5748_v31 = vpop.f32.mrf.mxu3  ;;  %v5579_v53 = vpop.f32.mrf.mxu2 }
 0x57b   : > { %v5749_v59 = vadd.f32 %v5748_v31, %v5579_v53  ;;  %v6119_v52 = vadd.f32 %v6118_v9, %v17363_v36 }
 0x57d   : > { %v5918_v12 = vadd.f32 %v5917_v26, %v5749_v59  ;;  %v5721_v59 = vadd.f32 %v17393_v48, %v17395_v44  ;;  %v5741_v48 = vadd.f32 %v5740_v46, %v5571_v61 }
 0x57f   : > { %v17415_v42 = vadd.f32 %v5918_v12, %v17287_v0  ;;  %v6120_v0 = vadd.f32 %v6119_v52, %v17367_v62  ;;  %v5890_v63 = vadd.f32 %v17388_v21, %v5721_v59  ;;  %v5910_v38 = vadd.f32 %v5909_v54, %v5741_v48 }
 0x581   : > { %v5922_v1 = vpop.f32.mrf.mxu0  ;;  %v6121_v33 = vadd.f32 %v6120_v0, %v17371_v58 }
 0x582   : > { %v5750_v50 = vpop.f32.mrf.mxu3  ;;  %v5581_v45 = vpop.f32.mrf.mxu2 }
 0x583   : > { %v6122_v23 = vadd.f32 %v6121_v33, %v17375_v19  ;;  %v5751_v27 = vadd.f32 %v5750_v50, %v5581_v45 }
 0x585   : > { %v6123_v1 = vadd.f32 %v6122_v23, %v17379_v22  ;;  %v5920_v46 = vadd.f32 %v5919_v6, %v5751_v27 }
 0x587   : > { %v6124_v30 = vadd.f32 %v6123_v1, %v17383_v57  ;;  %v17448_v54 = vadd.f32 %v5920_v46, %v17290_v17 }
 0x589   : > { %v5924_v26 = vpop.f32.mrf.mxu0  ;;  %v6125_v9 = vadd.f32 %v6124_v30, %v17386_v41 }
 0x58a   : > { %v5753_v31 = vpop.f32.mrf.mxu3  ;;  %v5584_v53 = vpop.f32.mrf.mxu2  ;;  %v5900_v26 = vadd.f32 %v17397_v35, %v5731_v60  ;;  %v17443_v35 = vadd.f32 %v5910_v38, %v17282_v16 }
 0x58b   : > { %v17432_v31 = vadd.f32 %v5890_v63, %v17268_v29  ;;  %v6126_v44 = vadd.f32 %v6125_v9, %v17391_v3 }
 0x58c   : > { %v17438_v21 = vadd.f32 %v5900_v26, %v17274_v24 }
 0x58d   : > { %v6127_v0 = vadd.f32 %v6126_v44, %v17432_v31 }
 0x58f   : > { %v6128_v59 = vadd.f32 %v6127_v0, %v17400_v7 }
 0x591   : > { %v5927_v56 = vpop.f32.mrf.mxu0  ;;  %v6129_v29 = vadd.f32 %v6128_v59, %v17438_v21 }
 0x592   : > { %v5755_v12 = vpop.f32.mrf.mxu3  ;;  %v5586_v10 = vpop.f32.mrf.mxu2 }
 0x593   : > { %v6130_v61 = vadd.f32 %v6129_v29, %v17403_v13 }
 0x595   : > { %v6131_v24 = vadd.f32 %v6130_v61, %v17443_v35 }
 0x597   : > { %v6132_v45 = vadd.f32 %v6131_v24, %v17415_v42 }
 0x599   : > { %v5929_v53 = vpop.f32.mrf.mxu0  ;;  %v6133_v16 = vadd.f32 %v6132_v45, %v17448_v54 }
 0x59a   : > { %v5758_v52 = vpop.f32.mrf.mxu3  ;;  %v5589_v33 = vpop.f32.mrf.mxu2 }
 0x59b   : > { %v5759_v23 = vadd.f32 %v5758_v52, %v5589_v33 }
 0x59d   : > { %v5928_v12 = vadd.f32 %v5927_v56, %v5759_v23 }
 0x59f   : > { %v6003_v60 = vadd.f32 %v5928_v12, %v17295_v2 }
 0x5a1   : > { %v5932_v63 = vpop.f32.mrf.mxu0  ;;  %v6134_v6 = vadd.f32 %v6133_v16, %v6003_v60 }
 0x5a2   : > { %v5760_v1 = vpop.f32.mrf.mxu3  ;;  %v5591_v50 = vpop.f32.mrf.mxu2 }
 0x5a3   : > { %v5761_v10 = vadd.f32 %v5760_v1, %v5591_v50 }
 0x5a5   : > { %v5930_v30 = vadd.f32 %v5929_v53, %v5761_v10 }
 0x5a7   : > { %v6004_v9 = vadd.f32 %v5930_v30, %v17298_v51 }
 0x5a9   : > { %v5934_v26 = vpop.f32.mrf.mxu0  ;;  %v6135_v48 = vadd.f32 %v6134_v6, %v6004_v9 }
 0x5aa   : > { %v5763_v56 = vpop.f32.mrf.mxu3  ;;  %v5594_v44 = vpop.f32.mrf.mxu2 }
 0x5b1   : > { %v5937_v38 = vpop.f32.mrf.mxu0 }
 0x5b2   : > { %v5765_v52 = vpop.f32.mrf.mxu3  ;;  %v5596_v0 = vpop.f32.mrf.mxu2 }
 0x5b9   : > { %v5939_v61 = vpop.f32.mrf.mxu0 }
 0x5ba   : > { %v5768_v17 = vpop.f32.mrf.mxu3  ;;  %v5599_v27 = vpop.f32.mrf.mxu2 }
 0x5bb   : > { %v5769_v33 = vadd.f32 %v5768_v17, %v5599_v27 }
 0x5bd   : > { %v5938_v59 = vadd.f32 %v5937_v38, %v5769_v33 }
 0x5bf   : > { %v6007_v2 = vadd.f32 %v5938_v59, %v17303_v20 }
 0x5c1   : > { %v6136_v29 = vadd.f32 %v6135_v48, %v6007_v2 }
 0x5c2   : > { %v5770_v23 = vpop.f32.mrf.mxu3  ;;  %v5601_v46 = vpop.f32.mrf.mxu2 }
 0x5c3   : > { %v5771_v53 = vadd.f32 %v5770_v23, %v5601_v46 }
 0x5c5   : > { %v5940_v12 = vadd.f32 %v5939_v61, %v5771_v53 }
 0x5c7   : > { %v6008_v51 = vadd.f32 %v5940_v12, %v17306_v11 }
 0x5c9   : > { %v6137_v1 = vadd.f32 %v6136_v29, %v6008_v51 }
 0x5cb   : > { %v6138_v63 = vrot.slane %v6137_v1, 4 }
 0x5cd   : > { %v6139_v24 = vadd.f32 %v6138_v63, %v6137_v1 }
 0x5cf   : > { %v6140_v50 = vrot.slane %v6139_v24, 2 }
 0x5d1   : > { %v6141_v45 = vadd.f32 %v6140_v50, %v6139_v24 }
 0x5d3   : > { %v6142_v10 = vrot.slane %v6141_v45, 1 }
 0x5d5   : > { %v6143_v16 = vadd.f32 %v6142_v10, %v6141_v45 }
 0x5d7   : > { %v17456_v30 = vmul.f32 0.00390625, %v6143_v16 }
 0x5d9   : > { %v17459_v6 = vsub.f32 %v6003_v60, %v17456_v30  ;;  %v17462_v20 = vsub.f32 %v6004_v9, %v17456_v30  ;;  %v17465_v56 = vsub.f32 %v6007_v2, %v17456_v30  ;;  %v17468_v11 = vsub.f32 %v6008_v51, %v17456_v30 }
 0x5da   : > { %v17472_v26 = vsub.f32 %v17311_v55, %v17456_v30  ;;  %v17476_v48 = vsub.f32 %v17315_v8, %v17456_v30  ;;  %v17480_v60 = vsub.f32 %v17319_v4, %v17456_v30  ;;  %v17488_v52 = vsub.f32 %v17323_v49, %v17456_v30 }
 0x5db   : > { %v17492_v55 = vsub.f32 %v17327_v18, %v17456_v30  ;;  %v17498_v4 = vsub.f32 %v17331_v25, %v17456_v30  ;;  %v17504_v49 = vsub.f32 %v17335_v15, %v17456_v30  ;;  %v17510_v33 = vsub.f32 %v17339_v40, %v17456_v30 }
 0x5dc   : > { %v6177_v9 = vmul.f32 %v17472_v26, %v17472_v26  ;;  %v6178_v44 = vmul.f32 %v17476_v48, %v17476_v48  ;;  %v6179_v8 = vmul.f32 %v17480_v60, %v17480_v60  ;;  %v6180_v17 = vmul.f32 %v17488_v52, %v17488_v52 }
 0x5dd   : > { %v6181_v18 = vmul.f32 %v17492_v55, %v17492_v55  ;;  %v6182_v25 = vmul.f32 %v17498_v4, %v17498_v4  ;;  %v17516_v2 = vsub.f32 %v17343_v28, %v17456_v30  ;;  %v6183_v15 = vmul.f32 %v17504_v49, %v17504_v49 }
 0x5de   : > { %v6209_v0 = vadd.f32 %v6178_v44, %v6177_v9  ;;  %v17522_v29 = vsub.f32 %v17347_v32, %v17456_v30  ;;  %v6184_v40 = vmul.f32 %v17510_v33, %v17510_v33  ;;  %v17528_v53 = vsub.f32 %v17351_v14, %v17456_v30 }
 0x5df   : > { %v6185_v28 = vmul.f32 %v17516_v2, %v17516_v2  ;;  %v17534_v12 = vsub.f32 %v17355_v5, %v17456_v30  ;;  %v17540_v1 = vsub.f32 %v17359_v43, %v17456_v30  ;;  %v17546_v24 = vsub.f32 %v17363_v36, %v17456_v30 }
 0x5e0   : > { %v6210_v38 = vadd.f32 %v6209_v0, %v6179_v8  ;;  %v6186_v32 = vmul.f32 %v17522_v29, %v17522_v29  ;;  %v6187_v14 = vmul.f32 %v17528_v53, %v17528_v53  ;;  %v17552_v45 = vsub.f32 %v17367_v62, %v17456_v30 }
 0x5e1   : > { %v6188_v5 = vmul.f32 %v17534_v12, %v17534_v12  ;;  %v6189_v43 = vmul.f32 %v17540_v1, %v17540_v1  ;;  %v17558_v16 = vsub.f32 %v17371_v58, %v17456_v30  ;;  %v6190_v36 = vmul.f32 %v17546_v24, %v17546_v24 }
 0x5e2   : > { %v6211_v27 = vadd.f32 %v6210_v38, %v6180_v17  ;;  %v17564_v44 = vsub.f32 %v17375_v19, %v17456_v30  ;;  %v6191_v62 = vmul.f32 %v17552_v45, %v17552_v45  ;;  %v17570_v0 = vsub.f32 %v17379_v22, %v17456_v30 }
 0x5e3   : > { %v6192_v58 = vmul.f32 %v17558_v16, %v17558_v16  ;;  %v17576_v38 = vsub.f32 %v17383_v57, %v17456_v30 }
 0x5e4   : > { %v6212_v59 = vadd.f32 %v6211_v27, %v6181_v18  ;;  %v6193_v19 = vmul.f32 %v17564_v44, %v17564_v44  ;;  %v17582_v27 = vsub.f32 %v17386_v41, %v17456_v30  ;;  %v6194_v22 = vmul.f32 %v17570_v0, %v17570_v0 }
 0x5e5   : > { %v6195_v57 = vmul.f32 %v17576_v38, %v17576_v38 }
 0x5e6   : > { %v6213_v23 = vadd.f32 %v6212_v59, %v6182_v25  ;;  %v17588_v59 = vsub.f32 %v17391_v3, %v17456_v30  ;;  %v6196_v41 = vmul.f32 %v17582_v27, %v17582_v27 }
 0x5e8   : > { %v6214_v46 = vadd.f32 %v6213_v23, %v6183_v15  ;;  %v17594_v23 = vsub.f32 %v17432_v31, %v17456_v30  ;;  %v6197_v3 = vmul.f32 %v17588_v59, %v17588_v59 }
 0x5ea   : > { %v6215_v61 = vadd.f32 %v6214_v46, %v6184_v40  ;;  %v17600_v46 = vsub.f32 %v17400_v7, %v17456_v30  ;;  %v6198_v31 = vmul.f32 %v17594_v23, %v17594_v23 }
 0x5ec   : > { %v6216_v51 = vadd.f32 %v6215_v61, %v6185_v28  ;;  %v17606_v61 = vsub.f32 %v17438_v21, %v17456_v30  ;;  %v6199_v7 = vmul.f32 %v17600_v46, %v17600_v46 }
 0x5ee   : > { %v6217_v63 = vadd.f32 %v6216_v51, %v6186_v32  ;;  %v17612_v51 = vsub.f32 %v17403_v13, %v17456_v30  ;;  %v6200_v21 = vmul.f32 %v17606_v61, %v17606_v61 }
 0x5f0   : > { %v6218_v50 = vadd.f32 %v6217_v63, %v6187_v14  ;;  %v17618_v63 = vsub.f32 %v17443_v35, %v17456_v30  ;;  %v6201_v13 = vmul.f32 %v17612_v51, %v17612_v51 }
 0x5f2   : > { %v6219_v10 = vadd.f32 %v6218_v50, %v6188_v5  ;;  %v17624_v50 = vsub.f32 %v17415_v42, %v17456_v30  ;;  %v6202_v35 = vmul.f32 %v17618_v63, %v17618_v63 }
 0x5f4   : > { %v6220_v9 = vadd.f32 %v6219_v10, %v6189_v43  ;;  %v17630_v10 = vsub.f32 %v17448_v54, %v17456_v30  ;;  %v6206_v54 = vmul.f32 %v17462_v20, %v17462_v20 }
 0x5f6   : > { %v6221_v8 = vadd.f32 %v6220_v9, %v6190_v36  ;;  %v6203_v9 = vmul.f32 %v17624_v50, %v17624_v50  ;;  %v6204_v42 = vmul.f32 %v17630_v10, %v17630_v10 }
 0x5f8   : > { %v6222_v17 = vadd.f32 %v6221_v8, %v6191_v62 }
 0x5fa   : > { %v6223_v18 = vadd.f32 %v6222_v17, %v6192_v58  ;;  %v6205_v58 = vmul.f32 %v17459_v6, %v17459_v6 }
 0x5fc   : > { %v6224_v25 = vadd.f32 %v6223_v18, %v6193_v19  ;;  %v6207_v19 = vmul.f32 %v17465_v56, %v17465_v56 }
 0x5fe   : > { %v6225_v15 = vadd.f32 %v6224_v25, %v6194_v22  ;;  %v6208_v22 = vmul.f32 %v17468_v11, %v17468_v11 }
 0x600   : > { %v6226_v40 = vadd.f32 %v6225_v15, %v6195_v57 }
 0x602   : > { %v6227_v28 = vadd.f32 %v6226_v40, %v6196_v41 }
 0x604   : > { %v6228_v32 = vadd.f32 %v6227_v28, %v6197_v3 }
 0x606   : > { %v6229_v14 = vadd.f32 %v6228_v32, %v6198_v31 }
 0x608   : > { %v6230_v5 = vadd.f32 %v6229_v14, %v6199_v7 }
 0x60a   : > { %v6231_v43 = vadd.f32 %v6230_v5, %v6200_v21 }
 0x60c   : > { %v6232_v36 = vadd.f32 %v6231_v43, %v6201_v13 }
 0x60e   : > { %v6233_v62 = vadd.f32 %v6232_v36, %v6202_v35 }
 0x610   : > { %v6234_v8 = vadd.f32 %v6233_v62, %v6203_v9 }
 0x612   : > { %v6235_v17 = vadd.f32 %v6234_v8, %v6204_v42 }
 0x614   : > { %v6236_v30 = vadd.f32 %v6235_v17, %v6205_v58 }
 0x616   : > { %v6237_v18 = vadd.f32 %v6236_v30, %v6206_v54 }
 0x618   : > { %v6238_v25 = vadd.f32 %v6237_v18, %v6207_v19 }
 0x61a   : > { %v6239_v57 = vadd.f32 %v6238_v25, %v6208_v22 }
 0x61c   : > { %v6240_v15 = vrot.slane %v6239_v57, 4 }
 0x61e   : > { %v6241_v41 = vadd.f32 %v6240_v15, %v6239_v57 }
 0x620   : > { %v6242_v40 = vrot.slane %v6241_v41, 2 }
 0x622   : > { %v6243_v3 = vadd.f32 %v6242_v40, %v6241_v41 }
 0x624   : > { %v6244_v28 = vrot.slane %v6243_v3, 1 }
 0x626   : > { %v6245_v31 = vadd.f32 %v6244_v28, %v6243_v3 }
 0x628   : > { %v6246_v32 = vmul.f32 0.00390625, %v6245_v31 }
 0x62a   : > { %v6247_v7 = vadd.f32 1e-05, %v6246_v32 }
 0x62c   : > { %16254 = vrsqrt.f32 %v6247_v7  ;;  %vm6254_vm7 = vweird.f32 %v6247_v7 }
 0x632   : > { %v16255_v14 = vpop.eup %16254 }
 0x633   : > { %v6249_v21 = vmul.f32 %v16255_v14, %v6247_v7  ;;  %vm6255_vm6 = vweird.f32 %v16255_v14 }
 0x634   : > { %vm6256_vm8 = vmor %vm6254_vm7, %vm6255_vm6 }
 0x635   : > { %v6250_v5 = vmul.f32 %v16255_v14, %v6249_v21 }
 0x637   : > { %v6251_v13 = vmul.f32 0.5, %v6250_v5 }
 0x639   : > { %v6252_v43 = vsub.f32 1.5, %v6251_v13 }
 0x63b   : > { %v6253_v35 = vmul.f32 %v16255_v14, %v6252_v43 }
 0x63d   : > { %v17646_v36 = vsel %vm6256_vm8, %v16255_v14, %v6253_v35 }
 0x63e   : > { %v6288_v9 = vmul.f32 %v17646_v36, %v17465_v56  ;;  %v6289_v62 = vmul.f32 %v17646_v36, %v17468_v11  ;;  %v17654_v19 = vmul.f32 %v17646_v36, %v17472_v26  ;;  %v17658_v57 = vmul.f32 %v17646_v36, %v17476_v48 }
 0x63f   : > { %v17662_v56 = vmul.f32 %v17646_v36, %v17480_v60  ;;  %v17666_v11 = vmul.f32 %v17646_v36, %v17488_v52  ;;  %v17670_v15 = vmul.f32 %v17646_v36, %v17492_v55  ;;  %v17674_v26 = vmul.f32 %v17646_v36, %v17498_v4 }
 0x640   : > { %v6320_v42 = vmax.f32 %v6288_v9, 0.0  ;;  %v6321_v8 = vmax.f32 %v6289_v62, 0.0  ;;  %v17678_v60 = vmul.f32 %v17646_v36, %v17504_v49  ;;  %v17682_v52 = vmul.f32 %v17646_v36, %v17510_v33 }
 0x641   : > { %v17686_v55 = vmul.f32 %v17646_v36, %v17516_v2  ;;  %v17690_v4 = vmul.f32 %v17646_v36, %v17522_v29  ;;  %v17694_v49 = vmul.f32 %v17646_v36, %v17528_v53  ;;  %v17700_v2 = vmul.f32 %v17646_v36, %v17534_v12 }
 0x642   : > { %v6352_v58 = vpack.c.bf16 %v6320_v42, %v6320_v42  ;;  %v6353_v17 = vpack.c.bf16 %v6321_v8, %v6321_v8  ;;  %v17704_v29 = vmul.f32 %v17646_v36, %v17540_v1  ;;  %v17711_v9 = vmul.f32 %v17646_v36, %v17546_v24 }
 0x643   : > { %v17719_v24 = vmul.f32 %v17646_v36, %v17552_v45  ;;  %v17735_v45 = vmul.f32 %v17646_v36, %v17576_v38  ;;  %v17753_v38 = vmul.f32 %v17646_v36, %v17606_v61  ;;  %v17775_v61 = vmul.f32 %v17646_v36, %v17462_v20 }
 0x644   : > { %v6385_v54 = vunpack.c.l.b16 %v6352_v58  ;;  %v6497_v30 = vunpack.c.l.b16 %v6353_v17  ;;  %v6300_v20 = vmax.f32 %v17694_v49, 0.0 }
 0x646   : > { %v6401_v18 = vpack.c.b16 %v6385_v54, %v6385_v54  ;;  %v6513_v22 = vpack.c.b16 %v6497_v30, %v6385_v54  ;;  %v6673_v25 = vpack.c.b16 %v6497_v30, %v6497_v30 }
 0x648   : > { %v6620_v41 = vshrl.u32 %v6513_v22, 16  ;;  %v6623_v40 = vshll.u32 %v6513_v22, 16  ;;  %v6735_v48 = vshll.u32 %v6673_v25, 16  ;;  %7367 = vst [vmem:[#allocation2 + $0x310] sm:$0xf] %v6673_v25  ;;  %v7129_v3 = vrot.slane %v6673_v25, 3 }
 0x649   : > { %7366 = vst [vmem:[#allocation2 + $0x304] sm:$0xf] %v6401_v18  ;;  %v6448_v7 = vshrl.u32 %v6401_v18, 16 }
 0x64a   : > { %v6622_v28 = vrot.slane %v6620_v41, 7  ;;  %v6737_v31 = vrot.slane %v6735_v48, 3  ;;  %v7408_v32 = vrot.slane %v6623_v40, 1  ;;  %v7161_v33 = vsel %vm16585_vm2, %v7129_v3, 0 }
 0x64b   : > { %v7208_v5 = vunpack.c.l.b16 %v7161_v33  ;;  %v7209_v13 = vunpack.c.h.b16 %v7161_v33  ;;  %v7441_v35 = vrot.slane %v6735_v48, 4  ;;  %v17723_v48 = vmul.f32 %v17646_v36, %v17558_v16 }
 0x64c   : > { %v6625_v14 = vor.u32 %v6623_v40, %v6622_v28  ;;  %v6785_v21 = vsel %vm16585_vm2, %v6622_v28, %v6737_v31  ;;  %v7409_v43 = vor.u32 %v7408_v32, %v6620_v41  ;;  %v17727_v28 = vmul.f32 %v17646_v36, %v17564_v44 }
 0x64d   : > { %v6817_v53 = vsel %vm689_vm1, %v6785_v21, 0  ;;  %v7240_v42 = vpack.c.b16 %v7208_v5, %v7208_v5  ;;  %v7241_v17 = vpack.c.b16 %v7209_v13, %v7209_v13  ;;  %v17731_v31 = vmul.f32 %v17646_v36, %v17570_v0 }
 0x64e   : > { %v6769_v12 = vsel %vm16585_vm2, %v6448_v7, %v6625_v14  ;;  %v6912_v62 = vunpack.c.l.b16 %v6817_v53  ;;  %v6913_v1 = vunpack.c.h.b16 %v6817_v53  ;;  %v7473_v54 = vsel %vm16979_vm5, %v7409_v43, %v7441_v35 }
 0x64f   : > { %v6910_v8 = vunpack.c.l.b16 %v6769_v12  ;;  %v6911_v58 = vunpack.c.h.b16 %v6769_v12  ;;  %7368 = vst [vmem:[#allocation2 + $0x31c] sm:$0xf] %v7240_v42  ;;  %v7520_v18 = vunpack.c.l.b16 %v7473_v54  ;;  %v7521_v22 = vunpack.c.h.b16 %v7473_v54 }
 0x650   : > { %v6976_v30 = vpack.c.b16 %v6912_v62, %v6912_v62  ;;  %v6977_v40 = vpack.c.b16 %v6913_v1, %v6913_v1  ;;  %7369 = vst [vmem:[#allocation2 + $0x328] sm:$0xf] %v7241_v17  ;;  %v17739_v16 = vmul.f32 %v17646_v36, %v17582_v27  ;;  %v17743_v7 = vmul.f32 %v17646_v36, %v17588_v59 }
 0x651   : > { %v6974_v25 = vpack.c.b16 %v6910_v8, %v6910_v8  ;;  %v6975_v41 = vpack.c.b16 %v6911_v58, %v6911_v58  ;;  %v7552_v3 = vpack.c.b16 %v7520_v18, %v7520_v18  ;;  %v7553_v32 = vpack.c.b16 %v7521_v22, %v7521_v22 }
 0x652   : > { %7104 = vst [vmem:[#allocation2 + $0x318] sm:$0xf] %v6976_v30  ;;  %v17747_v44 = vmul.f32 %v17646_v36, %v17594_v23  ;;  %v6280_v0 = vmul.f32 %v17646_v36, %v17600_v46  ;;  %v6282_v27 = vmul.f32 %v17646_v36, %v17612_v51  ;;  %v17759_v33 = vmul.f32 %v17646_v36, %v17618_v63 }
 0x653   : > { %7102 = vst [vmem:[#allocation2 + $0x300] sm:$0xf] %v6974_v25  ;;  %v17763_v59 = vmul.f32 %v17646_v36, %v17624_v50  ;;  %v17767_v23 = vmul.f32 %v17646_v36, %v17630_v10  ;;  %v17771_v46 = vmul.f32 %v17646_v36, %v17459_v6  ;;  %v6290_v51 = vmax.f32 %v17654_v19, 0.0 }
 0x654   : > { %7103 = vst [vmem:[#allocation2 + $0x30c] sm:$0xf] %v6975_v41  ;;  %v6292_v63 = vmax.f32 %v17662_v56, 0.0  ;;  %v6294_v50 = vmax.f32 %v17670_v15, 0.0  ;;  %v6295_v14 = vmax.f32 %v17674_v26, 0.0  ;;  %v6296_v10 = vmax.f32 %v17678_v60, 0.0 }
 0x655   : > { %7105 = vst [vmem:[#allocation2 + $0x324] sm:$0xf] %v6977_v40  ;;  %v6297_v21 = vmax.f32 %v17682_v52, 0.0  ;;  %v6298_v6 = vmax.f32 %v17686_v55, 0.0  ;;  %v6299_v5 = vmax.f32 %v17690_v4, 0.0  ;;  %v6301_v36 = vmax.f32 %v17700_v2, 0.0 }
 0x656   : > { %7646 = vst [vmem:[#allocation2 + $0x308] sm:$0xf] %v7552_v3  ;;  %v6302_v19 = vmax.f32 %v17704_v29, 0.0  ;;  %v6303_v56 = vmax.f32 %v17711_v9, 0.0  ;;  %v6304_v15 = vmax.f32 %v17719_v24, 0.0  ;;  %v6305_v26 = vmax.f32 %v17723_v48, 0.0 }
 0x657   : > { %7647 = vst [vmem:[#allocation2 + $0x314] sm:$0xf] %v7553_v32  ;;  %v6306_v60 = vmax.f32 %v17727_v28, 0.0  ;;  %v6307_v52 = vmax.f32 %v17731_v31, 0.0  ;;  %v6308_v55 = vmax.f32 %v17735_v45, 0.0  ;;  %v6309_v4 = vmax.f32 %v17739_v16, 0.0 }
 0x658   : > { %v6310_v49 = vmax.f32 %v17743_v7, 0.0  ;;  %v6311_v2 = vmax.f32 %v17747_v44, 0.0  ;;  %v6312_v13 = vmax.f32 %v6280_v0, 0.0  ;;  %v6322_v29 = vpack.c.bf16 %v6290_v51, %v6290_v51 }
 0x659   : > { %v6324_v53 = vpack.c.bf16 %v6292_v63, %v6292_v63  ;;  %v6326_v43 = vpack.c.bf16 %v6294_v50, %v6294_v50  ;;  %v6313_v35 = vmax.f32 %v17753_v38, 0.0  ;;  %v6314_v9 = vmax.f32 %v6282_v27, 0.0 }
 0x65a   : > { %v6315_v12 = vmax.f32 %v17759_v33, 0.0  ;;  %v6328_v62 = vpack.c.bf16 %v6296_v10, %v6296_v10  ;;  %v6316_v1 = vmax.f32 %v17763_v59, 0.0  ;;  %v6317_v42 = vmax.f32 %v17767_v23, 0.0 }
 0x65b   : > { %v6318_v8 = vmax.f32 %v17771_v46, 0.0  ;;  %v6330_v58 = vpack.c.bf16 %v6298_v6, %v6298_v6  ;;  %v6319_v17 = vmax.f32 %v17775_v61, 0.0  ;;  %v6327_v54 = vpack.c.bf16 %v6295_v14, %v6295_v14 }
 0x65c   : > { %v6329_v30 = vpack.c.bf16 %v6297_v21, %v6297_v21  ;;  %v6332_v18 = vpack.c.bf16 %v6300_v20, %v6300_v20  ;;  %v6334_v22 = vpack.c.bf16 %v6302_v19, %v6302_v19  ;;  %v17803_v24 = vunpack.c.l.b16 %v6322_v29 }
 0x65d   : > { %v17805_v25 = vunpack.c.l.b16 %v6324_v53  ;;  %v17807_v41 = vunpack.c.l.b16 %v6326_v43  ;;  %v6331_v40 = vpack.c.bf16 %v6299_v5, %v6299_v5  ;;  %v6333_v48 = vpack.c.bf16 %v6301_v36, %v6301_v36 }
 0x65e   : > { %v6336_v3 = vpack.c.bf16 %v6304_v15, %v6304_v15  ;;  %v17809_v28 = vunpack.c.l.b16 %v6328_v62  ;;  %v6335_v31 = vpack.c.bf16 %v6303_v56, %v6303_v56  ;;  %v6338_v45 = vpack.c.bf16 %v6306_v60, %v6306_v60 }
 0x65f   : > { %v6340_v32 = vpack.c.bf16 %v6308_v55, %v6308_v55  ;;  %v17811_v16 = vunpack.c.l.b16 %v6330_v58  ;;  %v6342_v7 = vpack.c.bf16 %v6310_v49, %v6310_v49  ;;  %v6344_v44 = vpack.c.bf16 %v6312_v13, %v6312_v13 }
 0x660   : > { %v6346_v0 = vpack.c.bf16 %v6314_v9, %v6314_v9  ;;  %v6375_v38 = vunpack.c.l.b16 %v6332_v18  ;;  %v6376_v27 = vunpack.c.l.b16 %v6334_v22  ;;  %v17815_v33 = vpack.c.b16 %v17803_v24, %v17803_v24 }
 0x661   : > { %v17819_v59 = vpack.c.b16 %v17805_v25, %v17805_v25  ;;  %v17823_v23 = vpack.c.b16 %v17807_v41, %v17807_v41  ;;  %v6337_v46 = vpack.c.bf16 %v6305_v26, %v6305_v26  ;;  %v6348_v61 = vpack.c.bf16 %v6316_v1, %v6316_v1 }
 0x662   : > { %v6377_v51 = vunpack.c.l.b16 %v6336_v3  ;;  %v17827_v63 = vpack.c.b16 %v17809_v28, %v17809_v28  ;;  %v6350_v50 = vpack.c.bf16 %v6318_v8, %v6318_v8  ;;  %v6378_v14 = vunpack.c.l.b16 %v6338_v45  ;;  %7306 = vst [vmem:[#allocation2 + $0x34] sm:$0xf] %v17815_v33 }
 0x663   : > { %v6379_v10 = vunpack.c.l.b16 %v6340_v32  ;;  %v17831_v21 = vpack.c.b16 %v17811_v16, %v17811_v16  ;;  %v6380_v6 = vunpack.c.l.b16 %v6342_v7  ;;  %v6381_v5 = vunpack.c.l.b16 %v6344_v44  ;;  %7310 = vst [vmem:[#allocation2 + $0x64] sm:$0xf] %v17819_v59 }
 0x664   : > { %v6382_v20 = vunpack.c.l.b16 %v6346_v0  ;;  %v17834_v36 = vpack.c.b16 %v6375_v38, %v6375_v38  ;;  %v6339_v19 = vpack.c.bf16 %v6307_v52, %v6307_v52  ;;  %v6341_v56 = vpack.c.bf16 %v6309_v4, %v6309_v4  ;;  %7314 = vst [vmem:[#allocation2 + $0x94] sm:$0xf] %v17823_v23 }
 0x665   : > { %v6343_v15 = vpack.c.bf16 %v6311_v2, %v6311_v2  ;;  %v17837_v26 = vpack.c.b16 %v6376_v27, %v6376_v27  ;;  %v6345_v60 = vpack.c.bf16 %v6313_v35, %v6313_v35  ;;  %v6347_v55 = vpack.c.bf16 %v6315_v12, %v6315_v12  ;;  %7318 = vst [vmem:[#allocation2 + $0xc4] sm:$0xf] %v17827_v63 }
 0x666   : > { %v6349_v49 = vpack.c.bf16 %v6317_v42, %v6317_v42  ;;  %v17840_v13 = vpack.c.b16 %v6377_v51, %v6377_v51  ;;  %v6351_v29 = vpack.c.bf16 %v6319_v17, %v6319_v17  ;;  %v6383_v53 = vunpack.c.l.b16 %v6348_v61  ;;  %7322 = vst [vmem:[#allocation2 + $0xf4] sm:$0xf] %v17831_v21 }
 0x667   : > { %v6384_v43 = vunpack.c.l.b16 %v6350_v50  ;;  %v17843_v9 = vpack.c.b16 %v6378_v14, %v6378_v14  ;;  %v17846_v52 = vpack.c.b16 %v6379_v10, %v6379_v10  ;;  %v17848_v4 = vpack.c.b16 %v6380_v6, %v6380_v6  ;;  %7326 = vst [vmem:[#allocation2 + $0x124] sm:$0xf] %v17834_v36 }
 0x668   : > { %v17850_v2 = vpack.c.b16 %v6381_v5, %v6381_v5  ;;  %v17852_v35 = vpack.c.b16 %v6382_v20, %v6382_v20  ;;  %v6484_v12 = vunpack.c.l.b16 %v6327_v54  ;;  %v6485_v62 = vunpack.c.l.b16 %v6329_v30  ;;  %7330 = vst [vmem:[#allocation2 + $0x154] sm:$0xf] %v17837_v26 }
 0x669   : > { %v6486_v1 = vunpack.c.l.b16 %v6331_v40  ;;  %v6487_v42 = vunpack.c.l.b16 %v6333_v48  ;;  %v6488_v8 = vunpack.c.l.b16 %v6335_v31  ;;  %v6489_v58 = vunpack.c.l.b16 %v6337_v46  ;;  %7334 = vst [vmem:[#allocation2 + $0x184] sm:$0xf] %v17840_v13 }
 0x66a   : > { %v6490_v17 = vunpack.c.l.b16 %v6339_v19  ;;  %v6491_v18 = vunpack.c.l.b16 %v6341_v56  ;;  %v6492_v22 = vunpack.c.l.b16 %v6343_v15  ;;  %v6493_v3 = vunpack.c.l.b16 %v6345_v60  ;;  %7338 = vst [vmem:[#allocation2 + $0x1b4] sm:$0xf] %v17843_v9 }
 0x66b   : > { %v6494_v45 = vunpack.c.l.b16 %v6347_v55  ;;  %v6495_v32 = vunpack.c.l.b16 %v6349_v49  ;;  %v17858_v7 = vpack.c.b16 %v6383_v53, %v6383_v53  ;;  %v17860_v54 = vpack.c.b16 %v6384_v43, %v6384_v43  ;;  %7342 = vst [vmem:[#allocation2 + $0x1e4] sm:$0xf] %v17846_v52 }
 0x66c   : > { %v17862_v30 = vunpack.c.l.b16 %v6351_v29  ;;  %v17865_v40 = vpack.c.b16 %v6484_v12, %v17807_v41  ;;  %v17869_v48 = vpack.c.b16 %v6485_v62, %v17809_v28  ;;  %v17872_v31 = vpack.c.b16 %v6486_v1, %v17811_v16  ;;  %7346 = vst [vmem:[#allocation2 + $0x214] sm:$0xf] %v17848_v4 }
 0x66d   : > { %v17874_v44 = vpack.c.b16 %v6487_v42, %v6375_v38  ;;  %v17876_v0 = vpack.c.b16 %v6488_v8, %v6376_v27  ;;  %v17879_v46 = vpack.c.b16 %v6489_v58, %v6377_v51  ;;  %v17881_v61 = vpack.c.b16 %v6490_v17, %v6378_v14  ;;  %7350 = vst [vmem:[#allocation2 + $0x244] sm:$0xf] %v17850_v2 }
 0x66e   : > { %v17883_v41 = vpack.c.b16 %v6491_v18, %v6379_v10  ;;  %v17885_v50 = vpack.c.b16 %v6492_v22, %v6380_v6  ;;  %v17888_v28 = vpack.c.b16 %v6493_v3, %v6381_v5  ;;  %v17890_v16 = vpack.c.b16 %v6494_v45, %v6382_v20  ;;  %7354 = vst [vmem:[#allocation2 + $0x274] sm:$0xf] %v17852_v35 }
 0x66f   : > { %v17892_v38 = vpack.c.b16 %v6495_v32, %v6383_v53  ;;  %v17895_v27 = vpack.c.b16 %v17862_v30, %v6384_v43  ;;  %7358 = vst [vmem:[#allocation2 + $0x2a4] sm:$0xf] %v17858_v7  ;;  %v6291_v51 = vmax.f32 %v17658_v57, 0.0  ;;  %v6293_v14 = vmax.f32 %v17666_v11, 0.0 }
 0x670   : > { %19590 = vst [vmem:[#allocation15_spill] sm:$0xff] %v17883_v41  ;;  %v17908_v15 = vpack.c.b16 %v6484_v12, %v6484_v12  ;;  %v17910_v60 = vpack.c.b16 %v6485_v62, %v6485_v62  ;;  %v17912_v57 = vpack.c.b16 %v6486_v1, %v6486_v1  ;;  %v19450_v11 = vshrl.u32 %v17888_v28, 16 }
 0x671   : > { %19591 = vst [vmem:[#allocation17_spill] sm:$0xff] %v17885_v50  ;;  %v6323_v10 = vpack.c.bf16 %v6291_v51, %v6291_v51  ;;  %v6325_v6 = vpack.c.bf16 %v6293_v14, %v6293_v14  ;;  %v17916_v55 = vpack.c.b16 %v6487_v42, %v6487_v42  ;;  %v19449_v49 = vshrl.u32 %v17890_v16, 16 }
 0x672   : > { %19592 = vst [vmem:[#allocation14_spill] sm:$0xff] %v17895_v27  ;;  %v19447_v29 = vshrl.u32 %v17892_v38, 16  ;;  %v19448_v53 = vshrl.u32 %v17895_v27, 16  ;;  %v17922_v43 = vpack.c.b16 %v6488_v8, %v6488_v8  ;;  %v17925_v12 = vpack.c.b16 %v6489_v58, %v6489_v58 }
 0x673   : > { %7362 = vst [vmem:[#allocation2 + $0x2d4] sm:$0xf] %v17860_v54  ;;  %v6482_v5 = vunpack.c.l.b16 %v6323_v10  ;;  %v6483_v20 = vunpack.c.l.b16 %v6325_v6  ;;  %v17928_v62 = vpack.c.b16 %v6490_v17, %v6490_v17  ;;  %v17933_v1 = vrot.slane %v19450_v11, 7 }
 0x674   : > { %7370 = vst [vmem:[#allocation2 + $0x4] sm:$0xf] %v17819_v59  ;;  %v17935_v42 = vpack.c.b16 %v6491_v18, %v6491_v18  ;;  %v17937_v51 = vpack.c.b16 %v6494_v45, %v6494_v45  ;;  %v17939_v8 = vpack.c.b16 %v6495_v32, %v6495_v32  ;;  %v17944_v58 = vrot.slane %v19449_v49, 7 }
 0x675   : > { %7374 = vst [vmem:[#allocation2 + $0x334] sm:$0xf] %v17860_v54  ;;  %v17904_v19 = vpack.c.b16 %v6482_v5, %v6482_v5  ;;  %v17906_v56 = vpack.c.b16 %v6483_v20, %v6483_v20  ;;  %v17948_v17 = vrot.slane %v19447_v29, 7  ;;  %v17952_v14 = vrot.slane %v19448_v53, 7 }
 0x676   : > { %7315 = vst [vmem:[#allocation2 + $0xa0] sm:$0xf] %v17908_v15  ;;  %v17954_v18 = vpack.c.b16 %v6492_v22, %v6492_v22  ;;  %v19452_v45 = vshll.u32 %v17888_v28, 16  ;;  %v17958_v32 = vpack.c.b16 %v6493_v3, %v6493_v3  ;;  %v19453_v10 = vshll.u32 %v17890_v16, 16 }
 0x677   : > { %7307 = vst [vmem:[#allocation2 + $0x40] sm:$0xf] %v17904_v19  ;;  %v19454_v6 = vshll.u32 %v17892_v38, 16  ;;  %v19455_v29 = vshll.u32 %v17895_v27, 16  ;;  %v6436_v49 = vshrl.u32 %v17850_v2, 16  ;;  %v6442_v53 = vshrl.u32 %v17858_v7, 16 }
 0x678   : > { %7311 = vst [vmem:[#allocation2 + $0x70] sm:$0xf] %v17906_v56  ;;  %v6597_v22 = vor.u32 %v19452_v45, %v17933_v1  ;;  %v6604_v3 = vor.u32 %v19453_v10, %v17944_v58  ;;  %v17982_v45 = vpack.c.b16 %v17862_v30, %v17862_v30  ;;  %v6439_v10 = vshrl.u32 %v17852_v35, 16 }
 0x679   : > { %7319 = vst [vmem:[#allocation2 + $0xd0] sm:$0xf] %v17910_v60  ;;  %v6611_v11 = vor.u32 %v19454_v6, %v17948_v17  ;;  %v6618_v39 = vor.u32 %v19455_v29, %v17952_v14  ;;  %v6445_v6 = vshrl.u32 %v17860_v54, 16  ;;  %v17992_v29 = vpack.c.b16 %v6482_v5, %v17803_v24 }
 0x67a   : > { %7323 = vst [vmem:[#allocation2 + $0x100] sm:$0xf] %v17912_v57  ;;  %v19598_v30 = vshll.u32 %v17937_v51, 16  ;;  %v18005_v2 = vsel %vm16585_vm2, %v6436_v49, %v6597_v22  ;;  %v18009_v35 = vsel %vm16585_vm2, %v6439_v10, %v6604_v3  ;;  %v18021_v54 = vpack.c.b16 %v6483_v20, %v17805_v25 }
 0x67b   : > { %19593 = vst [vmem:[#allocation16_spill] sm:$0xff] %v17939_v8  ;;  %v18013_v24 = vsel %vm16585_vm2, %v6442_v53, %v6611_v11  ;;  %v18017_v7 = vsel %vm16585_vm2, %v6445_v6, %v6618_v39  ;;  %v19460_v5 = vshrl.u32 %v17992_v29, 16  ;;  %v19462_v25 = vshll.u32 %v17904_v19, 16 }
 0x67c   : > { %7327 = vst [vmem:[#allocation2 + $0x130] sm:$0xf] %v17916_v55  ;;  %v17996_v47 = vrot.slane %v19598_v30, 3  ;;  %v19461_v49 = vshrl.u32 %v18021_v54, 16  ;;  %v19465_v53 = vshll.u32 %v17906_v56, 16  ;;  %v19466_v3 = vshll.u32 %v18021_v54, 16 }
 0x67d   : > { %19594 = vst [vmem:[#allocation18_spill] sm:$0xff] %v17944_v58  ;;  %v6517_v20 = vrot.slane %v19460_v5, 7  ;;  %v6677_v6 = vrot.slane %v19462_v25, 3  ;;  %v6403_v39 = vshrl.u32 %v17815_v33, 16  ;;  %v19469_v5 = vshrl.u32 %v17865_v40, 16 }
 0x67e   : > { %19595 = vst [vmem:[#allocation20_spill] sm:$0xff] %v17948_v17  ;;  %v6524_v10 = vrot.slane %v19461_v49, 7  ;;  %v6681_v30 = vrot.slane %v19465_v53, 3  ;;  %v6406_v25 = vshrl.u32 %v17819_v59, 16 }
 0x67f   : > { %19596 = vst [vmem:[#allocation23_spill] sm:$0xff] %v17952_v14  ;;  %v19600_v14 = vshll.u32 %v17939_v8, 16  ;;  %v6770_v49 = vsel %vm16585_vm2, %v6517_v20, %v6677_v6  ;;  %v6531_v33 = vrot.slane %v19469_v5, 7 }
 0x680   : > { %7331 = vst [vmem:[#allocation2 + $0x160] sm:$0xf] %v17922_v43  ;;  %v6527_v11 = vor.u32 %v19466_v3, %v6524_v10  ;;  %v6787_v53 = vsel %vm689_vm1, %v6770_v49, 0  ;;  %v6409_v49 = vshrl.u32 %v17823_v23, 16 }
 0x681   : > { %7335 = vst [vmem:[#allocation2 + $0x190] sm:$0xf] %v17925_v12  ;;  %v18000_v34 = vrot.slane %v19600_v14, 3  ;;  %v19463_v14 = vshll.u32 %v17992_v29, 16 }
 0x682   : > { %7339 = vst [vmem:[#allocation2 + $0x1c0] sm:$0xf] %v17928_v62  ;;  %v6755_v3 = vsel %vm16585_vm2, %v6406_v25, %v6527_v11  ;;  %v19481_v25 = vshll.u32 %v17910_v60, 16 }
 0x683   : > { %7343 = vst [vmem:[#allocation2 + $0x1f0] sm:$0xf] %v17935_v42  ;;  %v6520_v22 = vor.u32 %v19463_v14, %v6517_v20  ;;  %v19480_v20 = vshll.u32 %v17908_v15, 16 }
 0x684   : > { %19597 = vst [vmem:[#allocation24_spill] sm:$0xff] %v17982_v45 }
 0x685   : > { %7347 = vst [vmem:[#allocation2 + $0x220] sm:$0xf] %v17954_v18  ;;  %v6754_v14 = vsel %vm16585_vm2, %v6403_v39, %v6520_v22  ;;  %v6852_v22 = vunpack.c.l.b16 %v6787_v53 }
 0x686   : > { %7351 = vst [vmem:[#allocation2 + $0x250] sm:$0xf] %v17958_v32  ;;  %v6850_v6 = vunpack.c.l.b16 %v6754_v14  ;;  %v6851_v59 = vunpack.c.h.b16 %v6754_v14  ;;  %v6685_v14 = vrot.slane %v19480_v20, 3  ;;  %v6689_v20 = vrot.slane %v19481_v25, 3 }
 0x687   : > { %7355 = vst [vmem:[#allocation2 + $0x280] sm:$0xf] %v17937_v51  ;;  %v6916_v23 = vpack.c.b16 %v6852_v22, %v6852_v22  ;;  %v19605_v22 = vshrl.u32 %v17872_v31, 16 }
 0x688   : > { %19599 = vst [vmem:[#allocation25_spill] sm:$0xff] %v17996_v47  ;;  %v6855_v47 = vunpack.c.h.b16 %v6755_v3  ;;  %v6914_v17 = vpack.c.b16 %v6850_v6, %v6850_v6  ;;  %v19482_v6 = vshll.u32 %v17912_v57, 16 }
 0x689   : > { %19601 = vst [vmem:[#allocation26_spill] sm:$0xff] %v18000_v34  ;;  %v19479_v34 = vshll.u32 %v17865_v40, 16 }
 0x68a   : > { %7359 = vst [vmem:[#allocation2 + $0x2b0] sm:$0xf] %v17939_v8 }
 0x68b   : > { %19602 = vst [vmem:[#allocation27_spill] sm:$0xff] %v18009_v35  ;;  %v6534_v5 = vor.u32 %v19479_v34, %v6531_v33  ;;  %v6915_v35 = vpack.c.b16 %v6851_v59, %v6851_v59  ;;  %v19483_v34 = vshll.u32 %v17869_v48, 16  ;;  %v6772_v59 = vsel %vm16585_vm2, %v6531_v33, %v6685_v14 }
 0x68c   : > { %19603 = vst [vmem:[#allocation28_spill] sm:$0xff] %v18013_v24  ;;  %v6771_v24 = vsel %vm16585_vm2, %v6524_v10, %v6681_v30  ;;  %v6853_v10 = vunpack.c.h.b16 %v6787_v53  ;;  %v6854_v30 = vunpack.c.l.b16 %v6755_v3  ;;  %v6919_v3 = vpack.c.b16 %v6855_v47, %v6855_v47 }
 0x68d   : > { %7363 = vst [vmem:[#allocation2 + $0x2e0] sm:$0xf] %v17982_v45  ;;  %v6789_v39 = vsel %vm689_vm1, %v6771_v24, 0  ;;  %v19604_v24 = vshrl.u32 %v17869_v48, 16  ;;  %v6756_v11 = vsel %vm16585_vm2, %v6409_v49, %v6534_v5  ;;  %v19485_v5 = vshrl.u32 %v17874_v44, 16 }
 0x68e   : > { %7371 = vst [vmem:[#allocation2 + $0x10] sm:$0xf] %v17906_v56  ;;  %v6856_v58 = vunpack.c.l.b16 %v6789_v39  ;;  %v6917_v27 = vpack.c.b16 %v6853_v10, %v6853_v10  ;;  %v6918_v8 = vpack.c.b16 %v6854_v30, %v6854_v30  ;;  %v6545_v10 = vrot.slane %v19605_v22, 7 }
 0x68f   : > { %7375 = vst [vmem:[#allocation2 + $0x340] sm:$0xf] %v17982_v45  ;;  %v6538_v53 = vrot.slane %v19604_v24, 7  ;;  %v6857_v45 = vunpack.c.h.b16 %v6789_v39  ;;  %v6415_v49 = vshrl.u32 %v17831_v21, 16  ;;  %v6418_v30 = vshrl.u32 %v17834_v36, 16 }
 0x690   : > { %7042 = vst [vmem:[#allocation2 + $0x30] sm:$0xf] %v6914_v17  ;;  %v6920_v39 = vpack.c.b16 %v6856_v58, %v6856_v58  ;;  %v6858_v24 = vunpack.c.l.b16 %v6756_v11  ;;  %v19484_v33 = vshll.u32 %v17872_v31, 16  ;;  %v6791_v14 = vsel %vm689_vm1, %v6772_v59, 0 }
 0x691   : > { %7043 = vst [vmem:[#allocation2 + $0x3c] sm:$0xf] %v6915_v35  ;;  %v6541_v17 = vor.u32 %v19483_v34, %v6538_v53  ;;  %v6921_v47 = vpack.c.b16 %v6857_v45, %v6857_v45  ;;  %v6412_v35 = vshrl.u32 %v17827_v63, 16  ;;  %v19486_v63 = vshll.u32 %v17916_v55, 16 }
 0x692   : > { %7044 = vst [vmem:[#allocation2 + $0x48] sm:$0xf] %v6916_v23  ;;  %v6859_v23 = vunpack.c.h.b16 %v6756_v11  ;;  %v6773_v21 = vsel %vm16585_vm2, %v6538_v53, %v6689_v20  ;;  %v6548_v45 = vor.u32 %v19484_v33, %v6545_v10  ;;  %v6552_v11 = vrot.slane %v19485_v5, 7 }
 0x693   : > { %7045 = vst [vmem:[#allocation2 + $0x54] sm:$0xf] %v6917_v27  ;;  %v6693_v27 = vrot.slane %v19482_v6, 3  ;;  %v6757_v59 = vsel %vm16585_vm2, %v6412_v35, %v6541_v17  ;;  %v6860_v25 = vunpack.c.l.b16 %v6791_v14  ;;  %v6906_v6 = vunpack.c.l.b16 %v18017_v7 }
 0x694   : > { %7106 = vst [vmem:[#allocation2] sm:$0xf] %v6918_v8  ;;  %v6907_v34 = vunpack.c.h.b16 %v18017_v7  ;;  %v6922_v22 = vpack.c.b16 %v6858_v24, %v6858_v24  ;;  %v19487_v20 = vshll.u32 %v17874_v44, 16  ;;  %v6793_v53 = vsel %vm689_vm1, %v6773_v21, 0 }
 0x695   : > { %7107 = vst [vmem:[#allocation2 + $0xc] sm:$0xf] %v6919_v3  ;;  %v6861_v36 = vunpack.c.h.b16 %v6791_v14  ;;  %v6923_v33 = vpack.c.b16 %v6859_v23, %v6859_v23  ;;  %v6697_v17 = vrot.slane %v19486_v63, 3  ;;  %v6774_v35 = vsel %vm16585_vm2, %v6545_v10, %v6693_v27 }
 0x696   : > { %7108 = vst [vmem:[#allocation2 + $0x18] sm:$0xf] %v6920_v39  ;;  %v6862_v58 = vunpack.c.l.b16 %v6757_v59  ;;  %v19488_v7 = vshrl.u32 %v17876_v0, 16  ;;  %v6758_v24 = vsel %vm16585_vm2, %v6415_v49, %v6548_v45  ;;  %v6863_v14 = vunpack.c.h.b16 %v6757_v59 }
 0x697   : > { %7109 = vst [vmem:[#allocation2 + $0x24] sm:$0xf] %v6921_v47  ;;  %v6924_v23 = vpack.c.b16 %v6860_v25, %v6860_v25  ;;  %v18124_v21 = vpack.c.b16 %v6906_v6, %v6906_v6  ;;  %v18126_v63 = vpack.c.b16 %v6907_v34, %v6907_v34  ;;  %v19490_v10 = vshll.u32 %v17876_v0, 16 }
 0x698   : > { %7046 = vst [vmem:[#allocation2 + $0x60] sm:$0xf] %v6918_v8  ;;  %v6555_v8 = vor.u32 %v19487_v20, %v6552_v11  ;;  %v6865_v27 = vunpack.c.h.b16 %v6793_v53  ;;  %v6925_v20 = vpack.c.b16 %v6861_v36, %v6861_v36  ;;  %v19489_v5 = vshll.u32 %v17922_v43, 16 }
 0x699   : > { %7047 = vst [vmem:[#allocation2 + $0x6c] sm:$0xf] %v6919_v3  ;;  %v6864_v3 = vunpack.c.l.b16 %v6793_v53  ;;  %v6775_v49 = vsel %vm16585_vm2, %v6552_v11, %v6697_v17  ;;  %v6926_v45 = vpack.c.b16 %v6862_v58, %v6862_v58  ;;  %v6559_v34 = vrot.slane %v19488_v7, 7 }
 0x69a   : > { %7048 = vst [vmem:[#allocation2 + $0x78] sm:$0xf] %v6920_v39  ;;  %v6795_v39 = vsel %vm689_vm1, %v6774_v35, 0  ;;  %v6759_v25 = vsel %vm16585_vm2, %v6418_v30, %v6555_v8  ;;  %v6867_v6 = vunpack.c.h.b16 %v6758_v24  ;;  %v7114_v59 = vrot.slane %v17904_v19, 3 }
 0x69b   : > { %7049 = vst [vmem:[#allocation2 + $0x84] sm:$0xf] %v6921_v47  ;;  %v6866_v47 = vunpack.c.l.b16 %v6758_v24  ;;  %v6928_v36 = vpack.c.b16 %v6864_v3, %v6864_v3  ;;  %v7115_v11 = vrot.slane %v17906_v56, 3  ;;  %v18143_v53 = vsel %vm689_vm1, %v6775_v49, 0 }
 0x69c   : > { %7050 = vst [vmem:[#allocation2 + $0x90] sm:$0xf] %v6922_v22  ;;  %v6927_v22 = vpack.c.b16 %v6863_v14, %v6863_v14  ;;  %v6869_v17 = vunpack.c.h.b16 %v6795_v39  ;;  %v6929_v35 = vpack.c.b16 %v6865_v27, %v6865_v27  ;;  %v6701_v30 = vrot.slane %v19489_v5, 3 }
 0x69d   : > { %7051 = vst [vmem:[#allocation2 + $0x9c] sm:$0xf] %v6923_v33  ;;  %v6868_v33 = vunpack.c.l.b16 %v6795_v39  ;;  %v19491_v8 = vshll.u32 %v17925_v12, 16  ;;  %v6870_v24 = vunpack.c.l.b16 %v6759_v25  ;;  %v6930_v14 = vpack.c.b16 %v6866_v47, %v6866_v47 }
 0x69e   : > { %7110 = vst [vmem:[#allocation2 + $0x330] sm:$0xf] %v18124_v21  ;;  %v6562_v3 = vor.u32 %v19490_v10, %v6559_v34  ;;  %v6871_v7 = vunpack.c.h.b16 %v6759_v25  ;;  %v6931_v58 = vpack.c.b16 %v6867_v6, %v6867_v6  ;;  %v6872_v39 = vunpack.c.l.b16 %v18143_v53 }
 0x69f   : > { %7111 = vst [vmem:[#allocation2 + $0x33c] sm:$0xf] %v18126_v63  ;;  %v6932_v27 = vpack.c.b16 %v6868_v33, %v6868_v33  ;;  %v7147_v49 = vsel %vm16585_vm2, %v7115_v11, 0  ;;  %v19606_v47 = vshrl.u32 %v17879_v46, 16  ;;  %v6933_v25 = vpack.c.b16 %v6869_v17, %v6869_v17 }
 0x6a0   : > { %7052 = vst [vmem:[#allocation2 + $0xa8] sm:$0xf] %v6924_v23  ;;  %v6776_v33 = vsel %vm16585_vm2, %v6559_v34, %v6701_v30  ;;  %v19492_v5 = vshll.u32 %v17928_v62, 16  ;;  %v19607_v17 = vshrl.u32 %v17837_v26, 16  ;;  %v6936_v6 = vpack.c.b16 %v6872_v39, %v6872_v39 }
 0x6a1   : > { %7053 = vst [vmem:[#allocation2 + $0xb4] sm:$0xf] %v6925_v20  ;;  %v7146_v20 = vsel %vm16585_vm2, %v7114_v59, 0  ;;  %v6934_v59 = vpack.c.b16 %v6870_v24, %v6870_v24  ;;  %v7181_v10 = vunpack.c.h.b16 %v7147_v49  ;;  %v19609_v30 = vshrl.u32 %v17881_v61, 16 }
 0x6a2   : > { %7054 = vst [vmem:[#allocation2 + $0xc0] sm:$0xf] %v6926_v45  ;;  %v6566_v45 = vrot.slane %v19606_v47, 7  ;;  %v7178_v11 = vunpack.c.l.b16 %v7146_v20  ;;  %v7179_v23 = vunpack.c.h.b16 %v7146_v20  ;;  %v7180_v47 = vunpack.c.l.b16 %v7147_v49 }
 0x6a3   : > { %7055 = vst [vmem:[#allocation2 + $0xcc] sm:$0xf] %v6927_v22  ;;  %v6705_v22 = vrot.slane %v19491_v8, 3  ;;  %v19608_v8 = vshll.u32 %v17879_v46, 16  ;;  %v19493_v24 = vshll.u32 %v17881_v61, 16  ;;  %v19611_v20 = vshrl.u32 %v17885_v50, 16 }
 0x6a4   : > { %7056 = vst [vmem:[#allocation2 + $0xd8] sm:$0xf] %v6928_v36  ;;  %v6935_v36 = vpack.c.b16 %v6871_v7, %v6871_v7  ;;  %v6573_v7 = vrot.slane %v19609_v30, 7  ;;  %v19495_v39 = vshll.u32 %v17935_v42, 16  ;;  %v7210_v49 = vpack.c.b16 %v7178_v11, %v7178_v11 }
 0x6a5   : > { %7057 = vst [vmem:[#allocation2 + $0xe4] sm:$0xf] %v6929_v35  ;;  %v6760_v35 = vsel %vm16585_vm2, %v19607_v17, %v6562_v3  ;;  %v6569_v34 = vor.u32 %v19608_v8, %v6566_v45  ;;  %v18180_v3 = vrot.slane %v19611_v20, 7  ;;  %v7211_v17 = vpack.c.b16 %v7179_v23, %v7179_v23 }
 0x6a6   : > { %7058 = vst [vmem:[#allocation2 + $0xf0] sm:$0xf] %v6930_v14  ;;  %v19610_v14 = vshrl.u32 %v17883_v41, 16  ;;  %v6874_v8 = vunpack.c.l.b16 %v6760_v35  ;;  %v18184_v30 = vpack.c.b16 %v7180_v47, %v7180_v47  ;;  %v18191_v20 = vpack.c.b16 %v7181_v10, %v7181_v10 }
 0x6a7   : > { %7059 = vst [vmem:[#allocation2 + $0xfc] sm:$0xf] %v6931_v58  ;;  %v6873_v58 = vunpack.c.h.b16 %v18143_v53  ;;  %v6709_v53 = vrot.slane %v19492_v5, 3  ;;  %v19496_v47 = vshll.u32 %v17883_v41, 16  ;;  %v19497_v5 = vshll.u32 %v17885_v50, 16 }
 0x6a8   : > { %7060 = vst [vmem:[#allocation2 + $0x108] sm:$0xf] %v6932_v27  ;;  %v6580_v26 = vrot.slane %v19610_v14, 7  ;;  %v6799_v27 = vsel %vm689_vm1, %v6776_v33, 0  ;;  %v6777_v14 = vsel %vm16585_vm2, %v6566_v45, %v6705_v22  ;;  %v6576_v33 = vor.u32 %v19493_v24, %v6573_v7 }
 0x6a9   : > { %7061 = vst [vmem:[#allocation2 + $0x114] sm:$0xf] %v6933_v25  ;;  %v19494_v25 = vshll.u32 %v17954_v18, 16  ;;  %v6937_v11 = vpack.c.b16 %v6873_v58, %v6873_v58  ;;  %v19502_v45 = vshll.u32 %v17958_v32, 16  ;;  %v6876_v10 = vunpack.c.l.b16 %v6799_v27 }
 0x6aa   : > { %7062 = vst [vmem:[#allocation2 + $0x120] sm:$0xf] %v6934_v59  ;;  %v19612_v59 = vshrl.u32 %v17840_v13, 16  ;;  %v6801_v22 = vsel %vm689_vm1, %v6777_v14, 0  ;;  %v6877_v13 = vunpack.c.h.b16 %v6799_v27  ;;  %v6938_v24 = vpack.c.b16 %v6874_v8, %v6874_v8 }
 0x6ab   : > { %7063 = vst [vmem:[#allocation2 + $0x12c] sm:$0xf] %v6935_v36  ;;  %v6875_v36 = vunpack.c.h.b16 %v6760_v35  ;;  %v6583_v35 = vor.u32 %v19496_v47, %v6580_v26  ;;  %v6778_v58 = vsel %vm16585_vm2, %v6573_v7, %v6709_v53  ;;  %v19613_v27 = vshrl.u32 %v17843_v9, 16  ;;  %v15900_v47 = vld [vmem:[#allocation9 + $0x8] sm:$0xff] }
 0x6ac   : > { %7064 = vst [vmem:[#allocation2 + $0x138] sm:$0xf] %v6936_v6  ;;  %v6761_v23 = vsel %vm16585_vm2, %v19612_v59, %v6569_v34  ;;  %v6713_v6 = vrot.slane %v19495_v39, 3  ;;  %v6717_v34 = vrot.slane %v19494_v25, 3  ;;  %v6433_v25 = vshrl.u32 %v17848_v4, 16  ;;  %8496 = vmatpush.bf16.msra.mxu1 %v15900_v47 }
 0x6ad   : > { %7308 = vst [vmem:[#allocation2 + $0x4c] sm:$0xf] %v7210_v49  ;;  %v6878_v49 = vunpack.c.l.b16 %v6761_v23  ;;  %v6762_v8 = vsel %vm16585_vm2, %v19613_v27, %v6576_v33  ;;  %v6879_v14 = vunpack.c.h.b16 %v6761_v23  ;;  %v6939_v59 = vpack.c.b16 %v6875_v36, %v6875_v36 }
 0x6ae   : > { %7309 = vst [vmem:[#allocation2 + $0x58] sm:$0xf] %v7211_v17  ;;  %v6590_v17 = vor.u32 %v19497_v5, %v18180_v3  ;;  %v18223_v7 = vrot.slane %v19502_v45, 3  ;;  %v6880_v53 = vunpack.c.l.b16 %v6801_v22  ;;  %v6940_v39 = vpack.c.b16 %v6876_v10, %v6876_v10 }
 0x6af   : > { %7372 = vst [vmem:[#allocation2 + $0x1c] sm:$0xf] %v18184_v30  ;;  %v6779_v5 = vsel %vm16585_vm2, %v6580_v26, %v6713_v6  ;;  %v6803_v9 = vsel %vm689_vm1, %v6778_v58, 0  ;;  %v6881_v50 = vunpack.c.h.b16 %v6801_v22  ;;  %v6941_v41 = vpack.c.b16 %v6877_v13, %v6877_v13 }
 0x6b0   : > { %7373 = vst [vmem:[#allocation2 + $0x28] sm:$0xf] %v18191_v20  ;;  %v19614_v33 = vshrl.u32 %v17846_v52, 16  ;;  %v6780_v23 = vsel %vm16585_vm2, %v18180_v3, %v6717_v34  ;;  %v6882_v36 = vunpack.c.l.b16 %v6762_v8  ;;  %v6764_v26 = vsel %vm16585_vm2, %v6433_v25, %v6590_v17 }
 0x6b1   : > { %7065 = vst [vmem:[#allocation2 + $0x144] sm:$0xf] %v6937_v11  ;;  %v6942_v11 = vpack.c.b16 %v6878_v49, %v6878_v49  ;;  %v6883_v10 = vunpack.c.h.b16 %v6762_v8  ;;  %v6943_v6 = vpack.c.b16 %v6879_v14, %v6879_v14  ;;  %v6884_v22 = vunpack.c.l.b16 %v6803_v9 }
 0x6b2   : > { %7066 = vst [vmem:[#allocation2 + $0x150] sm:$0xf] %v6938_v24  ;;  %v6763_v4 = vsel %vm16585_vm2, %v19614_v33, %v6583_v35  ;;  %v6805_v24 = vsel %vm689_vm1, %v6779_v5, 0  ;;  %v6944_v13 = vpack.c.b16 %v6880_v53, %v6880_v53  ;;  %v6807_v3 = vsel %vm689_vm1, %v6780_v23, 0 }
 0x6b3   : > { %7067 = vst [vmem:[#allocation2 + $0x15c] sm:$0xf] %v6939_v59  ;;  %v6885_v35 = vunpack.c.h.b16 %v6803_v9  ;;  %v6886_v47 = vunpack.c.l.b16 %v6763_v4  ;;  %v6945_v34 = vpack.c.b16 %v6881_v50, %v6881_v50  ;;  %v6946_v25 = vpack.c.b16 %v6882_v36, %v6882_v36 }
 0x6b4   : > { %7068 = vst [vmem:[#allocation2 + $0x168] sm:$0xf] %v6940_v39  ;;  %v19615_v58 = vshll.u32 %v17888_v28, 16  ;;  %v19616_v17 = vshll.u32 %v17890_v16, 16  ;;  %v19617_v8 = vshll.u32 %v17892_v38, 16  ;;  %v6887_v5 = vunpack.c.h.b16 %v6763_v4 }
 0x6b5   : > { %7069 = vst [vmem:[#allocation2 + $0x174] sm:$0xf] %v6941_v41  ;;  %v6888_v59 = vunpack.c.l.b16 %v6805_v24  ;;  %v6947_v39 = vpack.c.b16 %v6883_v10, %v6883_v10  ;;  %v19618_v53 = vshll.u32 %v17992_v29, 16  ;;  %v6889_v50 = vunpack.c.h.b16 %v6805_v24 }
 0x6b6   : > { %v7400_v49 = vrot.slane %v19615_v58, 1  ;;  %v7402_v27 = vrot.slane %v19616_v17, 1  ;;  %v7404_v14 = vrot.slane %v19617_v8, 1  ;;  %7070 = vst [vmem:[#allocation2 + $0x180] sm:$0xf] %v6942_v11  ;;  %v6890_v41 = vunpack.c.l.b16 %v6764_v26 }
 0x6b7   : > { %v7378_v9 = vrot.slane %v19618_v53, 1  ;;  %7071 = vst [vmem:[#allocation2 + $0x18c] sm:$0xf] %v6943_v6  ;;  %v6948_v33 = vpack.c.b16 %v6884_v22, %v6884_v22  ;;  %v19619_v23 = vshll.u32 %v18021_v54, 16  ;;  %v6891_v58 = vunpack.c.h.b16 %v6764_v26 }
 0x6b8   : > { %7072 = vst [vmem:[#allocation2 + $0x198] sm:$0xf] %v6944_v13  ;;  %v6892_v17 = vunpack.c.l.b16 %v6807_v3  ;;  %v6893_v52 = vunpack.c.h.b16 %v6807_v3  ;;  %v6949_v45 = vpack.c.b16 %v6885_v35, %v6885_v35  ;;  %v6950_v11 = vpack.c.b16 %v6886_v47, %v6886_v47 }
 0x6b9   : > { %v7380_v36 = vrot.slane %v19619_v23, 1  ;;  %7073 = vst [vmem:[#allocation2 + $0x1a4] sm:$0xf] %v6945_v34  ;;  %v19620_v4 = vshrl.u32 %v17888_v28, 16  ;;  %v19621_v8 = vshrl.u32 %v17890_v16, 16  ;;  %v19622_v6 = vshrl.u32 %v17892_v38, 16 }
 0x6ba   : > { %7074 = vst [vmem:[#allocation2 + $0x1b0] sm:$0xf] %v6946_v25  ;;  %v6894_v22 = vunpack.c.l.b16 %v18005_v2  ;;  %v6951_v23 = vpack.c.b16 %v6887_v5, %v6887_v5  ;;  %v6952_v13 = vpack.c.b16 %v6888_v59, %v6888_v59  ;;  %v19623_v26 = vshrl.u32 %v17992_v29, 16  ;;  %v19627_v38 = vld [vmem:[#allocation16_spill] sm:$0xff]  ;;  %v19629_v59 = vld [vmem:[#allocation14_spill] sm:$0xff] }
 0x6bb   : > { %v7401_v10 = vor.u32 %v7400_v49, %v19620_v4  ;;  %v7403_v53 = vor.u32 %v7402_v27, %v19621_v8  ;;  %v7405_v24 = vor.u32 %v7404_v14, %v19622_v6  ;;  %7075 = vst [vmem:[#allocation2 + $0x1bc] sm:$0xf] %v6947_v39  ;;  %v19624_v35 = vshrl.u32 %v18021_v54, 16 }
 0x6bc   : > { %v7379_v3 = vor.u32 %v7378_v9, %v19623_v26  ;;  %v19625_v28 = vshll.u32 %v17958_v32, 16  ;;  %v19626_v16 = vshll.u32 %v17937_v51, 16  ;;  %v19628_v27 = vshll.u32 %v19627_v38, 16  ;;  %7076 = vst [vmem:[#allocation2 + $0x1c8] sm:$0xf] %v6948_v33 }
 0x6bd   : > { %v7381_v47 = vor.u32 %v7380_v36, %v19624_v35  ;;  %v6953_v14 = vpack.c.b16 %v6889_v50, %v6889_v50  ;;  %v6954_v5 = vpack.c.b16 %v6890_v41, %v6890_v41  ;;  %v19630_v4 = vshll.u32 %v19629_v59, 16  ;;  %7077 = vst [vmem:[#allocation2 + $0x1d4] sm:$0xf] %v6949_v45  ;;  %v19634_v45 = vld [vmem:[#allocation24_spill] sm:$0xff] }
 0x6be   : > { %v7437_v34 = vrot.slane %v19625_v28, 4  ;;  %v7438_v49 = vrot.slane %v19626_v16, 4  ;;  %v7439_v25 = vrot.slane %v19628_v27, 4  ;;  %v19631_v39 = vshll.u32 %v17904_v19, 16  ;;  %7078 = vst [vmem:[#allocation2 + $0x1e0] sm:$0xf] %v6950_v11 }
 0x6bf   : > { %v7406_v29 = vrot.slane %v19630_v4, 1  ;;  %v19632_v54 = vshll.u32 %v17906_v56, 16  ;;  %v6895_v19 = vunpack.c.h.b16 %v18005_v2  ;;  %v6955_v41 = vpack.c.b16 %v6891_v58, %v6891_v58  ;;  %7079 = vst [vmem:[#allocation2 + $0x1ec] sm:$0xf] %v6951_v23 }
 0x6c0   : > { %v7426_v9 = vrot.slane %v19631_v39, 4  ;;  %v18278_v6 = vsel %vm16979_vm5, %v7401_v10, %v7437_v34  ;;  %v18282_v26 = vsel %vm16979_vm5, %v7403_v53, %v7438_v49  ;;  %v18286_v50 = vsel %vm16979_vm5, %v7405_v24, %v7439_v25  ;;  %7080 = vst [vmem:[#allocation2 + $0x1f8] sm:$0xf] %v6952_v13  ;;  %v19638_v25 = vld [vmem:[#allocation18_spill] sm:$0xff] }
 0x6c1   : > { %v7427_v36 = vrot.slane %v19632_v54, 4  ;;  %v6731_v33 = vshll.u32 %v19634_v45, 16  ;;  %v6956_v10 = vpack.c.b16 %v6892_v17, %v6892_v17  ;;  %v19635_v53 = vsel %vm16585_vm2, %v17933_v1, %v18223_v7  ;;  %7081 = vst [vmem:[#allocation2 + $0x204] sm:$0xf] %v6953_v14  ;;  %v19637_v7 = vld [vmem:[#allocation27_spill] sm:$0xff]  ;;  %v19639_v14 = vld [vmem:[#allocation25_spill] sm:$0xff] }
 0x6c2   : > { %v7458_v56 = vsel %vm16979_vm5, %v7379_v3, %v7426_v9  ;;  %v6809_v11 = vsel %vm689_vm1, %v19635_v53, 0  ;;  %v6957_v2 = vpack.c.b16 %v6893_v52, %v6893_v52  ;;  %v6958_v58 = vpack.c.b16 %v6894_v22, %v6894_v22  ;;  %7082 = vst [vmem:[#allocation2 + $0x210] sm:$0xf] %v6954_v5 }
 0x6c3   : > { %v7459_v35 = vsel %vm16979_vm5, %v7381_v47, %v7427_v36  ;;  %v19636_v24 = vshrl.u32 %v19629_v59, 16  ;;  %v7490_v3 = vunpack.c.l.b16 %v7458_v56  ;;  %v7491_v28 = vunpack.c.h.b16 %v7458_v56  ;;  %7083 = vst [vmem:[#allocation2 + $0x21c] sm:$0xf] %v6955_v41 }
 0x6c4   : > { %v6959_v17 = vpack.c.b16 %v6895_v19, %v6895_v19  ;;  %v7492_v34 = vunpack.c.l.b16 %v7459_v35  ;;  %v7493_v47 = vunpack.c.h.b16 %v7459_v35  ;;  %v6896_v13 = vunpack.c.l.b16 %v6809_v11  ;;  %7084 = vst [vmem:[#allocation2 + $0x228] sm:$0xf] %v6956_v10  ;;  %v19641_v10 = vld [vmem:[#allocation20_spill] sm:$0xff]  ;;  %v19642_v35 = vld [vmem:[#allocation26_spill] sm:$0xff] }
 0x6c5   : > { %v7407_v23 = vor.u32 %v7406_v29, %v19636_v24  ;;  %v7440_v16 = vrot.slane %v6731_v33, 4  ;;  %v6897_v1 = vunpack.c.h.b16 %v6809_v11  ;;  %7085 = vst [vmem:[#allocation2 + $0x234] sm:$0xf] %v6957_v2  ;;  %v6898_v52 = vunpack.c.l.b16 %v19637_v7 }
 0x6c6   : > { %v7522_v49 = vpack.c.b16 %v7490_v3, %v7490_v3  ;;  %v7523_v27 = vpack.c.b16 %v7491_v28, %v7491_v28  ;;  %7086 = vst [vmem:[#allocation2 + $0x240] sm:$0xf] %v6958_v58  ;;  %v19640_v5 = vsel %vm16585_vm2, %v19638_v25, %v19639_v14  ;;  %v18313_v4 = vpack.c.b16 %v7492_v34, %v7492_v34  ;;  %v19644_v58 = vld [vmem:[#allocation28_spill] sm:$0xff] }
 0x6c7   : > { %v7472_v22 = vsel %vm16979_vm5, %v7407_v23, %v7440_v16  ;;  %v6811_v59 = vsel %vm689_vm1, %v19640_v5, 0  ;;  %v18315_v29 = vpack.c.b16 %v7493_v47, %v7493_v47  ;;  %7087 = vst [vmem:[#allocation2 + $0x24c] sm:$0xf] %v6959_v17  ;;  %v6960_v39 = vpack.c.b16 %v6896_v13, %v6896_v13  ;;  %v15914_v47 = vld [vmem:[#allocation9 + $0x78] sm:$0xff]  ;;  %v15913_v14 = vld [vmem:[#allocation9 + $0x70] sm:$0xff] }
 0x6c8   : > { %7586 = vst [vmem:[#allocation2 + $0x38] sm:$0xf] %v7522_v49  ;;  %v6899_v9 = vunpack.c.h.b16 %v19637_v7  ;;  %v6961_v54 = vpack.c.b16 %v6897_v1, %v6897_v1  ;;  %v7518_v36 = vunpack.c.l.b16 %v7472_v22  ;;  %v7519_v19 = vunpack.c.h.b16 %v7472_v22  ;;  %8659 = vmatpush.bf16.msrb.mxu2 %v15914_v47 }
 0x6c9   : > { %7587 = vst [vmem:[#allocation2 + $0x44] sm:$0xf] %v7523_v27  ;;  %v6900_v41 = vunpack.c.l.b16 %v6811_v59  ;;  %v6962_v56 = vpack.c.b16 %v6898_v52, %v6898_v52  ;;  %v19643_v53 = vsel %vm16585_vm2, %v19641_v10, %v19642_v35  ;;  %v6901_v2 = vunpack.c.h.b16 %v6811_v59 }
 0x6ca   : > { %7650 = vst [vmem:[#allocation2 + $0x8] sm:$0xf] %v18313_v4  ;;  %v6813_v11 = vsel %vm689_vm1, %v19643_v53, 0  ;;  %v6902_v24 = vunpack.c.l.b16 %v19644_v58  ;;  %v6903_v23 = vunpack.c.h.b16 %v19644_v58  ;;  %v6963_v3 = vpack.c.b16 %v6899_v9, %v6899_v9 }
 0x6cb   : > { %7651 = vst [vmem:[#allocation2 + $0x14] sm:$0xf] %v18315_v29  ;;  %v7116_v28 = vrot.slane %v17908_v15, 3  ;;  %v18329_v17 = vpack.c.b16 %v7518_v36, %v7518_v36  ;;  %v18331_v34 = vpack.c.b16 %v7519_v19, %v7519_v19  ;;  %v6904_v13 = vunpack.c.l.b16 %v6813_v11 }
 0x6cc   : > { %7088 = vst [vmem:[#allocation2 + $0x258] sm:$0xf] %v6960_v39  ;;  %v6964_v16 = vpack.c.b16 %v6900_v41, %v6900_v41  ;;  %v6905_v1 = vunpack.c.h.b16 %v6813_v11  ;;  %v6965_v7 = vpack.c.b16 %v6901_v2, %v6901_v2  ;;  %v7117_v52 = vrot.slane %v17910_v60, 3  ;;  %8660 = vmatpush.bf16.msrb.mxu2 %v15913_v14 }
 0x6cd   : > { %7089 = vst [vmem:[#allocation2 + $0x264] sm:$0xf] %v6961_v54  ;;  %v6966_v22 = vpack.c.b16 %v6902_v24, %v6902_v24  ;;  %v6967_v49 = vpack.c.b16 %v6903_v23, %v6903_v23  ;;  %v7118_v27 = vrot.slane %v17912_v57, 3  ;;  %v7148_v25 = vsel %vm16585_vm2, %v7116_v28, 0  ;;  %v15922_v24 = vld [vmem:[#allocation9 + $0xb8] sm:$0xff] }
 0x6ce   : > { %7090 = vst [vmem:[#allocation2 + $0x270] sm:$0xf] %v6962_v56  ;;  %v6968_v5 = vpack.c.b16 %v6904_v13, %v6904_v13  ;;  %v6969_v59 = vpack.c.b16 %v6905_v1, %v6905_v1  ;;  %v7119_v39 = vrot.slane %v17916_v55, 3  ;;  %v7149_v9 = vsel %vm16585_vm2, %v7117_v52, 0  ;;  %v15912_v56 = vld [vmem:[#allocation9 + $0x68] sm:$0xff]  ;;  %v16026_v23 = vld [vmem:[#allocation9 + $0xf8] sm:$0xff]  ;;  %8828 = vmatpush.bf16.msrb.mxu3 %v15922_v24 }
 0x6cf   : > { %7654 = vst [vmem:[#allocation2 + $0x338] sm:$0xf] %v18329_v17  ;;  %v7182_v54 = vunpack.c.l.b16 %v7148_v25  ;;  %v7120_v36 = vrot.slane %v17922_v43, 3  ;;  %v7150_v19 = vsel %vm16585_vm2, %v7118_v27, 0  ;;  %v7183_v41 = vunpack.c.h.b16 %v7148_v25  ;;  %9958 = vmatpush.bf16.msrb.mxu0 %v16026_v23  ;;  %v13891_v27 = vld [vmem:[#allocation2 + $0x348] sm:$0xf] }
 0x6d0   : > { %7655 = vst [vmem:[#allocation2 + $0x344] sm:$0xf] %v18331_v34  ;;  %v7121_v10 = vrot.slane %v17925_v12, 3  ;;  %v7184_v35 = vunpack.c.l.b16 %v7149_v9  ;;  %v7151_v53 = vsel %vm16585_vm2, %v7119_v39, 0  ;;  %v7185_v11 = vunpack.c.h.b16 %v7149_v9  ;;  %8661 = vmatpush.bf16.msrb.mxu2 %v15912_v56  ;;  %v15777_v25 = vld [vmem:[#allocation2 + $0x350] sm:$0xf0] }
 0x6d1   : > { %7091 = vst [vmem:[#allocation2 + $0x27c] sm:$0xf] %v6963_v3  ;;  %v7186_v2 = vunpack.c.l.b16 %v7150_v19  ;;  %v7214_v58 = vpack.c.b16 %v7182_v54, %v7182_v54  ;;  %v7122_v3 = vrot.slane %v17928_v62, 3  ;;  %v7152_v28 = vsel %vm16585_vm2, %v7120_v36, 0  ;;  %v15921_v24 = vld [vmem:[#allocation9 + $0xb0] sm:$0xff] }
 0x6d2   : > { %7092 = vst [vmem:[#allocation2 + $0x288] sm:$0xf] %v6964_v16  ;;  %v7187_v47 = vunpack.c.h.b16 %v7150_v19  ;;  %v7215_v13 = vpack.c.b16 %v7183_v41, %v7183_v41  ;;  %v15911_v16 = vld [vmem:[#allocation9 + $0x60] sm:$0xff]  ;;  %v7123_v1 = vrot.slane %v17935_v42, 3  ;;  %v7188_v52 = vunpack.c.l.b16 %v7151_v53  ;;  %v16025_v23 = vld [vmem:[#allocation9 + $0xf0] sm:$0xff]  ;;  %8829 = vmatpush.bf16.msrb.mxu3 %v15921_v24 }
 0x6d3   : > { %7093 = vst [vmem:[#allocation2 + $0x294] sm:$0xf] %v6965_v7  ;;  %v7153_v7 = vsel %vm16585_vm2, %v7121_v10, 0  ;;  %v7218_v14 = vpack.c.b16 %v7186_v2, %v7186_v2  ;;  %v7154_v39 = vsel %vm16585_vm2, %v7122_v3, 0  ;;  %v7191_v9 = vunpack.c.h.b16 %v7152_v28  ;;  %9959 = vmatpush.bf16.msrb.mxu0 %v16025_v23 }
 0x6d4   : > { %7094 = vst [vmem:[#allocation2 + $0x2a0] sm:$0xf] %v6966_v22  ;;  %v7216_v22 = vpack.c.b16 %v7184_v35, %v7184_v35  ;;  %8662 = vmatpush.bf16.msrb.mxu2 %v15911_v16  ;;  %v7125_v54 = vrot.slane %v17958_v32, 3  ;;  %v7192_v36 = vunpack.c.l.b16 %v7153_v7  ;;  %v7220_v19 = vpack.c.b16 %v7188_v52, %v7188_v52  ;;  %v15910_v16 = vld [vmem:[#allocation9 + $0x58] sm:$0xff]  ;;  %v15658_v52 = vld [vmem:[#allocation2 + $0x328] sm:$0xf0] }
 0x6d5   : > { %7095 = vst [vmem:[#allocation2 + $0x2ac] sm:$0xf] %v6967_v49  ;;  %v7217_v49 = vpack.c.b16 %v7185_v11, %v7185_v11  ;;  %v7193_v41 = vunpack.c.h.b16 %v7153_v7  ;;  %v7126_v10 = vrot.slane %v17937_v51, 3  ;;  %v7194_v35 = vunpack.c.l.b16 %v7154_v39  ;;  %v13419_v7 = vld [vmem:[#allocation2 + $0x320] sm:$0xf] }
 0x6d6   : > { %7096 = vst [vmem:[#allocation2 + $0x2b8] sm:$0xf] %v6968_v5  ;;  %v13892_v5 = vor.u32 %v15777_v25, %v13891_v27  ;;  %v7127_v11 = vrot.slane %v19627_v38, 3  ;;  %v7195_v2 = vunpack.c.h.b16 %v7154_v39  ;;  %v7157_v3 = vsel %vm16585_vm2, %v7125_v54, 0  ;;  %v15920_v39 = vld [vmem:[#allocation9 + $0xa8] sm:$0xff] }
 0x6d7   : > { %7097 = vst [vmem:[#allocation2 + $0x2c4] sm:$0xf] %v6969_v59  ;;  %v7124_v59 = vrot.slane %v17954_v18, 3  ;;  %v19645_v51 = vshll.u32 %v17865_v40, 16  ;;  %v7225_v38 = vpack.c.b16 %v7193_v41, %v7193_v41  ;;  %v13420_v27 = vor.u32 %v15658_v52, %v13419_v7  ;;  %8830 = vmatpush.bf16.msrb.mxu3 %v15920_v39 }
 0x6d8   : > { %7098 = vst [vmem:[#allocation2 + $0x2d0] sm:$0xf] %v18124_v21  ;;  %v7189_v21 = vunpack.c.h.b16 %v7151_v53  ;;  %5603 = vmatmul.bf16.gmra.mxu2 %v13892_v5  ;;  %v7159_v25 = vsel %vm16585_vm2, %v7127_v11, 0  ;;  %v19646_v5 = vshll.u32 %v17869_v48, 16  ;;  %v19647_v41 = vshrl.u32 %v17865_v40, 16 }
 0x6d9   : > { %7099 = vst [vmem:[#allocation2 + $0x2dc] sm:$0xf] %v18126_v63  ;;  %v7190_v63 = vunpack.c.l.b16 %v7152_v28  ;;  %v7156_v32 = vsel %vm16585_vm2, %v7124_v59, 0  ;;  %8663 = vmatpush.bf16.msrb.mxu2 %v15910_v16  ;;  %4409 = vmatmul.bf16.gmra.mxu1 %v13420_v27  ;;  %v19649_v24 = vshrl.u32 %v17869_v48, 16  ;;  %v7205_v16 = vunpack.c.h.b16 %v7159_v25  ;;  %v15908_v48 = vld [vmem:[#allocation9 + $0x48] sm:$0xff] }
 0x6da   : > { %7312 = vst [vmem:[#allocation2 + $0x7c] sm:$0xf] %v18184_v30  ;;  %v7219_v30 = vpack.c.b16 %v7187_v47, %v7187_v47  ;;  %v7221_v56 = vpack.c.b16 %v7189_v21, %v7189_v21  ;;  %v7224_v47 = vpack.c.b16 %v7192_v36, %v7192_v36  ;;  %v7198_v21 = vunpack.c.l.b16 %v7156_v32  ;;  %v15909_v36 = vld [vmem:[#allocation9 + $0x50] sm:$0xff] }
 0x6db   : > { %7313 = vst [vmem:[#allocation2 + $0x88] sm:$0xf] %v18191_v20  ;;  %v7155_v20 = vsel %vm16585_vm2, %v7123_v1, 0  ;;  %v7222_v53 = vpack.c.b16 %v7190_v63, %v7190_v63  ;;  %v7199_v63 = vunpack.c.h.b16 %v7156_v32  ;;  %v7384_v59 = vrot.slane %v19646_v5, 1 }
 0x6dc   : > { %7316 = vst [vmem:[#allocation2 + $0xac] sm:$0xf] %v7214_v58  ;;  %v7223_v58 = vpack.c.b16 %v7191_v9, %v7191_v9  ;;  %v7196_v28 = vunpack.c.l.b16 %v7155_v20  ;;  %v7197_v1 = vunpack.c.h.b16 %v7155_v20  ;;  %v16024_v9 = vld [vmem:[#allocation9 + $0xe8] sm:$0xff]  ;;  %v7204_v32 = vunpack.c.l.b16 %v7159_v25 }
 0x6dd   : > { %7317 = vst [vmem:[#allocation2 + $0xb8] sm:$0xf] %v7215_v13  ;;  %v7382_v13 = vrot.slane %v19645_v51, 1  ;;  %9960 = vmatpush.bf16.msrb.mxu0 %v16024_v9  ;;  %8664 = vmatpush.bf16.msrb.mxu2 %v15909_v36  ;;  %v7385_v23 = vor.u32 %v7384_v59, %v19649_v24  ;;  %v15919_v51 = vld [vmem:[#allocation9 + $0xa0] sm:$0xff]  ;;  %v19653_v52 = vshll.u32 %v17910_v60, 16  ;;  %v19655_v5 = vshll.u32 %v17879_v46, 16 }
 0x6de   : > { %7320 = vst [vmem:[#allocation2 + $0xdc] sm:$0xf] %v7216_v22  ;;  %v7158_v22 = vsel %vm16585_vm2, %v7126_v10, 0  ;;  %v7228_v54 = vpack.c.b16 %v7196_v28, %v7196_v28  ;;  %v7229_v20 = vpack.c.b16 %v7197_v1, %v7197_v1  ;;  %v19648_v10 = vshll.u32 %v17872_v31, 16  ;;  %8831 = vmatpush.bf16.msrb.mxu3 %v15919_v51  ;;  %v15776_v25 = vld [vmem:[#allocation2 + $0x34c] sm:$0xf] }
 0x6df   : > { %7321 = vst [vmem:[#allocation2 + $0xe8] sm:$0xf] %v7217_v49  ;;  %v7226_v49 = vpack.c.b16 %v7194_v35, %v7194_v35  ;;  %v7203_v11 = vunpack.c.h.b16 %v7158_v22  ;;  %v19651_v28 = vshll.u32 %v17908_v15, 16  ;;  %v7392_v59 = vrot.slane %v19655_v5, 1  ;;  %v15778_v5 = vld [vmem:[#allocation2 + $0x358] sm:$0xf0] }
 0x6e0   : > { %7324 = vst [vmem:[#allocation2 + $0x10c] sm:$0xf] %v7218_v14  ;;  %v7227_v14 = vpack.c.b16 %v7195_v2, %v7195_v2  ;;  %v7386_v35 = vrot.slane %v19648_v10, 1  ;;  %v7230_v2 = vpack.c.b16 %v7198_v21, %v7198_v21  ;;  %v19656_v9 = vshrl.u32 %v17874_v44, 16 }
 0x6e1   : > { %7325 = vst [vmem:[#allocation2 + $0x118] sm:$0xf] %v7219_v30  ;;  %v7200_v30 = vunpack.c.l.b16 %v7157_v3  ;;  %8665 = vmatpush.bf16.msrb.mxu2 %v15908_v48  ;;  %v7235_v39 = vpack.c.b16 %v7203_v11, %v7203_v11  ;;  %v6733_v8 = vrot.slane %v6731_v33, 3  ;;  %v7513_v33 = vunpack.c.h.b16 %v18278_v6 }
 0x6e2   : > { %7328 = vst [vmem:[#allocation2 + $0x13c] sm:$0xf] %v7220_v19  ;;  %v7201_v19 = vunpack.c.h.b16 %v7157_v3  ;;  %v19650_v3 = vshll.u32 %v17874_v44, 16  ;;  %v19660_v44 = vshll.u32 %v17916_v55, 16  ;;  %v19666_v55 = vshll.u32 %v17922_v43, 16 }
 0x6e3   : > { %7329 = vst [vmem:[#allocation2 + $0x148] sm:$0xf] %v7221_v56  ;;  %v7383_v56 = vor.u32 %v7382_v13, %v19647_v41  ;;  %v16023_v13 = vld [vmem:[#allocation9 + $0xe0] sm:$0xff]  ;;  %v7232_v1 = vpack.c.b16 %v7200_v30, %v7200_v30  ;;  %v19657_v30 = vshll.u32 %v17912_v57, 16  ;;  %v19658_v41 = vshll.u32 %v17881_v61, 16 }
 0x6e4   : > { %7332 = vst [vmem:[#allocation2 + $0x16c] sm:$0xf] %v7222_v53  ;;  %v7202_v53 = vunpack.c.l.b16 %v7158_v22  ;;  %v7388_v40 = vrot.slane %v19650_v3, 1  ;;  %v7429_v22 = vrot.slane %v19653_v52, 4  ;;  %v7233_v21 = vpack.c.b16 %v7201_v19, %v7201_v19  ;;  %9961 = vmatpush.bf16.msrb.mxu0 %v16023_v13 }
 0x6e5   : > { %7333 = vst [vmem:[#allocation2 + $0x178] sm:$0xf] %v7223_v58  ;;  %v7231_v58 = vpack.c.b16 %v7199_v63, %v7199_v63  ;;  %v13893_v63 = vld [vmem:[#allocation2 + $0x354] sm:$0xf0]  ;;  %v7236_v19 = vpack.c.b16 %v7204_v32, %v7204_v32  ;;  %v7431_v11 = vrot.slane %v19660_v44, 4  ;;  %v19661_v32 = vshrl.u32 %v17879_v46, 16 }
 0x6e6   : > { %7336 = vst [vmem:[#allocation2 + $0x19c] sm:$0xf] %v7224_v47  ;;  %v7428_v47 = vrot.slane %v19651_v28, 4  ;;  %v13896_v60 = vor.u32 %v15776_v25, %v13893_v63  ;;  %v7461_v36 = vsel %vm16979_vm5, %v7385_v23, %v7429_v22  ;;  %v19662_v23 = vld [vmem:[#allocation15_spill] sm:$0xff]  ;;  %v7432_v13 = vrot.slane %v19666_v55, 4 }
 0x6e7   : > { %7337 = vst [vmem:[#allocation2 + $0x1a8] sm:$0xf] %v7225_v38  ;;  %v19652_v38 = vshll.u32 %v17876_v0, 16  ;;  %v7393_v24 = vor.u32 %v7392_v59, %v19661_v32  ;;  %v19663_v3 = vshll.u32 %v19662_v23, 16  ;;  %v7496_v28 = vunpack.c.l.b16 %v7461_v36  ;;  %v14001_v32 = vld [vmem:[#allocation2 + $0xc] sm:$0xf0] }
 0x6e8   : > { %7340 = vst [vmem:[#allocation2 + $0x1cc] sm:$0xf] %v7226_v49  ;;  %v19654_v49 = vshrl.u32 %v17872_v31, 16  ;;  %v7460_v15 = vsel %vm16979_vm5, %v7383_v56, %v7428_v47  ;;  %v7389_v31 = vor.u32 %v7388_v40, %v19656_v9  ;;  %v7394_v56 = vrot.slane %v19658_v41, 1  ;;  %5772 = vmatmul.bf16.gmra.mxu3 %v13896_v60  ;;  %v19664_v47 = vld [vmem:[#allocation17_spill] sm:$0xff] }
 0x6e9   : > { %7341 = vst [vmem:[#allocation2 + $0x1d8] sm:$0xf] %v7227_v14  ;;  %v7390_v7 = vrot.slane %v19652_v38, 1  ;;  %v7234_v14 = vpack.c.b16 %v7202_v53, %v7202_v53  ;;  %v7494_v10 = vunpack.c.l.b16 %v7460_v15  ;;  %v7396_v40 = vrot.slane %v19663_v3, 1 }
 0x6ea   : > { %7344 = vst [vmem:[#allocation2 + $0x1fc] sm:$0xf] %v7228_v54  ;;  %v7387_v27 = vor.u32 %v7386_v35, %v19654_v49  ;;  %v7430_v54 = vrot.slane %v19657_v30, 4  ;;  %v19659_v35 = vshrl.u32 %v17876_v0, 16  ;;  %v19665_v0 = vshll.u32 %v19664_v47, 16 }
 0x6eb   : > { %7345 = vst [vmem:[#allocation2 + $0x208] sm:$0xf] %v7229_v20  ;;  %v7237_v20 = vpack.c.b16 %v7205_v16, %v7205_v16  ;;  %v7463_v16 = vsel %vm16979_vm5, %v7389_v31, %v7431_v11  ;;  %v19667_v46 = vshrl.u32 %v17881_v61, 16  ;;  %v7526_v48 = vpack.c.b16 %v7494_v10, %v7494_v10 }
 0x6ec   : > { %7348 = vst [vmem:[#allocation2 + $0x22c] sm:$0xf] %v7230_v2  ;;  %v7391_v53 = vor.u32 %v7390_v7, %v19659_v35  ;;  %v7462_v57 = vsel %vm16979_vm5, %v7387_v27, %v7430_v54  ;;  %v7495_v2 = vunpack.c.h.b16 %v7460_v15  ;;  %v7398_v51 = vrot.slane %v19665_v0, 1 }
 0x6ed   : > { %7349 = vst [vmem:[#allocation2 + $0x238] sm:$0xf] %v7231_v58  ;;  %v15899_v58 = vld [vmem:[#allocation9] sm:$0xff]  ;;  %v7395_v38 = vor.u32 %v7394_v56, %v19667_v46  ;;  %v19668_v7 = vshll.u32 %v17925_v12, 16  ;;  %v7498_v22 = vunpack.c.l.b16 %v7462_v57  ;;  %v7499_v27 = vunpack.c.h.b16 %v7462_v57  ;;  %v13899_v12 = vld [vmem:[#allocation2 + $0x350] sm:$0xf] }
 0x6ee   : > { %7352 = vst [vmem:[#allocation2 + $0x25c] sm:$0xf] %v7232_v1  ;;  %v7497_v1 = vunpack.c.h.b16 %v7461_v36  ;;  %8497 = vmatpush.bf16.msra.mxu1 %v15899_v58  ;;  %v7464_v43 = vsel %vm16979_vm5, %v7391_v53, %v7432_v13  ;;  %v7527_v15 = vpack.c.b16 %v7495_v2, %v7495_v2  ;;  %v19670_v25 = vshrl.u32 %v19662_v23, 16  ;;  %v15918_v36 = vld [vmem:[#allocation9 + $0x98] sm:$0xff]  ;;  %v15803_v58 = vld [vmem:[#allocation2 + $0x4] sm:$0xf] }
 0x6ef   : > { %7353 = vst [vmem:[#allocation2 + $0x268] sm:$0xf] %v7233_v21  ;;  %v7433_v52 = vrot.slane %v19668_v7, 4  ;;  %v19669_v21 = vshll.u32 %v17928_v62, 16  ;;  %v7500_v61 = vunpack.c.l.b16 %v7463_v16  ;;  %v7501_v62 = vunpack.c.h.b16 %v7463_v16  ;;  %8832 = vmatpush.bf16.msrb.mxu3 %v15918_v36  ;;  %v15916_v13 = vld [vmem:[#allocation9 + $0x88] sm:$0xff] }
 0x6f0   : > { %7356 = vst [vmem:[#allocation2 + $0x28c] sm:$0xf] %v7234_v14  ;;  %v7397_v63 = vor.u32 %v7396_v40, %v19670_v25  ;;  %v7528_v14 = vpack.c.b16 %v7496_v28, %v7496_v28  ;;  %v7529_v60 = vpack.c.b16 %v7497_v1, %v7497_v1  ;;  %v19671_v9 = vshrl.u32 %v19664_v47, 16  ;;  %v16021_v40 = vld [vmem:[#allocation9 + $0xd0] sm:$0xff]  ;;  %v13999_v16 = vld [vmem:[#allocation2] sm:$0xf] }
 0x6f1   : > { %7357 = vst [vmem:[#allocation2 + $0x298] sm:$0xf] %v7235_v39  ;;  %v7434_v49 = vrot.slane %v19669_v21, 4  ;;  %v7465_v59 = vsel %vm16979_vm5, %v7393_v24, %v7433_v52  ;;  %v13900_v39 = vor.u32 %v15778_v5, %v13899_v12  ;;  %v7502_v30 = vunpack.c.l.b16 %v7464_v43  ;;  %v16034_v1 = vld [vmem:[#allocation9 + $0x138] sm:$0xff]  ;;  %v16020_v7 = vld [vmem:[#allocation9 + $0xc8] sm:$0xff] }
 0x6f2   : > { %7360 = vst [vmem:[#allocation2 + $0x2bc] sm:$0xf] %v7236_v19  ;;  %v7399_v31 = vor.u32 %v7398_v51, %v19671_v9  ;;  %v7530_v54 = vpack.c.b16 %v7498_v22, %v7498_v22  ;;  %v16022_v19 = vld [vmem:[#allocation9 + $0xd8] sm:$0xff]  ;;  %v7503_v56 = vunpack.c.h.b16 %v7464_v43  ;;  %v7531_v10 = vpack.c.b16 %v7499_v27, %v7499_v27  ;;  %v15804_v52 = vld [vmem:[#allocation2 + $0x8] sm:$0xf0]  ;;  %10127 = vmatpush.bf16.msrb.mxu1 %v16034_v1  ;;  %v15915_v27 = vld [vmem:[#allocation9 + $0x80] sm:$0xff] }
 0x6f3   : > { %7361 = vst [vmem:[#allocation2 + $0x2c8] sm:$0xf] %v7237_v20  ;;  %v7466_v41 = vsel %vm16979_vm5, %v7395_v38, %v7434_v49  ;;  %5941 = vmatmul.bf16.gmra.mxu0 %v13900_v39  ;;  %v19673_v35 = vshll.u32 %v17954_v18, 16  ;;  %v7504_v44 = vunpack.c.l.b16 %v7465_v59  ;;  %v7532_v11 = vpack.c.b16 %v7500_v61, %v7500_v61  ;;  %v15917_v18 = vld [vmem:[#allocation9 + $0x90] sm:$0xff]  ;;  %v14007_v61 = vld [vmem:[#allocation2 + $0x8] sm:$0xf] }
 0x6f4   : > { %7590 = vst [vmem:[#allocation2 + $0x68] sm:$0xf] %v18313_v4  ;;  %v19672_v4 = vshll.u32 %v17935_v42, 16  ;;  %9962 = vmatpush.bf16.msrb.mxu0 %v16022_v19  ;;  %v7505_v57 = vunpack.c.h.b16 %v7465_v59  ;;  %v7533_v2 = vpack.c.b16 %v7501_v62, %v7501_v62  ;;  %v7506_v24 = vunpack.c.l.b16 %v7466_v41  ;;  %8833 = vmatpush.bf16.msrb.mxu3 %v15917_v18  ;;  %v14479_v5 = vld [vmem:[#allocation2 + $0x30] sm:$0xf]  ;;  %v19674_v39 = vld [vmem:[#allocation23_spill] sm:$0xff] }
 0x6f5   : > { %7591 = vst [vmem:[#allocation2 + $0x74] sm:$0xf] %v18315_v29  ;;  %v15907_v29 = vld [vmem:[#allocation9 + $0x40] sm:$0xff]  ;;  %v7436_v53 = vrot.slane %v19673_v35, 4  ;;  %v7534_v23 = vpack.c.b16 %v7502_v30, %v7502_v30  ;;  %v14004_v3 = vor.u32 %v15803_v58, %v14001_v32  ;;  %v7507_v47 = vunpack.c.h.b16 %v7466_v41  ;;  %v15924_v59 = vld [vmem:[#allocation2 + $0x38] sm:$0xf0] }
 0x6f6   : > { %7594 = vst [vmem:[#allocation2 + $0x98] sm:$0xf] %v7526_v48  ;;  %v7435_v20 = vrot.slane %v19672_v4, 4  ;;  %8666 = vmatpush.bf16.msrb.mxu2 %v15907_v29  ;;  %v7535_v0 = vpack.c.b16 %v7503_v56, %v7503_v56  ;;  %v7536_v55 = vpack.c.b16 %v7504_v44, %v7504_v44  ;;  %v7537_v38 = vpack.c.b16 %v7505_v57, %v7505_v57  ;;  %v15806_v29 = vld [vmem:[#allocation2 + $0x1c] sm:$0xf] }
 0x6f7   : > { %7595 = vst [vmem:[#allocation2 + $0xa4] sm:$0xf] %v7527_v15  ;;  %v7468_v28 = vsel %vm16979_vm5, %v7399_v31, %v7436_v53  ;;  %v7538_v48 = vpack.c.b16 %v7506_v24, %v7506_v24  ;;  %v14000_v21 = vor.u32 %v15804_v52, %v13999_v16  ;;  %v7539_v43 = vpack.c.b16 %v7507_v47, %v7507_v47  ;;  %v16019_v15 = vld [vmem:[#allocation9 + $0xc0] sm:$0xff]  ;;  %v14013_v35 = vld [vmem:[#allocation2 + $0x24] sm:$0xf0] }
 0x6f8   : > { %7598 = vst [vmem:[#allocation2 + $0xc8] sm:$0xf] %v7528_v14  ;;  %v7467_v42 = vsel %vm16979_vm5, %v7397_v63, %v7435_v20  ;;  %9963 = vmatpush.bf16.msrb.mxu0 %v16021_v40  ;;  %v7510_v22 = vunpack.c.l.b16 %v7468_v28  ;;  %v7511_v49 = vunpack.c.h.b16 %v7468_v28  ;;  %v7512_v25 = vunpack.c.l.b16 %v18278_v6  ;;  %8834 = vmatpush.bf16.msrb.mxu3 %v15916_v13  ;;  %v15805_v14 = vld [vmem:[#allocation2 + $0x10] sm:$0xf0]  ;;  %v15808_v18 = vld [vmem:[#allocation2 + $0x28] sm:$0xf0] }
 0x6f9   : > { %7599 = vst [vmem:[#allocation2 + $0xd4] sm:$0xf] %v7529_v60  ;;  %v7508_v51 = vunpack.c.l.b16 %v7467_v42  ;;  %8667 = vmatmul.bf16.vlgmr.msrb.gmra.mxu2 %v14004_v3  ;;  %v7509_v46 = vunpack.c.h.b16 %v7467_v42  ;;  %8498 = vmatmul.bf16.vlgmr.msra.gmra.mxu1 %v14000_v21  ;;  %v7514_v62 = vunpack.c.l.b16 %v18282_v26  ;;  %v6784_v9 = vsel %vm16585_vm2, %v19674_v39, %v6733_v8  ;;  %v14025_v16 = vld [vmem:[#allocation2 + $0x3c] sm:$0xf0]  ;;  %v14031_v52 = vld [vmem:[#allocation2 + $0x38] sm:$0xf] }
 0x6fa   : > { %7602 = vst [vmem:[#allocation2 + $0xf8] sm:$0xf] %v7530_v54  ;;  %v7542_v60 = vpack.c.b16 %v7510_v22, %v7510_v22  ;;  %v7515_v31 = vunpack.c.h.b16 %v18282_v26  ;;  %v7543_v30 = vpack.c.b16 %v7511_v49, %v7511_v49  ;;  %v14008_v54 = vor.u32 %v15805_v14, %v14007_v61  ;;  %v15811_v8 = vld [vmem:[#allocation2 + $0x40] sm:$0xf0]  ;;  %v14503_v22 = vld [vmem:[#allocation2 + $0x60] sm:$0xf] }
 0x6fb   : > { %7603 = vst [vmem:[#allocation2 + $0x104] sm:$0xf] %v7531_v10  ;;  %v7540_v63 = vpack.c.b16 %v7508_v51, %v7508_v51  ;;  %v7541_v12 = vpack.c.b16 %v7509_v46, %v7509_v46  ;;  %v7516_v6 = vunpack.c.l.b16 %v18286_v50  ;;  %v7544_v36 = vpack.c.b16 %v7512_v25, %v7512_v25  ;;  %v15927_v51 = vld [vmem:[#allocation2 + $0x50] sm:$0xf0]  ;;  %v14023_v46 = vld [vmem:[#allocation2 + $0x30] sm:$0xf] }
 0x6fc   : > { %7606 = vst [vmem:[#allocation2 + $0x128] sm:$0xf] %v7532_v11  ;;  %9964 = vmatpush.bf16.msrb.mxu0 %v16020_v7  ;;  %8835 = vmatpush.bf16.msrb.mxu3 %v15915_v27  ;;  %v14480_v19 = vor.u32 %v15924_v59, %v14479_v5  ;;  %v7517_v4 = vunpack.c.h.b16 %v18286_v50  ;;  %v7545_v20 = vpack.c.b16 %v7513_v33, %v7513_v33  ;;  %v6815_v41 = vsel %vm689_vm1, %v6784_v9, 0  ;;  %v14037_v27 = vld [vmem:[#allocation2 + $0x54] sm:$0xf0] }
 0x6fd   : > { %7607 = vst [vmem:[#allocation2 + $0x134] sm:$0xf] %v7533_v2  ;;  %v7546_v56 = vpack.c.b16 %v7514_v62, %v7514_v62  ;;  %v7128_v26 = vrot.slane %v19634_v45, 3  ;;  %v7547_v10 = vpack.c.b16 %v7515_v31, %v7515_v31  ;;  %v7548_v53 = vpack.c.b16 %v7516_v6, %v7516_v6  ;;  %v14011_v2 = vld [vmem:[#allocation2 + $0x18] sm:$0xf] }
 0x6fe   : > { %7610 = vst [vmem:[#allocation2 + $0x158] sm:$0xf] %v7534_v23  ;;  %v6908_v44 = vunpack.c.l.b16 %v6815_v41  ;;  %v7549_v11 = vpack.c.b16 %v7517_v4, %v7517_v4  ;;  %v6909_v50 = vunpack.c.h.b16 %v6815_v41  ;;  %v14016_v57 = vor.u32 %v15806_v29, %v14013_v35  ;;  %v15807_v45 = vld [vmem:[#allocation2 + $0x20] sm:$0xf0]  ;;  %v15813_v61 = vld [vmem:[#allocation2 + $0x50] sm:$0xf0] }
 0x6ff   : > { %7611 = vst [vmem:[#allocation2 + $0x164] sm:$0xf] %v7535_v0  ;;  %8836 = vmatmul.bf16.vlgmr.msrb.gmra.mxu3 %v14008_v54  ;;  %v7160_v42 = vsel %vm16585_vm2, %v7128_v26, 0  ;;  %v14012_v23 = vor.u32 %v15807_v45, %v14011_v2  ;;  %v14020_v47 = vor.u32 %v15808_v18, %v14019_v37  ;;  %v14491_v0 = vld [vmem:[#allocation2 + $0x48] sm:$0xf]  ;;  %v14032_v21 = vor.u32 %v15811_v8, %v14031_v52 }
 0x700   : > { %7614 = vst [vmem:[#allocation2 + $0x188] sm:$0xf] %v7536_v55  ;;  %9965 = vmatpush.bf16.msrb.mxu0 %v16019_v15  ;;  %v6972_v58 = vpack.c.b16 %v6908_v44, %v6908_v44  ;;  %v6973_v32 = vpack.c.b16 %v6909_v50, %v6909_v50  ;;  %v7206_v24 = vunpack.c.l.b16 %v7160_v42  ;;  %v7207_v3 = vunpack.c.h.b16 %v7160_v42  ;;  %v19675_v55 = vld [vmem:[#allocation21_spill] sm:$0xff]  ;;  %v16033_v15 = vld [vmem:[#allocation9 + $0x130] sm:$0xff]  ;;  %v15933_v62 = vld [vmem:[#allocation2 + $0x80] sm:$0xf0] }
 0x701   : > { %7615 = vst [vmem:[#allocation2 + $0x194] sm:$0xf] %v7537_v38  ;;  %v14492_v13 = vor.u32 %v15927_v51, %v14491_v0  ;;  %v15810_v38 = vld [vmem:[#allocation2 + $0x38] sm:$0xf0]  ;;  %10128 = vmatpush.bf16.msrb.mxu1 %v16033_v15  ;;  %v14043_v33 = vld [vmem:[#allocation2 + $0x50] sm:$0xf] }
 0x702   : > { %7618 = vst [vmem:[#allocation2 + $0x1b8] sm:$0xf] %v7538_v48  ;;  %v7238_v40 = vpack.c.b16 %v7206_v24, %v7206_v24  ;;  %v7239_v28 = vpack.c.b16 %v7207_v3, %v7207_v3  ;;  %v14024_v7 = vor.u32 %v15810_v38, %v14023_v46  ;;  %v15930_v48 = vld [vmem:[#allocation2 + $0x68] sm:$0xf0]  ;;  %v14515_v59 = vld [vmem:[#allocation2 + $0x78] sm:$0xf] }
 0x703   : > { %7619 = vst [vmem:[#allocation2 + $0x1c4] sm:$0xf] %v7539_v43  ;;  %9966 = vmatmul.bf16.vlgmr.msrb.gmra.mxu0 %v14480_v19  ;;  %v14504_v49 = vor.u32 %v15930_v48, %v14503_v22  ;;  %v15812_v43 = vld [vmem:[#allocation2 + $0x4c] sm:$0xf]  ;;  %v15815_v39 = vld [vmem:[#allocation2 + $0x64] sm:$0xf] }
 0x704   : > { %7622 = vst [vmem:[#allocation2 + $0x1e8] sm:$0xf] %v7540_v63  ;;  %v14040_v25 = vor.u32 %v15812_v43, %v14037_v27  ;;  %v14035_v63 = vld [vmem:[#allocation2 + $0x48] sm:$0xf]  ;;  %v14049_v9 = vld [vmem:[#allocation2 + $0x6c] sm:$0xf0] }
 0x705   : > { %7623 = vst [vmem:[#allocation2 + $0x1f4] sm:$0xf] %v7541_v12  ;;  %v14036_v14 = vor.u32 %v15813_v61, %v14035_v63  ;;  %v15814_v12 = vld [vmem:[#allocation2 + $0x58] sm:$0xf0]  ;;  %v14052_v31 = vor.u32 %v15815_v39, %v14049_v9  ;;  %v15816_v54 = vld [vmem:[#allocation2 + $0x68] sm:$0xf0] }
 0x706   : > { %7626 = vst [vmem:[#allocation2 + $0x218] sm:$0xf] %v7542_v60  ;;  %v14044_v5 = vor.u32 %v15814_v12, %v14043_v33  ;;  %v14516_v60 = vor.u32 %v15933_v62, %v14515_v59  ;;  %v15817_v19 = vld [vmem:[#allocation2 + $0x70] sm:$0xf0]  ;;  %v14527_v4 = vld [vmem:[#allocation2 + $0x90] sm:$0xf] }
 0x707   : > { %7627 = vst [vmem:[#allocation2 + $0x224] sm:$0xf] %v7543_v30  ;;  %v14047_v30 = vld [vmem:[#allocation2 + $0x60] sm:$0xf]  ;;  %v15818_v26 = vld [vmem:[#allocation2 + $0x7c] sm:$0xf] }
 0x708   : > { %7630 = vst [vmem:[#allocation2 + $0x248] sm:$0xf] %v7544_v36  ;;  %v14048_v6 = vor.u32 %v15816_v54, %v14047_v30  ;;  %v14055_v36 = vld [vmem:[#allocation2 + $0x68] sm:$0xf]  ;;  %v14059_v35 = vld [vmem:[#allocation2 + $0x78] sm:$0xf] }
 0x709   : > { %7631 = vst [vmem:[#allocation2 + $0x254] sm:$0xf] %v7545_v20  ;;  %8672 = vmatmul.bf16.gmra.mxu2 %v14016_v57  ;;  %8503 = vmatmul.bf16.gmra.mxu1 %v14012_v23  ;;  %v15936_v20 = vld [vmem:[#allocation2 + $0x98] sm:$0xf0]  ;;  %v14056_v41 = vor.u32 %v15817_v19, %v14055_v36  ;;  %v15820_v50 = vld [vmem:[#allocation2 + $0x88] sm:$0xf0] }
 0x70a   : > { %7634 = vst [vmem:[#allocation2 + $0x278] sm:$0xf] %v7546_v56  ;;  %v14528_v56 = vor.u32 %v15936_v20, %v14527_v4  ;;  %v14539_v57 = vld [vmem:[#allocation2 + $0xa8] sm:$0xf]  ;;  %v15939_v2 = vld [vmem:[#allocation2 + $0xb0] sm:$0xf0] }
 0x70b   : > { %7635 = vst [vmem:[#allocation2 + $0x284] sm:$0xf] %v7547_v10  ;;  %v14061_v10 = vld [vmem:[#allocation2 + $0x84] sm:$0xf0]  ;;  %v14540_v45 = vor.u32 %v15939_v2, %v14539_v57  ;;  %v14071_v23 = vld [vmem:[#allocation2 + $0x90] sm:$0xf] }
 0x70c   : > { %7638 = vst [vmem:[#allocation2 + $0x2a8] sm:$0xf] %v7548_v53  ;;  %v14064_v29 = vor.u32 %v15818_v26, %v14061_v10  ;;  %v15819_v53 = vld [vmem:[#allocation2 + $0x80] sm:$0xf0]  ;;  %v15822_v3 = vld [vmem:[#allocation2 + $0x98] sm:$0xf0] }
 0x70d   : > { %7639 = vst [vmem:[#allocation2 + $0x2b4] sm:$0xf] %v7549_v11  ;;  %v14060_v44 = vor.u32 %v15819_v53, %v14059_v35  ;;  %v14067_v11 = vld [vmem:[#allocation2 + $0x80] sm:$0xf]  ;;  %v14072_v37 = vor.u32 %v15822_v3, %v14071_v23  ;;  %v15942_v0 = vld [vmem:[#allocation2 + $0xc8] sm:$0xf0] }
 0x70e   : > { %7642 = vst [vmem:[#allocation2 + $0x2d8] sm:$0xf] %v18329_v17  ;;  %v19676_v17 = vld [vmem:[#allocation22_spill] sm:$0xff]  ;;  %v14068_v42 = vor.u32 %v15820_v50, %v14067_v11  ;;  %v15825_v52 = vld [vmem:[#allocation2 + $0xb0] sm:$0xf0] }
 0x70f   : > { %7643 = vst [vmem:[#allocation2 + $0x2e4] sm:$0xf] %v18331_v34  ;;  %8841 = vmatmul.bf16.gmra.mxu3 %v14020_v47  ;;  %v15809_v34 = vld [vmem:[#allocation2 + $0x34] sm:$0xf]  ;;  %v14551_v47 = vld [vmem:[#allocation2 + $0xc0] sm:$0xf] }
 0x710   : > { %7100 = vst [vmem:[#allocation2 + $0x2e8] sm:$0xf] %v6972_v58  ;;  %v14028_v1 = vor.u32 %v15809_v34, %v14025_v16  ;;  %v14085_v34 = vld [vmem:[#allocation2 + $0xb4] sm:$0xf0]  ;;  %v16032_v16 = vld [vmem:[#allocation9 + $0x128] sm:$0xff] }
 0x711   : > { %7101 = vst [vmem:[#allocation2 + $0x2f4] sm:$0xf] %v6973_v32  ;;  %10129 = vmatpush.bf16.msrb.mxu1 %v16032_v16  ;;  %v14091_v22 = vld [vmem:[#allocation2 + $0xb0] sm:$0xf]  ;;  %v15826_v48 = vld [vmem:[#allocation2 + $0xb8] sm:$0xf0] }
 0x712   : > { %7112 = vst [vmem:[#allocation2 + $0x348] sm:$0xf] %v6972_v58  ;;  %v15821_v58 = vld [vmem:[#allocation2 + $0x94] sm:$0xf]  ;;  %v14563_v43 = vld [vmem:[#allocation2 + $0xd8] sm:$0xf] }
 0x713   : > { %7113 = vst [vmem:[#allocation2 + $0x354] sm:$0xf] %v6973_v32  ;;  %9971 = vmatmul.bf16.gmra.mxu0 %v14492_v13  ;;  %v14073_v32 = vld [vmem:[#allocation2 + $0x9c] sm:$0xf0]  ;;  %v15824_v13 = vld [vmem:[#allocation2 + $0xac] sm:$0xf] }
 0x714   : > { %7648 = vst [vmem:[#allocation2 + $0x320] sm:$0xf] %v19675_v55  ;;  %v14076_v24 = vor.u32 %v15821_v58, %v14073_v32  ;;  %v14088_v46 = vor.u32 %v15824_v13, %v14085_v34  ;;  %v15945_v27 = vld [vmem:[#allocation2 + $0xe0] sm:$0xf0]  ;;  %v14097_v61 = vld [vmem:[#allocation2 + $0xcc] sm:$0xf0] }
 0x715   : > { %7649 = vst [vmem:[#allocation2 + $0x32c] sm:$0xf] %v19676_v17  ;;  %v15827_v63 = vld [vmem:[#allocation2 + $0xc4] sm:$0xf]  ;;  %v14095_v12 = vld [vmem:[#allocation2 + $0xc0] sm:$0xf] }
 0x716   : > { %7364 = vst [vmem:[#allocation2 + $0x2ec] sm:$0xf] %v7238_v40  ;;  %v14100_v33 = vor.u32 %v15827_v63, %v14097_v61  ;;  %v15829_v30 = vld [vmem:[#allocation2 + $0xd0] sm:$0xf0]  ;;  %v14575_v54 = vld [vmem:[#allocation2 + $0xf0] sm:$0xf] }
 0x717   : > { %7365 = vst [vmem:[#allocation2 + $0x2f8] sm:$0xf] %v7239_v28  ;;  %v14109_v26 = vld [vmem:[#allocation2 + $0xe4] sm:$0xf0]  ;;  %v15831_v11 = vld [vmem:[#allocation2 + $0xe0] sm:$0xf0] }
 0x718   : > { %7376 = vst [vmem:[#allocation2 + $0x34c] sm:$0xf] %v7238_v40  ;;  %v14079_v40 = vld [vmem:[#allocation2 + $0x98] sm:$0xf]  ;;  %v15832_v58 = vld [vmem:[#allocation2 + $0xe8] sm:$0xf0] }
 0x719   : > { %7377 = vst [vmem:[#allocation2 + $0x358] sm:$0xf] %v7239_v28  ;;  %8677 = vmatmul.bf16.gmra.mxu2 %v14028_v1  ;;  %8508 = vmatmul.bf16.gmra.mxu1 %v14024_v7  ;;  %v15823_v28 = vld [vmem:[#allocation2 + $0xa0] sm:$0xf0]  ;;  %v14083_v7 = vld [vmem:[#allocation2 + $0xa8] sm:$0xf] }
 0x71a   : > { %7656 = vst [vmem:[#allocation2 + $0x350] sm:$0xf] %v19675_v55  ;;  %v14080_v55 = vor.u32 %v15823_v28, %v14079_v40  ;;  %v14084_v8 = vor.u32 %v15825_v52, %v14083_v7  ;;  %v14587_v3 = vld [vmem:[#allocation2 + $0x108] sm:$0xf]  ;;  %v14119_v13 = vld [vmem:[#allocation2 + $0xf0] sm:$0xf] }
 0x71b   : > { %7657 = vst [vmem:[#allocation2 + $0x35c] sm:$0xf] %v19676_v17  ;;  %v14552_v17 = vor.u32 %v15942_v0, %v14551_v47  ;;  %v15833_v0 = vld [vmem:[#allocation2 + $0xf4] sm:$0xf]  ;;  %v15834_v34 = vld [vmem:[#allocation2 + $0xf8] sm:$0xf0] }
 0x71c   : > { %v15836_v63 = vld [vmem:[#allocation2 + $0x10c] sm:$0xf]  ;;  %v14133_v61 = vld [vmem:[#allocation2 + $0x114] sm:$0xf0] }
 0x71f   : > { %8846 = vmatmul.bf16.gmra.mxu3 %v14032_v21 }
 0x723   : > { %9976 = vmatmul.bf16.gmra.mxu0 %v14504_v49  ;;  %v14092_v49 = vor.u32 %v15826_v48, %v14091_v22  ;;  %v15835_v22 = vld [vmem:[#allocation2 + $0x100] sm:$0xf0]  ;;  %v14599_v48 = vld [vmem:[#allocation2 + $0x120] sm:$0xf] }
 0x729   : > { %8682 = vmatmul.bf16.gmra.mxu2 %v14040_v25  ;;  %8513 = vmatmul.bf16.gmra.mxu1 %v14036_v14  ;;  %v14564_v25 = vor.u32 %v15945_v27, %v14563_v43 }
 0x72f   : > { %8851 = vmatmul.bf16.gmra.mxu3 %v14044_v5  ;;  %v15828_v5 = vld [vmem:[#allocation2 + $0xc8] sm:$0xf0] }
 0x733   : > { %9981 = vmatmul.bf16.gmra.mxu0 %v14516_v60  ;;  %v14096_v60 = vor.u32 %v15828_v5, %v14095_v12  ;;  %v14136_v5 = vor.u32 %v15836_v63, %v14133_v61 }
 0x739   : > { %8687 = vmatmul.bf16.gmra.mxu2 %v14052_v31  ;;  %8518 = vmatmul.bf16.gmra.mxu1 %v14048_v6  ;;  %v14103_v31 = vld [vmem:[#allocation2 + $0xc8] sm:$0xf]  ;;  %v15948_v6 = vld [vmem:[#allocation2 + $0xf8] sm:$0xf0] }
 0x73a   : > { %v14104_v19 = vor.u32 %v15829_v30, %v14103_v31  ;;  %v14576_v20 = vor.u32 %v15948_v6, %v14575_v54  ;;  %v14139_v54 = vld [vmem:[#allocation2 + $0x110] sm:$0xf]  ;;  %v15838_v6 = vld [vmem:[#allocation2 + $0x118] sm:$0xf0] }
 0x73f   : > { %8856 = vmatmul.bf16.gmra.mxu3 %v14056_v41 }
 0x743   : > { %9986 = vmatmul.bf16.gmra.mxu0 %v14528_v56  ;;  %v15830_v56 = vld [vmem:[#allocation2 + $0xdc] sm:$0xf] }
 0x744   : > { %v14112_v35 = vor.u32 %v15830_v56, %v14109_v26  ;;  %v15957_v56 = vld [vmem:[#allocation2 + $0x140] sm:$0xf0] }
 0x749   : > { %8692 = vmatmul.bf16.gmra.mxu2 %v14064_v29  ;;  %8523 = vmatmul.bf16.gmra.mxu1 %v14060_v44  ;;  %v14107_v44 = vld [vmem:[#allocation2 + $0xd8] sm:$0xf] }
 0x74a   : > { %v14108_v57 = vor.u32 %v15831_v11, %v14107_v44  ;;  %v15839_v44 = vld [vmem:[#allocation2 + $0x124] sm:$0xf]  ;;  %v14145_v11 = vld [vmem:[#allocation2 + $0x12c] sm:$0xf0] }
 0x74f   : > { %8861 = vmatmul.bf16.gmra.mxu3 %v14068_v42 }
 0x753   : > { %9991 = vmatmul.bf16.gmra.mxu0 %v14540_v45  ;;  %v14115_v45 = vld [vmem:[#allocation2 + $0xe0] sm:$0xf] }
 0x754   : > { %v14116_v23 = vor.u32 %v15832_v58, %v14115_v45  ;;  %v15840_v45 = vld [vmem:[#allocation2 + $0x128] sm:$0xf0] }
 0x756   : > { %v4410_v51 = vpop.f32.mrf.mxu1 }
 0x757   : > { %v14121_v51 = vld [vmem:[#allocation2 + $0xfc] sm:$0xf0] }
 0x759   : > { %8697 = vmatmul.bf16.gmra.mxu2 %v14076_v24  ;;  %8528 = vmatmul.bf16.gmra.mxu1 %v14072_v37  ;;  %v15951_v37 = vld [vmem:[#allocation2 + $0x110] sm:$0xf0] }
 0x75a   : > { %v14588_v28 = vor.u32 %v15951_v37, %v14587_v3 }
 0x75b   : > { %v5604_v18 = vpop.f32.mrf.mxu2 }
 0x75e   : > { %v4412_v38 = vpop.f32.mrf.mxu1 }
 0x75f   : > { %8866 = vmatmul.bf16.gmra.mxu3 %v14080_v55 }
 0x763   : > { %9996 = vmatmul.bf16.gmra.mxu0 %v14552_v17  ;;  %v5606_v1 = vpop.f32.mrf.mxu2  ;;  %v14124_v17 = vor.u32 %v15833_v0, %v14121_v51  ;;  %v15960_v0 = vld [vmem:[#allocation2 + $0x158] sm:$0xf0] }
 0x769   : > { %8702 = vmatmul.bf16.gmra.mxu2 %v14088_v46  ;;  %8533 = vmatmul.bf16.gmra.mxu1 %v14084_v8  ;;  %v14120_v46 = vor.u32 %v15834_v34, %v14119_v13  ;;  %v14127_v8 = vld [vmem:[#allocation2 + $0xf8] sm:$0xf] }
 0x76a   : > { %v14128_v43 = vor.u32 %v15835_v22, %v14127_v8  ;;  %v14155_v8 = vld [vmem:[#allocation2 + $0x138] sm:$0xf]  ;;  %v15843_v22 = vld [vmem:[#allocation2 + $0x140] sm:$0xf0] }
 0x76b   : > { %v5773_v21 = vpop.f32.mrf.mxu3 }
 0x76c   : > { %v15954_v21 = vld [vmem:[#allocation2 + $0x128] sm:$0xf0] }
 0x76f   : > { %8871 = vmatmul.bf16.gmra.mxu3 %v14092_v49 }
 0x770   : > { %v5942_v15 = vpop.f32.mrf.mxu0 }
 0x771   : > { %v14600_v15 = vor.u32 %v15954_v21, %v14599_v48 }
 0x773   : > { %10001 = vmatmul.bf16.gmra.mxu0 %v14564_v25  ;;  %v5775_v14 = vpop.f32.mrf.mxu3 }
 0x776   : > { %v8499_v62 = vpop.f32.mrf.mxu1 }
 0x778   : > { %v5944_v59 = vpop.f32.mrf.mxu0 }
 0x779   : > { %8707 = vmatmul.bf16.gmra.mxu2 %v14100_v33  ;;  %8538 = vmatmul.bf16.gmra.mxu1 %v14096_v60  ;;  %v16031_v33 = vld [vmem:[#allocation9 + $0x120] sm:$0xff]  ;;  %v15837_v60 = vld [vmem:[#allocation2 + $0x110] sm:$0xf0] }
 0x77a   : > { %10130 = vmatpush.bf16.msrb.mxu1 %v16031_v33  ;;  %v14635_v33 = vld [vmem:[#allocation2 + $0x168] sm:$0xf] }
 0x77c   : > { %v8668_v39 = vpop.f32.mrf.mxu2 }
 0x77d   : > { %v8669_v9 = vadd.f32 %v8668_v39, %v8499_v62  ;;  %v14131_v62 = vld [vmem:[#allocation2 + $0x108] sm:$0xf] }
 0x77e   : > { %v8501_v4 = vpop.f32.mrf.mxu1  ;;  %v14132_v31 = vor.u32 %v15837_v60, %v14131_v62 }
 0x77f   : > { %8876 = vmatmul.bf16.gmra.mxu3 %v14104_v19 }
 0x780   : > { %v18469_v36 = vpop.f32.mrf.mxu0 }
 0x782   : > { %v8837_v29 = vpop.f32.mrf.mxu3 }
 0x783   : > { %10006 = vmatmul.bf16.gmra.mxu0 %v14576_v20  ;;  %v18471_v53 = vadd.f32 %v8837_v29, %v8669_v9  ;;  %v14140_v20 = vor.u32 %v15838_v6, %v14139_v54 }
 0x784   : > { %v8670_v41 = vpop.f32.mrf.mxu2 }
 0x785   : > { %v8671_v10 = vadd.f32 %v8670_v41, %v8501_v4  ;;  %v14611_v41 = vld [vmem:[#allocation2 + $0x138] sm:$0xf] }
 0x786   : > { %v8504_v42 = vpop.f32.mrf.mxu1  ;;  %v14612_v29 = vor.u32 %v15957_v56, %v14611_v41 }
 0x788   : > { %v18473_v50 = vpop.f32.mrf.mxu0 }
 0x789   : > { %8712 = vmatmul.bf16.gmra.mxu2 %v14112_v35  ;;  %8543 = vmatmul.bf16.gmra.mxu1 %v14108_v57  ;;  %v14148_v57 = vor.u32 %v15839_v44, %v14145_v11  ;;  %v14175_v44 = vld [vmem:[#allocation2 + $0x158] sm:$0xf]  ;;  %v15847_v11 = vld [vmem:[#allocation2 + $0x160] sm:$0xf0] }
 0x78a   : > { %v8839_v32 = vpop.f32.mrf.mxu3 }
 0x78b   : > { %v18475_v24 = vadd.f32 %v8839_v32, %v8671_v10 }
 0x78c   : > { %v8673_v2 = vpop.f32.mrf.mxu2 }
 0x78d   : > { %v14143_v2 = vld [vmem:[#allocation2 + $0x120] sm:$0xf] }
 0x78e   : > { %v8506_v40 = vpop.f32.mrf.mxu1 }
 0x78f   : > { %8881 = vmatmul.bf16.gmra.mxu3 %v14116_v23  ;;  %v14144_v23 = vor.u32 %v15840_v45, %v14143_v2  ;;  %v14151_v40 = vld [vmem:[#allocation2 + $0x128] sm:$0xf]  ;;  %v14176_v45 = vor.u32 %v15847_v11, %v14175_v44 }
 0x790   : > { %v9972_v18 = vpop.f32.mrf.mxu0 }
 0x792   : > { %v8842_v55 = vpop.f32.mrf.mxu3 }
 0x793   : > { %10011 = vmatmul.bf16.gmra.mxu0 %v14588_v28  ;;  %v15841_v28 = vld [vmem:[#allocation2 + $0x130] sm:$0xf0] }
 0x794   : > { %v8675_v47 = vpop.f32.mrf.mxu2  ;;  %v14152_v55 = vor.u32 %v15841_v28, %v14151_v40  ;;  %v16030_v40 = vld [vmem:[#allocation9 + $0x118] sm:$0xff] }
 0x795   : > { %v14623_v47 = vld [vmem:[#allocation2 + $0x150] sm:$0xf]  ;;  %10131 = vmatpush.bf16.msrb.mxu1 %v16030_v40 }
 0x796   : > { %v8509_v1 = vpop.f32.mrf.mxu1  ;;  %v14624_v13 = vor.u32 %v15960_v0, %v14623_v47 }
 0x798   : > { %v9974_v16 = vpop.f32.mrf.mxu0 }
 0x799   : > { %8717 = vmatmul.bf16.gmra.mxu2 %v14124_v17  ;;  %8548 = vmatmul.bf16.gmra.mxu1 %v14120_v46  ;;  %v15842_v16 = vld [vmem:[#allocation2 + $0x13c] sm:$0xf] }
 0x79a   : > { %v8844_v52 = vpop.f32.mrf.mxu3 }
 0x79c   : > { %v8678_v38 = vpop.f32.mrf.mxu2 }
 0x79d   : > { %v8679_v7 = vadd.f32 %v8678_v38, %v8509_v1  ;;  %v14157_v1 = vld [vmem:[#allocation2 + $0x144] sm:$0xf0] }
 0x79e   : > { %v8511_v27 = vpop.f32.mrf.mxu1 }
 0x79f   : > { %8886 = vmatmul.bf16.gmra.mxu3 %v14128_v43  ;;  %v14156_v43 = vor.u32 %v15843_v22, %v14155_v8 }
 0x7a0   : > { %v18477_v49 = vpop.f32.mrf.mxu0 }
 0x7a2   : > { %v8847_v12 = vpop.f32.mrf.mxu3 }
 0x7a3   : > { %10016 = vmatmul.bf16.gmra.mxu0 %v14600_v15  ;;  %v18479_v59 = vadd.f32 %v8847_v12, %v8679_v7  ;;  %v14160_v7 = vor.u32 %v15842_v16, %v14157_v1  ;;  %v14163_v15 = vld [vmem:[#allocation2 + $0x140] sm:$0xf]  ;;  %v15963_v12 = vld [vmem:[#allocation2 + $0x170] sm:$0xf0] }
 0x7a4   : > { %v8680_v25 = vpop.f32.mrf.mxu2  ;;  %v14636_v60 = vor.u32 %v15963_v12, %v14635_v33  ;;  %v14193_v33 = vld [vmem:[#allocation2 + $0x18c] sm:$0xf0] }
 0x7a5   : > { %v8681_v14 = vadd.f32 %v8680_v25, %v8511_v27  ;;  %v15844_v25 = vld [vmem:[#allocation2 + $0x148] sm:$0xf0] }
 0x7a6   : > { %v8514_v9 = vpop.f32.mrf.mxu1 }
 0x7a8   : > { %v18481_v39 = vpop.f32.mrf.mxu0 }
 0x7a9   : > { %8722 = vmatmul.bf16.gmra.mxu2 %v14136_v5  ;;  %8553 = vmatmul.bf16.gmra.mxu1 %v14132_v31  ;;  %v15845_v31 = vld [vmem:[#allocation2 + $0x154] sm:$0xf] }
 0x7aa   : > { %v8849_v19 = vpop.f32.mrf.mxu3 }
 0x7ab   : > { %v18483_v4 = vadd.f32 %v8849_v19, %v8681_v14  ;;  %v14164_v14 = vor.u32 %v15844_v25, %v14163_v15  ;;  %v14167_v19 = vld [vmem:[#allocation2 + $0x150] sm:$0xf] }
 0x7ac   : > { %v8683_v30 = vpop.f32.mrf.mxu2 }
 0x7ad   : > { %v14169_v30 = vld [vmem:[#allocation2 + $0x15c] sm:$0xf0] }
 0x7ae   : > { %v8516_v10 = vpop.f32.mrf.mxu1  ;;  %v14172_v6 = vor.u32 %v15845_v31, %v14169_v30 }
 0x7af   : > { %8891 = vmatmul.bf16.gmra.mxu3 %v14140_v20  ;;  %v15846_v20 = vld [vmem:[#allocation2 + $0x158] sm:$0xf0] }
 0x7b0   : > { %v9982_v26 = vpop.f32.mrf.mxu0 }
 0x7b1   : > { %v14168_v26 = vor.u32 %v15846_v20, %v14167_v19  ;;  %v14199_v20 = vld [vmem:[#allocation2 + $0x188] sm:$0xf] }
 0x7b2   : > { %v8852_v42 = vpop.f32.mrf.mxu3 }
 0x7b3   : > { %10021 = vmatmul.bf16.gmra.mxu0 %v14612_v29  ;;  %v14647_v42 = vld [vmem:[#allocation2 + $0x180] sm:$0xf] }
 0x7b4   : > { %v8685_v35 = vpop.f32.mrf.mxu2 }
 0x7b6   : > { %v8519_v32 = vpop.f32.mrf.mxu1 }
 0x7b8   : > { %v9984_v58 = vpop.f32.mrf.mxu0 }
 0x7b9   : > { %8727 = vmatmul.bf16.gmra.mxu2 %v14148_v57  ;;  %8558 = vmatmul.bf16.gmra.mxu1 %v14144_v23  ;;  %v15966_v57 = vld [vmem:[#allocation2 + $0x188] sm:$0xf0] }
 0x7ba   : > { %v8854_v18 = vpop.f32.mrf.mxu3 }
 0x7bc   : > { %v8688_v3 = vpop.f32.mrf.mxu2 }
 0x7bd   : > { %v8689_v37 = vadd.f32 %v8688_v3, %v8519_v32  ;;  %v14648_v32 = vor.u32 %v15966_v57, %v14647_v42  ;;  %v15848_v3 = vld [vmem:[#allocation2 + $0x16c] sm:$0xf]  ;;  %v15854_v42 = vld [vmem:[#allocation2 + $0x19c] sm:$0xf]  ;;  %v14205_v57 = vld [vmem:[#allocation2 + $0x1a4] sm:$0xf0] }
 0x7be   : > { %v8521_v17 = vpop.f32.mrf.mxu1 }
 0x7bf   : > { %8896 = vmatmul.bf16.gmra.mxu3 %v14152_v55  ;;  %v14179_v55 = vld [vmem:[#allocation2 + $0x168] sm:$0xf] }
 0x7c0   : > { %v18485_v51 = vpop.f32.mrf.mxu0 }
 0x7c2   : > { %v8857_v38 = vpop.f32.mrf.mxu3 }
 0x7c3   : > { %10026 = vmatmul.bf16.gmra.mxu0 %v14624_v13  ;;  %v18487_v52 = vadd.f32 %v8857_v38, %v8689_v37  ;;  %v14181_v37 = vld [vmem:[#allocation2 + $0x174] sm:$0xf0]  ;;  %v15850_v38 = vld [vmem:[#allocation2 + $0x178] sm:$0xf0] }
 0x7c4   : > { %v8690_v34 = vpop.f32.mrf.mxu2  ;;  %v14184_v47 = vor.u32 %v15848_v3, %v14181_v37  ;;  %v14203_v3 = vld [vmem:[#allocation2 + $0x198] sm:$0xf]  ;;  %v15855_v37 = vld [vmem:[#allocation2 + $0x1a0] sm:$0xf0] }
 0x7c5   : > { %v8691_v46 = vadd.f32 %v8690_v34, %v8521_v17  ;;  %v15849_v17 = vld [vmem:[#allocation2 + $0x170] sm:$0xf0] }
 0x7c6   : > { %v8524_v21 = vpop.f32.mrf.mxu1  ;;  %v14180_v16 = vor.u32 %v15849_v17, %v14179_v55  ;;  %v14211_v55 = vld [vmem:[#allocation2 + $0x1a0] sm:$0xf]  ;;  %v15856_v17 = vld [vmem:[#allocation2 + $0x1a8] sm:$0xf0] }
 0x7c7   : > { %v14659_v21 = vld [vmem:[#allocation2 + $0x198] sm:$0xf] }
 0x7c8   : > { %v18489_v48 = vpop.f32.mrf.mxu0 }
 0x7c9   : > { %8732 = vmatmul.bf16.gmra.mxu2 %v14160_v7  ;;  %8563 = vmatmul.bf16.gmra.mxu1 %v14156_v43  ;;  %v15969_v43 = vld [vmem:[#allocation2 + $0x1a0] sm:$0xf0] }
 0x7ca   : > { %v8859_v63 = vpop.f32.mrf.mxu3  ;;  %v14660_v25 = vor.u32 %v15969_v43, %v14659_v21 }
 0x7cb   : > { %v18491_v61 = vadd.f32 %v8859_v63, %v8691_v46  ;;  %v14187_v46 = vld [vmem:[#allocation2 + $0x170] sm:$0xf] }
 0x7cc   : > { %v8693_v27 = vpop.f32.mrf.mxu2  ;;  %v14188_v22 = vor.u32 %v15850_v38, %v14187_v46  ;;  %v14683_v46 = vld [vmem:[#allocation2 + $0x1c8] sm:$0xf]  ;;  %v15975_v38 = vld [vmem:[#allocation2 + $0x1d0] sm:$0xf0] }
 0x7cd   : > { %v14684_v21 = vor.u32 %v15975_v38, %v14683_v46  ;;  %v14707_v38 = vld [vmem:[#allocation2 + $0x1f8] sm:$0xf] }
 0x7ce   : > { %v8526_v62 = vpop.f32.mrf.mxu1 }
 0x7cf   : > { %8901 = vmatmul.bf16.gmra.mxu3 %v14164_v14  ;;  %v15851_v14 = vld [vmem:[#allocation2 + $0x184] sm:$0xf]  ;;  %v14191_v62 = vld [vmem:[#allocation2 + $0x180] sm:$0xf] }
 0x7d0   : > { %v9992_v5 = vpop.f32.mrf.mxu0 }
 0x7d1   : > { %v14196_v5 = vor.u32 %v15851_v14, %v14193_v33  ;;  %v14215_v14 = vld [vmem:[#allocation2 + $0x1b0] sm:$0xf]  ;;  %v15858_v33 = vld [vmem:[#allocation2 + $0x1b8] sm:$0xf0] }
 0x7d2   : > { %v8862_v54 = vpop.f32.mrf.mxu3 }
 0x7d3   : > { %10031 = vmatmul.bf16.gmra.mxu0 %v14636_v60  ;;  %v15852_v60 = vld [vmem:[#allocation2 + $0x188] sm:$0xf0] }
 0x7d4   : > { %v8695_v9 = vpop.f32.mrf.mxu2  ;;  %v14192_v30 = vor.u32 %v15852_v60, %v14191_v62  ;;  %v14216_v62 = vor.u32 %v15858_v33, %v14215_v14  ;;  %v14239_v33 = vld [vmem:[#allocation2 + $0x1e0] sm:$0xf] }
 0x7d6   : > { %v8529_v56 = vpop.f32.mrf.mxu1 }
 0x7d8   : > { %v9994_v41 = vpop.f32.mrf.mxu0 }
 0x7d9   : > { %8737 = vmatmul.bf16.gmra.mxu2 %v14172_v6  ;;  %8568 = vmatmul.bf16.gmra.mxu1 %v14168_v26  ;;  %v15853_v41 = vld [vmem:[#allocation2 + $0x190] sm:$0xf0]  ;;  %v15972_v26 = vld [vmem:[#allocation2 + $0x1b8] sm:$0xf0] }
 0x7da   : > { %v8864_v35 = vpop.f32.mrf.mxu3 }
 0x7dc   : > { %v8698_v10 = vpop.f32.mrf.mxu2 }
 0x7dd   : > { %v8699_v29 = vadd.f32 %v8698_v10, %v8529_v56  ;;  %v14671_v56 = vld [vmem:[#allocation2 + $0x1b0] sm:$0xf] }
 0x7de   : > { %v8531_v58 = vpop.f32.mrf.mxu1  ;;  %v14672_v44 = vor.u32 %v15972_v26, %v14671_v56 }
 0x7df   : > { %8906 = vmatmul.bf16.gmra.mxu3 %v14176_v45 }
 0x7e0   : > { %v18493_v2 = vpop.f32.mrf.mxu0 }
 0x7e2   : > { %v8867_v28 = vpop.f32.mrf.mxu3 }
 0x7e3   : > { %10036 = vmatmul.bf16.gmra.mxu0 %v14648_v32  ;;  %v18495_v0 = vadd.f32 %v8867_v28, %v8699_v29  ;;  %v14200_v29 = vor.u32 %v15853_v41, %v14199_v20  ;;  %v14208_v32 = vor.u32 %v15854_v42, %v14205_v57  ;;  %v14204_v28 = vor.u32 %v15855_v37, %v14203_v3  ;;  %v16029_v42 = vld [vmem:[#allocation9 + $0x110] sm:$0xff] }
 0x7e4   : > { %v8700_v23 = vpop.f32.mrf.mxu2  ;;  %10132 = vmatpush.bf16.msrb.mxu1 %v16029_v42  ;;  %v15861_v3 = vld [vmem:[#allocation2 + $0x1d0] sm:$0xf0]  ;;  %v14253_v42 = vld [vmem:[#allocation2 + $0x204] sm:$0xf0] }
 0x7e5   : > { %v8701_v18 = vadd.f32 %v8700_v23, %v8531_v58 }
 0x7e6   : > { %v8534_v34 = vpop.f32.mrf.mxu1 }
 0x7e8   : > { %v18497_v13 = vpop.f32.mrf.mxu0 }
 0x7e9   : > { %8742 = vmatmul.bf16.gmra.mxu2 %v14184_v47  ;;  %8573 = vmatmul.bf16.gmra.mxu1 %v14180_v16 }
 0x7ea   : > { %v8869_v7 = vpop.f32.mrf.mxu3 }
 0x7eb   : > { %v18499_v8 = vadd.f32 %v8869_v7, %v8701_v18 }
 0x7ec   : > { %v8703_v1 = vpop.f32.mrf.mxu2 }
 0x7ed   : > { %v14212_v1 = vor.u32 %v15856_v17, %v14211_v55  ;;  %v14235_v55 = vld [vmem:[#allocation2 + $0x1d0] sm:$0xf]  ;;  %v15862_v17 = vld [vmem:[#allocation2 + $0x1d8] sm:$0xf0] }
 0x7ee   : > { %v8536_v15 = vpop.f32.mrf.mxu1  ;;  %v14236_v46 = vor.u32 %v15862_v17, %v14235_v55 }
 0x7ef   : > { %8911 = vmatmul.bf16.gmra.mxu3 %v14188_v22  ;;  %v14217_v15 = vld [vmem:[#allocation2 + $0x1bc] sm:$0xf0] }
 0x7f0   : > { %v10002_v27 = vpop.f32.mrf.mxu0 }
 0x7f1   : > { %v15857_v27 = vld [vmem:[#allocation2 + $0x1b4] sm:$0xf] }
 0x7f2   : > { %v8872_v12 = vpop.f32.mrf.mxu3 }
 0x7f3   : > { %10041 = vmatmul.bf16.gmra.mxu0 %v14660_v25 }
 0x7f4   : > { %v8705_v63 = vpop.f32.mrf.mxu2 }
 0x7f5   : > { %v14220_v63 = vor.u32 %v15857_v27, %v14217_v15  ;;  %v15863_v15 = vld [vmem:[#allocation2 + $0x1e4] sm:$0xf] }
 0x7f6   : > { %v8539_v31 = vpop.f32.mrf.mxu1 }
 0x7f8   : > { %v10004_v9 = vpop.f32.mrf.mxu0 }
 0x7f9   : > { %8747 = vmatmul.bf16.gmra.mxu2 %v14196_v5  ;;  %8578 = vmatmul.bf16.gmra.mxu1 %v14192_v30  ;;  %v14223_v30 = vld [vmem:[#allocation2 + $0x1b8] sm:$0xf] }
 0x7fa   : > { %v8874_v19 = vpop.f32.mrf.mxu3 }
 0x7fb   : > { %v15978_v19 = vld [vmem:[#allocation2 + $0x1e8] sm:$0xf0] }
 0x7fc   : > { %v8708_v54 = vpop.f32.mrf.mxu2 }
 0x7fd   : > { %v8709_v6 = vadd.f32 %v8708_v54, %v8539_v31  ;;  %v15859_v54 = vld [vmem:[#allocation2 + $0x1c0] sm:$0xf0] }
 0x7fe   : > { %v8541_v35 = vpop.f32.mrf.mxu1  ;;  %v14224_v41 = vor.u32 %v15859_v54, %v14223_v30  ;;  %v14247_v54 = vld [vmem:[#allocation2 + $0x1e8] sm:$0xf] }
 0x7ff   : > { %8916 = vmatmul.bf16.gmra.mxu3 %v14200_v29 }
 0x800   : > { %v18501_v10 = vpop.f32.mrf.mxu0 }
 0x802   : > { %v8877_v58 = vpop.f32.mrf.mxu3 }
 0x803   : > { %10046 = vmatmul.bf16.gmra.mxu0 %v14672_v44  ;;  %v18503_v23 = vadd.f32 %v8877_v58, %v8709_v6  ;;  %v14695_v6 = vld [vmem:[#allocation2 + $0x1e0] sm:$0xf]  ;;  %v14229_v44 = vld [vmem:[#allocation2 + $0x1d4] sm:$0xf0] }
 0x804   : > { %v8710_v11 = vpop.f32.mrf.mxu2  ;;  %v14696_v26 = vor.u32 %v15978_v19, %v14695_v6  ;;  %v15865_v6 = vld [vmem:[#allocation2 + $0x1f0] sm:$0xf0]  ;;  %v14719_v19 = vld [vmem:[#allocation2 + $0x210] sm:$0xf] }
 0x805   : > { %v8711_v45 = vadd.f32 %v8710_v11, %v8541_v35  ;;  %v15860_v35 = vld [vmem:[#allocation2 + $0x1cc] sm:$0xf] }
 0x806   : > { %v8544_v40 = vpop.f32.mrf.mxu1 }
 0x808   : > { %v18505_v18 = vpop.f32.mrf.mxu0 }
 0x809   : > { %8752 = vmatmul.bf16.gmra.mxu2 %v14208_v32  ;;  %8583 = vmatmul.bf16.gmra.mxu1 %v14204_v28  ;;  %v14227_v32 = vld [vmem:[#allocation2 + $0x1c8] sm:$0xf] }
 0x80a   : > { %v8879_v34 = vpop.f32.mrf.mxu3  ;;  %v14228_v28 = vor.u32 %v15861_v3, %v14227_v32 }
 0x80b   : > { %v18507_v16 = vadd.f32 %v8879_v34, %v8711_v45  ;;  %v14232_v45 = vor.u32 %v15860_v35, %v14229_v44 }
 0x80c   : > { %v8713_v47 = vpop.f32.mrf.mxu2 }
 0x80e   : > { %v8546_v22 = vpop.f32.mrf.mxu1 }
 0x80f   : > { %8921 = vmatmul.bf16.gmra.mxu3 %v14212_v1 }
 0x810   : > { %v10012_v7 = vpop.f32.mrf.mxu0 }
 0x811   : > { %v15981_v7 = vld [vmem:[#allocation2 + $0x200] sm:$0xf0] }
 0x812   : > { %v8882_v25 = vpop.f32.mrf.mxu3 }
 0x813   : > { %10051 = vmatmul.bf16.gmra.mxu0 %v14684_v21  ;;  %v14241_v25 = vld [vmem:[#allocation2 + $0x1ec] sm:$0xf0] }
 0x814   : > { %v8715_v43 = vpop.f32.mrf.mxu2  ;;  %v14244_v14 = vor.u32 %v15863_v15, %v14241_v25 }
 0x815   : > { %v14708_v43 = vor.u32 %v15981_v7, %v14707_v38  ;;  %v15868_v38 = vld [vmem:[#allocation2 + $0x208] sm:$0xf0] }
 0x816   : > { %v8549_v5 = vpop.f32.mrf.mxu1 }
 0x818   : > { %v10014_v12 = vpop.f32.mrf.mxu0 }
 0x819   : > { %8757 = vmatmul.bf16.gmra.mxu2 %v14220_v63  ;;  %8588 = vmatmul.bf16.gmra.mxu1 %v14216_v62  ;;  %v15864_v12 = vld [vmem:[#allocation2 + $0x1e8] sm:$0xf0] }
 0x81a   : > { %v8884_v31 = vpop.f32.mrf.mxu3 }
 0x81c   : > { %v8718_v60 = vpop.f32.mrf.mxu2 }
 0x81d   : > { %v8719_v9 = vadd.f32 %v8718_v60, %v8549_v5  ;;  %v14240_v60 = vor.u32 %v15864_v12, %v14239_v33  ;;  %v15869_v33 = vld [vmem:[#allocation2 + $0x214] sm:$0xf]  ;;  %v14265_v12 = vld [vmem:[#allocation2 + $0x21c] sm:$0xf0] }
 0x81e   : > { %v8551_v56 = vpop.f32.mrf.mxu1 }
 0x81f   : > { %8926 = vmatmul.bf16.gmra.mxu3 %v14224_v41  ;;  %v15984_v41 = vld [vmem:[#allocation2 + $0x218] sm:$0xf0] }
 0x820   : > { %v18509_v20 = vpop.f32.mrf.mxu0  ;;  %v14720_v35 = vor.u32 %v15984_v41, %v14719_v19 }
 0x822   : > { %v8887_v57 = vpop.f32.mrf.mxu3 }
 0x823   : > { %10056 = vmatmul.bf16.gmra.mxu0 %v14696_v26  ;;  %v18511_v58 = vadd.f32 %v8887_v57, %v8719_v9  ;;  %v14248_v26 = vor.u32 %v15865_v6, %v14247_v54 }
 0x824   : > { %v8720_v29 = vpop.f32.mrf.mxu2 }
 0x825   : > { %v8721_v11 = vadd.f32 %v8720_v29, %v8551_v56 }
 0x826   : > { %v8554_v40 = vpop.f32.mrf.mxu1 }
 0x827   : > { %v14251_v40 = vld [vmem:[#allocation2 + $0x1f8] sm:$0xf] }
 0x828   : > { %v18513_v37 = vpop.f32.mrf.mxu0 }
 0x829   : > { %8762 = vmatmul.bf16.gmra.mxu2 %v14232_v45  ;;  %8593 = vmatmul.bf16.gmra.mxu1 %v14228_v28  ;;  %v15867_v28 = vld [vmem:[#allocation2 + $0x200] sm:$0xf0] }
 0x82a   : > { %v8889_v34 = vpop.f32.mrf.mxu3  ;;  %v14252_v17 = vor.u32 %v15867_v28, %v14251_v40  ;;  %v15872_v40 = vld [vmem:[#allocation2 + $0x22c] sm:$0xf]  ;;  %v14277_v28 = vld [vmem:[#allocation2 + $0x234] sm:$0xf0] }
 0x82b   : > { %v18515_v1 = vadd.f32 %v8889_v34, %v8721_v11  ;;  %v15866_v11 = vld [vmem:[#allocation2 + $0x1fc] sm:$0xf] }
 0x82c   : > { %v8723_v47 = vpop.f32.mrf.mxu2  ;;  %v14256_v32 = vor.u32 %v15866_v11, %v14253_v42 }
 0x82e   : > { %v8556_v21 = vpop.f32.mrf.mxu1 }
 0x82f   : > { %8931 = vmatmul.bf16.gmra.mxu3 %v14236_v46  ;;  %v14259_v46 = vld [vmem:[#allocation2 + $0x200] sm:$0xf] }
 0x830   : > { %v10022_v22 = vpop.f32.mrf.mxu0  ;;  %v14260_v21 = vor.u32 %v15868_v38, %v14259_v46  ;;  %v14280_v46 = vor.u32 %v15872_v40, %v14277_v28  ;;  %v14295_v28 = vld [vmem:[#allocation2 + $0x248] sm:$0xf] }
 0x832   : > { %v8892_v63 = vpop.f32.mrf.mxu3 }
 0x833   : > { %10061 = vmatmul.bf16.gmra.mxu0 %v14708_v43  ;;  %v14731_v43 = vld [vmem:[#allocation2 + $0x228] sm:$0xf] }
 0x834   : > { %v8725_v27 = vpop.f32.mrf.mxu2 }
 0x835   : > { %v15987_v27 = vld [vmem:[#allocation2 + $0x230] sm:$0xf0] }
 0x836   : > { %v8559_v62 = vpop.f32.mrf.mxu1  ;;  %v14732_v63 = vor.u32 %v15987_v27, %v14731_v43 }
 0x838   : > { %v10024_v5 = vpop.f32.mrf.mxu0 }
 0x839   : > { %8767 = vmatmul.bf16.gmra.mxu2 %v14244_v14  ;;  %8598 = vmatmul.bf16.gmra.mxu1 %v14240_v60  ;;  %v14263_v60 = vld [vmem:[#allocation2 + $0x210] sm:$0xf] }
 0x83a   : > { %v8894_v30 = vpop.f32.mrf.mxu3 }
 0x83c   : > { %v8728_v9 = vpop.f32.mrf.mxu2 }
 0x83d   : > { %v8729_v31 = vadd.f32 %v8728_v9, %v8559_v62  ;;  %v14268_v62 = vor.u32 %v15869_v33, %v14265_v12  ;;  %v15870_v9 = vld [vmem:[#allocation2 + $0x218] sm:$0xf0] }
 0x83e   : > { %v8561_v29 = vpop.f32.mrf.mxu1  ;;  %v14264_v54 = vor.u32 %v15870_v9, %v14263_v60  ;;  %v15993_v60 = vld [vmem:[#allocation2 + $0x260] sm:$0xf0] }
 0x83f   : > { %8936 = vmatmul.bf16.gmra.mxu3 %v14248_v26  ;;  %v14271_v26 = vld [vmem:[#allocation2 + $0x218] sm:$0xf] }
 0x840   : > { %v18517_v56 = vpop.f32.mrf.mxu0 }
 0x842   : > { %v8897_v45 = vpop.f32.mrf.mxu3 }
 0x843   : > { %10066 = vmatmul.bf16.gmra.mxu0 %v14720_v35  ;;  %v18519_v3 = vadd.f32 %v8897_v45, %v8729_v31  ;;  %v14743_v35 = vld [vmem:[#allocation2 + $0x240] sm:$0xf] }
 0x844   : > { %v8730_v44 = vpop.f32.mrf.mxu2 }
 0x845   : > { %v8731_v57 = vadd.f32 %v8730_v44, %v8561_v29  ;;  %v15871_v29 = vld [vmem:[#allocation2 + $0x220] sm:$0xf0]  ;;  %v15990_v44 = vld [vmem:[#allocation2 + $0x248] sm:$0xf0] }
 0x846   : > { %v8564_v55 = vpop.f32.mrf.mxu1  ;;  %v14272_v42 = vor.u32 %v15871_v29, %v14271_v26  ;;  %v14744_v45 = vor.u32 %v15990_v44, %v14743_v35  ;;  %v14287_v29 = vld [vmem:[#allocation2 + $0x240] sm:$0xf]  ;;  %v15876_v35 = vld [vmem:[#allocation2 + $0x248] sm:$0xf0] }
 0x848   : > { %v18521_v47 = vpop.f32.mrf.mxu0 }
 0x849   : > { %8772 = vmatmul.bf16.gmra.mxu2 %v14256_v32  ;;  %8603 = vmatmul.bf16.gmra.mxu1 %v14252_v17  ;;  %v16028_v17 = vld [vmem:[#allocation9 + $0x108] sm:$0xff] }
 0x84a   : > { %v8899_v7 = vpop.f32.mrf.mxu3  ;;  %10133 = vmatpush.bf16.msrb.mxu1 %v16028_v17  ;;  %v14767_v17 = vld [vmem:[#allocation2 + $0x270] sm:$0xf] }
 0x84b   : > { %v18523_v22 = vadd.f32 %v8899_v7, %v8731_v57  ;;  %v14275_v7 = vld [vmem:[#allocation2 + $0x228] sm:$0xf] }
 0x84c   : > { %v8733_v34 = vpop.f32.mrf.mxu2 }
 0x84e   : > { %v8566_v25 = vpop.f32.mrf.mxu1 }
 0x84f   : > { %8941 = vmatmul.bf16.gmra.mxu3 %v14260_v21  ;;  %v15873_v21 = vld [vmem:[#allocation2 + $0x230] sm:$0xf0] }
 0x850   : > { %v10032_v15 = vpop.f32.mrf.mxu0 }
 0x851   : > { %v14276_v15 = vor.u32 %v15873_v21, %v14275_v7 }
 0x852   : > { %v8902_v5 = vpop.f32.mrf.mxu3 }
 0x853   : > { %10071 = vmatmul.bf16.gmra.mxu0 %v14732_v63  ;;  %v14283_v63 = vld [vmem:[#allocation2 + $0x230] sm:$0xf] }
 0x854   : > { %v8735_v14 = vpop.f32.mrf.mxu2 }
 0x855   : > { %v15874_v14 = vld [vmem:[#allocation2 + $0x238] sm:$0xf0] }
 0x856   : > { %v8569_v30 = vpop.f32.mrf.mxu1  ;;  %v14284_v5 = vor.u32 %v15874_v14, %v14283_v63  ;;  %v14301_v63 = vld [vmem:[#allocation2 + $0x264] sm:$0xf0] }
 0x858   : > { %v10034_v31 = vpop.f32.mrf.mxu0 }
 0x859   : > { %8777 = vmatmul.bf16.gmra.mxu2 %v14268_v62  ;;  %8608 = vmatmul.bf16.gmra.mxu1 %v14264_v54  ;;  %v14755_v62 = vld [vmem:[#allocation2 + $0x258] sm:$0xf] }
 0x85a   : > { %v8904_v41 = vpop.f32.mrf.mxu3 }
 0x85c   : > { %v8738_v6 = vpop.f32.mrf.mxu2 }
 0x85d   : > { %v8739_v19 = vadd.f32 %v8738_v6, %v8569_v30  ;;  %v14756_v30 = vor.u32 %v15993_v60, %v14755_v62  ;;  %v15875_v6 = vld [vmem:[#allocation2 + $0x244] sm:$0xf]  ;;  %v14299_v60 = vld [vmem:[#allocation2 + $0x258] sm:$0xf] }
 0x85e   : > { %v8571_v57 = vpop.f32.mrf.mxu1 }
 0x85f   : > { %8946 = vmatmul.bf16.gmra.mxu3 %v14272_v42 }
 0x860   : > { %v18525_v11 = vpop.f32.mrf.mxu0 }
 0x862   : > { %v8907_v34 = vpop.f32.mrf.mxu3 }
 0x863   : > { %10076 = vmatmul.bf16.gmra.mxu0 %v14744_v45  ;;  %v18527_v38 = vadd.f32 %v8907_v34, %v8739_v19  ;;  %v14289_v19 = vld [vmem:[#allocation2 + $0x24c] sm:$0xf0]  ;;  %v15996_v34 = vld [vmem:[#allocation2 + $0x278] sm:$0xf0] }
 0x864   : > { %v8740_v32 = vpop.f32.mrf.mxu2  ;;  %v14292_v26 = vor.u32 %v15875_v6, %v14289_v19  ;;  %v14307_v19 = vld [vmem:[#allocation2 + $0x260] sm:$0xf] }
 0x865   : > { %v8741_v55 = vadd.f32 %v8740_v32, %v8571_v57  ;;  %v14288_v57 = vor.u32 %v15876_v35, %v14287_v29 }
 0x866   : > { %v8574_v27 = vpop.f32.mrf.mxu1 }
 0x867   : > { %v14768_v27 = vor.u32 %v15996_v34, %v14767_v17 }
 0x868   : > { %v18529_v43 = vpop.f32.mrf.mxu0 }
 0x869   : > { %8782 = vmatmul.bf16.gmra.mxu2 %v14280_v46  ;;  %8613 = vmatmul.bf16.gmra.mxu1 %v14276_v15 }
 0x86a   : > { %v8909_v33 = vpop.f32.mrf.mxu3 }
 0x86b   : > { %v18531_v12 = vadd.f32 %v8909_v33, %v8741_v55  ;;  %v15877_v55 = vld [vmem:[#allocation2 + $0x250] sm:$0xf0] }
 0x86c   : > { %v8743_v25 = vpop.f32.mrf.mxu2  ;;  %v14296_v7 = vor.u32 %v15877_v55, %v14295_v28  ;;  %v15881_v28 = vld [vmem:[#allocation2 + $0x274] sm:$0xf]  ;;  %v14313_v55 = vld [vmem:[#allocation2 + $0x27c] sm:$0xf0] }
 0x86d   : > { %v15878_v25 = vld [vmem:[#allocation2 + $0x25c] sm:$0xf]  ;;  %v14316_v34 = vor.u32 %v15881_v28, %v14313_v55  ;;  %v14323_v28 = vld [vmem:[#allocation2 + $0x288] sm:$0xf]  ;;  %v15885_v55 = vld [vmem:[#allocation2 + $0x290] sm:$0xf0] }
 0x86e   : > { %v8576_v31 = vpop.f32.mrf.mxu1 }
 0x86f   : > { %8951 = vmatmul.bf16.gmra.mxu3 %v14284_v5  ;;  %v14304_v5 = vor.u32 %v15878_v25, %v14301_v63 }
 0x870   : > { %v10042_v9 = vpop.f32.mrf.mxu0 }
 0x871   : > { %v15879_v9 = vld [vmem:[#allocation2 + $0x260] sm:$0xf0] }
 0x872   : > { %v8912_v41 = vpop.f32.mrf.mxu3 }
 0x873   : > { %10081 = vmatmul.bf16.gmra.mxu0 %v14756_v30  ;;  %v15880_v41 = vld [vmem:[#allocation2 + $0x268] sm:$0xf0] }
 0x874   : > { %v8745_v54 = vpop.f32.mrf.mxu2  ;;  %v14308_v35 = vor.u32 %v15880_v41, %v14307_v19 }
 0x875   : > { %v14300_v54 = vor.u32 %v15879_v9, %v14299_v60  ;;  %v15883_v60 = vld [vmem:[#allocation2 + $0x280] sm:$0xf0]  ;;  %v14791_v9 = vld [vmem:[#allocation2 + $0x2a0] sm:$0xf] }
 0x876   : > { %v8579_v42 = vpop.f32.mrf.mxu1 }
 0x878   : > { %v10044_v44 = vpop.f32.mrf.mxu0 }
 0x879   : > { %8787 = vmatmul.bf16.gmra.mxu2 %v14292_v26  ;;  %8618 = vmatmul.bf16.gmra.mxu1 %v14288_v57  ;;  %v14779_v44 = vld [vmem:[#allocation2 + $0x288] sm:$0xf] }
 0x87a   : > { %v8914_v40 = vpop.f32.mrf.mxu3 }
 0x87c   : > { %v8748_v45 = vpop.f32.mrf.mxu2 }
 0x87d   : > { %v8749_v32 = vadd.f32 %v8748_v45, %v8579_v42  ;;  %v15999_v42 = vld [vmem:[#allocation2 + $0x290] sm:$0xf0] }
 0x87e   : > { %v8581_v21 = vpop.f32.mrf.mxu1 }
 0x87f   : > { %8956 = vmatmul.bf16.gmra.mxu3 %v14296_v7  ;;  %v14311_v7 = vld [vmem:[#allocation2 + $0x270] sm:$0xf] }
 0x880   : > { %v18533_v46 = vpop.f32.mrf.mxu0 }
 0x882   : > { %v8917_v33 = vpop.f32.mrf.mxu3 }
 0x883   : > { %10086 = vmatmul.bf16.gmra.mxu0 %v14768_v27  ;;  %v18535_v62 = vadd.f32 %v8917_v33, %v8749_v32  ;;  %v14780_v32 = vor.u32 %v15999_v42, %v14779_v44  ;;  %v14325_v44 = vld [vmem:[#allocation2 + $0x294] sm:$0xf0] }
 0x884   : > { %v8750_v15 = vpop.f32.mrf.mxu2 }
 0x885   : > { %v8751_v14 = vadd.f32 %v8750_v15, %v8581_v21  ;;  %v15882_v21 = vld [vmem:[#allocation2 + $0x278] sm:$0xf0] }
 0x886   : > { %v8584_v30 = vpop.f32.mrf.mxu1  ;;  %v14312_v25 = vor.u32 %v15882_v21, %v14311_v7  ;;  %v14324_v7 = vor.u32 %v15885_v55, %v14323_v28 }
 0x887   : > { %v16002_v30 = vld [vmem:[#allocation2 + $0x2a8] sm:$0xf0] }
 0x888   : > { %v18537_v31 = vpop.f32.mrf.mxu0  ;;  %v14792_v41 = vor.u32 %v16002_v30, %v14791_v9 }
 0x889   : > { %8792 = vmatmul.bf16.gmra.mxu2 %v14304_v5  ;;  %8623 = vmatmul.bf16.gmra.mxu1 %v14300_v54  ;;  %v14319_v5 = vld [vmem:[#allocation2 + $0x278] sm:$0xf] }
 0x88a   : > { %v8919_v26 = vpop.f32.mrf.mxu3 }
 0x88b   : > { %v18539_v29 = vadd.f32 %v8919_v26, %v8751_v14 }
 0x88c   : > { %v8753_v6 = vpop.f32.mrf.mxu2 }
 0x88d   : > { %19677 = vst [vmem:[#allocation29_spill] sm:$0xff] %v18539_v29  ;;  %v14320_v6 = vor.u32 %v15883_v60, %v14319_v5  ;;  %v14803_v5 = vld [vmem:[#allocation2 + $0x2b8] sm:$0xf]  ;;  %v16005_v60 = vld [vmem:[#allocation2 + $0x2c0] sm:$0xf0] }
 0x88e   : > { %v8586_v45 = vpop.f32.mrf.mxu1  ;;  %v14804_v30 = vor.u32 %v16005_v60, %v14803_v5  ;;  %v15019_v29 = vld [vmem:[#allocation2 + $0xd8] sm:$0xf] }
 0x88f   : > { %8961 = vmatmul.bf16.gmra.mxu3 %v14308_v35  ;;  %v15884_v35 = vld [vmem:[#allocation2 + $0x28c] sm:$0xf] }
 0x890   : > { %v10052_v57 = vpop.f32.mrf.mxu0 }
 0x891   : > { %v16027_v57 = vld [vmem:[#allocation9 + $0x100] sm:$0xff] }
 0x892   : > { %v8922_v17 = vpop.f32.mrf.mxu3  ;;  %10134 = vmatpush.bf16.msrb.mxu1 %v16027_v57  ;;  %v15888_v57 = vld [vmem:[#allocation2 + $0x2a8] sm:$0xf0] }
 0x893   : > { %10091 = vmatmul.bf16.gmra.mxu0 %v14780_v32  ;;  %v14328_v32 = vor.u32 %v15884_v35, %v14325_v44  ;;  %v14335_v44 = vld [vmem:[#allocation2 + $0x2a0] sm:$0xf] }
 0x894   : > { %v8755_v40 = vpop.f32.mrf.mxu2  ;;  %v14336_v28 = vor.u32 %v15888_v57, %v14335_v44  ;;  %v16154_v44 = vld [vmem:[#allocation9 + $0x1f8] sm:$0xff]  ;;  %v16039_v57 = vld [vmem:[#allocation9 + $0x160] sm:$0xff] }
 0x895   : > { %11659 = vmatpush.bf16.msra.mxu0 %v16154_v44  ;;  %v14827_v44 = vld [vmem:[#allocation2 + $0x2e8] sm:$0xf] }
 0x896   : > { %v8589_v15 = vpop.f32.mrf.mxu1 }
 0x898   : > { %v10054_v27 = vpop.f32.mrf.mxu0 }
 0x899   : > { %8797 = vmatmul.bf16.gmra.mxu2 %v14316_v34  ;;  %8628 = vmatmul.bf16.gmra.mxu1 %v14312_v25  ;;  %v14331_v27 = vld [vmem:[#allocation2 + $0x290] sm:$0xf] }
 0x89a   : > { %v8924_v33 = vpop.f32.mrf.mxu3 }
 0x89c   : > { %v8758_v63 = vpop.f32.mrf.mxu2 }
 0x89d   : > { %v8759_v14 = vadd.f32 %v8758_v63, %v8589_v15  ;;  %v15886_v15 = vld [vmem:[#allocation2 + $0x298] sm:$0xf0] }
 0x89e   : > { %v8591_v19 = vpop.f32.mrf.mxu1  ;;  %v14332_v33 = vor.u32 %v15886_v15, %v14331_v27  ;;  %v14343_v27 = vld [vmem:[#allocation2 + $0x2a8] sm:$0xf]  ;;  %v15889_v15 = vld [vmem:[#allocation2 + $0x2b0] sm:$0xf0] }
 0x89f   : > { %8966 = vmatmul.bf16.gmra.mxu3 %v14320_v6  ;;  %v14344_v60 = vor.u32 %v15889_v15, %v14343_v27  ;;  %v16145_v27 = vld [vmem:[#allocation9 + $0x1b0] sm:$0xff] }
 0x8a0   : > { %v18541_v54 = vpop.f32.mrf.mxu0  ;;  %v16153_v15 = vld [vmem:[#allocation9 + $0x1f0] sm:$0xff] }
 0x8a1   : > { %11660 = vmatpush.bf16.msra.mxu0 %v16153_v15 }
 0x8a2   : > { %v8927_v45 = vpop.f32.mrf.mxu3 }
 0x8a3   : > { %10096 = vmatmul.bf16.gmra.mxu0 %v14792_v41  ;;  %v18543_v40 = vadd.f32 %v8927_v45, %v8759_v14  ;;  %v14337_v41 = vld [vmem:[#allocation2 + $0x2ac] sm:$0xf0] }
 0x8a4   : > { %v8760_v26 = vpop.f32.mrf.mxu2 }
 0x8a5   : > { %v8761_v42 = vadd.f32 %v8760_v26, %v8591_v19  ;;  %19678 = vst [vmem:[#allocation30_spill] sm:$0xff] %v18543_v40  ;;  %v15887_v19 = vld [vmem:[#allocation2 + $0x2a4] sm:$0xf]  ;;  %v14971_v40 = vld [vmem:[#allocation2 + $0x78] sm:$0xf] }
 0x8a6   : > { %v8594_v34 = vpop.f32.mrf.mxu1  ;;  %v14340_v35 = vor.u32 %v15887_v19, %v14337_v41  ;;  %v15890_v19 = vld [vmem:[#allocation2 + $0x2bc] sm:$0xf]  ;;  %v14349_v41 = vld [vmem:[#allocation2 + $0x2c4] sm:$0xf0] }
 0x8a7   : > { %v16041_v34 = vld [vmem:[#allocation9 + $0x170] sm:$0xff] }
 0x8a8   : > { %v18545_v17 = vpop.f32.mrf.mxu0 }
 0x8a9   : > { %8802 = vmatmul.bf16.gmra.mxu2 %v14328_v32  ;;  %8633 = vmatmul.bf16.gmra.mxu1 %v14324_v7 }
 0x8aa   : > { %v8929_v25 = vpop.f32.mrf.mxu3 }
 0x8ab   : > { %v18547_v63 = vadd.f32 %v8929_v25, %v8761_v42  ;;  %v16042_v42 = vld [vmem:[#allocation9 + $0x178] sm:$0xff]  ;;  %v14815_v25 = vld [vmem:[#allocation2 + $0x2d0] sm:$0xf] }
 0x8ac   : > { %v8763_v21 = vpop.f32.mrf.mxu2  ;;  %10296 = vmatpush.bf16.msra.mxu2 %v16042_v42 }
 0x8ad   : > { %19679 = vst [vmem:[#allocation16_spill] sm:$0xff] %v18547_v63 }
 0x8ae   : > { %v8596_v14 = vpop.f32.mrf.mxu1 }
 0x8af   : > { %8971 = vmatmul.bf16.gmra.mxu3 %v14332_v33  ;;  %v16008_v33 = vld [vmem:[#allocation2 + $0x2d8] sm:$0xf0]  ;;  %v16040_v14 = vld [vmem:[#allocation9 + $0x168] sm:$0xff] }
 0x8b0   : > { %v10062_v9 = vpop.f32.mrf.mxu0  ;;  %10297 = vmatpush.bf16.msra.mxu2 %v16041_v34 }
 0x8b2   : > { %v8932_v26 = vpop.f32.mrf.mxu3 }
 0x8b3   : > { %10101 = vmatmul.bf16.gmra.mxu0 %v14804_v30  ;;  %v14816_v30 = vor.u32 %v16008_v33, %v14815_v25  ;;  %v16038_v25 = vld [vmem:[#allocation9 + $0x158] sm:$0xff] }
 0x8b4   : > { %v8765_v6 = vpop.f32.mrf.mxu2  ;;  %10298 = vmatpush.bf16.msra.mxu2 %v16040_v14  ;;  %v16152_v14 = vld [vmem:[#allocation9 + $0x1e8] sm:$0xff] }
 0x8b5   : > { %11661 = vmatpush.bf16.msra.mxu0 %v16152_v14 }
 0x8b6   : > { %v8599_v32 = vpop.f32.mrf.mxu1 }
 0x8b8   : > { %v10064_v45 = vpop.f32.mrf.mxu0  ;;  %10299 = vmatpush.bf16.msra.mxu2 %v16039_v57  ;;  %v16011_v57 = vld [vmem:[#allocation2 + $0x2f0] sm:$0xf0] }
 0x8b9   : > { %8807 = vmatmul.bf16.gmra.mxu2 %v14340_v35  ;;  %8638 = vmatmul.bf16.gmra.mxu1 %v14336_v28  ;;  %v16146_v35 = vld [vmem:[#allocation9 + $0x1b8] sm:$0xff] }
 0x8ba   : > { %v8934_v21 = vpop.f32.mrf.mxu3  ;;  %11490 = vmatpush.bf16.msra.mxu3 %v16146_v35  ;;  %v14347_v28 = vld [vmem:[#allocation2 + $0x2b8] sm:$0xf] }
 0x8bc   : > { %v8768_v55 = vpop.f32.mrf.mxu2  ;;  %10300 = vmatpush.bf16.msra.mxu2 %v16038_v25  ;;  %v14361_v25 = vld [vmem:[#allocation2 + $0x2dc] sm:$0xf0] }
 0x8bd   : > { %v8769_v7 = vadd.f32 %v8768_v55, %v8599_v32  ;;  %v14352_v32 = vor.u32 %v15890_v19, %v14349_v41  ;;  %v15891_v55 = vld [vmem:[#allocation2 + $0x2c0] sm:$0xf0] }
 0x8be   : > { %v8601_v9 = vpop.f32.mrf.mxu1  ;;  %v14348_v33 = vor.u32 %v15891_v55, %v14347_v28  ;;  %11491 = vmatpush.bf16.msra.mxu3 %v16145_v27  ;;  %v16143_v28 = vld [vmem:[#allocation9 + $0x1a0] sm:$0xff]  ;;  %v14828_v27 = vor.u32 %v16011_v57, %v14827_v44  ;;  %v16149_v57 = vld [vmem:[#allocation9 + $0x1d0] sm:$0xff] }
 0x8bf   : > { %8976 = vmatmul.bf16.gmra.mxu3 %v14344_v60  ;;  %v16151_v55 = vld [vmem:[#allocation9 + $0x1e0] sm:$0xff] }
 0x8c0   : > { %v18549_v5 = vpop.f32.mrf.mxu0  ;;  %11662 = vmatpush.bf16.msra.mxu0 %v16151_v55 }
 0x8c2   : > { %v8937_v45 = vpop.f32.mrf.mxu3 }
 0x8c3   : > { %10106 = vmatmul.bf16.gmra.mxu0 %v14816_v30  ;;  %v18551_v42 = vadd.f32 %v8937_v45, %v8769_v7  ;;  %v14355_v30 = vld [vmem:[#allocation2 + $0x2c0] sm:$0xf]  ;;  %v15892_v7 = vld [vmem:[#allocation2 + $0x2c8] sm:$0xf0] }
 0x8c4   : > { %v8770_v6 = vpop.f32.mrf.mxu2  ;;  %v14356_v35 = vor.u32 %v15892_v7, %v14355_v30  ;;  %v16035_v30 = vld [vmem:[#allocation9 + $0x140] sm:$0xff]  ;;  %v14359_v7 = vld [vmem:[#allocation2 + $0x2d0] sm:$0xf] }
 0x8c5   : > { %v8771_v26 = vadd.f32 %v8770_v6, %v8601_v9  ;;  %19680 = vst [vmem:[#allocation14_spill] sm:$0xff] %v18551_v42  ;;  %v16144_v9 = vld [vmem:[#allocation9 + $0x1a8] sm:$0xff]  ;;  %v16037_v6 = vld [vmem:[#allocation9 + $0x150] sm:$0xff] }
 0x8c6   : > { %v8604_v21 = vpop.f32.mrf.mxu1  ;;  %11492 = vmatpush.bf16.msra.mxu3 %v16144_v9  ;;  %10301 = vmatpush.bf16.msra.mxu2 %v16037_v6  ;;  %v15894_v6 = vld [vmem:[#allocation2 + $0x2d8] sm:$0xf0] }
 0x8c7   : > { %v16036_v21 = vld [vmem:[#allocation9 + $0x148] sm:$0xff] }
 0x8c8   : > { %v18553_v34 = vpop.f32.mrf.mxu0 }
 0x8c9   : > { %8812 = vmatmul.bf16.gmra.mxu2 %v14352_v32  ;;  %8643 = vmatmul.bf16.gmra.mxu1 %v14348_v33  ;;  %v15893_v33 = vld [vmem:[#allocation2 + $0x2d4] sm:$0xf] }
 0x8ca   : > { %v8939_v19 = vpop.f32.mrf.mxu3  ;;  %11493 = vmatpush.bf16.msra.mxu3 %v16143_v28  ;;  %10302 = vmatpush.bf16.msra.mxu2 %v16036_v21  ;;  %v14364_v14 = vor.u32 %v15893_v33, %v14361_v25  ;;  %v16148_v28 = vld [vmem:[#allocation9 + $0x1c8] sm:$0xff]  ;;  %v15895_v33 = vld [vmem:[#allocation2 + $0x2e0] sm:$0xf0]  ;;  %v14839_v25 = vld [vmem:[#allocation2 + $0x300] sm:$0xf] }
 0x8cb   : > { %v18555_v41 = vadd.f32 %v8939_v19, %v8771_v26  ;;  %v16142_v26 = vld [vmem:[#allocation9 + $0x198] sm:$0xff]  ;;  %v16140_v21 = vld [vmem:[#allocation9 + $0x188] sm:$0xff] }
 0x8cc   : > { %v8773_v60 = vpop.f32.mrf.mxu2 }
 0x8cd   : > { %19681 = vst [vmem:[#allocation19_spill] sm:$0xff] %v18555_v41  ;;  %v16150_v60 = vld [vmem:[#allocation9 + $0x1d8] sm:$0xff]  ;;  %v14379_v41 = vld [vmem:[#allocation2 + $0x2f0] sm:$0xf] }
 0x8ce   : > { %v8606_v32 = vpop.f32.mrf.mxu1  ;;  %11663 = vmatpush.bf16.msra.mxu0 %v16150_v60  ;;  %11494 = vmatpush.bf16.msra.mxu3 %v16142_v26  ;;  %v16014_v60 = vld [vmem:[#allocation2 + $0x308] sm:$0xf0] }
 0x8cf   : > { %8981 = vmatmul.bf16.gmra.mxu3 %v14356_v35  ;;  %10303 = vmatpush.bf16.msra.mxu2 %v16035_v30  ;;  %v16141_v35 = vld [vmem:[#allocation9 + $0x190] sm:$0xff] }
 0x8d0   : > { %v10072_v45 = vpop.f32.mrf.mxu0 }
 0x8d1   : > { %v14360_v45 = vor.u32 %v15894_v6, %v14359_v7  ;;  %v16147_v7 = vld [vmem:[#allocation9 + $0x1c0] sm:$0xff]  ;;  %v14840_v6 = vor.u32 %v16014_v60, %v14839_v25 }
 0x8d2   : > { %v8942_v9 = vpop.f32.mrf.mxu3  ;;  %11664 = vmatpush.bf16.msra.mxu0 %v16149_v57  ;;  %11495 = vmatpush.bf16.msra.mxu3 %v16141_v35  ;;  %v14373_v57 = vld [vmem:[#allocation2 + $0x2f4] sm:$0xf0] }
 0x8d3   : > { %10111 = vmatmul.bf16.gmra.mxu0 %v14828_v27 }
 0x8d4   : > { %v8775_v15 = vpop.f32.mrf.mxu2 }
 0x8d5   : > { %v14367_v15 = vld [vmem:[#allocation2 + $0x2d8] sm:$0xf] }
 0x8d6   : > { %v8609_v44 = vpop.f32.mrf.mxu1  ;;  %11665 = vmatpush.bf16.msra.mxu0 %v16148_v28  ;;  %11496 = vmatpush.bf16.msra.mxu3 %v16140_v21  ;;  %v14368_v30 = vor.u32 %v15895_v33, %v14367_v15  ;;  %v14371_v21 = vld [vmem:[#allocation2 + $0x2e8] sm:$0xf]  ;;  %v15897_v15 = vld [vmem:[#allocation2 + $0x2f0] sm:$0xf0] }
 0x8d7   : > { %v14372_v60 = vor.u32 %v15897_v15, %v14371_v21  ;;  %v15923_v15 = vld [vmem:[#allocation2 + $0x34] sm:$0xf] }
 0x8d8   : > { %v10074_v19 = vpop.f32.mrf.mxu0 }
 0x8d9   : > { %8817 = vmatmul.bf16.gmra.mxu2 %v14364_v14  ;;  %8648 = vmatmul.bf16.gmra.mxu1 %v14360_v45  ;;  %v16139_v14 = vld [vmem:[#allocation9 + $0x180] sm:$0xff]  ;;  %v16162_v45 = vld [vmem:[#allocation9 + $0x238] sm:$0xff] }
 0x8da   : > { %v8944_v27 = vpop.f32.mrf.mxu3  ;;  %11666 = vmatpush.bf16.msra.mxu0 %v16147_v7  ;;  %11497 = vmatpush.bf16.msra.mxu3 %v16139_v14  ;;  %v15898_v7 = vld [vmem:[#allocation2 + $0x2f8] sm:$0xf0] }
 0x8db   : > { %11828 = vmatpush.bf16.msra.mxu1 %v16162_v45  ;;  %v14380_v14 = vor.u32 %v15898_v7, %v14379_v41 }
 0x8dc   : > { %v8778_v32 = vpop.f32.mrf.mxu2 }
 0x8dd   : > { %v8779_v55 = vadd.f32 %v8778_v32, %v8609_v44  ;;  %v15896_v44 = vld [vmem:[#allocation2 + $0x2ec] sm:$0xf] }
 0x8de   : > { %v8611_v9 = vpop.f32.mrf.mxu1  ;;  %v14376_v27 = vor.u32 %v15896_v44, %v14373_v57  ;;  %v16017_v44 = vld [vmem:[#allocation2 + $0x320] sm:$0xf0] }
 0x8df   : > { %8986 = vmatmul.bf16.gmra.mxu3 %v14368_v30 }
 0x8e0   : > { %v18557_v26 = vpop.f32.mrf.mxu0 }
 0x8e2   : > { %v8947_v32 = vpop.f32.mrf.mxu3 }
 0x8e3   : > { %10116 = vmatmul.bf16.gmra.mxu0 %v14840_v6  ;;  %v18559_v28 = vadd.f32 %v8947_v32, %v8779_v55 }
 0x8e4   : > { %v8780_v19 = vpop.f32.mrf.mxu2 }
 0x8e5   : > { %v8781_v35 = vadd.f32 %v8780_v19, %v8611_v9  ;;  %19682 = vst [vmem:[#allocation24_spill] sm:$0xff] %v18559_v28  ;;  %v14851_v19 = vld [vmem:[#allocation2 + $0x318] sm:$0xf]  ;;  %v15925_v28 = vld [vmem:[#allocation2 + $0x40] sm:$0xf0] }
 0x8e6   : > { %v8614_v25 = vpop.f32.mrf.mxu1  ;;  %v14852_v45 = vor.u32 %v16017_v44, %v14851_v19  ;;  %v16043_v19 = vld [vmem:[#allocation2 + $0x64] sm:$0xf]  ;;  %v14961_v44 = vld [vmem:[#allocation2 + $0x6c] sm:$0xf0] }
 0x8e8   : > { %v18561_v33 = vpop.f32.mrf.mxu0 }
 0x8e9   : > { %8822 = vmatmul.bf16.gmra.mxu2 %v14376_v27  ;;  %8653 = vmatmul.bf16.gmra.mxu1 %v14372_v60  ;;  %v14487_v27 = vld [vmem:[#allocation2 + $0x38] sm:$0xf]  ;;  %v14481_v60 = vld [vmem:[#allocation2 + $0x3c] sm:$0xf0] }
 0x8ea   : > { %v8949_v6 = vpop.f32.mrf.mxu3  ;;  %v14488_v21 = vor.u32 %v15925_v28, %v14487_v27  ;;  %v15928_v28 = vld [vmem:[#allocation2 + $0x58] sm:$0xf0]  ;;  %v14964_v27 = vor.u32 %v16043_v19, %v14961_v44  ;;  %v16047_v19 = vld [vmem:[#allocation2 + $0x80] sm:$0xf0] }
 0x8eb   : > { %v18563_v9 = vadd.f32 %v8949_v6, %v8781_v35  ;;  %v14484_v35 = vor.u32 %v15923_v15, %v14481_v60 }
 0x8ec   : > { %v8783_v30 = vpop.f32.mrf.mxu2 }
 0x8ed   : > { %19683 = vst [vmem:[#allocation27_spill] sm:$0xff] %v18563_v9 }
 0x8ee   : > { %v8616_v55 = vpop.f32.mrf.mxu1 }
 0x8ef   : > { %8991 = vmatmul.bf16.gmra.mxu3 %v14380_v14  ;;  %v16044_v55 = vld [vmem:[#allocation2 + $0x68] sm:$0xf0] }
 0x8f0   : > { %v10082_v57 = vpop.f32.mrf.mxu0 }
 0x8f1   : > { %v14959_v57 = vld [vmem:[#allocation2 + $0x60] sm:$0xf] }
 0x8f2   : > { %v8952_v25 = vpop.f32.mrf.mxu3 }
 0x8f3   : > { %10121 = vmatmul.bf16.gmra.mxu0 %v14852_v45  ;;  %v14499_v25 = vld [vmem:[#allocation2 + $0x50] sm:$0xf] }
 0x8f4   : > { %v8785_v32 = vpop.f32.mrf.mxu2  ;;  %v14500_v15 = vor.u32 %v15928_v28, %v14499_v25  ;;  %v14972_v25 = vor.u32 %v16047_v19, %v14971_v40  ;;  %v14983_v40 = vld [vmem:[#allocation2 + $0x90] sm:$0xf]  ;;  %v16050_v19 = vld [vmem:[#allocation2 + $0x98] sm:$0xf0] }
 0x8f5   : > { %v14960_v32 = vor.u32 %v16044_v55, %v14959_v57 }
 0x8f6   : > { %v8619_v42 = vpop.f32.mrf.mxu1 }
 0x8f8   : > { %v10084_v30 = vpop.f32.mrf.mxu0 }
 0x8f9   : > { %10304 = vmatmul.bf16.vlgmr.msra.gmra.mxu2 %v14488_v21  ;;  %10135 = vmatmul.bf16.vlgmr.msrb.gmra.mxu1 %v14484_v35  ;;  %v15926_v30 = vld [vmem:[#allocation2 + $0x4c] sm:$0xf]  ;;  %v14493_v35 = vld [vmem:[#allocation2 + $0x54] sm:$0xf0] }
 0x8fa   : > { %v8954_v7 = vpop.f32.mrf.mxu3  ;;  %v14496_v63 = vor.u32 %v15926_v30, %v14493_v35  ;;  %v15929_v35 = vld [vmem:[#allocation2 + $0x64] sm:$0xf] }
 0x8fc   : > { %v8788_v6 = vpop.f32.mrf.mxu2 }
 0x8fd   : > { %v8789_v41 = vadd.f32 %v8788_v6, %v8619_v42 }
 0x8fe   : > { %v8621_v45 = vpop.f32.mrf.mxu1 }
 0x8ff   : > { %11498 = vmatmul.bf16.vlgmr.msra.gmra.mxu3 %v14960_v32  ;;  %v16046_v32 = vld [vmem:[#allocation2 + $0x7c] sm:$0xf] }
 0x900   : > { %v18565_v14 = vpop.f32.mrf.mxu0 }
 0x902   : > { %v8957_v60 = vpop.f32.mrf.mxu3 }
 0x903   : > { %11667 = vmatmul.bf16.vlgmr.msra.gmra.mxu0 %v14964_v27  ;;  %v18567_v42 = vadd.f32 %v8957_v60, %v8789_v41  ;;  %v15931_v60 = vld [vmem:[#allocation2 + $0x70] sm:$0xf0] }
 0x904   : > { %v8790_v9 = vpop.f32.mrf.mxu2 }
 0x905   : > { %v8791_v21 = vadd.f32 %v8790_v9, %v8621_v45  ;;  %19684 = vst [vmem:[#allocation18_spill] sm:$0xff] %v18567_v42  ;;  %v14973_v9 = vld [vmem:[#allocation2 + $0x84] sm:$0xf0] }
 0x906   : > { %v8624_v7 = vpop.f32.mrf.mxu1  ;;  %v14976_v28 = vor.u32 %v16046_v32, %v14973_v9  ;;  %v16049_v32 = vld [vmem:[#allocation2 + $0x94] sm:$0xf]  ;;  %v14985_v9 = vld [vmem:[#allocation2 + $0x9c] sm:$0xf0] }
 0x908   : > { %v18569_v6 = vpop.f32.mrf.mxu0 }
 0x909   : > { %10309 = vmatmul.bf16.gmra.mxu2 %v14500_v15  ;;  %10140 = vmatmul.bf16.gmra.mxu1 %v14496_v63  ;;  %v14511_v15 = vld [vmem:[#allocation2 + $0x68] sm:$0xf]  ;;  %v14505_v63 = vld [vmem:[#allocation2 + $0x6c] sm:$0xf0] }
 0x90a   : > { %v8959_v55 = vpop.f32.mrf.mxu3  ;;  %v14512_v30 = vor.u32 %v15931_v60, %v14511_v15  ;;  %v15934_v15 = vld [vmem:[#allocation2 + $0x88] sm:$0xf0]  ;;  %v14988_v60 = vor.u32 %v16049_v32, %v14985_v9  ;;  %v14995_v9 = vld [vmem:[#allocation2 + $0xa8] sm:$0xf] }
 0x90b   : > { %v18571_v44 = vadd.f32 %v8959_v55, %v8791_v21  ;;  %v14508_v21 = vor.u32 %v15929_v35, %v14505_v63  ;;  %v16161_v63 = vld [vmem:[#allocation9 + $0x230] sm:$0xff] }
 0x90c   : > { %v8793_v57 = vpop.f32.mrf.mxu2  ;;  %11829 = vmatpush.bf16.msra.mxu1 %v16161_v63 }
 0x90d   : > { %19685 = vst [vmem:[#allocation25_spill] sm:$0xff] %v18571_v44 }
 0x90e   : > { %v8626_v41 = vpop.f32.mrf.mxu1 }
 0x90f   : > { %11503 = vmatmul.bf16.gmra.mxu3 %v14972_v25  ;;  %v14984_v41 = vor.u32 %v16050_v19, %v14983_v40 }
 0x910   : > { %v10092_v45 = vpop.f32.mrf.mxu0 }
 0x912   : > { %v8962_v7 = vpop.f32.mrf.mxu3 }
 0x913   : > { %11672 = vmatmul.bf16.gmra.mxu0 %v14976_v28 }
 0x914   : > { %v8795_v27 = vpop.f32.mrf.mxu2 }
 0x915   : > { %v14523_v27 = vld [vmem:[#allocation2 + $0x80] sm:$0xf] }
 0x916   : > { %v8629_v42 = vpop.f32.mrf.mxu1  ;;  %v14524_v35 = vor.u32 %v15934_v15, %v14523_v27  ;;  %v14997_v27 = vld [vmem:[#allocation2 + $0xb4] sm:$0xf0] }
 0x918   : > { %v10094_v57 = vpop.f32.mrf.mxu0 }
 0x919   : > { %10314 = vmatmul.bf16.gmra.mxu2 %v14512_v30  ;;  %10145 = vmatmul.bf16.gmra.mxu1 %v14508_v21  ;;  %v15932_v21 = vld [vmem:[#allocation2 + $0x7c] sm:$0xf] }
 0x91a   : > { %v8964_v45 = vpop.f32.mrf.mxu3 }
 0x91c   : > { %v8798_v55 = vpop.f32.mrf.mxu2 }
 0x91d   : > { %v8799_v44 = vadd.f32 %v8798_v55, %v8629_v42  ;;  %v14517_v55 = vld [vmem:[#allocation2 + $0x84] sm:$0xf0] }
 0x91e   : > { %v8631_v28 = vpop.f32.mrf.mxu1  ;;  %v14520_v19 = vor.u32 %v15932_v21, %v14517_v55  ;;  %v14529_v55 = vld [vmem:[#allocation2 + $0x9c] sm:$0xf0] }
 0x91f   : > { %11508 = vmatmul.bf16.gmra.mxu3 %v14984_v41  ;;  %v16053_v41 = vld [vmem:[#allocation2 + $0xb0] sm:$0xf0] }
 0x920   : > { %v18573_v25 = vpop.f32.mrf.mxu0 }
 0x921   : > { %19686 = vst [vmem:[#allocation20_spill] sm:$0xff] %v18573_v25 }
 0x922   : > { %v8967_v42 = vpop.f32.mrf.mxu3 }
 0x923   : > { %11677 = vmatmul.bf16.gmra.mxu0 %v14988_v60  ;;  %v18575_v57 = vadd.f32 %v8967_v42, %v8799_v44 }
 0x924   : > { %v8800_v7 = vpop.f32.mrf.mxu2 }
 0x925   : > { %v8801_v30 = vadd.f32 %v8800_v7, %v8631_v28  ;;  %19687 = vst [vmem:[#allocation26_spill] sm:$0xff] %v18575_v57  ;;  %v16052_v28 = vld [vmem:[#allocation2 + $0xac] sm:$0xf]  ;;  %v14996_v7 = vor.u32 %v16053_v41, %v14995_v9  ;;  %v15937_v57 = vld [vmem:[#allocation2 + $0xa0] sm:$0xf0] }
 0x926   : > { %v8634_v40 = vpop.f32.mrf.mxu1  ;;  %v15000_v63 = vor.u32 %v16052_v28, %v14997_v27  ;;  %v15007_v9 = vld [vmem:[#allocation2 + $0xc0] sm:$0xf]  ;;  %v16056_v41 = vld [vmem:[#allocation2 + $0xc8] sm:$0xf0]  ;;  %v16055_v28 = vld [vmem:[#allocation2 + $0xc4] sm:$0xf] }
 0x927   : > { %v15009_v27 = vld [vmem:[#allocation2 + $0xcc] sm:$0xf0] }
 0x928   : > { %v18577_v45 = vpop.f32.mrf.mxu0 }
 0x929   : > { %10319 = vmatmul.bf16.gmra.mxu2 %v14524_v35  ;;  %19688 = vst [vmem:[#allocation28_spill] sm:$0xff] %v18577_v45  ;;  %10150 = vmatmul.bf16.gmra.mxu1 %v14520_v19  ;;  %v14535_v35 = vld [vmem:[#allocation2 + $0x98] sm:$0xf] }
 0x92a   : > { %v8969_v32 = vpop.f32.mrf.mxu3  ;;  %v14536_v21 = vor.u32 %v15937_v57, %v14535_v35  ;;  %v15940_v57 = vld [vmem:[#allocation2 + $0xb8] sm:$0xf0]  ;;  %v15012_v35 = vor.u32 %v16055_v28, %v15009_v27  ;;  %v16059_v28 = vld [vmem:[#allocation2 + $0xe0] sm:$0xf0] }
 0x92b   : > { %v18579_v60 = vadd.f32 %v8969_v32, %v8801_v30 }
 0x92c   : > { %v8803_v25 = vpop.f32.mrf.mxu2 }
 0x92d   : > { %19689 = vst [vmem:[#allocation15_spill] sm:$0xff] %v18579_v60  ;;  %v15935_v25 = vld [vmem:[#allocation2 + $0x94] sm:$0xf] }
 0x92e   : > { %v8636_v44 = vpop.f32.mrf.mxu1  ;;  %v14532_v30 = vor.u32 %v15935_v25, %v14529_v55 }
 0x92f   : > { %11513 = vmatmul.bf16.gmra.mxu3 %v14996_v7  ;;  %v15008_v44 = vor.u32 %v16056_v41, %v15007_v9 }
 0x930   : > { %v10102_v15 = vpop.f32.mrf.mxu0 }
 0x932   : > { %v8972_v40 = vpop.f32.mrf.mxu3 }
 0x933   : > { %11682 = vmatmul.bf16.gmra.mxu0 %v15000_v63 }
 0x934   : > { %v8805_v42 = vpop.f32.mrf.mxu2 }
 0x935   : > { %v14547_v42 = vld [vmem:[#allocation2 + $0xb0] sm:$0xf] }
 0x936   : > { %v8639_v45 = vpop.f32.mrf.mxu1  ;;  %v14548_v25 = vor.u32 %v15940_v57, %v14547_v42  ;;  %v15020_v57 = vor.u32 %v16059_v28, %v15019_v29  ;;  %v15031_v29 = vld [vmem:[#allocation2 + $0xf0] sm:$0xf]  ;;  %v16062_v28 = vld [vmem:[#allocation2 + $0xf8] sm:$0xf0] }
 0x938   : > { %v10104_v19 = vpop.f32.mrf.mxu0 }
 0x939   : > { %10324 = vmatmul.bf16.gmra.mxu2 %v14536_v21  ;;  %10155 = vmatmul.bf16.gmra.mxu1 %v14532_v30  ;;  %v15938_v19 = vld [vmem:[#allocation2 + $0xac] sm:$0xf]  ;;  %v14541_v30 = vld [vmem:[#allocation2 + $0xb4] sm:$0xf0] }
 0x93a   : > { %v8974_v15 = vpop.f32.mrf.mxu3 }
 0x93c   : > { %v8808_v32 = vpop.f32.mrf.mxu2 }
 0x93d   : > { %v8809_v60 = vadd.f32 %v8808_v32, %v8639_v45 }
 0x93e   : > { %v8641_v63 = vpop.f32.mrf.mxu1 }
 0x93f   : > { %11518 = vmatmul.bf16.gmra.mxu3 %v15008_v44  ;;  %v16058_v44 = vld [vmem:[#allocation2 + $0xdc] sm:$0xf] }
 0x940   : > { %v18581_v7 = vpop.f32.mrf.mxu0 }
 0x941   : > { %19690 = vst [vmem:[#allocation17_spill] sm:$0xff] %v18581_v7  ;;  %v14544_v7 = vor.u32 %v15938_v19, %v14541_v30  ;;  %v15941_v30 = vld [vmem:[#allocation2 + $0xc4] sm:$0xf] }
 0x942   : > { %v8977_v55 = vpop.f32.mrf.mxu3 }
 0x943   : > { %11687 = vmatmul.bf16.gmra.mxu0 %v15012_v35  ;;  %v18583_v45 = vadd.f32 %v8977_v55, %v8809_v60  ;;  %v15943_v55 = vld [vmem:[#allocation2 + $0xd0] sm:$0xf0] }
 0x944   : > { %v8810_v40 = vpop.f32.mrf.mxu2 }
 0x945   : > { %v8811_v21 = vadd.f32 %v8810_v40, %v8641_v63  ;;  %19691 = vst [vmem:[#allocation23_spill] sm:$0xff] %v18583_v45  ;;  %v15021_v63 = vld [vmem:[#allocation2 + $0xe4] sm:$0xf0] }
 0x946   : > { %v8644_v15 = vpop.f32.mrf.mxu1  ;;  %v15024_v35 = vor.u32 %v16058_v44, %v15021_v63  ;;  %v16061_v44 = vld [vmem:[#allocation2 + $0xf4] sm:$0xf]  ;;  %v15033_v63 = vld [vmem:[#allocation2 + $0xfc] sm:$0xf0] }
 0x948   : > { %v18585_v32 = vpop.f32.mrf.mxu0 }
 0x949   : > { %10329 = vmatmul.bf16.gmra.mxu2 %v14548_v25  ;;  %10160 = vmatmul.bf16.gmra.mxu1 %v14544_v7  ;;  %v14559_v25 = vld [vmem:[#allocation2 + $0xc8] sm:$0xf]  ;;  %v14553_v7 = vld [vmem:[#allocation2 + $0xcc] sm:$0xf0] }
 0x94a   : > { %v8979_v41 = vpop.f32.mrf.mxu3  ;;  %v14560_v19 = vor.u32 %v15943_v55, %v14559_v25  ;;  %v15946_v25 = vld [vmem:[#allocation2 + $0xe8] sm:$0xf0]  ;;  %v15036_v55 = vor.u32 %v16061_v44, %v15033_v63  ;;  %v15043_v63 = vld [vmem:[#allocation2 + $0x108] sm:$0xf] }
 0x94b   : > { %v18587_v27 = vadd.f32 %v8979_v41, %v8811_v21  ;;  %v14556_v21 = vor.u32 %v15941_v30, %v14553_v7  ;;  %v16160_v7 = vld [vmem:[#allocation9 + $0x228] sm:$0xff] }
 0x94c   : > { %v8813_v9 = vpop.f32.mrf.mxu2  ;;  %11830 = vmatpush.bf16.msra.mxu1 %v16160_v7 }
 0x94d   : > { %19692 = vst [vmem:[#allocation21_spill] sm:$0xff] %v18587_v27 }
 0x94e   : > { %v8646_v60 = vpop.f32.mrf.mxu1 }
 0x94f   : > { %11523 = vmatmul.bf16.gmra.mxu3 %v15020_v57  ;;  %v15032_v60 = vor.u32 %v16062_v28, %v15031_v29 }
 0x950   : > { %v10112_v42 = vpop.f32.mrf.mxu0 }
 0x952   : > { %v8982_v15 = vpop.f32.mrf.mxu3 }
 0x953   : > { %11692 = vmatmul.bf16.gmra.mxu0 %v15024_v35 }
 0x954   : > { %v8815_v40 = vpop.f32.mrf.mxu2 }
 0x955   : > { %v14571_v40 = vld [vmem:[#allocation2 + $0xe0] sm:$0xf] }
 0x956   : > { %v8649_v45 = vpop.f32.mrf.mxu1  ;;  %v14572_v30 = vor.u32 %v15946_v25, %v14571_v40  ;;  %v15045_v40 = vld [vmem:[#allocation2 + $0x114] sm:$0xf0] }
 0x958   : > { %v10114_v9 = vpop.f32.mrf.mxu0 }
 0x959   : > { %10334 = vmatmul.bf16.gmra.mxu2 %v14560_v19  ;;  %10165 = vmatmul.bf16.gmra.mxu1 %v14556_v21  ;;  %v15944_v21 = vld [vmem:[#allocation2 + $0xdc] sm:$0xf] }
 0x95a   : > { %v8984_v42 = vpop.f32.mrf.mxu3 }
 0x95c   : > { %v8818_v41 = vpop.f32.mrf.mxu2 }
 0x95d   : > { %v8819_v27 = vadd.f32 %v8818_v41, %v8649_v45  ;;  %v14565_v41 = vld [vmem:[#allocation2 + $0xe4] sm:$0xf0] }
 0x95e   : > { %v8651_v35 = vpop.f32.mrf.mxu1  ;;  %v14568_v28 = vor.u32 %v15944_v21, %v14565_v41  ;;  %v14577_v41 = vld [vmem:[#allocation2 + $0xfc] sm:$0xf0] }
 0x95f   : > { %11528 = vmatmul.bf16.gmra.mxu3 %v15032_v60  ;;  %v16065_v60 = vld [vmem:[#allocation2 + $0x110] sm:$0xf0] }
 0x960   : > { %v18589_v57 = vpop.f32.mrf.mxu0 }
 0x961   : > { %19693 = vst [vmem:[#allocation22_spill] sm:$0xff] %v18589_v57 }
 0x962   : > { %v8987_v45 = vpop.f32.mrf.mxu3 }
 0x963   : > { %11697 = vmatmul.bf16.gmra.mxu0 %v15036_v55  ;;  %v18591_v9 = vadd.f32 %v8987_v45, %v8819_v27 }
 0x964   : > { %v8820_v15 = vpop.f32.mrf.mxu2 }
 0x965   : > { %v8821_v19 = vadd.f32 %v8820_v15, %v8651_v35  ;;  %19694 = vst [vmem:[#allocation31_spill] sm:$0xff] %v18591_v9  ;;  %v16064_v35 = vld [vmem:[#allocation2 + $0x10c] sm:$0xf]  ;;  %v15044_v15 = vor.u32 %v16065_v60, %v15043_v63  ;;  %v15949_v9 = vld [vmem:[#allocation2 + $0x100] sm:$0xf0] }
 0x966   : > { %v8654_v29 = vpop.f32.mrf.mxu1  ;;  %v15048_v7 = vor.u32 %v16064_v35, %v15045_v40  ;;  %v15055_v60 = vld [vmem:[#allocation2 + $0x120] sm:$0xf]  ;;  %v16068_v35 = vld [vmem:[#allocation2 + $0x128] sm:$0xf0]  ;;  %v16067_v40 = vld [vmem:[#allocation2 + $0x124] sm:$0xf] }
 0x968   : > { %v18593_v42 = vpop.f32.mrf.mxu0 }
 0x969   : > { %10339 = vmatmul.bf16.gmra.mxu2 %v14572_v30  ;;  %19695 = vst [vmem:[#allocation32_spill] sm:$0xff] %v18593_v42  ;;  %10170 = vmatmul.bf16.gmra.mxu1 %v14568_v28  ;;  %v14583_v30 = vld [vmem:[#allocation2 + $0xf8] sm:$0xf] }
 0x96a   : > { %v8989_v44 = vpop.f32.mrf.mxu3  ;;  %v14584_v21 = vor.u32 %v15949_v9, %v14583_v30  ;;  %v15952_v30 = vld [vmem:[#allocation2 + $0x118] sm:$0xf0] }
 0x96b   : > { %v18595_v55 = vadd.f32 %v8989_v44, %v8821_v19 }
 0x96c   : > { %v8823_v57 = vpop.f32.mrf.mxu2 }
 0x96d   : > { %19696 = vst [vmem:[#allocation33_spill] sm:$0xff] %v18595_v55  ;;  %v15947_v57 = vld [vmem:[#allocation2 + $0xf4] sm:$0xf] }
 0x96e   : > { %v8656_v27 = vpop.f32.mrf.mxu1  ;;  %v14580_v44 = vor.u32 %v15947_v57, %v14577_v41  ;;  %v15950_v41 = vld [vmem:[#allocation2 + $0x10c] sm:$0xf] }
 0x96f   : > { %11533 = vmatmul.bf16.gmra.mxu3 %v15044_v15  ;;  %v15057_v15 = vld [vmem:[#allocation2 + $0x12c] sm:$0xf0] }
 0x970   : > { %v10122_v25 = vpop.f32.mrf.mxu0 }
 0x972   : > { %v8992_v29 = vpop.f32.mrf.mxu3 }
 0x973   : > { %11702 = vmatmul.bf16.gmra.mxu0 %v15048_v7  ;;  %v15056_v7 = vor.u32 %v16068_v35, %v15055_v60  ;;  %v15060_v29 = vor.u32 %v16067_v40, %v15057_v15  ;;  %v15067_v15 = vld [vmem:[#allocation2 + $0x138] sm:$0xf] }
 0x974   : > { %v8825_v45 = vpop.f32.mrf.mxu2 }
 0x975   : > { %v14595_v45 = vld [vmem:[#allocation2 + $0x110] sm:$0xf] }
 0x976   : > { %v10136_v42 = vpop.f32.mrf.mxu1 }
 0x977   : > { %v10137_v19 = vadd.f32 %v10136_v42, %v18469_v36  ;;  %v14596_v42 = vor.u32 %v15952_v30, %v14595_v45 }
 0x978   : > { %v10124_v28 = vpop.f32.mrf.mxu0 }
 0x979   : > { %10344 = vmatmul.bf16.gmra.mxu2 %v14584_v21  ;;  %10175 = vmatmul.bf16.gmra.mxu1 %v14580_v44 }
 0x97a   : > { %v8994_v63 = vpop.f32.mrf.mxu3 }
 0x97c   : > { %v10305_v55 = vpop.f32.mrf.mxu2 }
 0x97d   : > { %v18598_v25 = vadd.f32 %v10305_v55, %v10137_v19  ;;  %v14589_v19 = vld [vmem:[#allocation2 + $0x114] sm:$0xf0] }
 0x97e   : > { %v10138_v9 = vpop.f32.mrf.mxu1  ;;  %v14592_v60 = vor.u32 %v15950_v41, %v14589_v19  ;;  %v15953_v19 = vld [vmem:[#allocation2 + $0x124] sm:$0xf] }
 0x97f   : > { %v10139_v21 = vadd.f32 %v10138_v9, %v18473_v50  ;;  %11538 = vmatmul.bf16.gmra.mxu3 %v15056_v7  ;;  %v16071_v50 = vld [vmem:[#allocation2 + $0x140] sm:$0xf0]  ;;  %v16070_v7 = vld [vmem:[#allocation2 + $0x13c] sm:$0xf] }
 0x980   : > { %v11668_v27 = vpop.f32.mrf.mxu0  ;;  %v15068_v45 = vor.u32 %v16071_v50, %v15067_v15  ;;  %v15079_v50 = vld [vmem:[#allocation2 + $0x150] sm:$0xf] }
 0x982   : > { %v11499_v55 = vpop.f32.mrf.mxu3 }
 0x983   : > { %11707 = vmatmul.bf16.gmra.mxu0 %v15060_v29  ;;  %v18603_v57 = vadd.f32 %v11668_v27, %v11499_v55  ;;  %v15069_v29 = vld [vmem:[#allocation2 + $0x144] sm:$0xf0] }
 0x984   : > { %v10307_v28 = vpop.f32.mrf.mxu2  ;;  %v15072_v27 = vor.u32 %v16070_v7, %v15069_v29  ;;  %v14607_v55 = vld [vmem:[#allocation2 + $0x128] sm:$0xf]  ;;  %v16074_v7 = vld [vmem:[#allocation2 + $0x158] sm:$0xf0]  ;;  %v16073_v29 = vld [vmem:[#allocation2 + $0x154] sm:$0xf] }
 0x985   : > { %v18601_v36 = vadd.f32 %v10307_v28, %v10139_v21  ;;  %19697 = vst [vmem:[#allocation34_spill] sm:$0xff] %v18603_v57 }
 0x986   : > { %v10141_v63 = vpop.f32.mrf.mxu1 }
 0x988   : > { %v11670_v44 = vpop.f32.mrf.mxu0 }
 0x989   : > { %10349 = vmatmul.bf16.gmra.mxu2 %v14596_v42  ;;  %10180 = vmatmul.bf16.gmra.mxu1 %v14592_v60  ;;  %v15955_v42 = vld [vmem:[#allocation2 + $0x130] sm:$0xf0]  ;;  %v14601_v60 = vld [vmem:[#allocation2 + $0x12c] sm:$0xf0] }
 0x98a   : > { %v11501_v40 = vpop.f32.mrf.mxu3  ;;  %v14608_v41 = vor.u32 %v15955_v42, %v14607_v55  ;;  %v14619_v55 = vld [vmem:[#allocation2 + $0x140] sm:$0xf]  ;;  %v15958_v42 = vld [vmem:[#allocation2 + $0x148] sm:$0xf0] }
 0x98b   : > { %v18605_v9 = vadd.f32 %v11670_v44, %v11501_v40  ;;  %v14604_v40 = vor.u32 %v15953_v19, %v14601_v60 }
 0x98c   : > { %v10310_v35 = vpop.f32.mrf.mxu2 }
 0x98d   : > { %19698 = vst [vmem:[#allocation35_spill] sm:$0xff] %v18605_v9 }
 0x98e   : > { %v10143_v30 = vpop.f32.mrf.mxu1 }
 0x98f   : > { %11543 = vmatmul.bf16.gmra.mxu3 %v15068_v45  ;;  %v15081_v45 = vld [vmem:[#allocation2 + $0x15c] sm:$0xf0] }
 0x990   : > { %v11673_v21 = vpop.f32.mrf.mxu0 }
 0x992   : > { %v11504_v63 = vpop.f32.mrf.mxu3 }
 0x993   : > { %11712 = vmatmul.bf16.gmra.mxu0 %v15072_v27  ;;  %v15080_v27 = vor.u32 %v16074_v7, %v15079_v50  ;;  %v15084_v63 = vor.u32 %v16073_v29, %v15081_v45  ;;  %v15091_v45 = vld [vmem:[#allocation2 + $0x168] sm:$0xf] }
 0x994   : > { %v10312_v28 = vpop.f32.mrf.mxu2 }
 0x996   : > { %v10146_v57 = vpop.f32.mrf.mxu1 }
 0x997   : > { %v10147_v44 = vadd.f32 %v10146_v57, %v18477_v49  ;;  %v14620_v57 = vor.u32 %v15958_v42, %v14619_v55  ;;  %v15093_v55 = vld [vmem:[#allocation2 + $0x174] sm:$0xf0] }
 0x998   : > { %v11675_v35 = vpop.f32.mrf.mxu0 }
 0x999   : > { %10354 = vmatmul.bf16.gmra.mxu2 %v14608_v41  ;;  %10185 = vmatmul.bf16.gmra.mxu1 %v14604_v40  ;;  %v14613_v40 = vld [vmem:[#allocation2 + $0x144] sm:$0xf0] }
 0x99a   : > { %v11506_v15 = vpop.f32.mrf.mxu3 }
 0x99c   : > { %v10315_v9 = vpop.f32.mrf.mxu2 }
 0x99d   : > { %v18608_v21 = vadd.f32 %v10315_v9, %v10147_v44  ;;  %v16159_v9 = vld [vmem:[#allocation9 + $0x220] sm:$0xff]  ;;  %v15956_v44 = vld [vmem:[#allocation2 + $0x13c] sm:$0xf] }
 0x99e   : > { %v10148_v28 = vpop.f32.mrf.mxu1  ;;  %11831 = vmatpush.bf16.msra.mxu1 %v16159_v9  ;;  %v14616_v7 = vor.u32 %v15956_v44, %v14613_v40  ;;  %v15959_v40 = vld [vmem:[#allocation2 + $0x154] sm:$0xf] }
 0x99f   : > { %v10149_v41 = vadd.f32 %v10148_v28, %v18481_v39  ;;  %11548 = vmatmul.bf16.gmra.mxu3 %v15080_v27  ;;  %v16077_v27 = vld [vmem:[#allocation2 + $0x170] sm:$0xf0] }
 0x9a0   : > { %v11678_v30 = vpop.f32.mrf.mxu0 }
 0x9a2   : > { %v11509_v19 = vpop.f32.mrf.mxu3 }
 0x9a3   : > { %11717 = vmatmul.bf16.gmra.mxu0 %v15084_v63  ;;  %v18613_v60 = vadd.f32 %v11678_v30, %v11509_v19  ;;  %v16076_v63 = vld [vmem:[#allocation2 + $0x16c] sm:$0xf]  ;;  %v14631_v19 = vld [vmem:[#allocation2 + $0x158] sm:$0xf] }
 0x9a4   : > { %v10317_v35 = vpop.f32.mrf.mxu2  ;;  %v15096_v30 = vor.u32 %v16076_v63, %v15093_v55  ;;  %v16080_v63 = vld [vmem:[#allocation2 + $0x188] sm:$0xf0]  ;;  %v16079_v55 = vld [vmem:[#allocation2 + $0x184] sm:$0xf] }
 0x9a5   : > { %v18611_v49 = vadd.f32 %v10317_v35, %v10149_v41  ;;  %19699 = vst [vmem:[#allocation36_spill] sm:$0xff] %v18613_v60  ;;  %v15092_v41 = vor.u32 %v16077_v27, %v15091_v45  ;;  %v15103_v27 = vld [vmem:[#allocation2 + $0x180] sm:$0xf] }
 0x9a6   : > { %v10151_v50 = vpop.f32.mrf.mxu1 }
 0x9a8   : > { %v11680_v15 = vpop.f32.mrf.mxu0 }
 0x9a9   : > { %10359 = vmatmul.bf16.gmra.mxu2 %v14620_v57  ;;  %10190 = vmatmul.bf16.gmra.mxu1 %v14616_v7  ;;  %v15961_v57 = vld [vmem:[#allocation2 + $0x160] sm:$0xf0]  ;;  %v14625_v7 = vld [vmem:[#allocation2 + $0x15c] sm:$0xf0] }
 0x9aa   : > { %v11511_v39 = vpop.f32.mrf.mxu3  ;;  %v14632_v44 = vor.u32 %v15961_v57, %v14631_v19  ;;  %v14643_v19 = vld [vmem:[#allocation2 + $0x170] sm:$0xf]  ;;  %v15964_v57 = vld [vmem:[#allocation2 + $0x178] sm:$0xf0] }
 0x9ab   : > { %v18615_v28 = vadd.f32 %v11680_v15, %v11511_v39  ;;  %v14628_v39 = vor.u32 %v15959_v40, %v14625_v7  ;;  %v15962_v7 = vld [vmem:[#allocation2 + $0x16c] sm:$0xf] }
 0x9ac   : > { %v10320_v29 = vpop.f32.mrf.mxu2 }
 0x9ad   : > { %19700 = vst [vmem:[#allocation37_spill] sm:$0xff] %v18615_v28 }
 0x9ae   : > { %v10153_v35 = vpop.f32.mrf.mxu1 }
 0x9af   : > { %11553 = vmatmul.bf16.gmra.mxu3 %v15092_v41  ;;  %v15105_v41 = vld [vmem:[#allocation2 + $0x18c] sm:$0xf0] }
 0x9b0   : > { %v11683_v42 = vpop.f32.mrf.mxu0 }
 0x9b2   : > { %v11514_v50 = vpop.f32.mrf.mxu3 }
 0x9b3   : > { %11722 = vmatmul.bf16.gmra.mxu0 %v15096_v30  ;;  %v15104_v30 = vor.u32 %v16080_v63, %v15103_v27  ;;  %v15108_v50 = vor.u32 %v16079_v55, %v15105_v41  ;;  %v15115_v41 = vld [vmem:[#allocation2 + $0x198] sm:$0xf] }
 0x9b4   : > { %v10322_v9 = vpop.f32.mrf.mxu2 }
 0x9b6   : > { %v10156_v60 = vpop.f32.mrf.mxu1 }
 0x9b7   : > { %v10157_v15 = vadd.f32 %v10156_v60, %v18485_v51  ;;  %v14644_v60 = vor.u32 %v15964_v57, %v14643_v19 }
 0x9b8   : > { %v11685_v29 = vpop.f32.mrf.mxu0 }
 0x9b9   : > { %10364 = vmatmul.bf16.gmra.mxu2 %v14632_v44  ;;  %10195 = vmatmul.bf16.gmra.mxu1 %v14628_v39 }
 0x9ba   : > { %v11516_v45 = vpop.f32.mrf.mxu3 }
 0x9bc   : > { %v10325_v28 = vpop.f32.mrf.mxu2 }
 0x9bd   : > { %v18618_v42 = vadd.f32 %v10325_v28, %v10157_v15  ;;  %v14637_v15 = vld [vmem:[#allocation2 + $0x174] sm:$0xf0] }
 0x9be   : > { %v10158_v9 = vpop.f32.mrf.mxu1  ;;  %v14640_v27 = vor.u32 %v15962_v7, %v14637_v15  ;;  %v15965_v15 = vld [vmem:[#allocation2 + $0x184] sm:$0xf] }
 0x9bf   : > { %v10159_v44 = vadd.f32 %v10158_v9, %v18489_v48  ;;  %11558 = vmatmul.bf16.gmra.mxu3 %v15104_v30  ;;  %v16083_v48 = vld [vmem:[#allocation2 + $0x1a0] sm:$0xf0]  ;;  %v16082_v30 = vld [vmem:[#allocation2 + $0x19c] sm:$0xf] }
 0x9c0   : > { %v11688_v35 = vpop.f32.mrf.mxu0  ;;  %v15116_v19 = vor.u32 %v16083_v48, %v15115_v41  ;;  %v15127_v48 = vld [vmem:[#allocation2 + $0x1b0] sm:$0xf] }
 0x9c2   : > { %v11519_v28 = vpop.f32.mrf.mxu3 }
 0x9c3   : > { %11727 = vmatmul.bf16.gmra.mxu0 %v15108_v50  ;;  %v18623_v40 = vadd.f32 %v11688_v35, %v11519_v28  ;;  %v15117_v50 = vld [vmem:[#allocation2 + $0x1a4] sm:$0xf0] }
 0x9c4   : > { %v10327_v29 = vpop.f32.mrf.mxu2  ;;  %v15120_v35 = vor.u32 %v16082_v30, %v15117_v50  ;;  %v14655_v28 = vld [vmem:[#allocation2 + $0x188] sm:$0xf]  ;;  %v16086_v30 = vld [vmem:[#allocation2 + $0x1b8] sm:$0xf0]  ;;  %v16085_v50 = vld [vmem:[#allocation2 + $0x1b4] sm:$0xf] }
 0x9c5   : > { %v18621_v51 = vadd.f32 %v10327_v29, %v10159_v44  ;;  %19701 = vst [vmem:[#allocation38_spill] sm:$0xff] %v18623_v40 }
 0x9c6   : > { %v10161_v45 = vpop.f32.mrf.mxu1 }
 0x9c8   : > { %v11690_v39 = vpop.f32.mrf.mxu0 }
 0x9c9   : > { %10369 = vmatmul.bf16.gmra.mxu2 %v14644_v60  ;;  %10200 = vmatmul.bf16.gmra.mxu1 %v14640_v27  ;;  %v15967_v60 = vld [vmem:[#allocation2 + $0x190] sm:$0xf0]  ;;  %v14649_v27 = vld [vmem:[#allocation2 + $0x18c] sm:$0xf0] }
 0x9ca   : > { %v11521_v55 = vpop.f32.mrf.mxu3  ;;  %v14656_v7 = vor.u32 %v15967_v60, %v14655_v28  ;;  %v14667_v28 = vld [vmem:[#allocation2 + $0x1a0] sm:$0xf]  ;;  %v15970_v60 = vld [vmem:[#allocation2 + $0x1a8] sm:$0xf0] }
 0x9cb   : > { %v18625_v9 = vadd.f32 %v11690_v39, %v11521_v55  ;;  %v14652_v55 = vor.u32 %v15965_v15, %v14649_v27 }
 0x9cc   : > { %v10330_v63 = vpop.f32.mrf.mxu2 }
 0x9cd   : > { %19702 = vst [vmem:[#allocation39_spill] sm:$0xff] %v18625_v9 }
 0x9ce   : > { %v10163_v57 = vpop.f32.mrf.mxu1 }
 0x9cf   : > { %11563 = vmatmul.bf16.gmra.mxu3 %v15116_v19  ;;  %v15129_v19 = vld [vmem:[#allocation2 + $0x1bc] sm:$0xf0] }
 0x9d0   : > { %v11693_v44 = vpop.f32.mrf.mxu0 }
 0x9d2   : > { %v11524_v45 = vpop.f32.mrf.mxu3 }
 0x9d3   : > { %11732 = vmatmul.bf16.gmra.mxu0 %v15120_v35  ;;  %v15128_v35 = vor.u32 %v16086_v30, %v15127_v48  ;;  %v15132_v45 = vor.u32 %v16085_v50, %v15129_v19  ;;  %v15139_v19 = vld [vmem:[#allocation2 + $0x1c8] sm:$0xf] }
 0x9d4   : > { %v10332_v29 = vpop.f32.mrf.mxu2 }
 0x9d6   : > { %v10166_v40 = vpop.f32.mrf.mxu1 }
 0x9d7   : > { %v10167_v39 = vadd.f32 %v10166_v40, %v18493_v2  ;;  %v14668_v40 = vor.u32 %v15970_v60, %v14667_v28  ;;  %v15141_v28 = vld [vmem:[#allocation2 + $0x1d4] sm:$0xf0] }
 0x9d8   : > { %v11695_v63 = vpop.f32.mrf.mxu0 }
 0x9d9   : > { %10374 = vmatmul.bf16.gmra.mxu2 %v14656_v7  ;;  %10205 = vmatmul.bf16.gmra.mxu1 %v14652_v55  ;;  %v14661_v55 = vld [vmem:[#allocation2 + $0x1a4] sm:$0xf0] }
 0x9da   : > { %v11526_v41 = vpop.f32.mrf.mxu3 }
 0x9dc   : > { %v10335_v9 = vpop.f32.mrf.mxu2 }
 0x9dd   : > { %v18628_v44 = vadd.f32 %v10335_v9, %v10167_v39  ;;  %v16158_v9 = vld [vmem:[#allocation9 + $0x218] sm:$0xff] }
 0x9de   : > { %v10168_v29 = vpop.f32.mrf.mxu1  ;;  %11832 = vmatpush.bf16.msra.mxu1 %v16158_v9  ;;  %v15968_v39 = vld [vmem:[#allocation2 + $0x19c] sm:$0xf] }
 0x9df   : > { %v10169_v7 = vadd.f32 %v10168_v29, %v18497_v13  ;;  %11568 = vmatmul.bf16.gmra.mxu3 %v15128_v35  ;;  %v14664_v30 = vor.u32 %v15968_v39, %v14661_v55  ;;  %v16089_v35 = vld [vmem:[#allocation2 + $0x1d0] sm:$0xf0] }
 0x9e0   : > { %v11698_v57 = vpop.f32.mrf.mxu0  ;;  %v15971_v55 = vld [vmem:[#allocation2 + $0x1b4] sm:$0xf] }
 0x9e2   : > { %v11529_v15 = vpop.f32.mrf.mxu3 }
 0x9e3   : > { %11737 = vmatmul.bf16.gmra.mxu0 %v15132_v45  ;;  %v18633_v27 = vadd.f32 %v11698_v57, %v11529_v15  ;;  %v16088_v45 = vld [vmem:[#allocation2 + $0x1cc] sm:$0xf]  ;;  %v14679_v15 = vld [vmem:[#allocation2 + $0x1b8] sm:$0xf] }
 0x9e4   : > { %v10337_v63 = vpop.f32.mrf.mxu2  ;;  %v15144_v57 = vor.u32 %v16088_v45, %v15141_v28  ;;  %v16092_v45 = vld [vmem:[#allocation2 + $0x1e8] sm:$0xf0]  ;;  %v16091_v28 = vld [vmem:[#allocation2 + $0x1e4] sm:$0xf] }
 0x9e5   : > { %v18631_v2 = vadd.f32 %v10337_v63, %v10169_v7  ;;  %19703 = vst [vmem:[#allocation40_spill] sm:$0xff] %v18633_v27  ;;  %v15140_v7 = vor.u32 %v16089_v35, %v15139_v19  ;;  %v15151_v35 = vld [vmem:[#allocation2 + $0x1e0] sm:$0xf] }
 0x9e6   : > { %v10171_v48 = vpop.f32.mrf.mxu1 }
 0x9e8   : > { %v11700_v41 = vpop.f32.mrf.mxu0 }
 0x9e9   : > { %10379 = vmatmul.bf16.gmra.mxu2 %v14668_v40  ;;  %10210 = vmatmul.bf16.gmra.mxu1 %v14664_v30  ;;  %v15973_v40 = vld [vmem:[#allocation2 + $0x1c0] sm:$0xf0]  ;;  %v14673_v30 = vld [vmem:[#allocation2 + $0x1bc] sm:$0xf0] }
 0x9ea   : > { %v11531_v13 = vpop.f32.mrf.mxu3  ;;  %v14680_v39 = vor.u32 %v15973_v40, %v14679_v15  ;;  %v14691_v15 = vld [vmem:[#allocation2 + $0x1d0] sm:$0xf]  ;;  %v15976_v40 = vld [vmem:[#allocation2 + $0x1d8] sm:$0xf0] }
 0x9eb   : > { %v18635_v29 = vadd.f32 %v11700_v41, %v11531_v13  ;;  %v14676_v13 = vor.u32 %v15971_v55, %v14673_v30  ;;  %v15974_v30 = vld [vmem:[#allocation2 + $0x1cc] sm:$0xf] }
 0x9ec   : > { %v10340_v50 = vpop.f32.mrf.mxu2 }
 0x9ed   : > { %19704 = vst [vmem:[#allocation41_spill] sm:$0xff] %v18635_v29 }
 0x9ee   : > { %v10173_v63 = vpop.f32.mrf.mxu1 }
 0x9ef   : > { %11573 = vmatmul.bf16.gmra.mxu3 %v15140_v7  ;;  %v15153_v7 = vld [vmem:[#allocation2 + $0x1ec] sm:$0xf0] }
 0x9f0   : > { %v11703_v60 = vpop.f32.mrf.mxu0 }
 0x9f2   : > { %v11534_v48 = vpop.f32.mrf.mxu3 }
 0x9f3   : > { %11742 = vmatmul.bf16.gmra.mxu0 %v15144_v57  ;;  %v15152_v57 = vor.u32 %v16092_v45, %v15151_v35  ;;  %v15156_v48 = vor.u32 %v16091_v28, %v15153_v7  ;;  %v18647_v35 = vadd.f32 %v18598_v25, %v18471_v53  ;;  %v15163_v7 = vld [vmem:[#allocation2 + $0x1f8] sm:$0xf]  ;;  %v14703_v25 = vld [vmem:[#allocation2 + $0x1e8] sm:$0xf] }
 0x9f4   : > { %v10342_v9 = vpop.f32.mrf.mxu2 }
 0x9f6   : > { %v10176_v27 = vpop.f32.mrf.mxu1 }
 0x9f7   : > { %v10177_v41 = vadd.f32 %v10176_v27, %v18501_v10  ;;  %v14692_v27 = vor.u32 %v15976_v40, %v14691_v15  ;;  %v16094_v15 = vld [vmem:[#allocation2 + $0x1fc] sm:$0xf] }
 0x9f8   : > { %v11705_v50 = vpop.f32.mrf.mxu0 }
 0x9f9   : > { %10384 = vmatmul.bf16.gmra.mxu2 %v14680_v39  ;;  %10215 = vmatmul.bf16.gmra.mxu1 %v14676_v13 }
 0x9fa   : > { %v11536_v19 = vpop.f32.mrf.mxu3 }
 0x9fc   : > { %v10345_v29 = vpop.f32.mrf.mxu2 }
 0x9fd   : > { %v18638_v60 = vadd.f32 %v10345_v29, %v10177_v41  ;;  %v14685_v41 = vld [vmem:[#allocation2 + $0x1d4] sm:$0xf0] }
 0x9fe   : > { %v10178_v9 = vpop.f32.mrf.mxu1  ;;  %v14688_v45 = vor.u32 %v15974_v30, %v14685_v41 }
 0x9ff   : > { %v10179_v39 = vadd.f32 %v10178_v9, %v18505_v18  ;;  %11578 = vmatmul.bf16.gmra.mxu3 %v15152_v57  ;;  %v16095_v57 = vld [vmem:[#allocation2 + $0x200] sm:$0xf0] }
 0xa00   : > { %v11708_v63 = vpop.f32.mrf.mxu0 }
 0xa02   : > { %v11539_v29 = vpop.f32.mrf.mxu3 }
 0xa03   : > { %11747 = vmatmul.bf16.gmra.mxu0 %v15156_v48  ;;  %v18643_v55 = vadd.f32 %v11708_v63, %v11539_v29  ;;  %v15165_v63 = vld [vmem:[#allocation2 + $0x204] sm:$0xf0]  ;;  %v15164_v48 = vor.u32 %v16095_v57, %v15163_v7  ;;  %v15979_v29 = vld [vmem:[#allocation2 + $0x1f0] sm:$0xf0] }
 0xa04   : > { %v10347_v50 = vpop.f32.mrf.mxu2  ;;  %v14704_v41 = vor.u32 %v15979_v29, %v14703_v25  ;;  %v14715_v25 = vld [vmem:[#allocation2 + $0x200] sm:$0xf]  ;;  %v15982_v29 = vld [vmem:[#allocation2 + $0x208] sm:$0xf0] }
 0xa05   : > { %v18641_v10 = vadd.f32 %v10347_v50, %v10179_v39  ;;  %v18653_v50 = vadd.f32 %v18601_v36, %v18475_v24  ;;  %v15175_v36 = vld [vmem:[#allocation2 + $0x210] sm:$0xf] }
 0xa06   : > { %v10181_v19 = vpop.f32.mrf.mxu1 }
 0xa07   : > { %v15977_v19 = vld [vmem:[#allocation2 + $0x1e4] sm:$0xf] }
 0xa08   : > { %v11710_v13 = vpop.f32.mrf.mxu0 }
 0xa09   : > { %10389 = vmatmul.bf16.gmra.mxu2 %v14692_v27  ;;  %10220 = vmatmul.bf16.gmra.mxu1 %v14688_v45  ;;  %v15168_v27 = vor.u32 %v16094_v15, %v15165_v63  ;;  %v16098_v15 = vld [vmem:[#allocation2 + $0x218] sm:$0xf0]  ;;  %v16097_v63 = vld [vmem:[#allocation2 + $0x214] sm:$0xf] }
 0xa0a   : > { %v11541_v28 = vpop.f32.mrf.mxu3 }
 0xa0b   : > { %v18649_v9 = vadd.f32 %v11710_v13, %v11541_v28  ;;  %v14697_v13 = vld [vmem:[#allocation2 + $0x1ec] sm:$0xf0] }
 0xa0c   : > { %v10350_v18 = vpop.f32.mrf.mxu2  ;;  %v14700_v7 = vor.u32 %v15977_v19, %v14697_v13  ;;  %v14716_v19 = vor.u32 %v15982_v29, %v14715_v25  ;;  %v16157_v13 = vld [vmem:[#allocation9 + $0x210] sm:$0xff]  ;;  %v16100_v29 = vld [vmem:[#allocation2 + $0x22c] sm:$0xf] }
 0xa0d   : > { %11833 = vmatpush.bf16.msra.mxu1 %v16157_v13 }
 0xa0e   : > { %v10183_v39 = vpop.f32.mrf.mxu1 }
 0xa0f   : > { %11583 = vmatmul.bf16.gmra.mxu3 %v15164_v48  ;;  %v15177_v48 = vld [vmem:[#allocation2 + $0x21c] sm:$0xf0] }
 0xa10   : > { %v11713_v40 = vpop.f32.mrf.mxu0 }
 0xa12   : > { %v11544_v30 = vpop.f32.mrf.mxu3 }
 0xa13   : > { %11752 = vmatmul.bf16.gmra.mxu0 %v15168_v27  ;;  %v15176_v27 = vor.u32 %v16098_v15, %v15175_v36  ;;  %v15180_v30 = vor.u32 %v16097_v63, %v15177_v48  ;;  %v18665_v15 = vadd.f32 %v18608_v21, %v18479_v59  ;;  %v14727_v21 = vld [vmem:[#allocation2 + $0x218] sm:$0xf] }
 0xa14   : > { %v10352_v53 = vpop.f32.mrf.mxu2 }
 0xa16   : > { %v10186_v18 = vpop.f32.mrf.mxu1 }
 0xa17   : > { %v10187_v28 = vadd.f32 %v10186_v18, %v18509_v20 }
 0xa18   : > { %v11715_v45 = vpop.f32.mrf.mxu0 }
 0xa19   : > { %10394 = vmatmul.bf16.gmra.mxu2 %v14704_v41  ;;  %10225 = vmatmul.bf16.gmra.mxu1 %v14700_v7  ;;  %v15980_v7 = vld [vmem:[#allocation2 + $0x1fc] sm:$0xf] }
 0xa1a   : > { %v11546_v24 = vpop.f32.mrf.mxu3 }
 0xa1c   : > { %v10355_v57 = vpop.f32.mrf.mxu2 }
 0xa1d   : > { %v18656_v40 = vadd.f32 %v10355_v57, %v10187_v28  ;;  %v14709_v57 = vld [vmem:[#allocation2 + $0x204] sm:$0xf0] }
 0xa1e   : > { %v10188_v53 = vpop.f32.mrf.mxu1 }
 0xa1f   : > { %v10189_v41 = vadd.f32 %v10188_v53, %v18513_v37  ;;  %11588 = vmatmul.bf16.gmra.mxu3 %v15176_v27  ;;  %v14712_v37 = vor.u32 %v15980_v7, %v14709_v57  ;;  %v15187_v27 = vld [vmem:[#allocation2 + $0x228] sm:$0xf]  ;;  %v16101_v53 = vld [vmem:[#allocation2 + $0x230] sm:$0xf0] }
 0xa20   : > { %v11718_v39 = vpop.f32.mrf.mxu0 }
 0xa22   : > { %v11549_v18 = vpop.f32.mrf.mxu3 }
 0xa23   : > { %11757 = vmatmul.bf16.gmra.mxu0 %v15180_v30  ;;  %v18661_v28 = vadd.f32 %v11718_v39, %v11549_v18  ;;  %v15189_v39 = vld [vmem:[#allocation2 + $0x234] sm:$0xf0]  ;;  %v15985_v18 = vld [vmem:[#allocation2 + $0x220] sm:$0xf0] }
 0xa24   : > { %v10357_v45 = vpop.f32.mrf.mxu2  ;;  %v15192_v13 = vor.u32 %v16100_v29, %v15189_v39  ;;  %v14728_v57 = vor.u32 %v15985_v18, %v14727_v21  ;;  %v16104_v29 = vld [vmem:[#allocation2 + $0x248] sm:$0xf0]  ;;  %v16103_v39 = vld [vmem:[#allocation2 + $0x244] sm:$0xf]  ;;  %v14739_v21 = vld [vmem:[#allocation2 + $0x230] sm:$0xf] }
 0xa25   : > { %v18659_v20 = vadd.f32 %v10357_v45, %v10189_v41  ;;  %v15188_v41 = vor.u32 %v16101_v53, %v15187_v27  ;;  %v15988_v18 = vld [vmem:[#allocation2 + $0x238] sm:$0xf0] }
 0xa26   : > { %v10191_v36 = vpop.f32.mrf.mxu1 }
 0xa27   : > { %v15983_v36 = vld [vmem:[#allocation2 + $0x214] sm:$0xf] }
 0xa28   : > { %v11720_v24 = vpop.f32.mrf.mxu0 }
 0xa29   : > { %10399 = vmatmul.bf16.gmra.mxu2 %v14716_v19  ;;  %10230 = vmatmul.bf16.gmra.mxu1 %v14712_v37  ;;  %v18671_v19 = vadd.f32 %v18611_v49, %v18483_v4  ;;  %v15199_v49 = vld [vmem:[#allocation2 + $0x240] sm:$0xf] }
 0xa2a   : > { %v11551_v48 = vpop.f32.mrf.mxu3 }
 0xa2b   : > { %v18667_v25 = vadd.f32 %v11720_v24, %v11551_v48  ;;  %v14721_v24 = vld [vmem:[#allocation2 + $0x21c] sm:$0xf0] }
 0xa2c   : > { %v10360_v63 = vpop.f32.mrf.mxu2  ;;  %v14724_v27 = vor.u32 %v15983_v36, %v14721_v24  ;;  %v14740_v36 = vor.u32 %v15988_v18, %v14739_v21  ;;  %v16106_v21 = vld [vmem:[#allocation2 + $0x25c] sm:$0xf] }
 0xa2e   : > { %v10193_v45 = vpop.f32.mrf.mxu1 }
 0xa2f   : > { %11593 = vmatmul.bf16.gmra.mxu3 %v15188_v41  ;;  %v15201_v41 = vld [vmem:[#allocation2 + $0x24c] sm:$0xf0] }
 0xa30   : > { %v11723_v30 = vpop.f32.mrf.mxu0 }
 0xa32   : > { %v11554_v7 = vpop.f32.mrf.mxu3 }
 0xa33   : > { %11762 = vmatmul.bf16.gmra.mxu0 %v15192_v13  ;;  %v15200_v13 = vor.u32 %v16104_v29, %v15199_v49  ;;  %v15204_v7 = vor.u32 %v16103_v39, %v15201_v41  ;;  %v18683_v49 = vadd.f32 %v18618_v42, %v18487_v52  ;;  %v15211_v41 = vld [vmem:[#allocation2 + $0x258] sm:$0xf]  ;;  %v14751_v42 = vld [vmem:[#allocation2 + $0x248] sm:$0xf] }
 0xa34   : > { %v10362_v59 = vpop.f32.mrf.mxu2 }
 0xa36   : > { %v10196_v63 = vpop.f32.mrf.mxu1 }
 0xa37   : > { %v10197_v48 = vadd.f32 %v10196_v63, %v18517_v56 }
 0xa38   : > { %v11725_v37 = vpop.f32.mrf.mxu0 }
 0xa39   : > { %10404 = vmatmul.bf16.gmra.mxu2 %v14728_v57  ;;  %10235 = vmatmul.bf16.gmra.mxu1 %v14724_v27  ;;  %v14733_v27 = vld [vmem:[#allocation2 + $0x234] sm:$0xf0] }
 0xa3a   : > { %v11556_v4 = vpop.f32.mrf.mxu3 }
 0xa3c   : > { %v10365_v53 = vpop.f32.mrf.mxu2 }
 0xa3d   : > { %v18674_v30 = vadd.f32 %v10365_v53, %v10197_v48  ;;  %v15986_v48 = vld [vmem:[#allocation2 + $0x22c] sm:$0xf] }
 0xa3e   : > { %v10198_v59 = vpop.f32.mrf.mxu1  ;;  %v14736_v29 = vor.u32 %v15986_v48, %v14733_v27 }
 0xa3f   : > { %v10199_v57 = vadd.f32 %v10198_v59, %v18521_v47  ;;  %11598 = vmatmul.bf16.gmra.mxu3 %v15200_v13  ;;  %v16107_v13 = vld [vmem:[#allocation2 + $0x260] sm:$0xf0] }
 0xa40   : > { %v11728_v45 = vpop.f32.mrf.mxu0 }
 0xa42   : > { %v11559_v24 = vpop.f32.mrf.mxu3 }
 0xa43   : > { %11767 = vmatmul.bf16.gmra.mxu0 %v15204_v7  ;;  %v18679_v63 = vadd.f32 %v11728_v45, %v11559_v24  ;;  %v15213_v45 = vld [vmem:[#allocation2 + $0x264] sm:$0xf0]  ;;  %v15212_v7 = vor.u32 %v16107_v13, %v15211_v41  ;;  %v15991_v24 = vld [vmem:[#allocation2 + $0x250] sm:$0xf0] }
 0xa44   : > { %v10367_v37 = vpop.f32.mrf.mxu2  ;;  %v14752_v27 = vor.u32 %v15991_v24, %v14751_v42  ;;  %v14763_v42 = vld [vmem:[#allocation2 + $0x260] sm:$0xf]  ;;  %v15994_v24 = vld [vmem:[#allocation2 + $0x268] sm:$0xf0] }
 0xa45   : > { %v18677_v56 = vadd.f32 %v10367_v37, %v10199_v57  ;;  %v18689_v37 = vadd.f32 %v18621_v51, %v18491_v61  ;;  %v15223_v51 = vld [vmem:[#allocation2 + $0x270] sm:$0xf] }
 0xa46   : > { %v10201_v4 = vpop.f32.mrf.mxu1 }
 0xa47   : > { %v15989_v4 = vld [vmem:[#allocation2 + $0x244] sm:$0xf] }
 0xa48   : > { %v11730_v53 = vpop.f32.mrf.mxu0 }
 0xa49   : > { %10409 = vmatmul.bf16.gmra.mxu2 %v14740_v36  ;;  %10240 = vmatmul.bf16.gmra.mxu1 %v14736_v29  ;;  %v15216_v36 = vor.u32 %v16106_v21, %v15213_v45  ;;  %v16110_v21 = vld [vmem:[#allocation2 + $0x278] sm:$0xf0]  ;;  %v16109_v45 = vld [vmem:[#allocation2 + $0x274] sm:$0xf] }
 0xa4a   : > { %v11561_v39 = vpop.f32.mrf.mxu3 }
 0xa4b   : > { %v18685_v59 = vadd.f32 %v11730_v53, %v11561_v39  ;;  %v14745_v53 = vld [vmem:[#allocation2 + $0x24c] sm:$0xf0] }
 0xa4c   : > { %v10370_v47 = vpop.f32.mrf.mxu2  ;;  %v14748_v41 = vor.u32 %v15989_v4, %v14745_v53  ;;  %v14764_v4 = vor.u32 %v15994_v24, %v14763_v42  ;;  %v16156_v53 = vld [vmem:[#allocation9 + $0x208] sm:$0xff] }
 0xa4d   : > { %11834 = vmatpush.bf16.msra.mxu1 %v16156_v53  ;;  %v16112_v24 = vld [vmem:[#allocation2 + $0x28c] sm:$0xf] }
 0xa4e   : > { %v10203_v57 = vpop.f32.mrf.mxu1 }
 0xa4f   : > { %11603 = vmatmul.bf16.gmra.mxu3 %v15212_v7  ;;  %v15225_v7 = vld [vmem:[#allocation2 + $0x27c] sm:$0xf0] }
 0xa50   : > { %v11733_v18 = vpop.f32.mrf.mxu0 }
 0xa52   : > { %v11564_v48 = vpop.f32.mrf.mxu3 }
 0xa53   : > { %11772 = vmatmul.bf16.gmra.mxu0 %v15216_v36  ;;  %v15224_v36 = vor.u32 %v16110_v21, %v15223_v51  ;;  %v15228_v48 = vor.u32 %v16109_v45, %v15225_v7  ;;  %v18701_v21 = vadd.f32 %v18628_v44, %v18495_v0  ;;  %v14775_v44 = vld [vmem:[#allocation2 + $0x278] sm:$0xf] }
 0xa54   : > { %v10372_v52 = vpop.f32.mrf.mxu2 }
 0xa56   : > { %v10206_v47 = vpop.f32.mrf.mxu1 }
 0xa57   : > { %v10207_v39 = vadd.f32 %v10206_v47, %v18525_v11 }
 0xa58   : > { %v11735_v29 = vpop.f32.mrf.mxu0 }
 0xa59   : > { %10414 = vmatmul.bf16.gmra.mxu2 %v14752_v27  ;;  %10245 = vmatmul.bf16.gmra.mxu1 %v14748_v41  ;;  %v15992_v41 = vld [vmem:[#allocation2 + $0x25c] sm:$0xf] }
 0xa5a   : > { %v11566_v61 = vpop.f32.mrf.mxu3 }
 0xa5c   : > { %v10375_v13 = vpop.f32.mrf.mxu2 }
 0xa5d   : > { %v18692_v18 = vadd.f32 %v10375_v13, %v10207_v39  ;;  %v14757_v13 = vld [vmem:[#allocation2 + $0x264] sm:$0xf0] }
 0xa5e   : > { %v10208_v52 = vpop.f32.mrf.mxu1 }
 0xa5f   : > { %v10209_v27 = vadd.f32 %v10208_v52, %v18529_v43  ;;  %11608 = vmatmul.bf16.gmra.mxu3 %v15224_v36  ;;  %v14760_v43 = vor.u32 %v15992_v41, %v14757_v13  ;;  %v15235_v36 = vld [vmem:[#allocation2 + $0x288] sm:$0xf]  ;;  %v16113_v52 = vld [vmem:[#allocation2 + $0x290] sm:$0xf0] }
 0xa60   : > { %v11738_v57 = vpop.f32.mrf.mxu0 }
 0xa62   : > { %v11569_v47 = vpop.f32.mrf.mxu3 }
 0xa63   : > { %11777 = vmatmul.bf16.gmra.mxu0 %v15228_v48  ;;  %v18697_v39 = vadd.f32 %v11738_v57, %v11569_v47  ;;  %v15237_v57 = vld [vmem:[#allocation2 + $0x294] sm:$0xf0]  ;;  %v15997_v47 = vld [vmem:[#allocation2 + $0x280] sm:$0xf0] }
 0xa64   : > { %v10377_v29 = vpop.f32.mrf.mxu2  ;;  %v15240_v53 = vor.u32 %v16112_v24, %v15237_v57  ;;  %v14776_v13 = vor.u32 %v15997_v47, %v14775_v44  ;;  %v16116_v24 = vld [vmem:[#allocation2 + $0x2a8] sm:$0xf0]  ;;  %v16115_v57 = vld [vmem:[#allocation2 + $0x2a4] sm:$0xf]  ;;  %v14787_v44 = vld [vmem:[#allocation2 + $0x290] sm:$0xf] }
 0xa65   : > { %v18695_v11 = vadd.f32 %v10377_v29, %v10209_v27  ;;  %v15236_v27 = vor.u32 %v16113_v52, %v15235_v36  ;;  %v16000_v47 = vld [vmem:[#allocation2 + $0x298] sm:$0xf0] }
 0xa66   : > { %v10211_v51 = vpop.f32.mrf.mxu1 }
 0xa67   : > { %v15995_v51 = vld [vmem:[#allocation2 + $0x274] sm:$0xf] }
 0xa68   : > { %v11740_v61 = vpop.f32.mrf.mxu0 }
 0xa69   : > { %10419 = vmatmul.bf16.gmra.mxu2 %v14764_v4  ;;  %10250 = vmatmul.bf16.gmra.mxu1 %v14760_v43  ;;  %v18707_v4 = vadd.f32 %v18631_v2, %v18499_v8  ;;  %v15247_v2 = vld [vmem:[#allocation2 + $0x2a0] sm:$0xf] }
 0xa6a   : > { %v11571_v7 = vpop.f32.mrf.mxu3 }
 0xa6b   : > { %v18703_v42 = vadd.f32 %v11740_v61, %v11571_v7  ;;  %v14769_v61 = vld [vmem:[#allocation2 + $0x27c] sm:$0xf0] }
 0xa6c   : > { %v10380_v45 = vpop.f32.mrf.mxu2  ;;  %v14772_v36 = vor.u32 %v15995_v51, %v14769_v61  ;;  %v14788_v51 = vor.u32 %v16000_v47, %v14787_v44  ;;  %v16118_v44 = vld [vmem:[#allocation2 + $0x2bc] sm:$0xf] }
 0xa6e   : > { %v10213_v29 = vpop.f32.mrf.mxu1 }
 0xa6f   : > { %11613 = vmatmul.bf16.gmra.mxu3 %v15236_v27  ;;  %v15249_v27 = vld [vmem:[#allocation2 + $0x2ac] sm:$0xf0] }
 0xa70   : > { %v11743_v48 = vpop.f32.mrf.mxu0 }
 0xa72   : > { %v11574_v41 = vpop.f32.mrf.mxu3 }
 0xa73   : > { %11782 = vmatmul.bf16.gmra.mxu0 %v15240_v53  ;;  %v15248_v53 = vor.u32 %v16116_v24, %v15247_v2  ;;  %v15252_v41 = vor.u32 %v16115_v57, %v15249_v27  ;;  %v18719_v2 = vadd.f32 %v18638_v60, %v18503_v23  ;;  %v15259_v27 = vld [vmem:[#allocation2 + $0x2b8] sm:$0xf]  ;;  %v14799_v60 = vld [vmem:[#allocation2 + $0x2a8] sm:$0xf] }
 0xa74   : > { %v10382_v0 = vpop.f32.mrf.mxu2 }
 0xa76   : > { %v10216_v45 = vpop.f32.mrf.mxu1 }
 0xa77   : > { %v10217_v7 = vadd.f32 %v10216_v45, %v18533_v46 }
 0xa78   : > { %v11745_v43 = vpop.f32.mrf.mxu0 }
 0xa79   : > { %10424 = vmatmul.bf16.gmra.mxu2 %v14776_v13  ;;  %10255 = vmatmul.bf16.gmra.mxu1 %v14772_v36  ;;  %v14781_v36 = vld [vmem:[#allocation2 + $0x294] sm:$0xf0] }
 0xa7a   : > { %v11576_v8 = vpop.f32.mrf.mxu3 }
 0xa7c   : > { %v10385_v52 = vpop.f32.mrf.mxu2 }
 0xa7d   : > { %v18710_v48 = vadd.f32 %v10385_v52, %v10217_v7  ;;  %v15998_v7 = vld [vmem:[#allocation2 + $0x28c] sm:$0xf] }
 0xa7e   : > { %v10218_v0 = vpop.f32.mrf.mxu1  ;;  %v14784_v24 = vor.u32 %v15998_v7, %v14781_v36 }
 0xa7f   : > { %v10219_v13 = vadd.f32 %v10218_v0, %v18537_v31  ;;  %11618 = vmatmul.bf16.gmra.mxu3 %v15248_v53  ;;  %v16119_v53 = vld [vmem:[#allocation2 + $0x2c0] sm:$0xf0] }
 0xa80   : > { %v11748_v29 = vpop.f32.mrf.mxu0 }
 0xa82   : > { %v11579_v61 = vpop.f32.mrf.mxu3 }
 0xa83   : > { %11787 = vmatmul.bf16.gmra.mxu0 %v15252_v41  ;;  %v18715_v45 = vadd.f32 %v11748_v29, %v11579_v61  ;;  %v15261_v29 = vld [vmem:[#allocation2 + $0x2c4] sm:$0xf0]  ;;  %v15260_v41 = vor.u32 %v16119_v53, %v15259_v27  ;;  %v16003_v61 = vld [vmem:[#allocation2 + $0x2b0] sm:$0xf0] }
 0xa84   : > { %v10387_v43 = vpop.f32.mrf.mxu2  ;;  %v14800_v36 = vor.u32 %v16003_v61, %v14799_v60  ;;  %v14811_v60 = vld [vmem:[#allocation2 + $0x2c0] sm:$0xf]  ;;  %v16006_v61 = vld [vmem:[#allocation2 + $0x2c8] sm:$0xf0] }
 0xa85   : > { %v18713_v46 = vadd.f32 %v10387_v43, %v10219_v13  ;;  %v18725_v43 = vadd.f32 %v18641_v10, %v18507_v16  ;;  %v15271_v10 = vld [vmem:[#allocation2 + $0x2d0] sm:$0xf] }
 0xa86   : > { %v10221_v8 = vpop.f32.mrf.mxu1 }
 0xa87   : > { %v16001_v8 = vld [vmem:[#allocation2 + $0x2a4] sm:$0xf] }
 0xa88   : > { %v11750_v52 = vpop.f32.mrf.mxu0 }
 0xa89   : > { %10429 = vmatmul.bf16.gmra.mxu2 %v14788_v51  ;;  %10260 = vmatmul.bf16.gmra.mxu1 %v14784_v24  ;;  %v15264_v51 = vor.u32 %v16118_v44, %v15261_v29  ;;  %v16122_v44 = vld [vmem:[#allocation2 + $0x2d8] sm:$0xf0]  ;;  %v16121_v29 = vld [vmem:[#allocation2 + $0x2d4] sm:$0xf] }
 0xa8a   : > { %v11581_v57 = vpop.f32.mrf.mxu3 }
 0xa8b   : > { %v18721_v0 = vadd.f32 %v11750_v52, %v11581_v57  ;;  %v14793_v52 = vld [vmem:[#allocation2 + $0x2ac] sm:$0xf0] }
 0xa8c   : > { %v10390_v31 = vpop.f32.mrf.mxu2  ;;  %v14796_v27 = vor.u32 %v16001_v8, %v14793_v52  ;;  %v14812_v8 = vor.u32 %v16006_v61, %v14811_v60  ;;  %v16155_v52 = vld [vmem:[#allocation9 + $0x200] sm:$0xff]  ;;  %v16124_v61 = vld [vmem:[#allocation2 + $0x2ec] sm:$0xf] }
 0xa8d   : > { %11835 = vmatpush.bf16.msra.mxu1 %v16155_v52 }
 0xa8e   : > { %v10223_v13 = vpop.f32.mrf.mxu1 }
 0xa8f   : > { %11623 = vmatmul.bf16.gmra.mxu3 %v15260_v41  ;;  %v15273_v41 = vld [vmem:[#allocation2 + $0x2dc] sm:$0xf0] }
 0xa90   : > { %v11753_v47 = vpop.f32.mrf.mxu0 }
 0xa92   : > { %v11584_v7 = vpop.f32.mrf.mxu3 }
 0xa93   : > { %11792 = vmatmul.bf16.gmra.mxu0 %v15264_v51  ;;  %v15272_v51 = vor.u32 %v16122_v44, %v15271_v10  ;;  %v15276_v7 = vor.u32 %v16121_v29, %v15273_v41  ;;  %v18737_v44 = vadd.f32 %v18656_v40, %v18511_v58  ;;  %v14823_v40 = vld [vmem:[#allocation2 + $0x2d8] sm:$0xf] }
 0xa94   : > { %v10392_v23 = vpop.f32.mrf.mxu2 }
 0xa96   : > { %v10226_v31 = vpop.f32.mrf.mxu1 }
 0xa97   : > { %v10227_v57 = vadd.f32 %v10226_v31, %v18541_v54 }
 0xa98   : > { %v11755_v24 = vpop.f32.mrf.mxu0 }
 0xa99   : > { %10434 = vmatmul.bf16.gmra.mxu2 %v14800_v36  ;;  %10265 = vmatmul.bf16.gmra.mxu1 %v14796_v27  ;;  %v16004_v27 = vld [vmem:[#allocation2 + $0x2bc] sm:$0xf] }
 0xa9a   : > { %v11586_v16 = vpop.f32.mrf.mxu3 }
 0xa9c   : > { %v10395_v53 = vpop.f32.mrf.mxu2 }
 0xa9d   : > { %v18728_v47 = vadd.f32 %v10395_v53, %v10227_v57  ;;  %v14805_v53 = vld [vmem:[#allocation2 + $0x2c4] sm:$0xf0] }
 0xa9e   : > { %v10228_v23 = vpop.f32.mrf.mxu1 }
 0xa9f   : > { %v10229_v36 = vadd.f32 %v10228_v23, %v18545_v17  ;;  %11628 = vmatmul.bf16.gmra.mxu3 %v15272_v51  ;;  %v14808_v17 = vor.u32 %v16004_v27, %v14805_v53  ;;  %v15283_v51 = vld [vmem:[#allocation2 + $0x2e8] sm:$0xf]  ;;  %v16125_v23 = vld [vmem:[#allocation2 + $0x2f0] sm:$0xf0] }
 0xaa0   : > { %v11758_v13 = vpop.f32.mrf.mxu0 }
 0xaa2   : > { %v11589_v31 = vpop.f32.mrf.mxu3 }
 0xaa3   : > { %11797 = vmatmul.bf16.gmra.mxu0 %v15276_v7  ;;  %v18733_v57 = vadd.f32 %v11758_v13, %v11589_v31  ;;  %v15285_v13 = vld [vmem:[#allocation2 + $0x2f4] sm:$0xf0]  ;;  %v16009_v31 = vld [vmem:[#allocation2 + $0x2e0] sm:$0xf0] }
 0xaa4   : > { %v10397_v24 = vpop.f32.mrf.mxu2  ;;  %v15288_v52 = vor.u32 %v16124_v61, %v15285_v13  ;;  %v14824_v53 = vor.u32 %v16009_v31, %v14823_v40  ;;  %v16128_v61 = vld [vmem:[#allocation2 + $0x308] sm:$0xf0]  ;;  %v16127_v13 = vld [vmem:[#allocation2 + $0x304] sm:$0xf]  ;;  %v14835_v40 = vld [vmem:[#allocation2 + $0x2f0] sm:$0xf] }
 0xaa5   : > { %v18731_v54 = vadd.f32 %v10397_v24, %v10229_v36  ;;  %v15284_v36 = vor.u32 %v16125_v23, %v15283_v51  ;;  %v16012_v31 = vld [vmem:[#allocation2 + $0x2f8] sm:$0xf0] }
 0xaa6   : > { %v10231_v10 = vpop.f32.mrf.mxu1 }
 0xaa7   : > { %v16007_v10 = vld [vmem:[#allocation2 + $0x2d4] sm:$0xf] }
 0xaa8   : > { %v11760_v16 = vpop.f32.mrf.mxu0 }
 0xaa9   : > { %10439 = vmatmul.bf16.gmra.mxu2 %v14812_v8  ;;  %10270 = vmatmul.bf16.gmra.mxu1 %v14808_v17  ;;  %v18743_v8 = vadd.f32 %v18659_v20, %v18515_v1  ;;  %v15295_v20 = vld [vmem:[#allocation2 + $0x300] sm:$0xf] }
 0xaaa   : > { %v11591_v41 = vpop.f32.mrf.mxu3 }
 0xaab   : > { %v18739_v60 = vadd.f32 %v11760_v16, %v11591_v41  ;;  %v14817_v16 = vld [vmem:[#allocation2 + $0x2dc] sm:$0xf0] }
 0xaac   : > { %v10400_v29 = vpop.f32.mrf.mxu2  ;;  %v14820_v51 = vor.u32 %v16007_v10, %v14817_v16  ;;  %v14836_v10 = vor.u32 %v16012_v31, %v14835_v40  ;;  %v16130_v40 = vld [vmem:[#allocation2 + $0x31c] sm:$0xf] }
 0xaae   : > { %v10233_v24 = vpop.f32.mrf.mxu1 }
 0xaaf   : > { %11633 = vmatmul.bf16.gmra.mxu3 %v15284_v36  ;;  %v15297_v36 = vld [vmem:[#allocation2 + $0x30c] sm:$0xf0] }
 0xab0   : > { %v11763_v7 = vpop.f32.mrf.mxu0 }
 0xab2   : > { %v11594_v27 = vpop.f32.mrf.mxu3 }
 0xab3   : > { %11802 = vmatmul.bf16.gmra.mxu0 %v15288_v52  ;;  %v15296_v52 = vor.u32 %v16128_v61, %v15295_v20  ;;  %v15300_v27 = vor.u32 %v16127_v13, %v15297_v36  ;;  %v18755_v20 = vadd.f32 %v18674_v30, %v18519_v3  ;;  %v15307_v36 = vld [vmem:[#allocation2 + $0x318] sm:$0xf]  ;;  %v14847_v30 = vld [vmem:[#allocation2 + $0x308] sm:$0xf] }
 0xab4   : > { %v10402_v58 = vpop.f32.mrf.mxu2 }
 0xab6   : > { %v10236_v29 = vpop.f32.mrf.mxu1 }
 0xab7   : > { %v10237_v41 = vadd.f32 %v10236_v29, %v18549_v5 }
 0xab8   : > { %v11765_v17 = vpop.f32.mrf.mxu0 }
 0xab9   : > { %10444 = vmatmul.bf16.gmra.mxu2 %v14824_v53  ;;  %10275 = vmatmul.bf16.gmra.mxu1 %v14820_v51  ;;  %v14829_v51 = vld [vmem:[#allocation2 + $0x2f4] sm:$0xf0] }
 0xaba   : > { %v11596_v1 = vpop.f32.mrf.mxu3 }
 0xabc   : > { %v10405_v23 = vpop.f32.mrf.mxu2 }
 0xabd   : > { %v18746_v7 = vadd.f32 %v10405_v23, %v10237_v41  ;;  %v16010_v41 = vld [vmem:[#allocation2 + $0x2ec] sm:$0xf] }
 0xabe   : > { %v10238_v58 = vpop.f32.mrf.mxu1  ;;  %v14832_v61 = vor.u32 %v16010_v41, %v14829_v51 }
 0xabf   : > { %v10239_v53 = vadd.f32 %v10238_v58, %v18553_v34  ;;  %11638 = vmatmul.bf16.gmra.mxu3 %v15296_v52  ;;  %v16131_v52 = vld [vmem:[#allocation2 + $0x320] sm:$0xf0] }
 0xac0   : > { %v11768_v24 = vpop.f32.mrf.mxu0 }
 0xac2   : > { %v11599_v16 = vpop.f32.mrf.mxu3 }
 0xac3   : > { %11807 = vmatmul.bf16.gmra.mxu0 %v15300_v27  ;;  %v18751_v29 = vadd.f32 %v11768_v24, %v11599_v16  ;;  %v15309_v24 = vld [vmem:[#allocation2 + $0x324] sm:$0xf0]  ;;  %v15308_v27 = vor.u32 %v16131_v52, %v15307_v36  ;;  %v16015_v16 = vld [vmem:[#allocation2 + $0x310] sm:$0xf0] }
 0xac4   : > { %v10407_v17 = vpop.f32.mrf.mxu2  ;;  %v14848_v51 = vor.u32 %v16015_v16, %v14847_v30 }
 0xac5   : > { %v18749_v5 = vadd.f32 %v10407_v17, %v10239_v53  ;;  %v18761_v17 = vadd.f32 %v18677_v56, %v18523_v22  ;;  %v15319_v56 = vld [vmem:[#allocation2 + $0x330] sm:$0xf] }
 0xac6   : > { %v10241_v1 = vpop.f32.mrf.mxu1 }
 0xac7   : > { %v16013_v1 = vld [vmem:[#allocation2 + $0x304] sm:$0xf] }
 0xac8   : > { %v11770_v23 = vpop.f32.mrf.mxu0 }
 0xac9   : > { %10449 = vmatmul.bf16.gmra.mxu2 %v14836_v10  ;;  %10280 = vmatmul.bf16.gmra.mxu1 %v14832_v61  ;;  %v15312_v10 = vor.u32 %v16130_v40, %v15309_v24  ;;  %v16134_v40 = vld [vmem:[#allocation2 + $0x338] sm:$0xf0]  ;;  %v16133_v24 = vld [vmem:[#allocation2 + $0x334] sm:$0xf] }
 0xaca   : > { %v11601_v13 = vpop.f32.mrf.mxu3 }
 0xacb   : > { %v18757_v58 = vadd.f32 %v11770_v23, %v11601_v13  ;;  %v14841_v23 = vld [vmem:[#allocation2 + $0x30c] sm:$0xf0] }
 0xacc   : > { %v10410_v34 = vpop.f32.mrf.mxu2  ;;  %v14844_v36 = vor.u32 %v16013_v1, %v14841_v23  ;;  %v16016_v23 = vld [vmem:[#allocation2 + $0x31c] sm:$0xf] }
 0xace   : > { %v10243_v53 = vpop.f32.mrf.mxu1 }
 0xacf   : > { %11643 = vmatmul.bf16.gmra.mxu3 %v15308_v27  ;;  %v15321_v27 = vld [vmem:[#allocation2 + $0x33c] sm:$0xf0] }
 0xad0   : > { %v11773_v31 = vpop.f32.mrf.mxu0  ;;  %v15324_v30 = vor.u32 %v16133_v24, %v15321_v27  ;;  %v16136_v27 = vld [vmem:[#allocation2 + $0x34c] sm:$0xf] }
 0xad2   : > { %v11604_v41 = vpop.f32.mrf.mxu3 }
 0xad3   : > { %11812 = vmatmul.bf16.gmra.mxu0 %v15312_v10  ;;  %v15320_v10 = vor.u32 %v16134_v40, %v15319_v56  ;;  %v15331_v56 = vld [vmem:[#allocation2 + $0x348] sm:$0xf]  ;;  %v16137_v40 = vld [vmem:[#allocation2 + $0x350] sm:$0xf0] }
 0xad4   : > { %v10412_v3 = vpop.f32.mrf.mxu2 }
 0xad6   : > { %v10246_v34 = vpop.f32.mrf.mxu1 }
 0xad7   : > { %v10247_v13 = vadd.f32 %v10246_v34, %v18557_v26 }
 0xad8   : > { %v11775_v61 = vpop.f32.mrf.mxu0 }
 0xad9   : > { %10454 = vmatmul.bf16.gmra.mxu2 %v14848_v51  ;;  %10285 = vmatmul.bf16.gmra.mxu1 %v14844_v36  ;;  %v14853_v61 = vld [vmem:[#allocation2 + $0x324] sm:$0xf0]  ;;  %v18773_v36 = vadd.f32 %v18692_v18, %v18527_v38 }
 0xada   : > { %v11606_v22 = vpop.f32.mrf.mxu3 }
 0xadc   : > { %v10415_v52 = vpop.f32.mrf.mxu2 }
 0xadd   : > { %v18764_v31 = vadd.f32 %v10415_v52, %v10247_v13  ;;  %v14856_v52 = vor.u32 %v16016_v23, %v14853_v61  ;;  %v16045_v23 = vld [vmem:[#allocation2 + $0x70] sm:$0xf0] }
 0xade   : > { %v10248_v3 = vpop.f32.mrf.mxu1 }
 0xadf   : > { %v10249_v16 = vadd.f32 %v10248_v3, %v18561_v33  ;;  %11648 = vmatmul.bf16.gmra.mxu3 %v15320_v10  ;;  %v15333_v10 = vld [vmem:[#allocation2 + $0x354] sm:$0xf0]  ;;  %v15332_v3 = vor.u32 %v16137_v40, %v15331_v56 }
 0xae0   : > { %v11778_v53 = vpop.f32.mrf.mxu0 }
 0xae2   : > { %v11609_v51 = vpop.f32.mrf.mxu3 }
 0xae3   : > { %11817 = vmatmul.bf16.gmra.mxu0 %v15324_v30  ;;  %v18769_v1 = vadd.f32 %v11778_v53, %v11609_v51  ;;  %v14967_v51 = vld [vmem:[#allocation2 + $0x68] sm:$0xf] }
 0xae4   : > { %v10417_v41 = vpop.f32.mrf.mxu2 }
 0xae5   : > { %v18767_v26 = vadd.f32 %v10417_v41, %v10249_v16  ;;  %19705 = vst [vmem:[#allocation42_spill] sm:$0xff] %v18769_v1  ;;  %v18779_v16 = vadd.f32 %v18695_v11, %v18531_v12  ;;  %v15336_v41 = vor.u32 %v16136_v27, %v15333_v10 }
 0xae6   : > { %v10251_v13 = vpop.f32.mrf.mxu1 }
 0xae8   : > { %v11780_v34 = vpop.f32.mrf.mxu0 }
 0xae9   : > { %10290 = vmatmul.bf16.gmra.mxu1 %v14856_v52  ;;  %v14968_v52 = vor.u32 %v16045_v23, %v14967_v51  ;;  %v18791_v51 = vadd.f32 %v18710_v48, %v18535_v62 }
 0xaea   : > { %v11611_v33 = vpop.f32.mrf.mxu3 }
 0xaeb   : > { %v18775_v24 = vadd.f32 %v11780_v34, %v11611_v33 }
 0xaec   : > { %v10420_v22 = vpop.f32.mrf.mxu2 }
 0xaed   : > { %19706 = vst [vmem:[#allocation43_spill] sm:$0xff] %v18775_v24 }
 0xaee   : > { %v10253_v30 = vpop.f32.mrf.mxu1 }
 0xaef   : > { %11653 = vmatmul.bf16.gmra.mxu3 %v15332_v3  ;;  %v16048_v3 = vld [vmem:[#allocation2 + $0x88] sm:$0xf0] }
 0xaf0   : > { %v11783_v53 = vpop.f32.mrf.mxu0 }
 0xaf1   : > { %v14979_v53 = vld [vmem:[#allocation2 + $0x80] sm:$0xf] }
 0xaf2   : > { %v11614_v18 = vpop.f32.mrf.mxu3 }
 0xaf3   : > { %11822 = vmatmul.bf16.gmra.mxu0 %v15336_v41 }
 0xaf4   : > { %v10422_v38 = vpop.f32.mrf.mxu2 }
 0xaf5   : > { %v14980_v38 = vor.u32 %v16048_v3, %v14979_v53  ;;  %v19710_v3 = vld [vmem:[#allocation20_spill] sm:$0xff] }
 0xaf6   : > { %v10256_v13 = vpop.f32.mrf.mxu1 }
 0xaf7   : > { %v10257_v34 = vadd.f32 %v10256_v13, %v18565_v14 }
 0xaf8   : > { %v11785_v61 = vpop.f32.mrf.mxu0 }
 0xaf9   : > { %11836 = vmatmul.bf16.vlgmr.msra.gmra.mxu1 %v14968_v52  ;;  %v19709_v52 = vld [vmem:[#allocation29_spill] sm:$0xff] }
 0xafa   : > { %v11616_v56 = vpop.f32.mrf.mxu3 }
 0xafc   : > { %v10425_v22 = vpop.f32.mrf.mxu2 }
 0xafd   : > { %v18782_v33 = vadd.f32 %v10425_v22, %v10257_v34  ;;  %v18797_v22 = vadd.f32 %v18713_v46, %v19709_v52  ;;  %v15003_v52 = vld [vmem:[#allocation2 + $0xb0] sm:$0xf] }
 0xafe   : > { %v10258_v12 = vpop.f32.mrf.mxu1 }
 0xaff   : > { %v10259_v11 = vadd.f32 %v10258_v12, %v18569_v6  ;;  %v14991_v12 = vld [vmem:[#allocation2 + $0x98] sm:$0xf] }
 0xb00   : > { %v11788_v40 = vpop.f32.mrf.mxu0 }
 0xb02   : > { %v11619_v30 = vpop.f32.mrf.mxu3 }
 0xb03   : > { %v18787_v41 = vadd.f32 %v11788_v40, %v11619_v30 }
 0xb04   : > { %v10427_v27 = vpop.f32.mrf.mxu2 }
 0xb05   : > { %v18785_v10 = vadd.f32 %v10427_v27, %v10259_v11  ;;  %19707 = vst [vmem:[#allocation44_spill] sm:$0xff] %v18787_v41  ;;  %v16051_v11 = vld [vmem:[#allocation2 + $0xa0] sm:$0xf0] }
 0xb06   : > { %v10261_v18 = vpop.f32.mrf.mxu1  ;;  %v14992_v48 = vor.u32 %v16051_v11, %v14991_v12  ;;  %v19713_v11 = vld [vmem:[#allocation30_spill] sm:$0xff] }
 0xb08   : > { %v11790_v14 = vpop.f32.mrf.mxu0 }
 0xb09   : > { %11841 = vmatmul.bf16.gmra.mxu1 %v14980_v38 }
 0xb0a   : > { %v11621_v61 = vpop.f32.mrf.mxu3 }
 0xb0b   : > { %v18793_v13 = vadd.f32 %v11790_v14, %v11621_v61  ;;  %v19711_v61 = vld [vmem:[#allocation28_spill] sm:$0xff] }
 0xb0c   : > { %v10430_v23 = vpop.f32.mrf.mxu2 }
 0xb0d   : > { %19708 = vst [vmem:[#allocation45_spill] sm:$0xff] %v18793_v13 }
 0xb0e   : > { %v10263_v34 = vpop.f32.mrf.mxu1 }
 0xb10   : > { %v11793_v6 = vpop.f32.mrf.mxu0 }
 0xb12   : > { %v11624_v40 = vpop.f32.mrf.mxu3 }
 0xb14   : > { %v10432_v56 = vpop.f32.mrf.mxu2 }
 0xb15   : > { %v16054_v56 = vld [vmem:[#allocation2 + $0xb8] sm:$0xf0] }
 0xb16   : > { %v10266_v53 = vpop.f32.mrf.mxu1  ;;  %v15004_v13 = vor.u32 %v16054_v56, %v15003_v52  ;;  %v15015_v52 = vld [vmem:[#allocation2 + $0xc8] sm:$0xf]  ;;  %v16057_v56 = vld [vmem:[#allocation2 + $0xd0] sm:$0xf0] }
 0xb17   : > { %v10267_v62 = vadd.f32 %v10266_v53, %v19710_v3  ;;  %v18809_v3 = vadd.f32 %v18728_v47, %v19713_v11  ;;  %v15016_v11 = vor.u32 %v16057_v56, %v15015_v52  ;;  %v19718_v56 = vld [vmem:[#allocation14_spill] sm:$0xff] }
 0xb18   : > { %v11795_v27 = vpop.f32.mrf.mxu0 }
 0xb19   : > { %11846 = vmatmul.bf16.gmra.mxu1 %v14992_v48 }
 0xb1a   : > { %v11626_v14 = vpop.f32.mrf.mxu3 }
 0xb1c   : > { %v10435_v30 = vpop.f32.mrf.mxu2 }
 0xb1d   : > { %v18800_v38 = vadd.f32 %v10435_v30, %v10267_v62 }
 0xb1e   : > { %v10268_v23 = vpop.f32.mrf.mxu1 }
 0xb1f   : > { %v10269_v6 = vadd.f32 %v10268_v23, %v19711_v61  ;;  %v19715_v61 = vld [vmem:[#allocation16_spill] sm:$0xff] }
 0xb20   : > { %v11798_v18 = vpop.f32.mrf.mxu0 }
 0xb22   : > { %v11629_v40 = vpop.f32.mrf.mxu3 }
 0xb23   : > { %v18805_v27 = vadd.f32 %v11798_v18, %v11629_v40 }
 0xb24   : > { %v10437_v46 = vpop.f32.mrf.mxu2 }
 0xb25   : > { %v18803_v34 = vadd.f32 %v10437_v46, %v10269_v6  ;;  %19712 = vst [vmem:[#allocation29_spill] sm:$0xff] %v18805_v27  ;;  %v18815_v6 = vadd.f32 %v18731_v54, %v19715_v61  ;;  %v19716_v27 = vld [vmem:[#allocation17_spill] sm:$0xff] }
 0xb26   : > { %v10271_v12 = vpop.f32.mrf.mxu1 }
 0xb28   : > { %v11800_v53 = vpop.f32.mrf.mxu0 }
 0xb29   : > { %11851 = vmatmul.bf16.gmra.mxu1 %v15004_v13 }
 0xb2a   : > { %v11631_v48 = vpop.f32.mrf.mxu3 }
 0xb2b   : > { %v18811_v30 = vadd.f32 %v11800_v53, %v11631_v48 }
 0xb2c   : > { %v10440_v62 = vpop.f32.mrf.mxu2 }
 0xb2d   : > { %19714 = vst [vmem:[#allocation20_spill] sm:$0xff] %v18811_v30 }
 0xb2e   : > { %v10273_v23 = vpop.f32.mrf.mxu1 }
 0xb30   : > { %v11803_v14 = vpop.f32.mrf.mxu0 }
 0xb32   : > { %v11634_v46 = vpop.f32.mrf.mxu3 }
 0xb33   : > { %v16060_v46 = vld [vmem:[#allocation2 + $0xe8] sm:$0xf0] }
 0xb34   : > { %v10442_v18 = vpop.f32.mrf.mxu2 }
 0xb35   : > { %v15027_v18 = vld [vmem:[#allocation2 + $0xe0] sm:$0xf] }
 0xb36   : > { %v10276_v12 = vpop.f32.mrf.mxu1  ;;  %v15028_v41 = vor.u32 %v16060_v46, %v15027_v18  ;;  %v16063_v18 = vld [vmem:[#allocation2 + $0x100] sm:$0xf0] }
 0xb37   : > { %v10277_v47 = vadd.f32 %v10276_v12, %v19716_v27  ;;  %v18827_v12 = vadd.f32 %v18746_v7, %v19718_v56 }
 0xb38   : > { %v11805_v40 = vpop.f32.mrf.mxu0 }
 0xb39   : > { %11856 = vmatmul.bf16.gmra.mxu1 %v15016_v11 }
 0xb3a   : > { %v11636_v53 = vpop.f32.mrf.mxu3 }
 0xb3c   : > { %v10445_v62 = vpop.f32.mrf.mxu2 }
 0xb3d   : > { %v18818_v13 = vadd.f32 %v10445_v62, %v10277_v47 }
 0xb3e   : > { %v10278_v14 = vpop.f32.mrf.mxu1 }
 0xb3f   : > { %v10279_v23 = vadd.f32 %v10278_v14, %v18585_v32 }
 0xb40   : > { %v11808_v48 = vpop.f32.mrf.mxu0 }
 0xb42   : > { %v11639_v30 = vpop.f32.mrf.mxu3 }
 0xb43   : > { %v18823_v40 = vadd.f32 %v11808_v48, %v11639_v30  ;;  %v15039_v48 = vld [vmem:[#allocation2 + $0xf8] sm:$0xf] }
 0xb44   : > { %v10447_v54 = vpop.f32.mrf.mxu2  ;;  %v15040_v7 = vor.u32 %v16063_v18, %v15039_v48 }
 0xb45   : > { %v18821_v61 = vadd.f32 %v10447_v54, %v10279_v23  ;;  %19717 = vst [vmem:[#allocation28_spill] sm:$0xff] %v18823_v40  ;;  %v19720_v23 = vld [vmem:[#allocation19_spill] sm:$0xff] }
 0xb46   : > { %v10281_v52 = vpop.f32.mrf.mxu1  ;;  %v18833_v54 = vadd.f32 %v18749_v5, %v19720_v23 }
 0xb48   : > { %v11810_v27 = vpop.f32.mrf.mxu0 }
 0xb49   : > { %11861 = vmatmul.bf16.gmra.mxu1 %v15028_v41 }
 0xb4a   : > { %v11641_v11 = vpop.f32.mrf.mxu3 }
 0xb4b   : > { %v18829_v62 = vadd.f32 %v11810_v27, %v11641_v11  ;;  %v15051_v27 = vld [vmem:[#allocation2 + $0x110] sm:$0xf]  ;;  %v16066_v11 = vld [vmem:[#allocation2 + $0x118] sm:$0xf0] }
 0xb4c   : > { %v10450_v47 = vpop.f32.mrf.mxu2 }
 0xb4d   : > { %19719 = vst [vmem:[#allocation30_spill] sm:$0xff] %v18829_v62 }
 0xb4e   : > { %v10283_v53 = vpop.f32.mrf.mxu1 }
 0xb50   : > { %v11813_v32 = vpop.f32.mrf.mxu0 }
 0xb52   : > { %v11644_v30 = vpop.f32.mrf.mxu3 }
 0xb53   : > { %v19722_v30 = vld [vmem:[#allocation24_spill] sm:$0xff] }
 0xb54   : > { %v10452_v14 = vpop.f32.mrf.mxu2  ;;  %v18843_v62 = vadd.f32 %v18764_v31, %v19722_v30  ;;  %v19726_v30 = vld [vmem:[#allocation35_spill] sm:$0xff] }
 0xb55   : > { %v15052_v14 = vor.u32 %v16066_v11, %v15051_v27 }
 0xb56   : > { %v18835_v52 = vpop.f32.mrf.mxu1 }
 0xb58   : > { %v11815_v46 = vpop.f32.mrf.mxu0 }
 0xb59   : > { %11866 = vmatmul.bf16.gmra.mxu1 %v15040_v7 }
 0xb5a   : > { %v11646_v56 = vpop.f32.mrf.mxu3 }
 0xb5b   : > { %v19724_v56 = vld [vmem:[#allocation27_spill] sm:$0xff] }
 0xb5c   : > { %v18849_v40 = vadd.f32 %v18767_v26, %v19724_v56  ;;  %v15075_v26 = vld [vmem:[#allocation2 + $0x140] sm:$0xf] }
 0xb5e   : > { %v18837_v47 = vpop.f32.mrf.mxu1 }
 0xb60   : > { %v11818_v41 = vpop.f32.mrf.mxu0 }
 0xb62   : > { %v11649_v32 = vpop.f32.mrf.mxu3 }
 0xb63   : > { %v18839_v53 = vadd.f32 %v11818_v41, %v11649_v32  ;;  %v15063_v41 = vld [vmem:[#allocation2 + $0x128] sm:$0xf]  ;;  %v16069_v32 = vld [vmem:[#allocation2 + $0x130] sm:$0xf0] }
 0xb64   : > { %v15064_v1 = vor.u32 %v16069_v32, %v15063_v41  ;;  %v16075_v32 = vld [vmem:[#allocation2 + $0x160] sm:$0xf0] }
 0xb65   : > { %19721 = vst [vmem:[#allocation16_spill] sm:$0xff] %v18839_v53 }
 0xb66   : > { %v10291_v23 = vpop.f32.mrf.mxu1 }
 0xb67   : > { %v19725_v23 = vld [vmem:[#allocation34_spill] sm:$0xff] }
 0xb68   : > { %v11820_v5 = vpop.f32.mrf.mxu0 }
 0xb69   : > { %11871 = vmatmul.bf16.gmra.mxu1 %v15052_v14 }
 0xb6a   : > { %v11651_v46 = vpop.f32.mrf.mxu3 }
 0xb6b   : > { %v18845_v48 = vadd.f32 %v11820_v5, %v11651_v46 }
 0xb6d   : > { %19723 = vst [vmem:[#allocation17_spill] sm:$0xff] %v18845_v48 }
 0xb6e   : > { %v10293_v7 = vpop.f32.mrf.mxu1 }
 0xb70   : > { %v11823_v18 = vpop.f32.mrf.mxu0 }
 0xb72   : > { %v11654_v24 = vpop.f32.mrf.mxu3 }
 0xb73   : > { %v16072_v24 = vld [vmem:[#allocation2 + $0x148] sm:$0xf0] }
 0xb74   : > { %v15076_v7 = vor.u32 %v16072_v24, %v15075_v26  ;;  %v15099_v24 = vld [vmem:[#allocation2 + $0x170] sm:$0xf] }
 0xb76   : > { %v11837_v11 = vpop.f32.mrf.mxu1 }
 0xb77   : > { %v11838_v53 = vadd.f32 %v11837_v11, %v19725_v23  ;;  %v19729_v23 = vld [vmem:[#allocation36_spill] sm:$0xff] }
 0xb78   : > { %v11825_v27 = vpop.f32.mrf.mxu0 }
 0xb79   : > { %v18853_v31 = vadd.f32 %v11838_v53, %v18647_v35  ;;  %11876 = vmatmul.bf16.gmra.mxu1 %v15064_v1  ;;  %v19727_v27 = vld [vmem:[#allocation18_spill] sm:$0xff]  ;;  %v19728_v35 = vld [vmem:[#allocation25_spill] sm:$0xff] }
 0xb7a   : > { %v11656_v14 = vpop.f32.mrf.mxu3  ;;  %v18861_v48 = vadd.f32 %v18782_v33, %v19727_v27  ;;  %v18865_v1 = vadd.f32 %v18785_v10, %v19728_v35  ;;  %v15087_v53 = vld [vmem:[#allocation2 + $0x158] sm:$0xf]  ;;  %v19731_v27 = vld [vmem:[#allocation26_spill] sm:$0xff] }
 0xb7b   : > { %v15088_v14 = vor.u32 %v16075_v32, %v15087_v53  ;;  %v19732_v53 = vld [vmem:[#allocation15_spill] sm:$0xff] }
 0xb7c   : > { %v15111_v32 = vld [vmem:[#allocation2 + $0x188] sm:$0xf] }
 0xb7e   : > { %v11839_v5 = vpop.f32.mrf.mxu1 }
 0xb7f   : > { %v11840_v46 = vadd.f32 %v11839_v5, %v19726_v30 }
 0xb81   : > { %v18857_v18 = vadd.f32 %v11840_v46, %v18653_v50  ;;  %v19730_v46 = vld [vmem:[#allocation37_spill] sm:$0xff] }
 0xb86   : > { %v11842_v56 = vpop.f32.mrf.mxu1 }
 0xb89   : > { %11881 = vmatmul.bf16.gmra.mxu1 %v15076_v7  ;;  %v16078_v7 = vld [vmem:[#allocation2 + $0x178] sm:$0xf0] }
 0xb8a   : > { %v15100_v10 = vor.u32 %v16078_v7, %v15099_v24  ;;  %v15123_v7 = vld [vmem:[#allocation2 + $0x1a0] sm:$0xf] }
 0xb8e   : > { %v11844_v41 = vpop.f32.mrf.mxu1 }
 0xb8f   : > { %v18877_v41 = vadd.f32 %v18800_v38, %v19731_v27  ;;  %v19735_v27 = vld [vmem:[#allocation23_spill] sm:$0xff] }
 0xb96   : > { %v11847_v11 = vpop.f32.mrf.mxu1 }
 0xb97   : > { %v11848_v50 = vadd.f32 %v11847_v11, %v19729_v23  ;;  %v16081_v11 = vld [vmem:[#allocation2 + $0x190] sm:$0xf0] }
 0xb99   : > { %v18869_v5 = vadd.f32 %v11848_v50, %v18665_v15  ;;  %11886 = vmatmul.bf16.gmra.mxu1 %v15088_v14  ;;  %v18881_v15 = vadd.f32 %v18803_v34, %v19732_v53  ;;  %v19733_v50 = vld [vmem:[#allocation38_spill] sm:$0xff]  ;;  %v15112_v14 = vor.u32 %v16081_v11, %v15111_v32  ;;  %v19736_v32 = vld [vmem:[#allocation21_spill] sm:$0xff] }
 0xb9a   : > { %v15135_v11 = vld [vmem:[#allocation2 + $0x1b8] sm:$0xf] }
 0xb9e   : > { %v11849_v30 = vpop.f32.mrf.mxu1 }
 0xb9f   : > { %v11850_v33 = vadd.f32 %v11849_v30, %v19730_v46 }
 0xba1   : > { %v18873_v26 = vadd.f32 %v11850_v33, %v18671_v19  ;;  %v19734_v33 = vld [vmem:[#allocation39_spill] sm:$0xff] }
 0xba6   : > { %v11852_v56 = vpop.f32.mrf.mxu1 }
 0xba9   : > { %11891 = vmatmul.bf16.gmra.mxu1 %v15100_v10  ;;  %v16084_v10 = vld [vmem:[#allocation2 + $0x1a8] sm:$0xf0] }
 0xbaa   : > { %v15124_v34 = vor.u32 %v16084_v10, %v15123_v7  ;;  %v19739_v7 = vld [vmem:[#allocation22_spill] sm:$0xff] }
 0xbab   : > { %v10287_v10 = vadd.f32 %v18835_v52, %v19739_v7  ;;  %v19742_v52 = vld [vmem:[#allocation33_spill] sm:$0xff] }
 0xbae   : > { %v11854_v35 = vpop.f32.mrf.mxu1 }
 0xbaf   : > { %v18893_v35 = vadd.f32 %v18818_v13, %v19735_v27  ;;  %v16090_v27 = vld [vmem:[#allocation2 + $0x1d8] sm:$0xf0] }
 0xbb6   : > { %v11857_v23 = vpop.f32.mrf.mxu1 }
 0xbb7   : > { %v11858_v19 = vadd.f32 %v11857_v23, %v19733_v50  ;;  %v16087_v23 = vld [vmem:[#allocation2 + $0x1c0] sm:$0xf0] }
 0xbb9   : > { %v18885_v30 = vadd.f32 %v11858_v19, %v18683_v49  ;;  %11896 = vmatmul.bf16.gmra.mxu1 %v15112_v14  ;;  %v18897_v49 = vadd.f32 %v18821_v61, %v19736_v32  ;;  %v19737_v19 = vld [vmem:[#allocation40_spill] sm:$0xff]  ;;  %v15136_v14 = vor.u32 %v16087_v23, %v15135_v11  ;;  %v19741_v23 = vld [vmem:[#allocation31_spill] sm:$0xff] }
 0xbba   : > { %v19740_v11 = vld [vmem:[#allocation32_spill] sm:$0xff] }
 0xbbe   : > { %v11859_v46 = vpop.f32.mrf.mxu1 }
 0xbbf   : > { %v11860_v38 = vadd.f32 %v11859_v46, %v19734_v33 }
 0xbc1   : > { %v18889_v24 = vadd.f32 %v11860_v38, %v18689_v37  ;;  %v19738_v38 = vld [vmem:[#allocation41_spill] sm:$0xff] }
 0xbc6   : > { %v11862_v56 = vpop.f32.mrf.mxu1 }
 0xbc7   : > { %v15147_v56 = vld [vmem:[#allocation2 + $0x1d0] sm:$0xf] }
 0xbc8   : > { %v15148_v32 = vor.u32 %v16090_v27, %v15147_v56 }
 0xbc9   : > { %11901 = vmatmul.bf16.gmra.mxu1 %v15124_v34  ;;  %v10455_v34 = vpop.f32.mrf.mxu2 }
 0xbce   : > { %v11864_v53 = vpop.f32.mrf.mxu1 }
 0xbcf   : > { %v10456_v53 = vadd.f32 %v10455_v34, %v10287_v10 }
 0xbd6   : > { %v11867_v50 = vpop.f32.mrf.mxu1 }
 0xbd7   : > { %v11868_v37 = vadd.f32 %v11867_v50, %v19737_v19  ;;  %v18912_v19 = vadd.f32 %v10456_v53, %v19741_v23 }
 0xbd9   : > { %v18901_v46 = vadd.f32 %v11868_v37, %v18701_v21  ;;  %11906 = vmatmul.bf16.gmra.mxu1 %v15136_v14  ;;  %v10289_v21 = vadd.f32 %v18837_v47, %v19740_v11  ;;  %v10457_v37 = vpop.f32.mrf.mxu2 }
 0xbdb   : > { %v10458_v14 = vadd.f32 %v10457_v37, %v10289_v21  ;;  %v15183_v37 = vld [vmem:[#allocation2 + $0x218] sm:$0xf] }
 0xbde   : > { %v11869_v33 = vpop.f32.mrf.mxu1 }
 0xbdf   : > { %v11870_v13 = vadd.f32 %v11869_v33, %v19738_v38  ;;  %v18915_v38 = vadd.f32 %v10458_v14, %v19742_v52  ;;  %v16099_v14 = vld [vmem:[#allocation2 + $0x220] sm:$0xf0] }
 0xbe1   : > { %v18907_v61 = vadd.f32 %v11870_v13, %v18707_v4  ;;  %v15159_v4 = vld [vmem:[#allocation2 + $0x1e8] sm:$0xf]  ;;  %v16093_v13 = vld [vmem:[#allocation2 + $0x1f0] sm:$0xf0] }
 0xbe2   : > { %v15160_v34 = vor.u32 %v16093_v13, %v15159_v4  ;;  %v15195_v13 = vld [vmem:[#allocation2 + $0x230] sm:$0xf] }
 0xbe6   : > { %v11872_v50 = vpop.f32.mrf.mxu1 }
 0xbe7   : > { %v16096_v50 = vld [vmem:[#allocation2 + $0x208] sm:$0xf0] }
 0xbe9   : > { %11911 = vmatmul.bf16.gmra.mxu1 %v15148_v32  ;;  %v15171_v32 = vld [vmem:[#allocation2 + $0x200] sm:$0xf] }
 0xbea   : > { %v15172_v11 = vor.u32 %v16096_v50, %v15171_v32  ;;  %v16105_v32 = vld [vmem:[#allocation2 + $0x250] sm:$0xf0] }
 0xbee   : > { %v11874_v33 = vpop.f32.mrf.mxu1 }
 0xbf6   : > { %v11877_v7 = vpop.f32.mrf.mxu1 }
 0xbf7   : > { %v11878_v10 = vadd.f32 %v11877_v7, %v18643_v55  ;;  %v16102_v7 = vld [vmem:[#allocation2 + $0x238] sm:$0xf0] }
 0xbf9   : > { %v18919_v56 = vadd.f32 %v11878_v10, %v18719_v2  ;;  %11916 = vmatmul.bf16.gmra.mxu1 %v15160_v34  ;;  %v15184_v2 = vor.u32 %v16099_v14, %v15183_v37  ;;  %v15196_v10 = vor.u32 %v16102_v7, %v15195_v13  ;;  %v16108_v37 = vld [vmem:[#allocation2 + $0x268] sm:$0xf0] }
 0xbfe   : > { %v11879_v47 = vpop.f32.mrf.mxu1 }
 0xbff   : > { %v11880_v27 = vadd.f32 %v11879_v47, %v18649_v9 }
 0xc01   : > { %v18923_v53 = vadd.f32 %v11880_v27, %v18725_v43  ;;  %v15207_v27 = vld [vmem:[#allocation2 + $0x248] sm:$0xf] }
 0xc06   : > { %v11882_v21 = vpop.f32.mrf.mxu1 }
 0xc09   : > { %11921 = vmatmul.bf16.gmra.mxu1 %v15172_v11 }
 0xc0e   : > { %v11884_v23 = vpop.f32.mrf.mxu1 }
 0xc0f   : > { %v15219_v23 = vld [vmem:[#allocation2 + $0x260] sm:$0xf] }
 0xc10   : > { %v15220_v14 = vor.u32 %v16108_v37, %v15219_v23  ;;  %v15267_v23 = vld [vmem:[#allocation2 + $0x2c0] sm:$0xf]  ;;  %v16120_v37 = vld [vmem:[#allocation2 + $0x2c8] sm:$0xf0] }
 0xc16   : > { %v11887_v55 = vpop.f32.mrf.mxu1 }
 0xc17   : > { %v11888_v33 = vadd.f32 %v11887_v55, %v18661_v28 }
 0xc19   : > { %v18927_v52 = vadd.f32 %v11888_v33, %v18737_v44  ;;  %11926 = vmatmul.bf16.gmra.mxu1 %v15184_v2  ;;  %v15208_v44 = vor.u32 %v16105_v32, %v15207_v27  ;;  %v15231_v2 = vld [vmem:[#allocation2 + $0x278] sm:$0xf] }
 0xc1e   : > { %v11889_v9 = vpop.f32.mrf.mxu1 }
 0xc1f   : > { %v11890_v43 = vadd.f32 %v11889_v9, %v18667_v25  ;;  %v16111_v9 = vld [vmem:[#allocation2 + $0x280] sm:$0xf0] }
 0xc21   : > { %v18931_v4 = vadd.f32 %v11890_v43, %v18743_v8 }
 0xc26   : > { %v11892_v34 = vpop.f32.mrf.mxu1 }
 0xc27   : > { %v16114_v34 = vld [vmem:[#allocation2 + $0x298] sm:$0xf0] }
 0xc29   : > { %11931 = vmatmul.bf16.gmra.mxu1 %v15196_v10  ;;  %v15243_v10 = vld [vmem:[#allocation2 + $0x290] sm:$0xf] }
 0xc2e   : > { %v11894_v47 = vpop.f32.mrf.mxu1 }
 0xc2f   : > { %v15244_v47 = vor.u32 %v16114_v34, %v15243_v10 }
 0xc36   : > { %v11897_v28 = vpop.f32.mrf.mxu1 }
 0xc37   : > { %v11898_v50 = vadd.f32 %v11897_v28, %v18679_v63  ;;  %v15255_v28 = vld [vmem:[#allocation2 + $0x2a8] sm:$0xf] }
 0xc39   : > { %v18935_v11 = vadd.f32 %v11898_v50, %v18755_v20  ;;  %11936 = vmatmul.bf16.gmra.mxu1 %v15208_v44  ;;  %v15232_v20 = vor.u32 %v16111_v9, %v15231_v2  ;;  %v16117_v50 = vld [vmem:[#allocation2 + $0x2b0] sm:$0xf0]  ;;  %v15279_v2 = vld [vmem:[#allocation2 + $0x2d8] sm:$0xf]  ;;  %v16123_v9 = vld [vmem:[#allocation2 + $0x2e0] sm:$0xf0] }
 0xc3e   : > { %v11899_v25 = vpop.f32.mrf.mxu1 }
 0xc3f   : > { %v11900_v8 = vadd.f32 %v11899_v25, %v18685_v59 }
 0xc41   : > { %v18939_v21 = vadd.f32 %v11900_v8, %v18761_v17 }
 0xc46   : > { %v11902_v55 = vpop.f32.mrf.mxu1 }
 0xc49   : > { %11941 = vmatmul.bf16.gmra.mxu1 %v15220_v14  ;;  %v15268_v14 = vor.u32 %v16120_v37, %v15267_v23  ;;  %v15327_v37 = vld [vmem:[#allocation2 + $0x338] sm:$0xf] }
 0xc4e   : > { %v11904_v33 = vpop.f32.mrf.mxu1 }
 0xc56   : > { %v11907_v63 = vpop.f32.mrf.mxu1 }
 0xc57   : > { %v11908_v43 = vadd.f32 %v11907_v63, %v18697_v39 }
 0xc59   : > { %v18943_v13 = vadd.f32 %v11908_v43, %v18773_v36  ;;  %11946 = vmatmul.bf16.gmra.mxu1 %v15232_v20  ;;  %v15256_v36 = vor.u32 %v16117_v50, %v15255_v28 }
 0xc5e   : > { %v11909_v59 = vpop.f32.mrf.mxu1 }
 0xc5f   : > { %v11910_v17 = vadd.f32 %v11909_v59, %v18703_v42  ;;  %v15291_v59 = vld [vmem:[#allocation2 + $0x2f0] sm:$0xf] }
 0xc61   : > { %v18947_v7 = vadd.f32 %v11910_v17, %v18779_v16  ;;  %v16126_v17 = vld [vmem:[#allocation2 + $0x2f8] sm:$0xf0] }
 0xc62   : > { %v15292_v10 = vor.u32 %v16126_v17, %v15291_v59 }
 0xc66   : > { %v11912_v27 = vpop.f32.mrf.mxu1 }
 0xc67   : > { %v15303_v27 = vld [vmem:[#allocation2 + $0x308] sm:$0xf] }
 0xc69   : > { %11951 = vmatmul.bf16.gmra.mxu1 %v15244_v47 }
 0xc6e   : > { %v11914_v32 = vpop.f32.mrf.mxu1 }
 0xc6f   : > { %v16129_v32 = vld [vmem:[#allocation2 + $0x310] sm:$0xf0] }
 0xc76   : > { %v11917_v39 = vpop.f32.mrf.mxu1 }
 0xc77   : > { %v11918_v44 = vadd.f32 %v11917_v39, %v18715_v45 }
 0xc79   : > { %v18951_v25 = vadd.f32 %v11918_v44, %v18791_v51  ;;  %11956 = vmatmul.bf16.gmra.mxu1 %v15256_v36  ;;  %v15280_v51 = vor.u32 %v16123_v9, %v15279_v2  ;;  %v15315_v44 = vld [vmem:[#allocation2 + $0x320] sm:$0xf]  ;;  %v16132_v36 = vld [vmem:[#allocation2 + $0x328] sm:$0xf0] }
 0xc7a   : > { %v19744_v9 = vld [vmem:[#allocation43_spill] sm:$0xff] }
 0xc7e   : > { %v11919_v42 = vpop.f32.mrf.mxu1 }
 0xc7f   : > { %v11920_v16 = vadd.f32 %v11919_v42, %v18721_v0  ;;  %v15316_v42 = vor.u32 %v16132_v36, %v15315_v44 }
 0xc81   : > { %v18955_v8 = vadd.f32 %v11920_v16, %v18797_v22 }
 0xc86   : > { %v11922_v55 = vpop.f32.mrf.mxu1 }
 0xc87   : > { %v19743_v55 = vld [vmem:[#allocation42_spill] sm:$0xff] }
 0xc89   : > { %11961 = vmatmul.bf16.gmra.mxu1 %v15268_v14  ;;  %v16135_v14 = vld [vmem:[#allocation2 + $0x340] sm:$0xf0] }
 0xc8e   : > { %v11924_v33 = vpop.f32.mrf.mxu1 }
 0xc96   : > { %v11927_v45 = vpop.f32.mrf.mxu1 }
 0xc97   : > { %v11928_v63 = vadd.f32 %v11927_v45, %v18733_v57 }
 0xc99   : > { %v18959_v43 = vadd.f32 %v11928_v63, %v18809_v3  ;;  %11966 = vmatmul.bf16.gmra.mxu1 %v15280_v51  ;;  %v15304_v3 = vor.u32 %v16129_v32, %v15303_v27  ;;  %v12189_v32 = vadd.f32 %v18857_v18, %v18853_v31 }
 0xc9e   : > { %v11929_v0 = vpop.f32.mrf.mxu1 }
 0xc9f   : > { %v11930_v22 = vadd.f32 %v11929_v0, %v18739_v60 }
 0xca1   : > { %v18963_v20 = vadd.f32 %v11930_v22, %v18815_v6  ;;  %v19745_v22 = vld [vmem:[#allocation44_spill] sm:$0xff] }
 0xca6   : > { %v11932_v34 = vpop.f32.mrf.mxu1 }
 0xca7   : > { %v19746_v34 = vld [vmem:[#allocation45_spill] sm:$0xff] }
 0xca9   : > { %11971 = vmatmul.bf16.gmra.mxu1 %v15292_v10 }
 0xcae   : > { %v11934_v47 = vpop.f32.mrf.mxu1 }
 0xcb6   : > { %v11937_v57 = vpop.f32.mrf.mxu1 }
 0xcb7   : > { %v11938_v28 = vadd.f32 %v11937_v57, %v18751_v29 }
 0xcb9   : > { %v18967_v50 = vadd.f32 %v11938_v28, %v18827_v12  ;;  %11976 = vmatmul.bf16.gmra.mxu1 %v15304_v3  ;;  %v15328_v12 = vor.u32 %v16135_v14, %v15327_v37 }
 0xcbe   : > { %v11939_v60 = vpop.f32.mrf.mxu1 }
 0xcbf   : > { %v11940_v6 = vadd.f32 %v11939_v60, %v18757_v58 }
 0xcc1   : > { %v18971_v39 = vadd.f32 %v11940_v6, %v18833_v54 }
 0xcc6   : > { %v11942_v16 = vpop.f32.mrf.mxu1 }
 0xcc9   : > { %11981 = vmatmul.bf16.gmra.mxu1 %v15316_v42 }
 0xcce   : > { %v11944_v23 = vpop.f32.mrf.mxu1 }
 0xcd6   : > { %v11947_v29 = vpop.f32.mrf.mxu1 }
 0xcd7   : > { %v11948_v33 = vadd.f32 %v11947_v29, %v19743_v55  ;;  %v19748_v55 = vld [vmem:[#allocation20_spill] sm:$0xff] }
 0xcd9   : > { %v18975_v2 = vadd.f32 %v11948_v33, %v18843_v62  ;;  %11986 = vmatmul.bf16.gmra.mxu1 %v15328_v12 }
 0xcde   : > { %v11949_v58 = vpop.f32.mrf.mxu1 }
 0xcdf   : > { %v11950_v54 = vadd.f32 %v11949_v58, %v19744_v9 }
 0xce1   : > { %v18979_v45 = vadd.f32 %v11950_v54, %v18849_v40  ;;  %v12190_v40 = vadd.f32 %v12189_v32, %v18869_v5 }
 0xce3   : > { %v12191_v28 = vadd.f32 %v12190_v40, %v18873_v26 }
 0xce5   : > { %v12192_v3 = vadd.f32 %v12191_v28, %v18885_v30 }
 0xce6   : > { %v11952_v63 = vpop.f32.mrf.mxu1 }
 0xce7   : > { %v14859_v63 = vld [vmem:[#allocation2 + $0x320] sm:$0xf] }
 0xcee   : > { %v11954_v51 = vpop.f32.mrf.mxu1 }
 0xcef   : > { %v16018_v51 = vld [vmem:[#allocation2 + $0x328] sm:$0xf0] }
 0xcf6   : > { %v11957_v0 = vpop.f32.mrf.mxu1 }
 0xcf7   : > { %v11958_v59 = vadd.f32 %v11957_v0, %v19745_v22  ;;  %v14860_v22 = vor.u32 %v16018_v51, %v14859_v63  ;;  %v19751_v51 = vld [vmem:[#allocation16_spill] sm:$0xff] }
 0xcf9   : > { %v18983_v17 = vadd.f32 %v11958_v59, %v18861_v48  ;;  %v12193_v48 = vadd.f32 %v12192_v3, %v18889_v24  ;;  %10459 = vmatmul.bf16.gmra.mxu2 %v14860_v22 }
 0xcfb   : > { %v12194_v60 = vadd.f32 %v12193_v48, %v18901_v46 }
 0xcfd   : > { %v12195_v44 = vadd.f32 %v12194_v60, %v18907_v61 }
 0xcfe   : > { %v11959_v10 = vpop.f32.mrf.mxu1 }
 0xcff   : > { %v11960_v47 = vadd.f32 %v11959_v10, %v19746_v34  ;;  %v12196_v42 = vadd.f32 %v12195_v44, %v18919_v56 }
 0xd01   : > { %v18987_v62 = vadd.f32 %v11960_v47, %v18865_v1  ;;  %v19747_v1 = vld [vmem:[#allocation29_spill] sm:$0xff]  ;;  %v12197_v23 = vadd.f32 %v12196_v42, %v18923_v53 }
 0xd03   : > { %v12198_v37 = vadd.f32 %v12197_v23, %v18927_v52 }
 0xd05   : > { %v12199_v29 = vadd.f32 %v12198_v37, %v18931_v4 }
 0xd06   : > { %v11962_v27 = vpop.f32.mrf.mxu1 }
 0xd07   : > { %v12200_v12 = vadd.f32 %v12199_v29, %v18935_v11  ;;  %v16138_v27 = vld [vmem:[#allocation2 + $0x358] sm:$0xf0]  ;;  %v19750_v29 = vld [vmem:[#allocation30_spill] sm:$0xff] }
 0xd09   : > { %v12201_v9 = vadd.f32 %v12200_v12, %v18939_v21 }
 0xd0b   : > { %v12202_v54 = vadd.f32 %v12201_v9, %v18943_v13 }
 0xd0d   : > { %v12203_v0 = vadd.f32 %v12202_v54, %v18947_v7 }
 0xd0e   : > { %v11964_v57 = vpop.f32.mrf.mxu1 }
 0xd0f   : > { %v12204_v59 = vadd.f32 %v12203_v0, %v18951_v25 }
 0xd11   : > { %v12205_v10 = vadd.f32 %v12204_v59, %v18955_v8 }
 0xd13   : > { %v12206_v34 = vadd.f32 %v12205_v10, %v18959_v43  ;;  %v19752_v10 = vld [vmem:[#allocation17_spill] sm:$0xff] }
 0xd15   : > { %v12207_v32 = vadd.f32 %v12206_v34, %v18963_v20 }
 0xd16   : > { %v11967_v6 = vpop.f32.mrf.mxu1 }
 0xd17   : > { %v11968_v36 = vadd.f32 %v11967_v6, %v19747_v1  ;;  %v12208_v57 = vadd.f32 %v12207_v32, %v18967_v50  ;;  %v19749_v6 = vld [vmem:[#allocation28_spill] sm:$0xff] }
 0xd19   : > { %v19000_v16 = vadd.f32 %v11968_v36, %v18877_v41  ;;  %v12209_v28 = vadd.f32 %v12208_v57, %v18971_v39 }
 0xd1b   : > { %v12210_v3 = vadd.f32 %v12209_v28, %v18975_v2 }
 0xd1d   : > { %v12211_v60 = vadd.f32 %v12210_v3, %v18979_v45 }
 0xd1e   : > { %v11969_v14 = vpop.f32.mrf.mxu1 }
 0xd1f   : > { %v11970_v33 = vadd.f32 %v11969_v14, %v19748_v55  ;;  %v12212_v1 = vadd.f32 %v12211_v60, %v18983_v17 }
 0xd21   : > { %v19008_v58 = vadd.f32 %v11970_v33, %v18881_v15  ;;  %v15339_v15 = vld [vmem:[#allocation2 + $0x350] sm:$0xf]  ;;  %v12213_v42 = vadd.f32 %v12212_v1, %v18987_v62 }
 0xd22   : > { %v15340_v40 = vor.u32 %v16138_v27, %v15339_v15 }
 0xd23   : > { %v12214_v23 = vadd.f32 %v12213_v42, %v19000_v16 }
 0xd24   : > { %11991 = vmatmul.bf16.gmra.mxu1 %v15340_v40 }
 0xd25   : > { %v12215_v14 = vadd.f32 %v12214_v23, %v19008_v58 }
 0xd26   : > { %v11972_v41 = vpop.f32.mrf.mxu1 }
 0xd2e   : > { %v11974_v47 = vpop.f32.mrf.mxu1 }
 0xd36   : > { %v11977_v48 = vpop.f32.mrf.mxu1 }
 0xd37   : > { %v11978_v44 = vadd.f32 %v11977_v48, %v19749_v6 }
 0xd39   : > { %v12053_v36 = vadd.f32 %v11978_v44, %v18893_v35 }
 0xd3b   : > { %v12216_v33 = vadd.f32 %v12215_v14, %v12053_v36 }
 0xd3e   : > { %v11979_v37 = vpop.f32.mrf.mxu1 }
 0xd3f   : > { %v11980_v55 = vadd.f32 %v11979_v37, %v19750_v29 }
 0xd41   : > { %v12054_v12 = vadd.f32 %v11980_v55, %v18897_v49 }
 0xd43   : > { %v12217_v9 = vadd.f32 %v12216_v33, %v12054_v12 }
 0xd46   : > { %v11982_v54 = vpop.f32.mrf.mxu1 }
 0xd4e   : > { %v11984_v41 = vpop.f32.mrf.mxu1 }
 0xd56   : > { %v11987_v63 = vpop.f32.mrf.mxu1 }
 0xd57   : > { %v11988_v0 = vadd.f32 %v11987_v63, %v19751_v51 }
 0xd59   : > { %v12057_v35 = vadd.f32 %v11988_v0, %v18912_v19 }
 0xd5b   : > { %v12218_v22 = vadd.f32 %v12217_v9, %v12057_v35 }
 0xd5e   : > { %v11989_v59 = vpop.f32.mrf.mxu1 }
 0xd5f   : > { %v11990_v34 = vadd.f32 %v11989_v59, %v19752_v10 }
 0xd61   : > { %v12058_v47 = vadd.f32 %v11990_v34, %v18915_v38 }
 0xd63   : > { %v12219_v15 = vadd.f32 %v12218_v22, %v12058_v47 }
 0xd65   : > { %v12220_v27 = vrot.slane %v12219_v15, 4 }
 0xd67   : > { %v12221_v32 = vadd.f32 %v12220_v27, %v12219_v15 }
 0xd69   : > { %v12222_v40 = vrot.slane %v12221_v32, 2 }
 0xd6b   : > { %v12223_v57 = vadd.f32 %v12222_v40, %v12221_v32 }
 0xd6d   : > { %v12224_v49 = vrot.slane %v12223_v57, 1 }
 0xd6f   : > { %v12225_v28 = vadd.f32 %v12224_v49, %v12223_v57 }
 0xd71   : > { %v19033_v3 = vmul.f32 0.00390625, %v12225_v28 }
 0xd73   : > { %v19036_v48 = vsub.f32 %v12053_v36, %v19033_v3  ;;  %v19039_v19 = vsub.f32 %v12054_v12, %v19033_v3  ;;  %v19042_v60 = vsub.f32 %v12057_v35, %v19033_v3  ;;  %v19045_v38 = vsub.f32 %v12058_v47, %v19033_v3 }
 0xd74   : > { %v19049_v6 = vsub.f32 %v18853_v31, %v19033_v3  ;;  %v19053_v44 = vsub.f32 %v18857_v18, %v19033_v3  ;;  %v19057_v1 = vsub.f32 %v18869_v5, %v19033_v3  ;;  %v19065_v23 = vsub.f32 %v18873_v26, %v19033_v3 }
 0xd75   : > { %v19069_v31 = vsub.f32 %v18885_v30, %v19033_v3  ;;  %v19075_v5 = vsub.f32 %v18889_v24, %v19033_v3  ;;  %v19081_v26 = vsub.f32 %v18901_v46, %v19033_v3  ;;  %v19087_v33 = vsub.f32 %v18907_v61, %v19033_v3 }
 0xd76   : > { %v12259_v36 = vmul.f32 %v19049_v6, %v19049_v6  ;;  %v12260_v42 = vmul.f32 %v19053_v44, %v19053_v44  ;;  %v12261_v18 = vmul.f32 %v19057_v1, %v19057_v1  ;;  %v12262_v14 = vmul.f32 %v19065_v23, %v19065_v23 }
 0xd77   : > { %v12263_v30 = vmul.f32 %v19069_v31, %v19069_v31  ;;  %v12264_v24 = vmul.f32 %v19075_v5, %v19075_v5  ;;  %v19093_v9 = vsub.f32 %v18919_v56, %v19033_v3  ;;  %v12265_v46 = vmul.f32 %v19081_v26, %v19081_v26 }
 0xd78   : > { %v12291_v37 = vadd.f32 %v12260_v42, %v12259_v36  ;;  %v19099_v41 = vsub.f32 %v18923_v53, %v19033_v3  ;;  %v12266_v61 = vmul.f32 %v19087_v33, %v19087_v33  ;;  %v19105_v51 = vsub.f32 %v18927_v52, %v19033_v3 }
 0xd79   : > { %v12267_v56 = vmul.f32 %v19093_v9, %v19093_v9  ;;  %v19111_v35 = vsub.f32 %v18931_v4, %v19033_v3  ;;  %v19117_v59 = vsub.f32 %v18935_v11, %v19033_v3  ;;  %v19123_v34 = vsub.f32 %v18939_v21, %v19033_v3 }
 0xd7a   : > { %v12292_v29 = vadd.f32 %v12291_v37, %v12261_v18  ;;  %v12268_v53 = vmul.f32 %v19099_v41, %v19099_v41  ;;  %v12269_v52 = vmul.f32 %v19105_v51, %v19105_v51  ;;  %v19129_v15 = vsub.f32 %v18943_v13, %v19033_v3 }
 0xd7b   : > { %v12270_v4 = vmul.f32 %v19111_v35, %v19111_v35  ;;  %v12271_v11 = vmul.f32 %v19117_v59, %v19117_v59  ;;  %v19135_v32 = vsub.f32 %v18947_v7, %v19033_v3  ;;  %v12272_v21 = vmul.f32 %v19123_v34, %v19123_v34 }
 0xd7c   : > { %v12293_v55 = vadd.f32 %v12292_v29, %v12262_v14  ;;  %v19141_v57 = vsub.f32 %v18951_v25, %v19033_v3  ;;  %v12273_v13 = vmul.f32 %v19129_v15, %v19129_v15  ;;  %v19147_v28 = vsub.f32 %v18955_v8, %v19033_v3 }
 0xd7d   : > { %v12274_v7 = vmul.f32 %v19135_v32, %v19135_v32  ;;  %v19153_v42 = vsub.f32 %v18959_v43, %v19033_v3  ;;  %v19159_v37 = vsub.f32 %v18963_v20, %v19033_v3  ;;  %v19165_v29 = vsub.f32 %v18967_v50, %v19033_v3 }
 0xd7e   : > { %v12294_v12 = vadd.f32 %v12293_v55, %v12263_v30  ;;  %v12275_v25 = vmul.f32 %v19141_v57, %v19141_v57  ;;  %v12276_v8 = vmul.f32 %v19147_v28, %v19147_v28  ;;  %v19171_v55 = vsub.f32 %v18971_v39, %v19033_v3 }
 0xd7f   : > { %v12277_v43 = vmul.f32 %v19153_v42, %v19153_v42  ;;  %v12278_v20 = vmul.f32 %v19159_v37, %v19159_v37  ;;  %v12279_v50 = vmul.f32 %v19165_v29, %v19165_v29 }
 0xd80   : > { %v12295_v54 = vadd.f32 %v12294_v12, %v12264_v24  ;;  %v19177_v12 = vsub.f32 %v18975_v2, %v19033_v3  ;;  %v12280_v39 = vmul.f32 %v19171_v55, %v19171_v55 }
 0xd82   : > { %v12296_v63 = vadd.f32 %v12295_v54, %v12265_v46  ;;  %v19183_v54 = vsub.f32 %v18979_v45, %v19033_v3  ;;  %v12281_v2 = vmul.f32 %v19177_v12, %v19177_v12 }
 0xd84   : > { %v12297_v0 = vadd.f32 %v12296_v63, %v12266_v61  ;;  %v19189_v63 = vsub.f32 %v18983_v17, %v19033_v3  ;;  %v12282_v45 = vmul.f32 %v19183_v54, %v19183_v54 }
 0xd86   : > { %v12298_v22 = vadd.f32 %v12297_v0, %v12267_v56  ;;  %v10460_v0 = vpop.f32.mrf.mxu2  ;;  %v12283_v17 = vmul.f32 %v19189_v63, %v19189_v63 }
 0xd88   : > { %v12299_v10 = vadd.f32 %v12298_v22, %v12268_v53  ;;  %v19195_v53 = vsub.f32 %v18987_v62, %v19033_v3 }
 0xd8a   : > { %v12300_v47 = vadd.f32 %v12299_v10, %v12269_v52  ;;  %v19201_v10 = vsub.f32 %v19000_v16, %v19033_v3  ;;  %v12284_v62 = vmul.f32 %v19195_v53, %v19195_v53 }
 0xd8c   : > { %v12301_v27 = vadd.f32 %v12300_v47, %v12270_v4  ;;  %v19207_v47 = vsub.f32 %v19008_v58, %v19033_v3  ;;  %v12288_v58 = vmul.f32 %v19039_v19, %v19039_v19 }
 0xd8e   : > { %v12302_v40 = vadd.f32 %v12301_v27, %v12271_v11  ;;  %v12285_v27 = vmul.f32 %v19201_v10, %v19201_v10  ;;  %v12286_v16 = vmul.f32 %v19207_v47, %v19207_v47 }
 0xd90   : > { %v12303_v49 = vadd.f32 %v12302_v40, %v12272_v21  ;;  %v10462_v40 = vpop.f32.mrf.mxu2 }
 0xd92   : > { %v12304_v36 = vadd.f32 %v12303_v49, %v12273_v13 }
 0xd94   : > { %v12305_v18 = vadd.f32 %v12304_v36, %v12274_v7  ;;  %v12287_v7 = vmul.f32 %v19036_v48, %v19036_v48 }
 0xd96   : > { %v12306_v14 = vadd.f32 %v12305_v18, %v12275_v25  ;;  %v12289_v25 = vmul.f32 %v19042_v60, %v19042_v60 }
 0xd98   : > { %v12307_v30 = vadd.f32 %v12306_v14, %v12276_v8  ;;  %v12290_v8 = vmul.f32 %v19045_v38, %v19045_v38 }
 0xd9a   : > { %v12308_v24 = vadd.f32 %v12307_v30, %v12277_v43 }
 0xd9c   : > { %v12309_v46 = vadd.f32 %v12308_v24, %v12278_v20 }
 0xd9e   : > { %v12310_v61 = vadd.f32 %v12309_v46, %v12279_v50 }
 0xda0   : > { %v12311_v56 = vadd.f32 %v12310_v61, %v12280_v39 }
 0xda1   : > { %v11992_v52 = vpop.f32.mrf.mxu1 }
 0xda2   : > { %v12312_v22 = vadd.f32 %v12311_v56, %v12281_v2 }
 0xda4   : > { %v12313_v4 = vadd.f32 %v12312_v22, %v12282_v45 }
 0xda6   : > { %v12314_v11 = vadd.f32 %v12313_v4, %v12283_v17  ;;  %v12188_v4 = vld [vmem:[%s16551_s30 + $0xf8] sm:$0xff] }
 0xda8   : > { %v12315_v21 = vadd.f32 %v12314_v11, %v12284_v62 }
 0xda9   : > { %v11994_v49 = vpop.f32.mrf.mxu1 }
 0xdaa   : > { %v12316_v13 = vadd.f32 %v12315_v21, %v12285_v27  ;;  %v12158_v49 = vld [vmem:[%s16551_s30 + $0x8] sm:$0xff] }
 0xdac   : > { %v12317_v36 = vadd.f32 %v12316_v13, %v12286_v16  ;;  %v12157_v13 = vld [vmem:[%s16551_s30] sm:$0xff] }
 0xdae   : > { %v12318_v3 = vadd.f32 %v12317_v36, %v12287_v7  ;;  %v12160_v36 = vld [vmem:[%s16551_s30 + $0x18] sm:$0xff] }
 0xdb0   : > { %v12319_v18 = vadd.f32 %v12318_v3, %v12288_v58  ;;  %v12161_v58 = vld [vmem:[%s16551_s30 + $0x20] sm:$0xff]  ;;  %v12162_v3 = vld [vmem:[%s16551_s30 + $0x28] sm:$0xff] }
 0xdb2   : > { %v12320_v14 = vadd.f32 %v12319_v18, %v12289_v25 }
 0xdb4   : > { %v12321_v43 = vadd.f32 %v12320_v14, %v12290_v8  ;;  %v12163_v8 = vld [vmem:[%s16551_s30 + $0x30] sm:$0xff] }
 0xdb6   : > { %v12322_v30 = vrot.slane %v12321_v43, 4 }
 0xdb8   : > { %v12323_v20 = vadd.f32 %v12322_v30, %v12321_v43  ;;  %v12164_v43 = vld [vmem:[%s16551_s30 + $0x38] sm:$0xff] }
 0xdba   : > { %v12324_v24 = vrot.slane %v12323_v20, 2 }
 0xdbc   : > { %v12325_v50 = vadd.f32 %v12324_v24, %v12323_v20 }
 0xdbe   : > { %v12326_v46 = vrot.slane %v12325_v50, 1 }
 0xdc0   : > { %v12327_v39 = vadd.f32 %v12326_v46, %v12325_v50  ;;  %v12166_v50 = vld [vmem:[%s16551_s30 + $0x48] sm:$0xff] }
 0xdc2   : > { %v12328_v61 = vmul.f32 0.00390625, %v12327_v39 }
 0xdc4   : > { %v12329_v2 = vadd.f32 1e-05, %v12328_v61 }
 0xdc6   : > { %16256 = vrsqrt.f32 %v12329_v2  ;;  %vm12336_vm10 = vweird.f32 %v12329_v2 }
 0xdcc   : > { %v16257_v56 = vpop.eup %16256 }
 0xdcd   : > { %v12331_v0 = vmul.f32 %v16257_v56, %v12329_v2  ;;  %vm12337_vm9 = vweird.f32 %v16257_v56 }
 0xdce   : > { %vm12338_vm11 = vmor %vm12336_vm10, %vm12337_vm9 }
 0xdcf   : > { %v12332_v45 = vmul.f32 %v16257_v56, %v12331_v0 }
 0xdd1   : > { %v12333_v22 = vmul.f32 0.5, %v12332_v45 }
 0xdd3   : > { %v12334_v52 = vsub.f32 1.5, %v12333_v22 }
 0xdd5   : > { %v12335_v17 = vmul.f32 %v16257_v56, %v12334_v52 }
 0xdd7   : > { %v19224_v62 = vsel %vm12338_vm11, %v16257_v56, %v12335_v17 }
 0xdd8   : > { %v12371_v11 = vmul.f32 %v19224_v62, %v19045_v38  ;;  %v12340_v21 = vmul.f32 %v19224_v62, %v19049_v6  ;;  %v12341_v40 = vmul.f32 %v19224_v62, %v19053_v44  ;;  %v12342_v16 = vmul.f32 %v19224_v62, %v19057_v1  ;;  %v12159_v38 = vld [vmem:[%s16551_s30 + $0x10] sm:$0xff] }
 0xdd9   : > { %v12343_v7 = vmul.f32 %v19224_v62, %v19065_v23  ;;  %v12344_v6 = vmul.f32 %v19224_v62, %v19069_v31  ;;  %v12345_v44 = vmul.f32 %v19224_v62, %v19075_v5  ;;  %v12346_v1 = vmul.f32 %v19224_v62, %v19081_v26  ;;  %v12165_v26 = vld [vmem:[%s16551_s30 + $0x40] sm:$0xff] }
 0xdda   : > { %v12403_v27 = vadd.f32 %v12371_v11, %v12188_v4  ;;  %v12372_v25 = vadd.f32 %v12340_v21, %v12157_v13  ;;  %v12373_v18 = vadd.f32 %v12341_v40, %v12158_v49  ;;  %v12374_v23 = vadd.f32 %v12342_v16, %v12159_v38 }
 0xddb   : > { %v12347_v14 = vmul.f32 %v19224_v62, %v19087_v33  ;;  %v12375_v31 = vadd.f32 %v12343_v7, %v12160_v36  ;;  %v12348_v5 = vmul.f32 %v19224_v62, %v19093_v9  ;;  %v12376_v30 = vadd.f32 %v12344_v6, %v12161_v58  ;;  %v12167_v9 = vld [vmem:[%s16551_s30 + $0x50] sm:$0xff] }
 0xddc   : > { %12435 = vst [vmem:[%s19230_s18 + $0xf8] sm:$0xff] %v12403_v27  ;;  %v12349_v20 = vmul.f32 %v19224_v62, %v19099_v41  ;;  %v12377_v24 = vadd.f32 %v12345_v44, %v12162_v3  ;;  %v12350_v33 = vmul.f32 %v19224_v62, %v19105_v51  ;;  %v12378_v46 = vadd.f32 %v12346_v1, %v12163_v8  ;;  %v12168_v41 = vld [vmem:[%s16551_s30 + $0x58] sm:$0xff]  ;;  %v12169_v51 = vld [vmem:[%s16551_s30 + $0x60] sm:$0xff] }
 0xddd   : > { %12404 = vst [vmem:[%s19230_s18] sm:$0xff] %v12372_v25  ;;  %v12351_v39 = vmul.f32 %v19224_v62, %v19111_v35  ;;  %v12379_v61 = vadd.f32 %v12347_v14, %v12164_v43  ;;  %v12352_v2 = vmul.f32 %v19224_v62, %v19117_v59  ;;  %v12380_v56 = vadd.f32 %v12348_v5, %v12165_v26  ;;  %v12170_v35 = vld [vmem:[%s16551_s30 + $0x68] sm:$0xff]  ;;  %v12171_v59 = vld [vmem:[%s16551_s30 + $0x70] sm:$0xff] }
 0xdde   : > { %12405 = vst [vmem:[%s19230_s18 + $0x8] sm:$0xff] %v12373_v18  ;;  %v12353_v0 = vmul.f32 %v19224_v62, %v19123_v34  ;;  %v12381_v45 = vadd.f32 %v12349_v20, %v12166_v50  ;;  %v12354_v22 = vmul.f32 %v19224_v62, %v19129_v15  ;;  %v12382_v52 = vadd.f32 %v12350_v33, %v12167_v9  ;;  %v12172_v34 = vld [vmem:[%s16551_s30 + $0x78] sm:$0xff]  ;;  %v12173_v15 = vld [vmem:[%s16551_s30 + $0x80] sm:$0xff] }
 0xddf   : > { %12406 = vst [vmem:[%s19230_s18 + $0x10] sm:$0xff] %v12374_v23  ;;  %v12355_v17 = vmul.f32 %v19224_v62, %v19135_v32  ;;  %v12383_v4 = vadd.f32 %v12351_v39, %v12168_v41  ;;  %v12356_v11 = vmul.f32 %v19224_v62, %v19141_v57  ;;  %v12384_v27 = vadd.f32 %v12352_v2, %v12169_v51  ;;  %v12174_v32 = vld [vmem:[%s16551_s30 + $0x88] sm:$0xff]  ;;  %v12175_v57 = vld [vmem:[%s16551_s30 + $0x90] sm:$0xff] }
 0xde0   : > { %12407 = vst [vmem:[%s19230_s18 + $0x18] sm:$0xff] %v12375_v31  ;;  %v12357_v21 = vmul.f32 %v19224_v62, %v19147_v28  ;;  %v12385_v40 = vadd.f32 %v12353_v0, %v12170_v35  ;;  %v12358_v16 = vmul.f32 %v19224_v62, %v19153_v42  ;;  %v12386_v13 = vadd.f32 %v12354_v22, %v12171_v59  ;;  %v12176_v28 = vld [vmem:[%s16551_s30 + $0x98] sm:$0xff]  ;;  %v12177_v42 = vld [vmem:[%s16551_s30 + $0xa0] sm:$0xff] }
 0xde1   : > { %12408 = vst [vmem:[%s19230_s18 + $0x20] sm:$0xff] %v12376_v30  ;;  %v12359_v49 = vmul.f32 %v19224_v62, %v19159_v37  ;;  %v12387_v38 = vadd.f32 %v12355_v17, %v12172_v34  ;;  %v12360_v7 = vmul.f32 %v19224_v62, %v19165_v29  ;;  %v12388_v36 = vadd.f32 %v12356_v11, %v12173_v15  ;;  %v12178_v37 = vld [vmem:[%s16551_s30 + $0xa8] sm:$0xff]  ;;  %v12179_v29 = vld [vmem:[%s16551_s30 + $0xb0] sm:$0xff] }
 0xde2   : > { %12409 = vst [vmem:[%s19230_s18 + $0x28] sm:$0xff] %v12377_v24  ;;  %v12361_v6 = vmul.f32 %v19224_v62, %v19171_v55  ;;  %v12389_v58 = vadd.f32 %v12357_v21, %v12174_v32  ;;  %v12362_v44 = vmul.f32 %v19224_v62, %v19177_v12  ;;  %v12390_v3 = vadd.f32 %v12358_v16, %v12175_v57  ;;  %v12180_v55 = vld [vmem:[%s16551_s30 + $0xb8] sm:$0xff]  ;;  %v12181_v12 = vld [vmem:[%s16551_s30 + $0xc0] sm:$0xff] }
 0xde3   : > { %12410 = vst [vmem:[%s19230_s18 + $0x30] sm:$0xff] %v12378_v46  ;;  %v12363_v1 = vmul.f32 %v19224_v62, %v19183_v54  ;;  %v12391_v25 = vadd.f32 %v12359_v49, %v12176_v28  ;;  %v12364_v18 = vmul.f32 %v19224_v62, %v19189_v63  ;;  %v12392_v23 = vadd.f32 %v12360_v7, %v12177_v42  ;;  %v12182_v54 = vld [vmem:[%s16551_s30 + $0xc8] sm:$0xff]  ;;  %v12183_v63 = vld [vmem:[%s16551_s30 + $0xd0] sm:$0xff] }
 0xde4   : > { %12411 = vst [vmem:[%s19230_s18 + $0x38] sm:$0xff] %v12379_v61  ;;  %v12365_v8 = vmul.f32 %v19224_v62, %v19195_v53  ;;  %v12393_v14 = vadd.f32 %v12361_v6, %v12178_v37  ;;  %v12366_v31 = vmul.f32 %v19224_v62, %v19201_v10  ;;  %v12394_v43 = vadd.f32 %v12362_v44, %v12179_v29  ;;  %v12184_v53 = vld [vmem:[%s16551_s30 + $0xd8] sm:$0xff]  ;;  %v12185_v10 = vld [vmem:[%s16551_s30 + $0xe0] sm:$0xff]  ;;  %v12187_v46 = vld [vmem:[%s16551_s30 + $0xf0] sm:$0xff] }
 0xde5   : > { %12412 = vst [vmem:[%s19230_s18 + $0x40] sm:$0xff] %v12380_v56  ;;  %v12367_v5 = vmul.f32 %v19224_v62, %v19207_v47  ;;  %v12395_v30 = vadd.f32 %v12363_v1, %v12180_v55  ;;  %v12368_v26 = vmul.f32 %v19224_v62, %v19036_v48  ;;  %v12396_v20 = vadd.f32 %v12364_v18, %v12181_v12  ;;  %v12186_v47 = vld [vmem:[%s16551_s30 + $0xe8] sm:$0xff] }
 0xde6   : > { %12413 = vst [vmem:[%s19230_s18 + $0x48] sm:$0xff] %v12381_v45  ;;  %v12369_v24 = vmul.f32 %v19224_v62, %v19039_v19  ;;  %v12397_v50 = vadd.f32 %v12365_v8, %v12182_v54  ;;  %v12370_v48 = vmul.f32 %v19224_v62, %v19042_v60  ;;  %v12398_v33 = vadd.f32 %v12366_v31, %v12183_v63 }
 0xde7   : > { %12414 = vst [vmem:[%s19230_s18 + $0x50] sm:$0xff] %v12382_v52  ;;  %v12399_v19 = vadd.f32 %v12367_v5, %v12184_v53  ;;  %v12400_v9 = vadd.f32 %v12368_v26, %v12185_v10 }
 0xde8   : > { %12415 = vst [vmem:[%s19230_s18 + $0x58] sm:$0xff] %v12383_v4  ;;  %v12401_v39 = vadd.f32 %v12369_v24, %v12186_v47  ;;  %v12402_v61 = vadd.f32 %v12370_v48, %v12187_v46 }
 0xde9   : > { %12416 = vst [vmem:[%s19230_s18 + $0x60] sm:$0xff] %v12384_v27 }
 0xdea   : > { %12417 = vst [vmem:[%s19230_s18 + $0x68] sm:$0xff] %v12385_v40 }
 0xdeb   : > { %12418 = vst [vmem:[%s19230_s18 + $0x70] sm:$0xff] %v12386_v13 }
 0xdec   : > { %12419 = vst [vmem:[%s19230_s18 + $0x78] sm:$0xff] %v12387_v38 }
 0xded   : > { %12420 = vst [vmem:[%s19230_s18 + $0x80] sm:$0xff] %v12388_v36 }
 0xdee   : > { %12421 = vst [vmem:[%s19230_s18 + $0x88] sm:$0xff] %v12389_v58 }
 0xdef   : > { %12422 = vst [vmem:[%s19230_s18 + $0x90] sm:$0xff] %v12390_v3 }
 0xdf0   : > { %12423 = vst [vmem:[%s19230_s18 + $0x98] sm:$0xff] %v12391_v25 }
 0xdf1   : > { %12424 = vst [vmem:[%s19230_s18 + $0xa0] sm:$0xff] %v12392_v23 }
 0xdf2   : > { %12425 = vst [vmem:[%s19230_s18 + $0xa8] sm:$0xff] %v12393_v14 }
 0xdf3   : > { %12426 = vst [vmem:[%s19230_s18 + $0xb0] sm:$0xff] %v12394_v43 }
 0xdf4   : > { %12427 = vst [vmem:[%s19230_s18 + $0xb8] sm:$0xff] %v12395_v30 }
 0xdf5   : > { %12428 = vst [vmem:[%s19230_s18 + $0xc0] sm:$0xff] %v12396_v20 }
 0xdf6   : > { %12429 = vst [vmem:[%s19230_s18 + $0xc8] sm:$0xff] %v12397_v50 }
 0xdf7   : > { %12430 = vst [vmem:[%s19230_s18 + $0xd0] sm:$0xff] %v12398_v33 }
 0xdf8   : > { %12431 = vst [vmem:[%s19230_s18 + $0xd8] sm:$0xff] %v12399_v19 }
 0xdf9   : > { %12432 = vst [vmem:[%s19230_s18 + $0xe0] sm:$0xff] %v12400_v9 }
 0xdfa   : > { %12433 = vst [vmem:[%s19230_s18 + $0xe8] sm:$0xff] %v12401_v39 }
 0xdfb   : > { %12434 = vst [vmem:[%s19230_s18 + $0xf0] sm:$0xff] %v12402_v61 }
 0xdfc   : > { %16375 = shalt.err (!%p16372_p10)
}
 0xdfd   : > { %s16427_s22 = smov 128   ;;  %s16428_s24 = smov 8  }
 0xdfe   : > { %16190 = dma.vmem_to_hbm [thread:$0]  (%p16515_p3), %s12450_s28, 4096, %s12452_s29, %s12437_s4, %s16427_s22, %s16427_s22, %s16428_s24  }
 0xdff PF: > { %s12466_s25 = sand.u32 1, %s16406_s12   ;;  %p19753_p12 = scmp.ge.s32.totalorder %s16418_s15, 2 }
 0xe00   : > { %s12467_s30 = scalar_lea.sflag [#allocation6], %s12466_s25 }
 0xe01   : > { %p16204_p13 = pnand %p19753_p12, %p16484_p6 }
 0xe03   : > { %p16205_p0 = pneg %p16204_p13 }
 0xe05   : > { %16401 = dma.done.wait (%p16205_p0), %s12467_s30, 4096  }
 0xe06   : > { %16403 = vsyncadd (%p16205_p0), %s12467_s30, 4294963200  ;;  %p17_p5 = scmp.ge.s32.totalorder %s16505_s6, 4   ;;  %s19754_s12 = smov %s16410_s13 }
 0xe07   : > { %s19755_s13 = smov %s16414_s14  ;;  %s19756_s14 = smov %s16521_s10 }
 0xe08   : > { %s19757_s15 = smov %s16505_s6  ;;  %19 = sbr.rel (!%p17_p5) target bundleno = 6 (0x6), region = 89 }
 0xe0d   :  { %12473 = vsyncpa [#allocation5], 1 }
 0xe0e   :  { %12475 = vsyncpa [#allocation5 + $0x1], 1 }
 0xe0f   :  { %12476 = vsyncpa [#allocation8], 1 }
 0xe10   :  { %12477 = vsyncpa [#allocation6], 1 }
 0xe11   :  { %12479 = vsyncpa [#allocation6 + $0x1], 1 }

</bundles_post_ra>
